<compile_context>
chip_gen: v6e
topology: v6e:2x2x1
jax: 0.10.0
libtpu: 0.0.40
codegen_flags: <defaults>
</compile_context>

<pallas_src>
import functools

import jax
import jax.numpy as jnp
from jax.experimental import pallas as pl
from jax.experimental.pallas import tpu as pltpu

EPS = 1e-5
NEG_SLOPE = 0.1
NC_PAD = 128  # fc2 output padded to a full lane width


# ---------------------------------------------------------------------------
# In-kernel fused conv stage
# ---------------------------------------------------------------------------
def _conv_bn_lrelu_pool(xp, w_ref, s_ref, xnext, patch, *, k, Ho, Wo, cin):
    """k x k valid conv over the zero-padded activation `xp` (+ folded BN/bias),
    LeakyReLU(0.1), then 2x2 stride-2 max-pool.

    Pooled rows are written into `xnext`'s interior (offset (1, 1)); `xnext`'s
    border was pre-zeroed, so it is already the padded input of the next stage.
    `patch` is a (Wo, k*k*cin) VMEM scratch used as an im2col row buffer.
    """
    Wh = Wo // 2
    shift = s_ref[...]                                          # (1, cout) f32

    # 0/1 selection matrices picking even / odd output columns: stride-free
    # horizontal max-pool via two tiny matmuls (exact, since each row selects
    # exactly one element).
    rows = jax.lax.broadcasted_iota(jnp.int32, (Wh, Wo), 0)
    cols = jax.lax.broadcasted_iota(jnp.int32, (Wh, Wo), 1)
    sel_even = (cols == 2 * rows).astype(jnp.float32)
    sel_odd = (cols == 2 * rows + 1).astype(jnp.float32)

    def conv_row(h):
        # Build the im2col row patch (Wo, k*k*cin) straight from VMEM.
        for i in range(k):
            for j in range(k):
                c0 = (i * k + j) * cin
                patch[:, c0:c0 + cin] = xp[h + i, j:j + Wo, :]
        y = jnp.dot(patch[...].astype(jnp.bfloat16), w_ref[...],
                    preferred_element_type=jnp.float32)
        y = y + shift                                           # folded BN + bias
        return jnp.where(y >= 0, y, NEG_SLOPE * y)              # (Wo, cout) f32

    def body(r, carry):
        # Vertical 2-max over the two conv rows feeding pooled row r.
        v = jnp.maximum(conv_row(2 * r), conv_row(2 * r + 1))   # (Wo, cout)
        # Horizontal 2-max via the selection matmuls.
        pooled = jnp.maximum(
            jnp.dot(sel_even, v, preferred_element_type=jnp.float32),
            jnp.dot(sel_odd, v, preferred_element_type=jnp.float32))  # (Wh, cout)
        xnext[1 + r, 1:1 + Wh, :] = pooled
        return carry

    jax.lax.fori_loop(0, Ho // 2, body, 0)


# ---------------------------------------------------------------------------
# Whole-network kernel (one grid step == one image)
# ---------------------------------------------------------------------------
def _cnn_kernel(x_ref,
                w1, s1, w2, s2, w3, s3, w4, s4, wf1, sf1, wf2, bf2,
                o_ref,
                xp1, xp2, xp3, xp4, feat_ref,
                patch1, patch2, patch3, patch4):
    # Zero the padded activation scratches (their borders implement padding=1).
    xp1[...] = jnp.zeros_like(xp1)
    xp2[...] = jnp.zeros_like(xp2)
    xp3[...] = jnp.zeros_like(xp3)
    xp4[...] = jnp.zeros_like(xp4)

    # Load this image into the interior of the first padded buffer.
    xp1[1:29, 1:29, :] = x_ref[0]                               # (28, 28, 1)

    # conv1..conv4, each fused with its BN, LeakyReLU and 2x2 max-pool.
    _conv_bn_lrelu_pool(xp1, w1, s1, xp2, patch1, k=3, Ho=28, Wo=28, cin=1)
    _conv_bn_lrelu_pool(xp2, w2, s2, xp3, patch2, k=3, Ho=14, Wo=14, cin=32)
    _conv_bn_lrelu_pool(xp3, w3, s3, xp4, patch3, k=6, Ho=4, Wo=4, cin=64)
    _conv_bn_lrelu_pool(xp4, w4, s4, feat_ref, patch4, k=3, Ho=2, Wo=2, cin=128)

    # Flatten (spatial is 1x1 here, so NHWC flatten == PyTorch's NCHW flatten).
    feat = feat_ref[1, 1:2, :]                                  # (1, 256) f32

    # fc1 + folded BatchNorm1d + LeakyReLU
    h1 = jnp.dot(feat.astype(jnp.bfloat16), wf1[...],
                 preferred_element_type=jnp.float32) + sf1[...]
    h1 = jnp.where(h1 >= 0, h1, NEG_SLOPE * h1)
    # TODO(synk): Dropout(0.5) is identity in eval mode; training-mode RNG
    # dropout (pltpu.prng_*) not implemented.

    # fc2 (padded to 128 output lanes for a lane-dense store)
    logits = jnp.dot(h1.astype(jnp.bfloat16), wf2[...],
                     preferred_element_type=jnp.float32) + bf2[...]
    o_ref[0] = logits                                           # (1, NC_PAD)


# ---------------------------------------------------------------------------
# Host-side glue: parameter init, BN/bias folding, forward wrapper
# ---------------------------------------------------------------------------
def init_params(key, num_classes):
    """Random parameters mirroring a freshly constructed (untrained) OptimizedCNN."""
    params = {}
    convs = [(32, 1, 3), (64, 32, 3), (128, 64, 6), (256, 128, 3)]
    keys = jax.random.split(key, 6)
    for idx, (co, ci, kk) in enumerate(convs, 1):
        k1, k2, k3, k4 = jax.random.split(keys[idx - 1], 4)
        params[f"conv{idx}_w"] = 0.05 * jax.random.normal(k1, (co, ci, kk, kk), jnp.float32)
        params[f"conv{idx}_b"] = 0.05 * jax.random.normal(k2, (co,), jnp.float32)
        params[f"bn{idx}_gamma"] = 1.0 + 0.1 * jax.random.normal(k3, (co,), jnp.float32)
        params[f"bn{idx}_beta"] = 0.1 * jax.random.normal(k4, (co,), jnp.float32)
        params[f"bn{idx}_mean"] = jnp.zeros((co,), jnp.float32)   # fresh running stats
        params[f"bn{idx}_var"] = jnp.ones((co,), jnp.float32)

    k1, k2, k3, k4 = jax.random.split(keys[4], 4)
    params["fc1_w"] = 0.05 * jax.random.normal(k1, (128, 256), jnp.float32)  # (out, in)
    params["fc1_b"] = 0.05 * jax.random.normal(k2, (128,), jnp.float32)
    params["bnfc_gamma"] = 1.0 + 0.1 * jax.random.normal(k3, (128,), jnp.float32)
    params["bnfc_beta"] = 0.1 * jax.random.normal(k4, (128,), jnp.float32)
    params["bnfc_mean"] = jnp.zeros((128,), jnp.float32)
    params["bnfc_var"] = jnp.ones((128,), jnp.float32)

    k1, k2 = jax.random.split(keys[5], 2)
    params["fc2_w"] = 0.05 * jax.random.normal(k1, (num_classes, 128), jnp.float32)
    params["fc2_b"] = 0.05 * jax.random.normal(k2, (num_classes,), jnp.float32)
    return params


def fold_params(params, num_classes):
    """Once-per-model host prep: fold eval-mode BatchNorm + biases into the
    weights, reorder conv weights to the in-kernel im2col layout ((i, j, cin)
    rows), pre-transpose FC weights, pad fc2 to 128 lanes, cast MXU operands
    to bf16 (shifts stay f32)."""
    assert num_classes <= NC_PAD

    def bn_scale_shift(prefix):
        scale = params[f"{prefix}_gamma"] / jnp.sqrt(params[f"{prefix}_var"] + EPS)
        shift = params[f"{prefix}_beta"] - scale * params[f"{prefix}_mean"]
        return scale, shift

    folded = []
    for idx in (1, 2, 3, 4):
        w = params[f"conv{idx}_w"]                       # (O, I, kh, kw)
        b = params[f"conv{idx}_b"]
        scale, shift = bn_scale_shift(f"bn{idx}")
        O, I, kh, kw = w.shape
        w2d = jnp.transpose(w, (2, 3, 1, 0)).reshape(kh * kw * I, O)
        folded.append((w2d * scale[None, :]).astype(jnp.bfloat16))
        folded.append((b * scale + shift).reshape(1, O).astype(jnp.float32))

    scale, shift = bn_scale_shift("bnfc")
    wf1 = (params["fc1_w"].T * scale[None, :]).astype(jnp.bfloat16)      # (256, 128)
    sf1 = (params["fc1_b"] * scale + shift).reshape(1, 128).astype(jnp.float32)
    folded += [wf1, sf1]

    nc = num_classes
    wf2 = jnp.zeros((128, NC_PAD), jnp.float32).at[:, :nc].set(params["fc2_w"].T)
    bf2 = jnp.zeros((1, NC_PAD), jnp.float32).at[0, :nc].set(params["fc2_b"])
    folded += [wf2.astype(jnp.bfloat16), bf2]
    return tuple(folded)


def forward(folded, x_nchw, num_classes):
    """Eval-mode forward of OptimizedCNN. x_nchw: (N, 1, 28, 28) float32."""
    N, C, H, W = x_nchw.shape
    assert (C, H, W) == (1, 28, 28), "OptimizedCNN requires (N, 1, 28, 28) input"
    # NCHW -> NHWC is a pure reshape because C == 1.
    x = x_nchw.reshape(N, 28, 28, 1).astype(jnp.float32)

    const2d = lambda n: (0, 0)
    out = pl.pallas_call(
        _cnn_kernel,
        out_shape=jax.ShapeDtypeStruct((N, 1, NC_PAD), jnp.float32),
        grid=(N,),
        in_specs=[pl.BlockSpec((1, 28, 28, 1), lambda n: (n, 0, 0, 0))]
                 + [pl.BlockSpec(a.shape, const2d) for a in folded],
        out_specs=pl.BlockSpec((1, 1, NC_PAD), lambda n: (n, 0, 0)),
        scratch_shapes=[
            pltpu.VMEM((30, 30, 1), jnp.float32),    # padded input (conv1)
            pltpu.VMEM((16, 16, 32), jnp.float32),   # padded pool1 output
            pltpu.VMEM((9, 9, 64), jnp.float32),     # padded pool2 output
            pltpu.VMEM((4, 4, 128), jnp.float32),    # padded pool3 output
            pltpu.VMEM((2, 2, 256), jnp.float32),    # pool4 output (1x1x256)
            pltpu.VMEM((28, 9), jnp.float32),        # im2col row buffers
            pltpu.VMEM((14, 288), jnp.float32),
            pltpu.VMEM((4, 2304), jnp.float32),
            pltpu.VMEM((2, 1152), jnp.float32),
        ],
        compiler_params=pltpu.CompilerParams(
            dimension_semantics=("parallel",)),      # one image per TC on v7x
    )(x, *folded)
    return out.reshape(N, NC_PAD)[:, :num_classes]


if __name__ == "__main__":
    num_classes = 10
    key = jax.random.PRNGKey(0)
    pkey, xkey = jax.random.split(key)

    params = init_params(pkey, num_classes)
    folded = fold_params(params, num_classes)

    # Architecture implies 28x28 single-channel input (flatten -> 256 features).
    x = jax.random.normal(xkey, (2, 1, 28, 28), jnp.float32)

    fwd = jax.jit(functools.partial(forward, num_classes=num_classes))
    logits = fwd(folded, x)
    jax.block_until_ready(logits)
    assert logits.shape == (2, num_classes), logits.shape
    print("KERNEL_OK")
</pallas_src>

<mosaic_0001>
module attributes {stable_mosaic.version = 11 : i64} {
  func.func @_cnn_kernel(%arg0: i32, %arg1: memref<1x28x28x1xf32, #tpu.memory_space<vmem>>, %arg2: memref<9x32xbf16, #tpu.memory_space<vmem>>, %arg3: memref<1x32xf32, #tpu.memory_space<vmem>>, %arg4: memref<288x64xbf16, #tpu.memory_space<vmem>>, %arg5: memref<1x64xf32, #tpu.memory_space<vmem>>, %arg6: memref<2304x128xbf16, #tpu.memory_space<vmem>>, %arg7: memref<1x128xf32, #tpu.memory_space<vmem>>, %arg8: memref<1152x256xbf16, #tpu.memory_space<vmem>>, %arg9: memref<1x256xf32, #tpu.memory_space<vmem>>, %arg10: memref<256x128xbf16, #tpu.memory_space<vmem>>, %arg11: memref<1x128xf32, #tpu.memory_space<vmem>>, %arg12: memref<128x128xbf16, #tpu.memory_space<vmem>>, %arg13: memref<1x128xf32, #tpu.memory_space<vmem>>, %arg14: memref<1x1x128xf32, #tpu.memory_space<vmem>>, %arg15: memref<30x30x1xf32, #tpu.memory_space<vmem>>, %arg16: memref<16x16x32xf32, #tpu.memory_space<vmem>>, %arg17: memref<9x9x64xf32, #tpu.memory_space<vmem>>, %arg18: memref<4x4x128xf32, #tpu.memory_space<vmem>>, %arg19: memref<2x2x256xf32, #tpu.memory_space<vmem>>, %arg20: memref<28x9xf32, #tpu.memory_space<vmem>>, %arg21: memref<14x288xf32, #tpu.memory_space<vmem>>, %arg22: memref<4x2304xf32, #tpu.memory_space<vmem>>, %arg23: memref<2x1152xf32, #tpu.memory_space<vmem>>) attributes {dimension_semantics = [#tpu.dimension_semantics<parallel>], iteration_bounds = array<i64: 2>, scalar_prefetch = 0 : i64, scratch_operands = 9 : i64, tpu.core_type = #tpu.core_type<tc>, window_params = [{transform_indices = @transform_0, window_bounds = array<i64: 1, 28, 28, 1>}, {pipeline_mode = #tpu.pipeline_mode<synchronous>, transform_indices = @transform_1, window_bounds = array<i64: 9, 32>}, {pipeline_mode = #tpu.pipeline_mode<synchronous>, transform_indices = @transform_2, window_bounds = array<i64: 1, 32>}, {pipeline_mode = #tpu.pipeline_mode<synchronous>, transform_indices = @transform_3, window_bounds = array<i64: 288, 64>}, {pipeline_mode = #tpu.pipeline_mode<synchronous>, transform_indices = @transform_4, window_bounds = array<i64: 1, 64>}, {pipeline_mode = #tpu.pipeline_mode<synchronous>, transform_indices = @transform_5, window_bounds = array<i64: 2304, 128>}, {pipeline_mode = #tpu.pipeline_mode<synchronous>, transform_indices = @transform_6, window_bounds = array<i64: 1, 128>}, {pipeline_mode = #tpu.pipeline_mode<synchronous>, transform_indices = @transform_7, window_bounds = array<i64: 1152, 256>}, {pipeline_mode = #tpu.pipeline_mode<synchronous>, transform_indices = @transform_8, window_bounds = array<i64: 1, 256>}, {pipeline_mode = #tpu.pipeline_mode<synchronous>, transform_indices = @transform_9, window_bounds = array<i64: 256, 128>}, {pipeline_mode = #tpu.pipeline_mode<synchronous>, transform_indices = @transform_10, window_bounds = array<i64: 1, 128>}, {pipeline_mode = #tpu.pipeline_mode<synchronous>, transform_indices = @transform_11, window_bounds = array<i64: 128, 128>}, {pipeline_mode = #tpu.pipeline_mode<synchronous>, transform_indices = @transform_12, window_bounds = array<i64: 1, 128>}, {transform_indices = @transform_13, window_bounds = array<i64: 1, 1, 128>}]} {
    %cst = arith.constant 0.000000e+00 : f32
    %0 = vector.broadcast %cst : f32 to vector<30x30x1xf32>
    %c0 = arith.constant 0 : index
    %c0_0 = arith.constant 0 : index
    %c0_1 = arith.constant 0 : index
    %1 = vector.load %arg15[%c0, %c0_0, %c0_1] : memref<30x30x1xf32, #tpu.memory_space<vmem>>, vector<30x30x1xf32>
    tpu.vector_store %arg15[%c0, %c0_0, %c0_1], %0 {strides = array<i32>} : memref<30x30x1xf32, #tpu.memory_space<vmem>>, vector<30x30x1xf32>,
    %cst_2 = arith.constant 0.000000e+00 : f32
    %2 = vector.broadcast %cst_2 : f32 to vector<16x16x32xf32>
    %c0_3 = arith.constant 0 : index
    %c0_4 = arith.constant 0 : index
    %c0_5 = arith.constant 0 : index
    %3 = vector.load %arg16[%c0_3, %c0_4, %c0_5] : memref<16x16x32xf32, #tpu.memory_space<vmem>>, vector<16x16x32xf32>
    tpu.vector_store %arg16[%c0_3, %c0_4, %c0_5], %2 {strides = array<i32>} : memref<16x16x32xf32, #tpu.memory_space<vmem>>, vector<16x16x32xf32>,
    %cst_6 = arith.constant 0.000000e+00 : f32
    %4 = vector.broadcast %cst_6 : f32 to vector<9x9x64xf32>
    %c0_7 = arith.constant 0 : index
    %c0_8 = arith.constant 0 : index
    %c0_9 = arith.constant 0 : index
    %5 = vector.load %arg17[%c0_7, %c0_8, %c0_9] : memref<9x9x64xf32, #tpu.memory_space<vmem>>, vector<9x9x64xf32>
    tpu.vector_store %arg17[%c0_7, %c0_8, %c0_9], %4 {strides = array<i32>} : memref<9x9x64xf32, #tpu.memory_space<vmem>>, vector<9x9x64xf32>,
    %cst_10 = arith.constant 0.000000e+00 : f32
    %6 = vector.broadcast %cst_10 : f32 to vector<4x4x128xf32>
    %c0_11 = arith.constant 0 : index
    %c0_12 = arith.constant 0 : index
    %c0_13 = arith.constant 0 : index
    %7 = vector.load %arg18[%c0_11, %c0_12, %c0_13] : memref<4x4x128xf32, #tpu.memory_space<vmem>>, vector<4x4x128xf32>
    tpu.vector_store %arg18[%c0_11, %c0_12, %c0_13], %6 {strides = array<i32>} : memref<4x4x128xf32, #tpu.memory_space<vmem>>, vector<4x4x128xf32>,
    %c0_14 = arith.constant 0 : index
    %c0_15 = arith.constant 0 : index
    %c0_16 = arith.constant 0 : index
    %c0_17 = arith.constant 0 : index
    %8 = vector.load %arg1[%c0_14, %c0_15, %c0_16, %c0_17] : memref<1x28x28x1xf32, #tpu.memory_space<vmem>>, vector<1x28x28x1xf32>
    %9 = vector.shape_cast %8 : vector<1x28x28x1xf32> to vector<28x28x1xf32>
    %c1 = arith.constant 1 : index
    %c1_18 = arith.constant 1 : index
    %c0_19 = arith.constant 0 : index
    %10 = vector.load %arg15[%c1, %c1_18, %c0_19] : memref<30x30x1xf32, #tpu.memory_space<vmem>>, vector<28x28x1xf32>
    tpu.vector_store %arg15[%c1, %c1_18, %c0_19], %9 {strides = array<i32>} : memref<30x30x1xf32, #tpu.memory_space<vmem>>, vector<28x28x1xf32>,
    %c0_20 = arith.constant 0 : index
    %c0_21 = arith.constant 0 : index
    %11 = vector.load %arg3[%c0_20, %c0_21] : memref<1x32xf32, #tpu.memory_space<vmem>>, vector<1x32xf32>
    %12 = tpu.iota {dimensions = array<i32: 0>} : vector<14x28xi32>
    %13 = tpu.iota {dimensions = array<i32: 1>} : vector<14x28xi32>
    %c2_i32 = arith.constant 2 : i32
    %14 = vector.broadcast %c2_i32 : i32 to vector<14x28xi32>
    %15 = arith.muli %14, %12 : vector<14x28xi32>
    %16 = arith.cmpi eq, %13, %15 : vector<14x28xi32>
    %17 = arith.extui %16 : vector<14x28xi1> to vector<14x28xi32>
    %18 = arith.sitofp %17 : vector<14x28xi32> to vector<14x28xf32>
    %c2_i32_22 = arith.constant 2 : i32
    %19 = vector.broadcast %c2_i32_22 : i32 to vector<14x28xi32>
    %20 = arith.muli %19, %12 : vector<14x28xi32>
    %c1_i32 = arith.constant 1 : i32
    %21 = vector.broadcast %c1_i32 : i32 to vector<14x28xi32>
    %22 = arith.addi %20, %21 : vector<14x28xi32>
    %23 = arith.cmpi eq, %13, %22 : vector<14x28xi32>
    %24 = arith.extui %23 : vector<14x28xi1> to vector<14x28xi32>
    %25 = arith.sitofp %24 : vector<14x28xi32> to vector<14x28xf32>
    %c0_i32 = arith.constant 0 : i32
    %c14_i32 = arith.constant 14 : i32
    %26 = arith.addi %c0_i32, %c14_i32 : i32
    %c1_i32_23 = arith.constant 1 : i32
    scf.for %arg24 = %c0_i32 to %26 step %c1_i32_23  : i32 {
      %c2_i32_170 = arith.constant 2 : i32
      %218 = arith.muli %c2_i32_170, %arg24 : i32
      %c0_i32_171 = arith.constant 0 : i32
      %219 = arith.addi %218, %c0_i32_171 : i32
      %220 = arith.index_cast %219 : i32 to index
      %c0_172 = arith.constant 0 : index
      %c0_173 = arith.constant 0 : index
      %221 = vector.load %arg15[%220, %c0_172, %c0_173] : memref<30x30x1xf32, #tpu.memory_space<vmem>>, vector<1x28x1xf32>
      %222 = vector.shape_cast %221 : vector<1x28x1xf32> to vector<28x1xf32>
      %c0_174 = arith.constant 0 : index
      %c0_175 = arith.constant 0 : index
      %223 = vector.load %arg20[%c0_174, %c0_175] : memref<28x9xf32, #tpu.memory_space<vmem>>, vector<28x1xf32>
      tpu.vector_store %arg20[%c0_174, %c0_175], %222 {strides = array<i32>} : memref<28x9xf32, #tpu.memory_space<vmem>>, vector<28x1xf32>,
      %c0_i32_176 = arith.constant 0 : i32
      %224 = arith.addi %218, %c0_i32_176 : i32
      %225 = arith.index_cast %224 : i32 to index
      %c1_177 = arith.constant 1 : index
      %c0_178 = arith.constant 0 : index
      %226 = vector.load %arg15[%225, %c1_177, %c0_178] : memref<30x30x1xf32, #tpu.memory_space<vmem>>, vector<1x28x1xf32>
      %227 = vector.shape_cast %226 : vector<1x28x1xf32> to vector<28x1xf32>
      %c0_179 = arith.constant 0 : index
      %c1_180 = arith.constant 1 : index
      %228 = vector.load %arg20[%c0_179, %c1_180] : memref<28x9xf32, #tpu.memory_space<vmem>>, vector<28x1xf32>
      tpu.vector_store %arg20[%c0_179, %c1_180], %227 {strides = array<i32>} : memref<28x9xf32, #tpu.memory_space<vmem>>, vector<28x1xf32>,
      %c0_i32_181 = arith.constant 0 : i32
      %229 = arith.addi %218, %c0_i32_181 : i32
      %230 = arith.index_cast %229 : i32 to index
      %c2_182 = arith.constant 2 : index
      %c0_183 = arith.constant 0 : index
      %231 = vector.load %arg15[%230, %c2_182, %c0_183] : memref<30x30x1xf32, #tpu.memory_space<vmem>>, vector<1x28x1xf32>
      %232 = vector.shape_cast %231 : vector<1x28x1xf32> to vector<28x1xf32>
      %c0_184 = arith.constant 0 : index
      %c2_185 = arith.constant 2 : index
      %233 = vector.load %arg20[%c0_184, %c2_185] : memref<28x9xf32, #tpu.memory_space<vmem>>, vector<28x1xf32>
      tpu.vector_store %arg20[%c0_184, %c2_185], %232 {strides = array<i32>} : memref<28x9xf32, #tpu.memory_space<vmem>>, vector<28x1xf32>,
      %c1_i32_186 = arith.constant 1 : i32
      %234 = arith.addi %218, %c1_i32_186 : i32
      %235 = arith.index_cast %234 : i32 to index
      %c0_187 = arith.constant 0 : index
      %c0_188 = arith.constant 0 : index
      %236 = vector.load %arg15[%235, %c0_187, %c0_188] : memref<30x30x1xf32, #tpu.memory_space<vmem>>, vector<1x28x1xf32>
      %237 = vector.shape_cast %236 : vector<1x28x1xf32> to vector<28x1xf32>
      %c0_189 = arith.constant 0 : index
      %c3 = arith.constant 3 : index
      %238 = vector.load %arg20[%c0_189, %c3] : memref<28x9xf32, #tpu.memory_space<vmem>>, vector<28x1xf32>
      tpu.vector_store %arg20[%c0_189, %c3], %237 {strides = array<i32>} : memref<28x9xf32, #tpu.memory_space<vmem>>, vector<28x1xf32>,
      %c1_i32_190 = arith.constant 1 : i32
      %239 = arith.addi %218, %c1_i32_190 : i32
      %240 = arith.index_cast %239 : i32 to index
      %c1_191 = arith.constant 1 : index
      %c0_192 = arith.constant 0 : index
      %241 = vector.load %arg15[%240, %c1_191, %c0_192] : memref<30x30x1xf32, #tpu.memory_space<vmem>>, vector<1x28x1xf32>
      %242 = vector.shape_cast %241 : vector<1x28x1xf32> to vector<28x1xf32>
      %c0_193 = arith.constant 0 : index
      %c4 = arith.constant 4 : index
      %243 = vector.load %arg20[%c0_193, %c4] : memref<28x9xf32, #tpu.memory_space<vmem>>, vector<28x1xf32>
      tpu.vector_store %arg20[%c0_193, %c4], %242 {strides = array<i32>} : memref<28x9xf32, #tpu.memory_space<vmem>>, vector<28x1xf32>,
      %c1_i32_194 = arith.constant 1 : i32
      %244 = arith.addi %218, %c1_i32_194 : i32
      %245 = arith.index_cast %244 : i32 to index
      %c2_195 = arith.constant 2 : index
      %c0_196 = arith.constant 0 : index
      %246 = vector.load %arg15[%245, %c2_195, %c0_196] : memref<30x30x1xf32, #tpu.memory_space<vmem>>, vector<1x28x1xf32>
      %247 = vector.shape_cast %246 : vector<1x28x1xf32> to vector<28x1xf32>
      %c0_197 = arith.constant 0 : index
      %c5 = arith.constant 5 : index
      %248 = vector.load %arg20[%c0_197, %c5] : memref<28x9xf32, #tpu.memory_space<vmem>>, vector<28x1xf32>
      tpu.vector_store %arg20[%c0_197, %c5], %247 {strides = array<i32>} : memref<28x9xf32, #tpu.memory_space<vmem>>, vector<28x1xf32>,
      %c2_i32_198 = arith.constant 2 : i32
      %249 = arith.addi %218, %c2_i32_198 : i32
      %250 = arith.index_cast %249 : i32 to index
      %c0_199 = arith.constant 0 : index
      %c0_200 = arith.constant 0 : index
      %251 = vector.load %arg15[%250, %c0_199, %c0_200] : memref<30x30x1xf32, #tpu.memory_space<vmem>>, vector<1x28x1xf32>
      %252 = vector.shape_cast %251 : vector<1x28x1xf32> to vector<28x1xf32>
      %c0_201 = arith.constant 0 : index
      %c6 = arith.constant 6 : index
      %253 = vector.load %arg20[%c0_201, %c6] : memref<28x9xf32, #tpu.memory_space<vmem>>, vector<28x1xf32>
      tpu.vector_store %arg20[%c0_201, %c6], %252 {strides = array<i32>} : memref<28x9xf32, #tpu.memory_space<vmem>>, vector<28x1xf32>,
      %c2_i32_202 = arith.constant 2 : i32
      %254 = arith.addi %218, %c2_i32_202 : i32
      %255 = arith.index_cast %254 : i32 to index
      %c1_203 = arith.constant 1 : index
      %c0_204 = arith.constant 0 : index
      %256 = vector.load %arg15[%255, %c1_203, %c0_204] : memref<30x30x1xf32, #tpu.memory_space<vmem>>, vector<1x28x1xf32>
      %257 = vector.shape_cast %256 : vector<1x28x1xf32> to vector<28x1xf32>
      %c0_205 = arith.constant 0 : index
      %c7 = arith.constant 7 : index
      %258 = vector.load %arg20[%c0_205, %c7] : memref<28x9xf32, #tpu.memory_space<vmem>>, vector<28x1xf32>
      tpu.vector_store %arg20[%c0_205, %c7], %257 {strides = array<i32>} : memref<28x9xf32, #tpu.memory_space<vmem>>, vector<28x1xf32>,
      %c2_i32_206 = arith.constant 2 : i32
      %259 = arith.addi %218, %c2_i32_206 : i32
      %260 = arith.index_cast %259 : i32 to index
      %c2_207 = arith.constant 2 : index
      %c0_208 = arith.constant 0 : index
      %261 = vector.load %arg15[%260, %c2_207, %c0_208] : memref<30x30x1xf32, #tpu.memory_space<vmem>>, vector<1x28x1xf32>
      %262 = vector.shape_cast %261 : vector<1x28x1xf32> to vector<28x1xf32>
      %c0_209 = arith.constant 0 : index
      %c8 = arith.constant 8 : index
      %263 = vector.load %arg20[%c0_209, %c8] : memref<28x9xf32, #tpu.memory_space<vmem>>, vector<28x1xf32>
      tpu.vector_store %arg20[%c0_209, %c8], %262 {strides = array<i32>} : memref<28x9xf32, #tpu.memory_space<vmem>>, vector<28x1xf32>,
      %c0_210 = arith.constant 0 : index
      %c0_211 = arith.constant 0 : index
      %264 = vector.load %arg20[%c0_210, %c0_211] : memref<28x9xf32, #tpu.memory_space<vmem>>, vector<28x9xf32>
      %265 = arith.truncf %264 : vector<28x9xf32> to vector<28x9xbf16>
      %c0_212 = arith.constant 0 : index
      %c0_213 = arith.constant 0 : index
      %266 = vector.load %arg2[%c0_212, %c0_213] : memref<9x32xbf16, #tpu.memory_space<vmem>>, vector<9x32xbf16>
      %cst_214 = arith.constant dense<0.000000e+00> : vector<28x32xf32>
      %267 = tpu.matmul %265, %266, %cst_214 {dimension_numbers = #tpu.dot_dimension_numbers<[1], [0], [0], [1], [0, 0, 1, 1], [], []>} : vector<28x9xbf16>, vector<9x32xbf16>, vector<28x32xf32> -> vector<28x32xf32>
      %268 = vector.broadcast %11 : vector<1x32xf32> to vector<28x32xf32>
      %269 = arith.addf %267, %268 : vector<28x32xf32>
      %cst_215 = arith.constant 0.000000e+00 : f32
      %270 = vector.broadcast %cst_215 : f32 to vector<28x32xf32>
      %271 = arith.cmpf oge, %269, %270 : vector<28x32xf32>
      %cst_216 = arith.constant 1.000000e-01 : f32
      %272 = vector.broadcast %cst_216 : f32 to vector<28x32xf32>
      %273 = arith.mulf %272, %269 : vector<28x32xf32>
      %274 = arith.select %271, %269, %273 : vector<28x32xi1>, vector<28x32xf32>
      %c2_i32_217 = arith.constant 2 : i32
      %275 = arith.muli %c2_i32_217, %arg24 : i32
      %c1_i32_218 = arith.constant 1 : i32
      %276 = arith.addi %275, %c1_i32_218 : i32
      %c0_i32_219 = arith.constant 0 : i32
      %277 = arith.addi %276, %c0_i32_219 : i32
      %278 = arith.index_cast %277 : i32 to index
      %c0_220 = arith.constant 0 : index
      %c0_221 = arith.constant 0 : index
      %279 = vector.load %arg15[%278, %c0_220, %c0_221] : memref<30x30x1xf32, #tpu.memory_space<vmem>>, vector<1x28x1xf32>
      %280 = vector.shape_cast %279 : vector<1x28x1xf32> to vector<28x1xf32>
      %c0_222 = arith.constant 0 : index
      %c0_223 = arith.constant 0 : index
      %281 = vector.load %arg20[%c0_222, %c0_223] : memref<28x9xf32, #tpu.memory_space<vmem>>, vector<28x1xf32>
      tpu.vector_store %arg20[%c0_222, %c0_223], %280 {strides = array<i32>} : memref<28x9xf32, #tpu.memory_space<vmem>>, vector<28x1xf32>,
      %c0_i32_224 = arith.constant 0 : i32
      %282 = arith.addi %276, %c0_i32_224 : i32
      %283 = arith.index_cast %282 : i32 to index
      %c1_225 = arith.constant 1 : index
      %c0_226 = arith.constant 0 : index
      %284 = vector.load %arg15[%283, %c1_225, %c0_226] : memref<30x30x1xf32, #tpu.memory_space<vmem>>, vector<1x28x1xf32>
      %285 = vector.shape_cast %284 : vector<1x28x1xf32> to vector<28x1xf32>
      %c0_227 = arith.constant 0 : index
      %c1_228 = arith.constant 1 : index
      %286 = vector.load %arg20[%c0_227, %c1_228] : memref<28x9xf32, #tpu.memory_space<vmem>>, vector<28x1xf32>
      tpu.vector_store %arg20[%c0_227, %c1_228], %285 {strides = array<i32>} : memref<28x9xf32, #tpu.memory_space<vmem>>, vector<28x1xf32>,
      %c0_i32_229 = arith.constant 0 : i32
      %287 = arith.addi %276, %c0_i32_229 : i32
      %288 = arith.index_cast %287 : i32 to index
      %c2_230 = arith.constant 2 : index
      %c0_231 = arith.constant 0 : index
      %289 = vector.load %arg15[%288, %c2_230, %c0_231] : memref<30x30x1xf32, #tpu.memory_space<vmem>>, vector<1x28x1xf32>
      %290 = vector.shape_cast %289 : vector<1x28x1xf32> to vector<28x1xf32>
      %c0_232 = arith.constant 0 : index
      %c2_233 = arith.constant 2 : index
      %291 = vector.load %arg20[%c0_232, %c2_233] : memref<28x9xf32, #tpu.memory_space<vmem>>, vector<28x1xf32>
      tpu.vector_store %arg20[%c0_232, %c2_233], %290 {strides = array<i32>} : memref<28x9xf32, #tpu.memory_space<vmem>>, vector<28x1xf32>,
      %c1_i32_234 = arith.constant 1 : i32
      %292 = arith.addi %276, %c1_i32_234 : i32
      %293 = arith.index_cast %292 : i32 to index
      %c0_235 = arith.constant 0 : index
      %c0_236 = arith.constant 0 : index
      %294 = vector.load %arg15[%293, %c0_235, %c0_236] : memref<30x30x1xf32, #tpu.memory_space<vmem>>, vector<1x28x1xf32>
      %295 = vector.shape_cast %294 : vector<1x28x1xf32> to vector<28x1xf32>
      %c0_237 = arith.constant 0 : index
      %c3_238 = arith.constant 3 : index
      %296 = vector.load %arg20[%c0_237, %c3_238] : memref<28x9xf32, #tpu.memory_space<vmem>>, vector<28x1xf32>
      tpu.vector_store %arg20[%c0_237, %c3_238], %295 {strides = array<i32>} : memref<28x9xf32, #tpu.memory_space<vmem>>, vector<28x1xf32>,
      %c1_i32_239 = arith.constant 1 : i32
      %297 = arith.addi %276, %c1_i32_239 : i32
      %298 = arith.index_cast %297 : i32 to index
      %c1_240 = arith.constant 1 : index
      %c0_241 = arith.constant 0 : index
      %299 = vector.load %arg15[%298, %c1_240, %c0_241] : memref<30x30x1xf32, #tpu.memory_space<vmem>>, vector<1x28x1xf32>
      %300 = vector.shape_cast %299 : vector<1x28x1xf32> to vector<28x1xf32>
      %c0_242 = arith.constant 0 : index
      %c4_243 = arith.constant 4 : index
      %301 = vector.load %arg20[%c0_242, %c4_243] : memref<28x9xf32, #tpu.memory_space<vmem>>, vector<28x1xf32>
      tpu.vector_store %arg20[%c0_242, %c4_243], %300 {strides = array<i32>} : memref<28x9xf32, #tpu.memory_space<vmem>>, vector<28x1xf32>,
      %c1_i32_244 = arith.constant 1 : i32
      %302 = arith.addi %276, %c1_i32_244 : i32
      %303 = arith.index_cast %302 : i32 to index
      %c2_245 = arith.constant 2 : index
      %c0_246 = arith.constant 0 : index
      %304 = vector.load %arg15[%303, %c2_245, %c0_246] : memref<30x30x1xf32, #tpu.memory_space<vmem>>, vector<1x28x1xf32>
      %305 = vector.shape_cast %304 : vector<1x28x1xf32> to vector<28x1xf32>
      %c0_247 = arith.constant 0 : index
      %c5_248 = arith.constant 5 : index
      %306 = vector.load %arg20[%c0_247, %c5_248] : memref<28x9xf32, #tpu.memory_space<vmem>>, vector<28x1xf32>
      tpu.vector_store %arg20[%c0_247, %c5_248], %305 {strides = array<i32>} : memref<28x9xf32, #tpu.memory_space<vmem>>, vector<28x1xf32>,
      %c2_i32_249 = arith.constant 2 : i32
      %307 = arith.addi %276, %c2_i32_249 : i32
      %308 = arith.index_cast %307 : i32 to index
      %c0_250 = arith.constant 0 : index
      %c0_251 = arith.constant 0 : index
      %309 = vector.load %arg15[%308, %c0_250, %c0_251] : memref<30x30x1xf32, #tpu.memory_space<vmem>>, vector<1x28x1xf32>
      %310 = vector.shape_cast %309 : vector<1x28x1xf32> to vector<28x1xf32>
      %c0_252 = arith.constant 0 : index
      %c6_253 = arith.constant 6 : index
      %311 = vector.load %arg20[%c0_252, %c6_253] : memref<28x9xf32, #tpu.memory_space<vmem>>, vector<28x1xf32>
      tpu.vector_store %arg20[%c0_252, %c6_253], %310 {strides = array<i32>} : memref<28x9xf32, #tpu.memory_space<vmem>>, vector<28x1xf32>,
      %c2_i32_254 = arith.constant 2 : i32
      %312 = arith.addi %276, %c2_i32_254 : i32
      %313 = arith.index_cast %312 : i32 to index
      %c1_255 = arith.constant 1 : index
      %c0_256 = arith.constant 0 : index
      %314 = vector.load %arg15[%313, %c1_255, %c0_256] : memref<30x30x1xf32, #tpu.memory_space<vmem>>, vector<1x28x1xf32>
      %315 = vector.shape_cast %314 : vector<1x28x1xf32> to vector<28x1xf32>
      %c0_257 = arith.constant 0 : index
      %c7_258 = arith.constant 7 : index
      %316 = vector.load %arg20[%c0_257, %c7_258] : memref<28x9xf32, #tpu.memory_space<vmem>>, vector<28x1xf32>
      tpu.vector_store %arg20[%c0_257, %c7_258], %315 {strides = array<i32>} : memref<28x9xf32, #tpu.memory_space<vmem>>, vector<28x1xf32>,
      %c2_i32_259 = arith.constant 2 : i32
      %317 = arith.addi %276, %c2_i32_259 : i32
      %318 = arith.index_cast %317 : i32 to index
      %c2_260 = arith.constant 2 : index
      %c0_261 = arith.constant 0 : index
      %319 = vector.load %arg15[%318, %c2_260, %c0_261] : memref<30x30x1xf32, #tpu.memory_space<vmem>>, vector<1x28x1xf32>
      %320 = vector.shape_cast %319 : vector<1x28x1xf32> to vector<28x1xf32>
      %c0_262 = arith.constant 0 : index
      %c8_263 = arith.constant 8 : index
      %321 = vector.load %arg20[%c0_262, %c8_263] : memref<28x9xf32, #tpu.memory_space<vmem>>, vector<28x1xf32>
      tpu.vector_store %arg20[%c0_262, %c8_263], %320 {strides = array<i32>} : memref<28x9xf32, #tpu.memory_space<vmem>>, vector<28x1xf32>,
      %c0_264 = arith.constant 0 : index
      %c0_265 = arith.constant 0 : index
      %322 = vector.load %arg20[%c0_264, %c0_265] : memref<28x9xf32, #tpu.memory_space<vmem>>, vector<28x9xf32>
      %323 = arith.truncf %322 : vector<28x9xf32> to vector<28x9xbf16>
      %c0_266 = arith.constant 0 : index
      %c0_267 = arith.constant 0 : index
      %324 = vector.load %arg2[%c0_266, %c0_267] : memref<9x32xbf16, #tpu.memory_space<vmem>>, vector<9x32xbf16>
      %cst_268 = arith.constant dense<0.000000e+00> : vector<28x32xf32>
      %325 = tpu.matmul %323, %324, %cst_268 {dimension_numbers = #tpu.dot_dimension_numbers<[1], [0], [0], [1], [0, 0, 1, 1], [], []>} : vector<28x9xbf16>, vector<9x32xbf16>, vector<28x32xf32> -> vector<28x32xf32>
      %326 = vector.broadcast %11 : vector<1x32xf32> to vector<28x32xf32>
      %327 = arith.addf %325, %326 : vector<28x32xf32>
      %cst_269 = arith.constant 0.000000e+00 : f32
      %328 = vector.broadcast %cst_269 : f32 to vector<28x32xf32>
      %329 = arith.cmpf oge, %327, %328 : vector<28x32xf32>
      %cst_270 = arith.constant 1.000000e-01 : f32
      %330 = vector.broadcast %cst_270 : f32 to vector<28x32xf32>
      %331 = arith.mulf %330, %327 : vector<28x32xf32>
      %332 = arith.select %329, %327, %331 : vector<28x32xi1>, vector<28x32xf32>
      %333 = arith.maximumf %274, %332 : vector<28x32xf32>
      %cst_271 = arith.constant dense<0.000000e+00> : vector<14x32xf32>
      %334 = tpu.matmul %18, %333, %cst_271 {dimension_numbers = #tpu.dot_dimension_numbers<[1], [0], [0], [1], [0, 0, 1, 1], [], []>} : vector<14x28xf32>, vector<28x32xf32>, vector<14x32xf32> -> vector<14x32xf32>
      %cst_272 = arith.constant dense<0.000000e+00> : vector<14x32xf32>
      %335 = tpu.matmul %25, %333, %cst_272 {dimension_numbers = #tpu.dot_dimension_numbers<[1], [0], [0], [1], [0, 0, 1, 1], [], []>} : vector<14x28xf32>, vector<28x32xf32>, vector<14x32xf32> -> vector<14x32xf32>
      %336 = arith.maximumf %334, %335 : vector<14x32xf32>
      %c1_i32_273 = arith.constant 1 : i32
      %337 = arith.addi %c1_i32_273, %arg24 : i32
      %338 = arith.index_cast %337 : i32 to index
      %c1_274 = arith.constant 1 : index
      %c0_275 = arith.constant 0 : index
      %339 = vector.load %arg16[%338, %c1_274, %c0_275] : memref<16x16x32xf32, #tpu.memory_space<vmem>>, vector<1x14x32xf32>
      %340 = vector.shape_cast %339 : vector<1x14x32xf32> to vector<14x32xf32>
      %341 = vector.shape_cast %336 : vector<14x32xf32> to vector<1x14x32xf32>
      tpu.vector_store %arg16[%338, %c1_274, %c0_275], %341 {strides = array<i32>} : memref<16x16x32xf32, #tpu.memory_space<vmem>>, vector<1x14x32xf32>,
    }
    %c14_i32_24 = arith.constant 14 : i32
    %c0_25 = arith.constant 0 : index
    %c0_26 = arith.constant 0 : index
    %27 = vector.load %arg5[%c0_25, %c0_26] : memref<1x64xf32, #tpu.memory_space<vmem>>, vector<1x64xf32>
    %28 = tpu.iota {dimensions = array<i32: 0>} : vector<7x14xi32>
    %29 = tpu.iota {dimensions = array<i32: 1>} : vector<7x14xi32>
    %c2_i32_27 = arith.constant 2 : i32
    %30 = vector.broadcast %c2_i32_27 : i32 to vector<7x14xi32>
    %31 = arith.muli %30, %28 : vector<7x14xi32>
    %32 = arith.cmpi eq, %29, %31 : vector<7x14xi32>
    %33 = arith.extui %32 : vector<7x14xi1> to vector<7x14xi32>
    %34 = arith.sitofp %33 : vector<7x14xi32> to vector<7x14xf32>
    %c2_i32_28 = arith.constant 2 : i32
    %35 = vector.broadcast %c2_i32_28 : i32 to vector<7x14xi32>
    %36 = arith.muli %35, %28 : vector<7x14xi32>
    %c1_i32_29 = arith.constant 1 : i32
    %37 = vector.broadcast %c1_i32_29 : i32 to vector<7x14xi32>
    %38 = arith.addi %36, %37 : vector<7x14xi32>
    %39 = arith.cmpi eq, %29, %38 : vector<7x14xi32>
    %40 = arith.extui %39 : vector<7x14xi1> to vector<7x14xi32>
    %41 = arith.sitofp %40 : vector<7x14xi32> to vector<7x14xf32>
    %c0_i32_30 = arith.constant 0 : i32
    %c7_i32 = arith.constant 7 : i32
    %42 = arith.addi %c0_i32_30, %c7_i32 : i32
    %c1_i32_31 = arith.constant 1 : i32
    scf.for %arg24 = %c0_i32_30 to %42 step %c1_i32_31  : i32 {
      %c2_i32_170 = arith.constant 2 : i32
      %218 = arith.muli %c2_i32_170, %arg24 : i32
      %c0_i32_171 = arith.constant 0 : i32
      %219 = arith.addi %218, %c0_i32_171 : i32
      %220 = arith.index_cast %219 : i32 to index
      %c0_172 = arith.constant 0 : index
      %c0_173 = arith.constant 0 : index
      %221 = vector.load %arg16[%220, %c0_172, %c0_173] : memref<16x16x32xf32, #tpu.memory_space<vmem>>, vector<1x14x32xf32>
      %222 = vector.shape_cast %221 : vector<1x14x32xf32> to vector<14x32xf32>
      %c0_174 = arith.constant 0 : index
      %c0_175 = arith.constant 0 : index
      %223 = vector.load %arg21[%c0_174, %c0_175] : memref<14x288xf32, #tpu.memory_space<vmem>>, vector<14x32xf32>
      tpu.vector_store %arg21[%c0_174, %c0_175], %222 {strides = array<i32>} : memref<14x288xf32, #tpu.memory_space<vmem>>, vector<14x32xf32>,
      %c0_i32_176 = arith.constant 0 : i32
      %224 = arith.addi %218, %c0_i32_176 : i32
      %225 = arith.index_cast %224 : i32 to index
      %c1_177 = arith.constant 1 : index
      %c0_178 = arith.constant 0 : index
      %226 = vector.load %arg16[%225, %c1_177, %c0_178] : memref<16x16x32xf32, #tpu.memory_space<vmem>>, vector<1x14x32xf32>
      %227 = vector.shape_cast %226 : vector<1x14x32xf32> to vector<14x32xf32>
      %c0_179 = arith.constant 0 : index
      %c32 = arith.constant 32 : index
      %228 = vector.load %arg21[%c0_179, %c32] : memref<14x288xf32, #tpu.memory_space<vmem>>, vector<14x32xf32>
      tpu.vector_store %arg21[%c0_179, %c32], %227 {strides = array<i32>} : memref<14x288xf32, #tpu.memory_space<vmem>>, vector<14x32xf32>,
      %c0_i32_180 = arith.constant 0 : i32
      %229 = arith.addi %218, %c0_i32_180 : i32
      %230 = arith.index_cast %229 : i32 to index
      %c2_181 = arith.constant 2 : index
      %c0_182 = arith.constant 0 : index
      %231 = vector.load %arg16[%230, %c2_181, %c0_182] : memref<16x16x32xf32, #tpu.memory_space<vmem>>, vector<1x14x32xf32>
      %232 = vector.shape_cast %231 : vector<1x14x32xf32> to vector<14x32xf32>
      %c0_183 = arith.constant 0 : index
      %c64 = arith.constant 64 : index
      %233 = vector.load %arg21[%c0_183, %c64] : memref<14x288xf32, #tpu.memory_space<vmem>>, vector<14x32xf32>
      tpu.vector_store %arg21[%c0_183, %c64], %232 {strides = array<i32>} : memref<14x288xf32, #tpu.memory_space<vmem>>, vector<14x32xf32>,
      %c1_i32_184 = arith.constant 1 : i32
      %234 = arith.addi %218, %c1_i32_184 : i32
      %235 = arith.index_cast %234 : i32 to index
      %c0_185 = arith.constant 0 : index
      %c0_186 = arith.constant 0 : index
      %236 = vector.load %arg16[%235, %c0_185, %c0_186] : memref<16x16x32xf32, #tpu.memory_space<vmem>>, vector<1x14x32xf32>
      %237 = vector.shape_cast %236 : vector<1x14x32xf32> to vector<14x32xf32>
      %c0_187 = arith.constant 0 : index
      %c96 = arith.constant 96 : index
      %238 = vector.load %arg21[%c0_187, %c96] : memref<14x288xf32, #tpu.memory_space<vmem>>, vector<14x32xf32>
      tpu.vector_store %arg21[%c0_187, %c96], %237 {strides = array<i32>} : memref<14x288xf32, #tpu.memory_space<vmem>>, vector<14x32xf32>,
      %c1_i32_188 = arith.constant 1 : i32
      %239 = arith.addi %218, %c1_i32_188 : i32
      %240 = arith.index_cast %239 : i32 to index
      %c1_189 = arith.constant 1 : index
      %c0_190 = arith.constant 0 : index
      %241 = vector.load %arg16[%240, %c1_189, %c0_190] : memref<16x16x32xf32, #tpu.memory_space<vmem>>, vector<1x14x32xf32>
      %242 = vector.shape_cast %241 : vector<1x14x32xf32> to vector<14x32xf32>
      %c0_191 = arith.constant 0 : index
      %c128_192 = arith.constant 128 : index
      %243 = vector.load %arg21[%c0_191, %c128_192] : memref<14x288xf32, #tpu.memory_space<vmem>>, vector<14x32xf32>
      tpu.vector_store %arg21[%c0_191, %c128_192], %242 {strides = array<i32>} : memref<14x288xf32, #tpu.memory_space<vmem>>, vector<14x32xf32>,
      %c1_i32_193 = arith.constant 1 : i32
      %244 = arith.addi %218, %c1_i32_193 : i32
      %245 = arith.index_cast %244 : i32 to index
      %c2_194 = arith.constant 2 : index
      %c0_195 = arith.constant 0 : index
      %246 = vector.load %arg16[%245, %c2_194, %c0_195] : memref<16x16x32xf32, #tpu.memory_space<vmem>>, vector<1x14x32xf32>
      %247 = vector.shape_cast %246 : vector<1x14x32xf32> to vector<14x32xf32>
      %c0_196 = arith.constant 0 : index
      %c160 = arith.constant 160 : index
      %248 = vector.load %arg21[%c0_196, %c160] : memref<14x288xf32, #tpu.memory_space<vmem>>, vector<14x32xf32>
      tpu.vector_store %arg21[%c0_196, %c160], %247 {strides = array<i32>} : memref<14x288xf32, #tpu.memory_space<vmem>>, vector<14x32xf32>,
      %c2_i32_197 = arith.constant 2 : i32
      %249 = arith.addi %218, %c2_i32_197 : i32
      %250 = arith.index_cast %249 : i32 to index
      %c0_198 = arith.constant 0 : index
      %c0_199 = arith.constant 0 : index
      %251 = vector.load %arg16[%250, %c0_198, %c0_199] : memref<16x16x32xf32, #tpu.memory_space<vmem>>, vector<1x14x32xf32>
      %252 = vector.shape_cast %251 : vector<1x14x32xf32> to vector<14x32xf32>
      %c0_200 = arith.constant 0 : index
      %c192 = arith.constant 192 : index
      %253 = vector.load %arg21[%c0_200, %c192] : memref<14x288xf32, #tpu.memory_space<vmem>>, vector<14x32xf32>
      tpu.vector_store %arg21[%c0_200, %c192], %252 {strides = array<i32>} : memref<14x288xf32, #tpu.memory_space<vmem>>, vector<14x32xf32>,
      %c2_i32_201 = arith.constant 2 : i32
      %254 = arith.addi %218, %c2_i32_201 : i32
      %255 = arith.index_cast %254 : i32 to index
      %c1_202 = arith.constant 1 : index
      %c0_203 = arith.constant 0 : index
      %256 = vector.load %arg16[%255, %c1_202, %c0_203] : memref<16x16x32xf32, #tpu.memory_space<vmem>>, vector<1x14x32xf32>
      %257 = vector.shape_cast %256 : vector<1x14x32xf32> to vector<14x32xf32>
      %c0_204 = arith.constant 0 : index
      %c224 = arith.constant 224 : index
      %258 = vector.load %arg21[%c0_204, %c224] : memref<14x288xf32, #tpu.memory_space<vmem>>, vector<14x32xf32>
      tpu.vector_store %arg21[%c0_204, %c224], %257 {strides = array<i32>} : memref<14x288xf32, #tpu.memory_space<vmem>>, vector<14x32xf32>,
      %c2_i32_205 = arith.constant 2 : i32
      %259 = arith.addi %218, %c2_i32_205 : i32
      %260 = arith.index_cast %259 : i32 to index
      %c2_206 = arith.constant 2 : index
      %c0_207 = arith.constant 0 : index
      %261 = vector.load %arg16[%260, %c2_206, %c0_207] : memref<16x16x32xf32, #tpu.memory_space<vmem>>, vector<1x14x32xf32>
      %262 = vector.shape_cast %261 : vector<1x14x32xf32> to vector<14x32xf32>
      %c0_208 = arith.constant 0 : index
      %c256_209 = arith.constant 256 : index
      %263 = vector.load %arg21[%c0_208, %c256_209] : memref<14x288xf32, #tpu.memory_space<vmem>>, vector<14x32xf32>
      tpu.vector_store %arg21[%c0_208, %c256_209], %262 {strides = array<i32>} : memref<14x288xf32, #tpu.memory_space<vmem>>, vector<14x32xf32>,
      %c0_210 = arith.constant 0 : index
      %c0_211 = arith.constant 0 : index
      %264 = vector.load %arg21[%c0_210, %c0_211] : memref<14x288xf32, #tpu.memory_space<vmem>>, vector<14x288xf32>
      %265 = arith.truncf %264 : vector<14x288xf32> to vector<14x288xbf16>
      %c0_212 = arith.constant 0 : index
      %c0_213 = arith.constant 0 : index
      %266 = vector.load %arg4[%c0_212, %c0_213] : memref<288x64xbf16, #tpu.memory_space<vmem>>, vector<288x64xbf16>
      %cst_214 = arith.constant dense<0.000000e+00> : vector<14x64xf32>
      %267 = tpu.matmul %265, %266, %cst_214 {dimension_numbers = #tpu.dot_dimension_numbers<[1], [0], [0], [1], [0, 0, 1, 1], [], []>} : vector<14x288xbf16>, vector<288x64xbf16>, vector<14x64xf32> -> vector<14x64xf32>
      %268 = vector.broadcast %27 : vector<1x64xf32> to vector<14x64xf32>
      %269 = arith.addf %267, %268 : vector<14x64xf32>
      %cst_215 = arith.constant 0.000000e+00 : f32
      %270 = vector.broadcast %cst_215 : f32 to vector<14x64xf32>
      %271 = arith.cmpf oge, %269, %270 : vector<14x64xf32>
      %cst_216 = arith.constant 1.000000e-01 : f32
      %272 = vector.broadcast %cst_216 : f32 to vector<14x64xf32>
      %273 = arith.mulf %272, %269 : vector<14x64xf32>
      %274 = arith.select %271, %269, %273 : vector<14x64xi1>, vector<14x64xf32>
      %c2_i32_217 = arith.constant 2 : i32
      %275 = arith.muli %c2_i32_217, %arg24 : i32
      %c1_i32_218 = arith.constant 1 : i32
      %276 = arith.addi %275, %c1_i32_218 : i32
      %c0_i32_219 = arith.constant 0 : i32
      %277 = arith.addi %276, %c0_i32_219 : i32
      %278 = arith.index_cast %277 : i32 to index
      %c0_220 = arith.constant 0 : index
      %c0_221 = arith.constant 0 : index
      %279 = vector.load %arg16[%278, %c0_220, %c0_221] : memref<16x16x32xf32, #tpu.memory_space<vmem>>, vector<1x14x32xf32>
      %280 = vector.shape_cast %279 : vector<1x14x32xf32> to vector<14x32xf32>
      %c0_222 = arith.constant 0 : index
      %c0_223 = arith.constant 0 : index
      %281 = vector.load %arg21[%c0_222, %c0_223] : memref<14x288xf32, #tpu.memory_space<vmem>>, vector<14x32xf32>
      tpu.vector_store %arg21[%c0_222, %c0_223], %280 {strides = array<i32>} : memref<14x288xf32, #tpu.memory_space<vmem>>, vector<14x32xf32>,
      %c0_i32_224 = arith.constant 0 : i32
      %282 = arith.addi %276, %c0_i32_224 : i32
      %283 = arith.index_cast %282 : i32 to index
      %c1_225 = arith.constant 1 : index
      %c0_226 = arith.constant 0 : index
      %284 = vector.load %arg16[%283, %c1_225, %c0_226] : memref<16x16x32xf32, #tpu.memory_space<vmem>>, vector<1x14x32xf32>
      %285 = vector.shape_cast %284 : vector<1x14x32xf32> to vector<14x32xf32>
      %c0_227 = arith.constant 0 : index
      %c32_228 = arith.constant 32 : index
      %286 = vector.load %arg21[%c0_227, %c32_228] : memref<14x288xf32, #tpu.memory_space<vmem>>, vector<14x32xf32>
      tpu.vector_store %arg21[%c0_227, %c32_228], %285 {strides = array<i32>} : memref<14x288xf32, #tpu.memory_space<vmem>>, vector<14x32xf32>,
      %c0_i32_229 = arith.constant 0 : i32
      %287 = arith.addi %276, %c0_i32_229 : i32
      %288 = arith.index_cast %287 : i32 to index
      %c2_230 = arith.constant 2 : index
      %c0_231 = arith.constant 0 : index
      %289 = vector.load %arg16[%288, %c2_230, %c0_231] : memref<16x16x32xf32, #tpu.memory_space<vmem>>, vector<1x14x32xf32>
      %290 = vector.shape_cast %289 : vector<1x14x32xf32> to vector<14x32xf32>
      %c0_232 = arith.constant 0 : index
      %c64_233 = arith.constant 64 : index
      %291 = vector.load %arg21[%c0_232, %c64_233] : memref<14x288xf32, #tpu.memory_space<vmem>>, vector<14x32xf32>
      tpu.vector_store %arg21[%c0_232, %c64_233], %290 {strides = array<i32>} : memref<14x288xf32, #tpu.memory_space<vmem>>, vector<14x32xf32>,
      %c1_i32_234 = arith.constant 1 : i32
      %292 = arith.addi %276, %c1_i32_234 : i32
      %293 = arith.index_cast %292 : i32 to index
      %c0_235 = arith.constant 0 : index
      %c0_236 = arith.constant 0 : index
      %294 = vector.load %arg16[%293, %c0_235, %c0_236] : memref<16x16x32xf32, #tpu.memory_space<vmem>>, vector<1x14x32xf32>
      %295 = vector.shape_cast %294 : vector<1x14x32xf32> to vector<14x32xf32>
      %c0_237 = arith.constant 0 : index
      %c96_238 = arith.constant 96 : index
      %296 = vector.load %arg21[%c0_237, %c96_238] : memref<14x288xf32, #tpu.memory_space<vmem>>, vector<14x32xf32>
      tpu.vector_store %arg21[%c0_237, %c96_238], %295 {strides = array<i32>} : memref<14x288xf32, #tpu.memory_space<vmem>>, vector<14x32xf32>,
      %c1_i32_239 = arith.constant 1 : i32
      %297 = arith.addi %276, %c1_i32_239 : i32
      %298 = arith.index_cast %297 : i32 to index
      %c1_240 = arith.constant 1 : index
      %c0_241 = arith.constant 0 : index
      %299 = vector.load %arg16[%298, %c1_240, %c0_241] : memref<16x16x32xf32, #tpu.memory_space<vmem>>, vector<1x14x32xf32>
      %300 = vector.shape_cast %299 : vector<1x14x32xf32> to vector<14x32xf32>
      %c0_242 = arith.constant 0 : index
      %c128_243 = arith.constant 128 : index
      %301 = vector.load %arg21[%c0_242, %c128_243] : memref<14x288xf32, #tpu.memory_space<vmem>>, vector<14x32xf32>
      tpu.vector_store %arg21[%c0_242, %c128_243], %300 {strides = array<i32>} : memref<14x288xf32, #tpu.memory_space<vmem>>, vector<14x32xf32>,
      %c1_i32_244 = arith.constant 1 : i32
      %302 = arith.addi %276, %c1_i32_244 : i32
      %303 = arith.index_cast %302 : i32 to index
      %c2_245 = arith.constant 2 : index
      %c0_246 = arith.constant 0 : index
      %304 = vector.load %arg16[%303, %c2_245, %c0_246] : memref<16x16x32xf32, #tpu.memory_space<vmem>>, vector<1x14x32xf32>
      %305 = vector.shape_cast %304 : vector<1x14x32xf32> to vector<14x32xf32>
      %c0_247 = arith.constant 0 : index
      %c160_248 = arith.constant 160 : index
      %306 = vector.load %arg21[%c0_247, %c160_248] : memref<14x288xf32, #tpu.memory_space<vmem>>, vector<14x32xf32>
      tpu.vector_store %arg21[%c0_247, %c160_248], %305 {strides = array<i32>} : memref<14x288xf32, #tpu.memory_space<vmem>>, vector<14x32xf32>,
      %c2_i32_249 = arith.constant 2 : i32
      %307 = arith.addi %276, %c2_i32_249 : i32
      %308 = arith.index_cast %307 : i32 to index
      %c0_250 = arith.constant 0 : index
      %c0_251 = arith.constant 0 : index
      %309 = vector.load %arg16[%308, %c0_250, %c0_251] : memref<16x16x32xf32, #tpu.memory_space<vmem>>, vector<1x14x32xf32>
      %310 = vector.shape_cast %309 : vector<1x14x32xf32> to vector<14x32xf32>
      %c0_252 = arith.constant 0 : index
      %c192_253 = arith.constant 192 : index
      %311 = vector.load %arg21[%c0_252, %c192_253] : memref<14x288xf32, #tpu.memory_space<vmem>>, vector<14x32xf32>
      tpu.vector_store %arg21[%c0_252, %c192_253], %310 {strides = array<i32>} : memref<14x288xf32, #tpu.memory_space<vmem>>, vector<14x32xf32>,
      %c2_i32_254 = arith.constant 2 : i32
      %312 = arith.addi %276, %c2_i32_254 : i32
      %313 = arith.index_cast %312 : i32 to index
      %c1_255 = arith.constant 1 : index
      %c0_256 = arith.constant 0 : index
      %314 = vector.load %arg16[%313, %c1_255, %c0_256] : memref<16x16x32xf32, #tpu.memory_space<vmem>>, vector<1x14x32xf32>
      %315 = vector.shape_cast %314 : vector<1x14x32xf32> to vector<14x32xf32>
      %c0_257 = arith.constant 0 : index
      %c224_258 = arith.constant 224 : index
      %316 = vector.load %arg21[%c0_257, %c224_258] : memref<14x288xf32, #tpu.memory_space<vmem>>, vector<14x32xf32>
      tpu.vector_store %arg21[%c0_257, %c224_258], %315 {strides = array<i32>} : memref<14x288xf32, #tpu.memory_space<vmem>>, vector<14x32xf32>,
      %c2_i32_259 = arith.constant 2 : i32
      %317 = arith.addi %276, %c2_i32_259 : i32
      %318 = arith.index_cast %317 : i32 to index
      %c2_260 = arith.constant 2 : index
      %c0_261 = arith.constant 0 : index
      %319 = vector.load %arg16[%318, %c2_260, %c0_261] : memref<16x16x32xf32, #tpu.memory_space<vmem>>, vector<1x14x32xf32>
      %320 = vector.shape_cast %319 : vector<1x14x32xf32> to vector<14x32xf32>
      %c0_262 = arith.constant 0 : index
      %c256_263 = arith.constant 256 : index
      %321 = vector.load %arg21[%c0_262, %c256_263] : memref<14x288xf32, #tpu.memory_space<vmem>>, vector<14x32xf32>
      tpu.vector_store %arg21[%c0_262, %c256_263], %320 {strides = array<i32>} : memref<14x288xf32, #tpu.memory_space<vmem>>, vector<14x32xf32>,
      %c0_264 = arith.constant 0 : index
      %c0_265 = arith.constant 0 : index
      %322 = vector.load %arg21[%c0_264, %c0_265] : memref<14x288xf32, #tpu.memory_space<vmem>>, vector<14x288xf32>
      %323 = arith.truncf %322 : vector<14x288xf32> to vector<14x288xbf16>
      %c0_266 = arith.constant 0 : index
      %c0_267 = arith.constant 0 : index
      %324 = vector.load %arg4[%c0_266, %c0_267] : memref<288x64xbf16, #tpu.memory_space<vmem>>, vector<288x64xbf16>
      %cst_268 = arith.constant dense<0.000000e+00> : vector<14x64xf32>
      %325 = tpu.matmul %323, %324, %cst_268 {dimension_numbers = #tpu.dot_dimension_numbers<[1], [0], [0], [1], [0, 0, 1, 1], [], []>} : vector<14x288xbf16>, vector<288x64xbf16>, vector<14x64xf32> -> vector<14x64xf32>
      %326 = vector.broadcast %27 : vector<1x64xf32> to vector<14x64xf32>
      %327 = arith.addf %325, %326 : vector<14x64xf32>
      %cst_269 = arith.constant 0.000000e+00 : f32
      %328 = vector.broadcast %cst_269 : f32 to vector<14x64xf32>
      %329 = arith.cmpf oge, %327, %328 : vector<14x64xf32>
      %cst_270 = arith.constant 1.000000e-01 : f32
      %330 = vector.broadcast %cst_270 : f32 to vector<14x64xf32>
      %331 = arith.mulf %330, %327 : vector<14x64xf32>
      %332 = arith.select %329, %327, %331 : vector<14x64xi1>, vector<14x64xf32>
      %333 = arith.maximumf %274, %332 : vector<14x64xf32>
      %cst_271 = arith.constant dense<0.000000e+00> : vector<7x64xf32>
      %334 = tpu.matmul %34, %333, %cst_271 {dimension_numbers = #tpu.dot_dimension_numbers<[1], [0], [0], [1], [0, 0, 1, 1], [], []>} : vector<7x14xf32>, vector<14x64xf32>, vector<7x64xf32> -> vector<7x64xf32>
      %cst_272 = arith.constant dense<0.000000e+00> : vector<7x64xf32>
      %335 = tpu.matmul %41, %333, %cst_272 {dimension_numbers = #tpu.dot_dimension_numbers<[1], [0], [0], [1], [0, 0, 1, 1], [], []>} : vector<7x14xf32>, vector<14x64xf32>, vector<7x64xf32> -> vector<7x64xf32>
      %336 = arith.maximumf %334, %335 : vector<7x64xf32>
      %c1_i32_273 = arith.constant 1 : i32
      %337 = arith.addi %c1_i32_273, %arg24 : i32
      %338 = arith.index_cast %337 : i32 to index
      %c1_274 = arith.constant 1 : index
      %c0_275 = arith.constant 0 : index
      %339 = vector.load %arg17[%338, %c1_274, %c0_275] : memref<9x9x64xf32, #tpu.memory_space<vmem>>, vector<1x7x64xf32>
      %340 = vector.shape_cast %339 : vector<1x7x64xf32> to vector<7x64xf32>
      %341 = vector.shape_cast %336 : vector<7x64xf32> to vector<1x7x64xf32>
      tpu.vector_store %arg17[%338, %c1_274, %c0_275], %341 {strides = array<i32>} : memref<9x9x64xf32, #tpu.memory_space<vmem>>, vector<1x7x64xf32>,
    }
    %c7_i32_32 = arith.constant 7 : i32
    %c0_33 = arith.constant 0 : index
    %c0_34 = arith.constant 0 : index
    %43 = vector.load %arg7[%c0_33, %c0_34] : memref<1x128xf32, #tpu.memory_space<vmem>>, vector<1x128xf32>
    %44 = tpu.iota {dimensions = array<i32: 0>} : vector<2x4xi32>
    %45 = tpu.iota {dimensions = array<i32: 1>} : vector<2x4xi32>
    %c2_i32_35 = arith.constant 2 : i32
    %46 = vector.broadcast %c2_i32_35 : i32 to vector<2x4xi32>
    %47 = arith.muli %46, %44 : vector<2x4xi32>
    %48 = arith.cmpi eq, %45, %47 : vector<2x4xi32>
    %49 = arith.extui %48 : vector<2x4xi1> to vector<2x4xi32>
    %50 = arith.sitofp %49 : vector<2x4xi32> to vector<2x4xf32>
    %c2_i32_36 = arith.constant 2 : i32
    %51 = vector.broadcast %c2_i32_36 : i32 to vector<2x4xi32>
    %52 = arith.muli %51, %44 : vector<2x4xi32>
    %c1_i32_37 = arith.constant 1 : i32
    %53 = vector.broadcast %c1_i32_37 : i32 to vector<2x4xi32>
    %54 = arith.addi %52, %53 : vector<2x4xi32>
    %55 = arith.cmpi eq, %45, %54 : vector<2x4xi32>
    %56 = arith.extui %55 : vector<2x4xi1> to vector<2x4xi32>
    %57 = arith.sitofp %56 : vector<2x4xi32> to vector<2x4xf32>
    %c0_i32_38 = arith.constant 0 : i32
    %c2_i32_39 = arith.constant 2 : i32
    %58 = arith.addi %c0_i32_38, %c2_i32_39 : i32
    %c1_i32_40 = arith.constant 1 : i32
    scf.for %arg24 = %c0_i32_38 to %58 step %c1_i32_40  : i32 {
      %c2_i32_170 = arith.constant 2 : i32
      %218 = arith.muli %c2_i32_170, %arg24 : i32
      %c0_i32_171 = arith.constant 0 : i32
      %219 = arith.addi %218, %c0_i32_171 : i32
      %220 = arith.index_cast %219 : i32 to index
      %c0_172 = arith.constant 0 : index
      %c0_173 = arith.constant 0 : index
      %221 = vector.load %arg17[%220, %c0_172, %c0_173] : memref<9x9x64xf32, #tpu.memory_space<vmem>>, vector<1x4x64xf32>
      %222 = vector.shape_cast %221 : vector<1x4x64xf32> to vector<4x64xf32>
      %c0_174 = arith.constant 0 : index
      %c0_175 = arith.constant 0 : index
      %223 = vector.load %arg22[%c0_174, %c0_175] : memref<4x2304xf32, #tpu.memory_space<vmem>>, vector<4x64xf32>
      tpu.vector_store %arg22[%c0_174, %c0_175], %222 {strides = array<i32>} : memref<4x2304xf32, #tpu.memory_space<vmem>>, vector<4x64xf32>,
      %c0_i32_176 = arith.constant 0 : i32
      %224 = arith.addi %218, %c0_i32_176 : i32
      %225 = arith.index_cast %224 : i32 to index
      %c1_177 = arith.constant 1 : index
      %c0_178 = arith.constant 0 : index
      %226 = vector.load %arg17[%225, %c1_177, %c0_178] : memref<9x9x64xf32, #tpu.memory_space<vmem>>, vector<1x4x64xf32>
      %227 = vector.shape_cast %226 : vector<1x4x64xf32> to vector<4x64xf32>
      %c0_179 = arith.constant 0 : index
      %c64 = arith.constant 64 : index
      %228 = vector.load %arg22[%c0_179, %c64] : memref<4x2304xf32, #tpu.memory_space<vmem>>, vector<4x64xf32>
      tpu.vector_store %arg22[%c0_179, %c64], %227 {strides = array<i32>} : memref<4x2304xf32, #tpu.memory_space<vmem>>, vector<4x64xf32>,
      %c0_i32_180 = arith.constant 0 : i32
      %229 = arith.addi %218, %c0_i32_180 : i32
      %230 = arith.index_cast %229 : i32 to index
      %c2_181 = arith.constant 2 : index
      %c0_182 = arith.constant 0 : index
      %231 = vector.load %arg17[%230, %c2_181, %c0_182] : memref<9x9x64xf32, #tpu.memory_space<vmem>>, vector<1x4x64xf32>
      %232 = vector.shape_cast %231 : vector<1x4x64xf32> to vector<4x64xf32>
      %c0_183 = arith.constant 0 : index
      %c128_184 = arith.constant 128 : index
      %233 = vector.load %arg22[%c0_183, %c128_184] : memref<4x2304xf32, #tpu.memory_space<vmem>>, vector<4x64xf32>
      tpu.vector_store %arg22[%c0_183, %c128_184], %232 {strides = array<i32>} : memref<4x2304xf32, #tpu.memory_space<vmem>>, vector<4x64xf32>,
      %c0_i32_185 = arith.constant 0 : i32
      %234 = arith.addi %218, %c0_i32_185 : i32
      %235 = arith.index_cast %234 : i32 to index
      %c3 = arith.constant 3 : index
      %c0_186 = arith.constant 0 : index
      %236 = vector.load %arg17[%235, %c3, %c0_186] : memref<9x9x64xf32, #tpu.memory_space<vmem>>, vector<1x4x64xf32>
      %237 = vector.shape_cast %236 : vector<1x4x64xf32> to vector<4x64xf32>
      %c0_187 = arith.constant 0 : index
      %c192 = arith.constant 192 : index
      %238 = vector.load %arg22[%c0_187, %c192] : memref<4x2304xf32, #tpu.memory_space<vmem>>, vector<4x64xf32>
      tpu.vector_store %arg22[%c0_187, %c192], %237 {strides = array<i32>} : memref<4x2304xf32, #tpu.memory_space<vmem>>, vector<4x64xf32>,
      %c0_i32_188 = arith.constant 0 : i32
      %239 = arith.addi %218, %c0_i32_188 : i32
      %240 = arith.index_cast %239 : i32 to index
      %c4 = arith.constant 4 : index
      %c0_189 = arith.constant 0 : index
      %241 = vector.load %arg17[%240, %c4, %c0_189] : memref<9x9x64xf32, #tpu.memory_space<vmem>>, vector<1x4x64xf32>
      %242 = vector.shape_cast %241 : vector<1x4x64xf32> to vector<4x64xf32>
      %c0_190 = arith.constant 0 : index
      %c256_191 = arith.constant 256 : index
      %243 = vector.load %arg22[%c0_190, %c256_191] : memref<4x2304xf32, #tpu.memory_space<vmem>>, vector<4x64xf32>
      tpu.vector_store %arg22[%c0_190, %c256_191], %242 {strides = array<i32>} : memref<4x2304xf32, #tpu.memory_space<vmem>>, vector<4x64xf32>,
      %c0_i32_192 = arith.constant 0 : i32
      %244 = arith.addi %218, %c0_i32_192 : i32
      %245 = arith.index_cast %244 : i32 to index
      %c5 = arith.constant 5 : index
      %c0_193 = arith.constant 0 : index
      %246 = vector.load %arg17[%245, %c5, %c0_193] : memref<9x9x64xf32, #tpu.memory_space<vmem>>, vector<1x4x64xf32>
      %247 = vector.shape_cast %246 : vector<1x4x64xf32> to vector<4x64xf32>
      %c0_194 = arith.constant 0 : index
      %c320 = arith.constant 320 : index
      %248 = vector.load %arg22[%c0_194, %c320] : memref<4x2304xf32, #tpu.memory_space<vmem>>, vector<4x64xf32>
      tpu.vector_store %arg22[%c0_194, %c320], %247 {strides = array<i32>} : memref<4x2304xf32, #tpu.memory_space<vmem>>, vector<4x64xf32>,
      %c1_i32_195 = arith.constant 1 : i32
      %249 = arith.addi %218, %c1_i32_195 : i32
      %250 = arith.index_cast %249 : i32 to index
      %c0_196 = arith.constant 0 : index
      %c0_197 = arith.constant 0 : index
      %251 = vector.load %arg17[%250, %c0_196, %c0_197] : memref<9x9x64xf32, #tpu.memory_space<vmem>>, vector<1x4x64xf32>
      %252 = vector.shape_cast %251 : vector<1x4x64xf32> to vector<4x64xf32>
      %c0_198 = arith.constant 0 : index
      %c384_199 = arith.constant 384 : index
      %253 = vector.load %arg22[%c0_198, %c384_199] : memref<4x2304xf32, #tpu.memory_space<vmem>>, vector<4x64xf32>
      tpu.vector_store %arg22[%c0_198, %c384_199], %252 {strides = array<i32>} : memref<4x2304xf32, #tpu.memory_space<vmem>>, vector<4x64xf32>,
      %c1_i32_200 = arith.constant 1 : i32
      %254 = arith.addi %218, %c1_i32_200 : i32
      %255 = arith.index_cast %254 : i32 to index
      %c1_201 = arith.constant 1 : index
      %c0_202 = arith.constant 0 : index
      %256 = vector.load %arg17[%255, %c1_201, %c0_202] : memref<9x9x64xf32, #tpu.memory_space<vmem>>, vector<1x4x64xf32>
      %257 = vector.shape_cast %256 : vector<1x4x64xf32> to vector<4x64xf32>
      %c0_203 = arith.constant 0 : index
      %c448 = arith.constant 448 : index
      %258 = vector.load %arg22[%c0_203, %c448] : memref<4x2304xf32, #tpu.memory_space<vmem>>, vector<4x64xf32>
      tpu.vector_store %arg22[%c0_203, %c448], %257 {strides = array<i32>} : memref<4x2304xf32, #tpu.memory_space<vmem>>, vector<4x64xf32>,
      %c1_i32_204 = arith.constant 1 : i32
      %259 = arith.addi %218, %c1_i32_204 : i32
      %260 = arith.index_cast %259 : i32 to index
      %c2_205 = arith.constant 2 : index
      %c0_206 = arith.constant 0 : index
      %261 = vector.load %arg17[%260, %c2_205, %c0_206] : memref<9x9x64xf32, #tpu.memory_space<vmem>>, vector<1x4x64xf32>
      %262 = vector.shape_cast %261 : vector<1x4x64xf32> to vector<4x64xf32>
      %c0_207 = arith.constant 0 : index
      %c512_208 = arith.constant 512 : index
      %263 = vector.load %arg22[%c0_207, %c512_208] : memref<4x2304xf32, #tpu.memory_space<vmem>>, vector<4x64xf32>
      tpu.vector_store %arg22[%c0_207, %c512_208], %262 {strides = array<i32>} : memref<4x2304xf32, #tpu.memory_space<vmem>>, vector<4x64xf32>,
      %c1_i32_209 = arith.constant 1 : i32
      %264 = arith.addi %218, %c1_i32_209 : i32
      %265 = arith.index_cast %264 : i32 to index
      %c3_210 = arith.constant 3 : index
      %c0_211 = arith.constant 0 : index
      %266 = vector.load %arg17[%265, %c3_210, %c0_211] : memref<9x9x64xf32, #tpu.memory_space<vmem>>, vector<1x4x64xf32>
      %267 = vector.shape_cast %266 : vector<1x4x64xf32> to vector<4x64xf32>
      %c0_212 = arith.constant 0 : index
      %c576 = arith.constant 576 : index
      %268 = vector.load %arg22[%c0_212, %c576] : memref<4x2304xf32, #tpu.memory_space<vmem>>, vector<4x64xf32>
      tpu.vector_store %arg22[%c0_212, %c576], %267 {strides = array<i32>} : memref<4x2304xf32, #tpu.memory_space<vmem>>, vector<4x64xf32>,
      %c1_i32_213 = arith.constant 1 : i32
      %269 = arith.addi %218, %c1_i32_213 : i32
      %270 = arith.index_cast %269 : i32 to index
      %c4_214 = arith.constant 4 : index
      %c0_215 = arith.constant 0 : index
      %271 = vector.load %arg17[%270, %c4_214, %c0_215] : memref<9x9x64xf32, #tpu.memory_space<vmem>>, vector<1x4x64xf32>
      %272 = vector.shape_cast %271 : vector<1x4x64xf32> to vector<4x64xf32>
      %c0_216 = arith.constant 0 : index
      %c640_217 = arith.constant 640 : index
      %273 = vector.load %arg22[%c0_216, %c640_217] : memref<4x2304xf32, #tpu.memory_space<vmem>>, vector<4x64xf32>
      tpu.vector_store %arg22[%c0_216, %c640_217], %272 {strides = array<i32>} : memref<4x2304xf32, #tpu.memory_space<vmem>>, vector<4x64xf32>,
      %c1_i32_218 = arith.constant 1 : i32
      %274 = arith.addi %218, %c1_i32_218 : i32
      %275 = arith.index_cast %274 : i32 to index
      %c5_219 = arith.constant 5 : index
      %c0_220 = arith.constant 0 : index
      %276 = vector.load %arg17[%275, %c5_219, %c0_220] : memref<9x9x64xf32, #tpu.memory_space<vmem>>, vector<1x4x64xf32>
      %277 = vector.shape_cast %276 : vector<1x4x64xf32> to vector<4x64xf32>
      %c0_221 = arith.constant 0 : index
      %c704 = arith.constant 704 : index
      %278 = vector.load %arg22[%c0_221, %c704] : memref<4x2304xf32, #tpu.memory_space<vmem>>, vector<4x64xf32>
      tpu.vector_store %arg22[%c0_221, %c704], %277 {strides = array<i32>} : memref<4x2304xf32, #tpu.memory_space<vmem>>, vector<4x64xf32>,
      %c2_i32_222 = arith.constant 2 : i32
      %279 = arith.addi %218, %c2_i32_222 : i32
      %280 = arith.index_cast %279 : i32 to index
      %c0_223 = arith.constant 0 : index
      %c0_224 = arith.constant 0 : index
      %281 = vector.load %arg17[%280, %c0_223, %c0_224] : memref<9x9x64xf32, #tpu.memory_space<vmem>>, vector<1x4x64xf32>
      %282 = vector.shape_cast %281 : vector<1x4x64xf32> to vector<4x64xf32>
      %c0_225 = arith.constant 0 : index
      %c768_226 = arith.constant 768 : index
      %283 = vector.load %arg22[%c0_225, %c768_226] : memref<4x2304xf32, #tpu.memory_space<vmem>>, vector<4x64xf32>
      tpu.vector_store %arg22[%c0_225, %c768_226], %282 {strides = array<i32>} : memref<4x2304xf32, #tpu.memory_space<vmem>>, vector<4x64xf32>,
      %c2_i32_227 = arith.constant 2 : i32
      %284 = arith.addi %218, %c2_i32_227 : i32
      %285 = arith.index_cast %284 : i32 to index
      %c1_228 = arith.constant 1 : index
      %c0_229 = arith.constant 0 : index
      %286 = vector.load %arg17[%285, %c1_228, %c0_229] : memref<9x9x64xf32, #tpu.memory_space<vmem>>, vector<1x4x64xf32>
      %287 = vector.shape_cast %286 : vector<1x4x64xf32> to vector<4x64xf32>
      %c0_230 = arith.constant 0 : index
      %c832 = arith.constant 832 : index
      %288 = vector.load %arg22[%c0_230, %c832] : memref<4x2304xf32, #tpu.memory_space<vmem>>, vector<4x64xf32>
      tpu.vector_store %arg22[%c0_230, %c832], %287 {strides = array<i32>} : memref<4x2304xf32, #tpu.memory_space<vmem>>, vector<4x64xf32>,
      %c2_i32_231 = arith.constant 2 : i32
      %289 = arith.addi %218, %c2_i32_231 : i32
      %290 = arith.index_cast %289 : i32 to index
      %c2_232 = arith.constant 2 : index
      %c0_233 = arith.constant 0 : index
      %291 = vector.load %arg17[%290, %c2_232, %c0_233] : memref<9x9x64xf32, #tpu.memory_space<vmem>>, vector<1x4x64xf32>
      %292 = vector.shape_cast %291 : vector<1x4x64xf32> to vector<4x64xf32>
      %c0_234 = arith.constant 0 : index
      %c896_235 = arith.constant 896 : index
      %293 = vector.load %arg22[%c0_234, %c896_235] : memref<4x2304xf32, #tpu.memory_space<vmem>>, vector<4x64xf32>
      tpu.vector_store %arg22[%c0_234, %c896_235], %292 {strides = array<i32>} : memref<4x2304xf32, #tpu.memory_space<vmem>>, vector<4x64xf32>,
      %c2_i32_236 = arith.constant 2 : i32
      %294 = arith.addi %218, %c2_i32_236 : i32
      %295 = arith.index_cast %294 : i32 to index
      %c3_237 = arith.constant 3 : index
      %c0_238 = arith.constant 0 : index
      %296 = vector.load %arg17[%295, %c3_237, %c0_238] : memref<9x9x64xf32, #tpu.memory_space<vmem>>, vector<1x4x64xf32>
      %297 = vector.shape_cast %296 : vector<1x4x64xf32> to vector<4x64xf32>
      %c0_239 = arith.constant 0 : index
      %c960 = arith.constant 960 : index
      %298 = vector.load %arg22[%c0_239, %c960] : memref<4x2304xf32, #tpu.memory_space<vmem>>, vector<4x64xf32>
      tpu.vector_store %arg22[%c0_239, %c960], %297 {strides = array<i32>} : memref<4x2304xf32, #tpu.memory_space<vmem>>, vector<4x64xf32>,
      %c2_i32_240 = arith.constant 2 : i32
      %299 = arith.addi %218, %c2_i32_240 : i32
      %300 = arith.index_cast %299 : i32 to index
      %c4_241 = arith.constant 4 : index
      %c0_242 = arith.constant 0 : index
      %301 = vector.load %arg17[%300, %c4_241, %c0_242] : memref<9x9x64xf32, #tpu.memory_space<vmem>>, vector<1x4x64xf32>
      %302 = vector.shape_cast %301 : vector<1x4x64xf32> to vector<4x64xf32>
      %c0_243 = arith.constant 0 : index
      %c1024_244 = arith.constant 1024 : index
      %303 = vector.load %arg22[%c0_243, %c1024_244] : memref<4x2304xf32, #tpu.memory_space<vmem>>, vector<4x64xf32>
      tpu.vector_store %arg22[%c0_243, %c1024_244], %302 {strides = array<i32>} : memref<4x2304xf32, #tpu.memory_space<vmem>>, vector<4x64xf32>,
      %c2_i32_245 = arith.constant 2 : i32
      %304 = arith.addi %218, %c2_i32_245 : i32
      %305 = arith.index_cast %304 : i32 to index
      %c5_246 = arith.constant 5 : index
      %c0_247 = arith.constant 0 : index
      %306 = vector.load %arg17[%305, %c5_246, %c0_247] : memref<9x9x64xf32, #tpu.memory_space<vmem>>, vector<1x4x64xf32>
      %307 = vector.shape_cast %306 : vector<1x4x64xf32> to vector<4x64xf32>
      %c0_248 = arith.constant 0 : index
      %c1088 = arith.constant 1088 : index
      %308 = vector.load %arg22[%c0_248, %c1088] : memref<4x2304xf32, #tpu.memory_space<vmem>>, vector<4x64xf32>
      tpu.vector_store %arg22[%c0_248, %c1088], %307 {strides = array<i32>} : memref<4x2304xf32, #tpu.memory_space<vmem>>, vector<4x64xf32>,
      %c3_i32 = arith.constant 3 : i32
      %309 = arith.addi %218, %c3_i32 : i32
      %310 = arith.index_cast %309 : i32 to index
      %c0_249 = arith.constant 0 : index
      %c0_250 = arith.constant 0 : index
      %311 = vector.load %arg17[%310, %c0_249, %c0_250] : memref<9x9x64xf32, #tpu.memory_space<vmem>>, vector<1x4x64xf32>
      %312 = vector.shape_cast %311 : vector<1x4x64xf32> to vector<4x64xf32>
      %c0_251 = arith.constant 0 : index
      %c1152 = arith.constant 1152 : index
      %313 = vector.load %arg22[%c0_251, %c1152] : memref<4x2304xf32, #tpu.memory_space<vmem>>, vector<4x64xf32>
      tpu.vector_store %arg22[%c0_251, %c1152], %312 {strides = array<i32>} : memref<4x2304xf32, #tpu.memory_space<vmem>>, vector<4x64xf32>,
      %c3_i32_252 = arith.constant 3 : i32
      %314 = arith.addi %218, %c3_i32_252 : i32
      %315 = arith.index_cast %314 : i32 to index
      %c1_253 = arith.constant 1 : index
      %c0_254 = arith.constant 0 : index
      %316 = vector.load %arg17[%315, %c1_253, %c0_254] : memref<9x9x64xf32, #tpu.memory_space<vmem>>, vector<1x4x64xf32>
      %317 = vector.shape_cast %316 : vector<1x4x64xf32> to vector<4x64xf32>
      %c0_255 = arith.constant 0 : index
      %c1216 = arith.constant 1216 : index
      %318 = vector.load %arg22[%c0_255, %c1216] : memref<4x2304xf32, #tpu.memory_space<vmem>>, vector<4x64xf32>
      tpu.vector_store %arg22[%c0_255, %c1216], %317 {strides = array<i32>} : memref<4x2304xf32, #tpu.memory_space<vmem>>, vector<4x64xf32>,
      %c3_i32_256 = arith.constant 3 : i32
      %319 = arith.addi %218, %c3_i32_256 : i32
      %320 = arith.index_cast %319 : i32 to index
      %c2_257 = arith.constant 2 : index
      %c0_258 = arith.constant 0 : index
      %321 = vector.load %arg17[%320, %c2_257, %c0_258] : memref<9x9x64xf32, #tpu.memory_space<vmem>>, vector<1x4x64xf32>
      %322 = vector.shape_cast %321 : vector<1x4x64xf32> to vector<4x64xf32>
      %c0_259 = arith.constant 0 : index
      %c1280 = arith.constant 1280 : index
      %323 = vector.load %arg22[%c0_259, %c1280] : memref<4x2304xf32, #tpu.memory_space<vmem>>, vector<4x64xf32>
      tpu.vector_store %arg22[%c0_259, %c1280], %322 {strides = array<i32>} : memref<4x2304xf32, #tpu.memory_space<vmem>>, vector<4x64xf32>,
      %c3_i32_260 = arith.constant 3 : i32
      %324 = arith.addi %218, %c3_i32_260 : i32
      %325 = arith.index_cast %324 : i32 to index
      %c3_261 = arith.constant 3 : index
      %c0_262 = arith.constant 0 : index
      %326 = vector.load %arg17[%325, %c3_261, %c0_262] : memref<9x9x64xf32, #tpu.memory_space<vmem>>, vector<1x4x64xf32>
      %327 = vector.shape_cast %326 : vector<1x4x64xf32> to vector<4x64xf32>
      %c0_263 = arith.constant 0 : index
      %c1344 = arith.constant 1344 : index
      %328 = vector.load %arg22[%c0_263, %c1344] : memref<4x2304xf32, #tpu.memory_space<vmem>>, vector<4x64xf32>
      tpu.vector_store %arg22[%c0_263, %c1344], %327 {strides = array<i32>} : memref<4x2304xf32, #tpu.memory_space<vmem>>, vector<4x64xf32>,
      %c3_i32_264 = arith.constant 3 : i32
      %329 = arith.addi %218, %c3_i32_264 : i32
      %330 = arith.index_cast %329 : i32 to index
      %c4_265 = arith.constant 4 : index
      %c0_266 = arith.constant 0 : index
      %331 = vector.load %arg17[%330, %c4_265, %c0_266] : memref<9x9x64xf32, #tpu.memory_space<vmem>>, vector<1x4x64xf32>
      %332 = vector.shape_cast %331 : vector<1x4x64xf32> to vector<4x64xf32>
      %c0_267 = arith.constant 0 : index
      %c1408 = arith.constant 1408 : index
      %333 = vector.load %arg22[%c0_267, %c1408] : memref<4x2304xf32, #tpu.memory_space<vmem>>, vector<4x64xf32>
      tpu.vector_store %arg22[%c0_267, %c1408], %332 {strides = array<i32>} : memref<4x2304xf32, #tpu.memory_space<vmem>>, vector<4x64xf32>,
      %c3_i32_268 = arith.constant 3 : i32
      %334 = arith.addi %218, %c3_i32_268 : i32
      %335 = arith.index_cast %334 : i32 to index
      %c5_269 = arith.constant 5 : index
      %c0_270 = arith.constant 0 : index
      %336 = vector.load %arg17[%335, %c5_269, %c0_270] : memref<9x9x64xf32, #tpu.memory_space<vmem>>, vector<1x4x64xf32>
      %337 = vector.shape_cast %336 : vector<1x4x64xf32> to vector<4x64xf32>
      %c0_271 = arith.constant 0 : index
      %c1472 = arith.constant 1472 : index
      %338 = vector.load %arg22[%c0_271, %c1472] : memref<4x2304xf32, #tpu.memory_space<vmem>>, vector<4x64xf32>
      tpu.vector_store %arg22[%c0_271, %c1472], %337 {strides = array<i32>} : memref<4x2304xf32, #tpu.memory_space<vmem>>, vector<4x64xf32>,
      %c4_i32 = arith.constant 4 : i32
      %339 = arith.addi %218, %c4_i32 : i32
      %340 = arith.index_cast %339 : i32 to index
      %c0_272 = arith.constant 0 : index
      %c0_273 = arith.constant 0 : index
      %341 = vector.load %arg17[%340, %c0_272, %c0_273] : memref<9x9x64xf32, #tpu.memory_space<vmem>>, vector<1x4x64xf32>
      %342 = vector.shape_cast %341 : vector<1x4x64xf32> to vector<4x64xf32>
      %c0_274 = arith.constant 0 : index
      %c1536 = arith.constant 1536 : index
      %343 = vector.load %arg22[%c0_274, %c1536] : memref<4x2304xf32, #tpu.memory_space<vmem>>, vector<4x64xf32>
      tpu.vector_store %arg22[%c0_274, %c1536], %342 {strides = array<i32>} : memref<4x2304xf32, #tpu.memory_space<vmem>>, vector<4x64xf32>,
      %c4_i32_275 = arith.constant 4 : i32
      %344 = arith.addi %218, %c4_i32_275 : i32
      %345 = arith.index_cast %344 : i32 to index
      %c1_276 = arith.constant 1 : index
      %c0_277 = arith.constant 0 : index
      %346 = vector.load %arg17[%345, %c1_276, %c0_277] : memref<9x9x64xf32, #tpu.memory_space<vmem>>, vector<1x4x64xf32>
      %347 = vector.shape_cast %346 : vector<1x4x64xf32> to vector<4x64xf32>
      %c0_278 = arith.constant 0 : index
      %c1600 = arith.constant 1600 : index
      %348 = vector.load %arg22[%c0_278, %c1600] : memref<4x2304xf32, #tpu.memory_space<vmem>>, vector<4x64xf32>
      tpu.vector_store %arg22[%c0_278, %c1600], %347 {strides = array<i32>} : memref<4x2304xf32, #tpu.memory_space<vmem>>, vector<4x64xf32>,
      %c4_i32_279 = arith.constant 4 : i32
      %349 = arith.addi %218, %c4_i32_279 : i32
      %350 = arith.index_cast %349 : i32 to index
      %c2_280 = arith.constant 2 : index
      %c0_281 = arith.constant 0 : index
      %351 = vector.load %arg17[%350, %c2_280, %c0_281] : memref<9x9x64xf32, #tpu.memory_space<vmem>>, vector<1x4x64xf32>
      %352 = vector.shape_cast %351 : vector<1x4x64xf32> to vector<4x64xf32>
      %c0_282 = arith.constant 0 : index
      %c1664 = arith.constant 1664 : index
      %353 = vector.load %arg22[%c0_282, %c1664] : memref<4x2304xf32, #tpu.memory_space<vmem>>, vector<4x64xf32>
      tpu.vector_store %arg22[%c0_282, %c1664], %352 {strides = array<i32>} : memref<4x2304xf32, #tpu.memory_space<vmem>>, vector<4x64xf32>,
      %c4_i32_283 = arith.constant 4 : i32
      %354 = arith.addi %218, %c4_i32_283 : i32
      %355 = arith.index_cast %354 : i32 to index
      %c3_284 = arith.constant 3 : index
      %c0_285 = arith.constant 0 : index
      %356 = vector.load %arg17[%355, %c3_284, %c0_285] : memref<9x9x64xf32, #tpu.memory_space<vmem>>, vector<1x4x64xf32>
      %357 = vector.shape_cast %356 : vector<1x4x64xf32> to vector<4x64xf32>
      %c0_286 = arith.constant 0 : index
      %c1728 = arith.constant 1728 : index
      %358 = vector.load %arg22[%c0_286, %c1728] : memref<4x2304xf32, #tpu.memory_space<vmem>>, vector<4x64xf32>
      tpu.vector_store %arg22[%c0_286, %c1728], %357 {strides = array<i32>} : memref<4x2304xf32, #tpu.memory_space<vmem>>, vector<4x64xf32>,
      %c4_i32_287 = arith.constant 4 : i32
      %359 = arith.addi %218, %c4_i32_287 : i32
      %360 = arith.index_cast %359 : i32 to index
      %c4_288 = arith.constant 4 : index
      %c0_289 = arith.constant 0 : index
      %361 = vector.load %arg17[%360, %c4_288, %c0_289] : memref<9x9x64xf32, #tpu.memory_space<vmem>>, vector<1x4x64xf32>
      %362 = vector.shape_cast %361 : vector<1x4x64xf32> to vector<4x64xf32>
      %c0_290 = arith.constant 0 : index
      %c1792 = arith.constant 1792 : index
      %363 = vector.load %arg22[%c0_290, %c1792] : memref<4x2304xf32, #tpu.memory_space<vmem>>, vector<4x64xf32>
      tpu.vector_store %arg22[%c0_290, %c1792], %362 {strides = array<i32>} : memref<4x2304xf32, #tpu.memory_space<vmem>>, vector<4x64xf32>,
      %c4_i32_291 = arith.constant 4 : i32
      %364 = arith.addi %218, %c4_i32_291 : i32
      %365 = arith.index_cast %364 : i32 to index
      %c5_292 = arith.constant 5 : index
      %c0_293 = arith.constant 0 : index
      %366 = vector.load %arg17[%365, %c5_292, %c0_293] : memref<9x9x64xf32, #tpu.memory_space<vmem>>, vector<1x4x64xf32>
      %367 = vector.shape_cast %366 : vector<1x4x64xf32> to vector<4x64xf32>
      %c0_294 = arith.constant 0 : index
      %c1856 = arith.constant 1856 : index
      %368 = vector.load %arg22[%c0_294, %c1856] : memref<4x2304xf32, #tpu.memory_space<vmem>>, vector<4x64xf32>
      tpu.vector_store %arg22[%c0_294, %c1856], %367 {strides = array<i32>} : memref<4x2304xf32, #tpu.memory_space<vmem>>, vector<4x64xf32>,
      %c5_i32 = arith.constant 5 : i32
      %369 = arith.addi %218, %c5_i32 : i32
      %370 = arith.index_cast %369 : i32 to index
      %c0_295 = arith.constant 0 : index
      %c0_296 = arith.constant 0 : index
      %371 = vector.load %arg17[%370, %c0_295, %c0_296] : memref<9x9x64xf32, #tpu.memory_space<vmem>>, vector<1x4x64xf32>
      %372 = vector.shape_cast %371 : vector<1x4x64xf32> to vector<4x64xf32>
      %c0_297 = arith.constant 0 : index
      %c1920 = arith.constant 1920 : index
      %373 = vector.load %arg22[%c0_297, %c1920] : memref<4x2304xf32, #tpu.memory_space<vmem>>, vector<4x64xf32>
      tpu.vector_store %arg22[%c0_297, %c1920], %372 {strides = array<i32>} : memref<4x2304xf32, #tpu.memory_space<vmem>>, vector<4x64xf32>,
      %c5_i32_298 = arith.constant 5 : i32
      %374 = arith.addi %218, %c5_i32_298 : i32
      %375 = arith.index_cast %374 : i32 to index
      %c1_299 = arith.constant 1 : index
      %c0_300 = arith.constant 0 : index
      %376 = vector.load %arg17[%375, %c1_299, %c0_300] : memref<9x9x64xf32, #tpu.memory_space<vmem>>, vector<1x4x64xf32>
      %377 = vector.shape_cast %376 : vector<1x4x64xf32> to vector<4x64xf32>
      %c0_301 = arith.constant 0 : index
      %c1984 = arith.constant 1984 : index
      %378 = vector.load %arg22[%c0_301, %c1984] : memref<4x2304xf32, #tpu.memory_space<vmem>>, vector<4x64xf32>
      tpu.vector_store %arg22[%c0_301, %c1984], %377 {strides = array<i32>} : memref<4x2304xf32, #tpu.memory_space<vmem>>, vector<4x64xf32>,
      %c5_i32_302 = arith.constant 5 : i32
      %379 = arith.addi %218, %c5_i32_302 : i32
      %380 = arith.index_cast %379 : i32 to index
      %c2_303 = arith.constant 2 : index
      %c0_304 = arith.constant 0 : index
      %381 = vector.load %arg17[%380, %c2_303, %c0_304] : memref<9x9x64xf32, #tpu.memory_space<vmem>>, vector<1x4x64xf32>
      %382 = vector.shape_cast %381 : vector<1x4x64xf32> to vector<4x64xf32>
      %c0_305 = arith.constant 0 : index
      %c2048 = arith.constant 2048 : index
      %383 = vector.load %arg22[%c0_305, %c2048] : memref<4x2304xf32, #tpu.memory_space<vmem>>, vector<4x64xf32>
      tpu.vector_store %arg22[%c0_305, %c2048], %382 {strides = array<i32>} : memref<4x2304xf32, #tpu.memory_space<vmem>>, vector<4x64xf32>,
      %c5_i32_306 = arith.constant 5 : i32
      %384 = arith.addi %218, %c5_i32_306 : i32
      %385 = arith.index_cast %384 : i32 to index
      %c3_307 = arith.constant 3 : index
      %c0_308 = arith.constant 0 : index
      %386 = vector.load %arg17[%385, %c3_307, %c0_308] : memref<9x9x64xf32, #tpu.memory_space<vmem>>, vector<1x4x64xf32>
      %387 = vector.shape_cast %386 : vector<1x4x64xf32> to vector<4x64xf32>
      %c0_309 = arith.constant 0 : index
      %c2112 = arith.constant 2112 : index
      %388 = vector.load %arg22[%c0_309, %c2112] : memref<4x2304xf32, #tpu.memory_space<vmem>>, vector<4x64xf32>
      tpu.vector_store %arg22[%c0_309, %c2112], %387 {strides = array<i32>} : memref<4x2304xf32, #tpu.memory_space<vmem>>, vector<4x64xf32>,
      %c5_i32_310 = arith.constant 5 : i32
      %389 = arith.addi %218, %c5_i32_310 : i32
      %390 = arith.index_cast %389 : i32 to index
      %c4_311 = arith.constant 4 : index
      %c0_312 = arith.constant 0 : index
      %391 = vector.load %arg17[%390, %c4_311, %c0_312] : memref<9x9x64xf32, #tpu.memory_space<vmem>>, vector<1x4x64xf32>
      %392 = vector.shape_cast %391 : vector<1x4x64xf32> to vector<4x64xf32>
      %c0_313 = arith.constant 0 : index
      %c2176 = arith.constant 2176 : index
      %393 = vector.load %arg22[%c0_313, %c2176] : memref<4x2304xf32, #tpu.memory_space<vmem>>, vector<4x64xf32>
      tpu.vector_store %arg22[%c0_313, %c2176], %392 {strides = array<i32>} : memref<4x2304xf32, #tpu.memory_space<vmem>>, vector<4x64xf32>,
      %c5_i32_314 = arith.constant 5 : i32
      %394 = arith.addi %218, %c5_i32_314 : i32
      %395 = arith.index_cast %394 : i32 to index
      %c5_315 = arith.constant 5 : index
      %c0_316 = arith.constant 0 : index
      %396 = vector.load %arg17[%395, %c5_315, %c0_316] : memref<9x9x64xf32, #tpu.memory_space<vmem>>, vector<1x4x64xf32>
      %397 = vector.shape_cast %396 : vector<1x4x64xf32> to vector<4x64xf32>
      %c0_317 = arith.constant 0 : index
      %c2240 = arith.constant 2240 : index
      %398 = vector.load %arg22[%c0_317, %c2240] : memref<4x2304xf32, #tpu.memory_space<vmem>>, vector<4x64xf32>
      tpu.vector_store %arg22[%c0_317, %c2240], %397 {strides = array<i32>} : memref<4x2304xf32, #tpu.memory_space<vmem>>, vector<4x64xf32>,
      %c0_318 = arith.constant 0 : index
      %c0_319 = arith.constant 0 : index
      %399 = vector.load %arg22[%c0_318, %c0_319] : memref<4x2304xf32, #tpu.memory_space<vmem>>, vector<4x2304xf32>
      %400 = arith.truncf %399 : vector<4x2304xf32> to vector<4x2304xbf16>
      %c0_320 = arith.constant 0 : index
      %c0_321 = arith.constant 0 : index
      %401 = vector.load %arg6[%c0_320, %c0_321] : memref<2304x128xbf16, #tpu.memory_space<vmem>>, vector<2304x128xbf16>
      %cst_322 = arith.constant dense<0.000000e+00> : vector<4x128xf32>
      %402 = tpu.matmul %400, %401, %cst_322 {dimension_numbers = #tpu.dot_dimension_numbers<[1], [0], [0], [1], [0, 0, 1, 1], [], []>} : vector<4x2304xbf16>, vector<2304x128xbf16>, vector<4x128xf32> -> vector<4x128xf32>
      %403 = vector.broadcast %43 : vector<1x128xf32> to vector<4x128xf32>
      %404 = arith.addf %402, %403 : vector<4x128xf32>
      %cst_323 = arith.constant 0.000000e+00 : f32
      %405 = vector.broadcast %cst_323 : f32 to vector<4x128xf32>
      %406 = arith.cmpf oge, %404, %405 : vector<4x128xf32>
      %cst_324 = arith.constant 1.000000e-01 : f32
      %407 = vector.broadcast %cst_324 : f32 to vector<4x128xf32>
      %408 = arith.mulf %407, %404 : vector<4x128xf32>
      %409 = arith.select %406, %404, %408 : vector<4x128xi1>, vector<4x128xf32>
      %c2_i32_325 = arith.constant 2 : i32
      %410 = arith.muli %c2_i32_325, %arg24 : i32
      %c1_i32_326 = arith.constant 1 : i32
      %411 = arith.addi %410, %c1_i32_326 : i32
      %c0_i32_327 = arith.constant 0 : i32
      %412 = arith.addi %411, %c0_i32_327 : i32
      %413 = arith.index_cast %412 : i32 to index
      %c0_328 = arith.constant 0 : index
      %c0_329 = arith.constant 0 : index
      %414 = vector.load %arg17[%413, %c0_328, %c0_329] : memref<9x9x64xf32, #tpu.memory_space<vmem>>, vector<1x4x64xf32>
      %415 = vector.shape_cast %414 : vector<1x4x64xf32> to vector<4x64xf32>
      %c0_330 = arith.constant 0 : index
      %c0_331 = arith.constant 0 : index
      %416 = vector.load %arg22[%c0_330, %c0_331] : memref<4x2304xf32, #tpu.memory_space<vmem>>, vector<4x64xf32>
      tpu.vector_store %arg22[%c0_330, %c0_331], %415 {strides = array<i32>} : memref<4x2304xf32, #tpu.memory_space<vmem>>, vector<4x64xf32>,
      %c0_i32_332 = arith.constant 0 : i32
      %417 = arith.addi %411, %c0_i32_332 : i32
      %418 = arith.index_cast %417 : i32 to index
      %c1_333 = arith.constant 1 : index
      %c0_334 = arith.constant 0 : index
      %419 = vector.load %arg17[%418, %c1_333, %c0_334] : memref<9x9x64xf32, #tpu.memory_space<vmem>>, vector<1x4x64xf32>
      %420 = vector.shape_cast %419 : vector<1x4x64xf32> to vector<4x64xf32>
      %c0_335 = arith.constant 0 : index
      %c64_336 = arith.constant 64 : index
      %421 = vector.load %arg22[%c0_335, %c64_336] : memref<4x2304xf32, #tpu.memory_space<vmem>>, vector<4x64xf32>
      tpu.vector_store %arg22[%c0_335, %c64_336], %420 {strides = array<i32>} : memref<4x2304xf32, #tpu.memory_space<vmem>>, vector<4x64xf32>,
      %c0_i32_337 = arith.constant 0 : i32
      %422 = arith.addi %411, %c0_i32_337 : i32
      %423 = arith.index_cast %422 : i32 to index
      %c2_338 = arith.constant 2 : index
      %c0_339 = arith.constant 0 : index
      %424 = vector.load %arg17[%423, %c2_338, %c0_339] : memref<9x9x64xf32, #tpu.memory_space<vmem>>, vector<1x4x64xf32>
      %425 = vector.shape_cast %424 : vector<1x4x64xf32> to vector<4x64xf32>
      %c0_340 = arith.constant 0 : index
      %c128_341 = arith.constant 128 : index
      %426 = vector.load %arg22[%c0_340, %c128_341] : memref<4x2304xf32, #tpu.memory_space<vmem>>, vector<4x64xf32>
      tpu.vector_store %arg22[%c0_340, %c128_341], %425 {strides = array<i32>} : memref<4x2304xf32, #tpu.memory_space<vmem>>, vector<4x64xf32>,
      %c0_i32_342 = arith.constant 0 : i32
      %427 = arith.addi %411, %c0_i32_342 : i32
      %428 = arith.index_cast %427 : i32 to index
      %c3_343 = arith.constant 3 : index
      %c0_344 = arith.constant 0 : index
      %429 = vector.load %arg17[%428, %c3_343, %c0_344] : memref<9x9x64xf32, #tpu.memory_space<vmem>>, vector<1x4x64xf32>
      %430 = vector.shape_cast %429 : vector<1x4x64xf32> to vector<4x64xf32>
      %c0_345 = arith.constant 0 : index
      %c192_346 = arith.constant 192 : index
      %431 = vector.load %arg22[%c0_345, %c192_346] : memref<4x2304xf32, #tpu.memory_space<vmem>>, vector<4x64xf32>
      tpu.vector_store %arg22[%c0_345, %c192_346], %430 {strides = array<i32>} : memref<4x2304xf32, #tpu.memory_space<vmem>>, vector<4x64xf32>,
      %c0_i32_347 = arith.constant 0 : i32
      %432 = arith.addi %411, %c0_i32_347 : i32
      %433 = arith.index_cast %432 : i32 to index
      %c4_348 = arith.constant 4 : index
      %c0_349 = arith.constant 0 : index
      %434 = vector.load %arg17[%433, %c4_348, %c0_349] : memref<9x9x64xf32, #tpu.memory_space<vmem>>, vector<1x4x64xf32>
      %435 = vector.shape_cast %434 : vector<1x4x64xf32> to vector<4x64xf32>
      %c0_350 = arith.constant 0 : index
      %c256_351 = arith.constant 256 : index
      %436 = vector.load %arg22[%c0_350, %c256_351] : memref<4x2304xf32, #tpu.memory_space<vmem>>, vector<4x64xf32>
      tpu.vector_store %arg22[%c0_350, %c256_351], %435 {strides = array<i32>} : memref<4x2304xf32, #tpu.memory_space<vmem>>, vector<4x64xf32>,
      %c0_i32_352 = arith.constant 0 : i32
      %437 = arith.addi %411, %c0_i32_352 : i32
      %438 = arith.index_cast %437 : i32 to index
      %c5_353 = arith.constant 5 : index
      %c0_354 = arith.constant 0 : index
      %439 = vector.load %arg17[%438, %c5_353, %c0_354] : memref<9x9x64xf32, #tpu.memory_space<vmem>>, vector<1x4x64xf32>
      %440 = vector.shape_cast %439 : vector<1x4x64xf32> to vector<4x64xf32>
      %c0_355 = arith.constant 0 : index
      %c320_356 = arith.constant 320 : index
      %441 = vector.load %arg22[%c0_355, %c320_356] : memref<4x2304xf32, #tpu.memory_space<vmem>>, vector<4x64xf32>
      tpu.vector_store %arg22[%c0_355, %c320_356], %440 {strides = array<i32>} : memref<4x2304xf32, #tpu.memory_space<vmem>>, vector<4x64xf32>,
      %c1_i32_357 = arith.constant 1 : i32
      %442 = arith.addi %411, %c1_i32_357 : i32
      %443 = arith.index_cast %442 : i32 to index
      %c0_358 = arith.constant 0 : index
      %c0_359 = arith.constant 0 : index
      %444 = vector.load %arg17[%443, %c0_358, %c0_359] : memref<9x9x64xf32, #tpu.memory_space<vmem>>, vector<1x4x64xf32>
      %445 = vector.shape_cast %444 : vector<1x4x64xf32> to vector<4x64xf32>
      %c0_360 = arith.constant 0 : index
      %c384_361 = arith.constant 384 : index
      %446 = vector.load %arg22[%c0_360, %c384_361] : memref<4x2304xf32, #tpu.memory_space<vmem>>, vector<4x64xf32>
      tpu.vector_store %arg22[%c0_360, %c384_361], %445 {strides = array<i32>} : memref<4x2304xf32, #tpu.memory_space<vmem>>, vector<4x64xf32>,
      %c1_i32_362 = arith.constant 1 : i32
      %447 = arith.addi %411, %c1_i32_362 : i32
      %448 = arith.index_cast %447 : i32 to index
      %c1_363 = arith.constant 1 : index
      %c0_364 = arith.constant 0 : index
      %449 = vector.load %arg17[%448, %c1_363, %c0_364] : memref<9x9x64xf32, #tpu.memory_space<vmem>>, vector<1x4x64xf32>
      %450 = vector.shape_cast %449 : vector<1x4x64xf32> to vector<4x64xf32>
      %c0_365 = arith.constant 0 : index
      %c448_366 = arith.constant 448 : index
      %451 = vector.load %arg22[%c0_365, %c448_366] : memref<4x2304xf32, #tpu.memory_space<vmem>>, vector<4x64xf32>
      tpu.vector_store %arg22[%c0_365, %c448_366], %450 {strides = array<i32>} : memref<4x2304xf32, #tpu.memory_space<vmem>>, vector<4x64xf32>,
      %c1_i32_367 = arith.constant 1 : i32
      %452 = arith.addi %411, %c1_i32_367 : i32
      %453 = arith.index_cast %452 : i32 to index
      %c2_368 = arith.constant 2 : index
      %c0_369 = arith.constant 0 : index
      %454 = vector.load %arg17[%453, %c2_368, %c0_369] : memref<9x9x64xf32, #tpu.memory_space<vmem>>, vector<1x4x64xf32>
      %455 = vector.shape_cast %454 : vector<1x4x64xf32> to vector<4x64xf32>
      %c0_370 = arith.constant 0 : index
      %c512_371 = arith.constant 512 : index
      %456 = vector.load %arg22[%c0_370, %c512_371] : memref<4x2304xf32, #tpu.memory_space<vmem>>, vector<4x64xf32>
      tpu.vector_store %arg22[%c0_370, %c512_371], %455 {strides = array<i32>} : memref<4x2304xf32, #tpu.memory_space<vmem>>, vector<4x64xf32>,
      %c1_i32_372 = arith.constant 1 : i32
      %457 = arith.addi %411, %c1_i32_372 : i32
      %458 = arith.index_cast %457 : i32 to index
      %c3_373 = arith.constant 3 : index
      %c0_374 = arith.constant 0 : index
      %459 = vector.load %arg17[%458, %c3_373, %c0_374] : memref<9x9x64xf32, #tpu.memory_space<vmem>>, vector<1x4x64xf32>
      %460 = vector.shape_cast %459 : vector<1x4x64xf32> to vector<4x64xf32>
      %c0_375 = arith.constant 0 : index
      %c576_376 = arith.constant 576 : index
      %461 = vector.load %arg22[%c0_375, %c576_376] : memref<4x2304xf32, #tpu.memory_space<vmem>>, vector<4x64xf32>
      tpu.vector_store %arg22[%c0_375, %c576_376], %460 {strides = array<i32>} : memref<4x2304xf32, #tpu.memory_space<vmem>>, vector<4x64xf32>,
      %c1_i32_377 = arith.constant 1 : i32
      %462 = arith.addi %411, %c1_i32_377 : i32
      %463 = arith.index_cast %462 : i32 to index
      %c4_378 = arith.constant 4 : index
      %c0_379 = arith.constant 0 : index
      %464 = vector.load %arg17[%463, %c4_378, %c0_379] : memref<9x9x64xf32, #tpu.memory_space<vmem>>, vector<1x4x64xf32>
      %465 = vector.shape_cast %464 : vector<1x4x64xf32> to vector<4x64xf32>
      %c0_380 = arith.constant 0 : index
      %c640_381 = arith.constant 640 : index
      %466 = vector.load %arg22[%c0_380, %c640_381] : memref<4x2304xf32, #tpu.memory_space<vmem>>, vector<4x64xf32>
      tpu.vector_store %arg22[%c0_380, %c640_381], %465 {strides = array<i32>} : memref<4x2304xf32, #tpu.memory_space<vmem>>, vector<4x64xf32>,
      %c1_i32_382 = arith.constant 1 : i32
      %467 = arith.addi %411, %c1_i32_382 : i32
      %468 = arith.index_cast %467 : i32 to index
      %c5_383 = arith.constant 5 : index
      %c0_384 = arith.constant 0 : index
      %469 = vector.load %arg17[%468, %c5_383, %c0_384] : memref<9x9x64xf32, #tpu.memory_space<vmem>>, vector<1x4x64xf32>
      %470 = vector.shape_cast %469 : vector<1x4x64xf32> to vector<4x64xf32>
      %c0_385 = arith.constant 0 : index
      %c704_386 = arith.constant 704 : index
      %471 = vector.load %arg22[%c0_385, %c704_386] : memref<4x2304xf32, #tpu.memory_space<vmem>>, vector<4x64xf32>
      tpu.vector_store %arg22[%c0_385, %c704_386], %470 {strides = array<i32>} : memref<4x2304xf32, #tpu.memory_space<vmem>>, vector<4x64xf32>,
      %c2_i32_387 = arith.constant 2 : i32
      %472 = arith.addi %411, %c2_i32_387 : i32
      %473 = arith.index_cast %472 : i32 to index
      %c0_388 = arith.constant 0 : index
      %c0_389 = arith.constant 0 : index
      %474 = vector.load %arg17[%473, %c0_388, %c0_389] : memref<9x9x64xf32, #tpu.memory_space<vmem>>, vector<1x4x64xf32>
      %475 = vector.shape_cast %474 : vector<1x4x64xf32> to vector<4x64xf32>
      %c0_390 = arith.constant 0 : index
      %c768_391 = arith.constant 768 : index
      %476 = vector.load %arg22[%c0_390, %c768_391] : memref<4x2304xf32, #tpu.memory_space<vmem>>, vector<4x64xf32>
      tpu.vector_store %arg22[%c0_390, %c768_391], %475 {strides = array<i32>} : memref<4x2304xf32, #tpu.memory_space<vmem>>, vector<4x64xf32>,
      %c2_i32_392 = arith.constant 2 : i32
      %477 = arith.addi %411, %c2_i32_392 : i32
      %478 = arith.index_cast %477 : i32 to index
      %c1_393 = arith.constant 1 : index
      %c0_394 = arith.constant 0 : index
      %479 = vector.load %arg17[%478, %c1_393, %c0_394] : memref<9x9x64xf32, #tpu.memory_space<vmem>>, vector<1x4x64xf32>
      %480 = vector.shape_cast %479 : vector<1x4x64xf32> to vector<4x64xf32>
      %c0_395 = arith.constant 0 : index
      %c832_396 = arith.constant 832 : index
      %481 = vector.load %arg22[%c0_395, %c832_396] : memref<4x2304xf32, #tpu.memory_space<vmem>>, vector<4x64xf32>
      tpu.vector_store %arg22[%c0_395, %c832_396], %480 {strides = array<i32>} : memref<4x2304xf32, #tpu.memory_space<vmem>>, vector<4x64xf32>,
      %c2_i32_397 = arith.constant 2 : i32
      %482 = arith.addi %411, %c2_i32_397 : i32
      %483 = arith.index_cast %482 : i32 to index
      %c2_398 = arith.constant 2 : index
      %c0_399 = arith.constant 0 : index
      %484 = vector.load %arg17[%483, %c2_398, %c0_399] : memref<9x9x64xf32, #tpu.memory_space<vmem>>, vector<1x4x64xf32>
      %485 = vector.shape_cast %484 : vector<1x4x64xf32> to vector<4x64xf32>
      %c0_400 = arith.constant 0 : index
      %c896_401 = arith.constant 896 : index
      %486 = vector.load %arg22[%c0_400, %c896_401] : memref<4x2304xf32, #tpu.memory_space<vmem>>, vector<4x64xf32>
      tpu.vector_store %arg22[%c0_400, %c896_401], %485 {strides = array<i32>} : memref<4x2304xf32, #tpu.memory_space<vmem>>, vector<4x64xf32>,
      %c2_i32_402 = arith.constant 2 : i32
      %487 = arith.addi %411, %c2_i32_402 : i32
      %488 = arith.index_cast %487 : i32 to index
      %c3_403 = arith.constant 3 : index
      %c0_404 = arith.constant 0 : index
      %489 = vector.load %arg17[%488, %c3_403, %c0_404] : memref<9x9x64xf32, #tpu.memory_space<vmem>>, vector<1x4x64xf32>
      %490 = vector.shape_cast %489 : vector<1x4x64xf32> to vector<4x64xf32>
      %c0_405 = arith.constant 0 : index
      %c960_406 = arith.constant 960 : index
      %491 = vector.load %arg22[%c0_405, %c960_406] : memref<4x2304xf32, #tpu.memory_space<vmem>>, vector<4x64xf32>
      tpu.vector_store %arg22[%c0_405, %c960_406], %490 {strides = array<i32>} : memref<4x2304xf32, #tpu.memory_space<vmem>>, vector<4x64xf32>,
      %c2_i32_407 = arith.constant 2 : i32
      %492 = arith.addi %411, %c2_i32_407 : i32
      %493 = arith.index_cast %492 : i32 to index
      %c4_408 = arith.constant 4 : index
      %c0_409 = arith.constant 0 : index
      %494 = vector.load %arg17[%493, %c4_408, %c0_409] : memref<9x9x64xf32, #tpu.memory_space<vmem>>, vector<1x4x64xf32>
      %495 = vector.shape_cast %494 : vector<1x4x64xf32> to vector<4x64xf32>
      %c0_410 = arith.constant 0 : index
      %c1024_411 = arith.constant 1024 : index
      %496 = vector.load %arg22[%c0_410, %c1024_411] : memref<4x2304xf32, #tpu.memory_space<vmem>>, vector<4x64xf32>
      tpu.vector_store %arg22[%c0_410, %c1024_411], %495 {strides = array<i32>} : memref<4x2304xf32, #tpu.memory_space<vmem>>, vector<4x64xf32>,
      %c2_i32_412 = arith.constant 2 : i32
      %497 = arith.addi %411, %c2_i32_412 : i32
      %498 = arith.index_cast %497 : i32 to index
      %c5_413 = arith.constant 5 : index
      %c0_414 = arith.constant 0 : index
      %499 = vector.load %arg17[%498, %c5_413, %c0_414] : memref<9x9x64xf32, #tpu.memory_space<vmem>>, vector<1x4x64xf32>
      %500 = vector.shape_cast %499 : vector<1x4x64xf32> to vector<4x64xf32>
      %c0_415 = arith.constant 0 : index
      %c1088_416 = arith.constant 1088 : index
      %501 = vector.load %arg22[%c0_415, %c1088_416] : memref<4x2304xf32, #tpu.memory_space<vmem>>, vector<4x64xf32>
      tpu.vector_store %arg22[%c0_415, %c1088_416], %500 {strides = array<i32>} : memref<4x2304xf32, #tpu.memory_space<vmem>>, vector<4x64xf32>,
      %c3_i32_417 = arith.constant 3 : i32
      %502 = arith.addi %411, %c3_i32_417 : i32
      %503 = arith.index_cast %502 : i32 to index
      %c0_418 = arith.constant 0 : index
      %c0_419 = arith.constant 0 : index
      %504 = vector.load %arg17[%503, %c0_418, %c0_419] : memref<9x9x64xf32, #tpu.memory_space<vmem>>, vector<1x4x64xf32>
      %505 = vector.shape_cast %504 : vector<1x4x64xf32> to vector<4x64xf32>
      %c0_420 = arith.constant 0 : index
      %c1152_421 = arith.constant 1152 : index
      %506 = vector.load %arg22[%c0_420, %c1152_421] : memref<4x2304xf32, #tpu.memory_space<vmem>>, vector<4x64xf32>
      tpu.vector_store %arg22[%c0_420, %c1152_421], %505 {strides = array<i32>} : memref<4x2304xf32, #tpu.memory_space<vmem>>, vector<4x64xf32>,
      %c3_i32_422 = arith.constant 3 : i32
      %507 = arith.addi %411, %c3_i32_422 : i32
      %508 = arith.index_cast %507 : i32 to index
      %c1_423 = arith.constant 1 : index
      %c0_424 = arith.constant 0 : index
      %509 = vector.load %arg17[%508, %c1_423, %c0_424] : memref<9x9x64xf32, #tpu.memory_space<vmem>>, vector<1x4x64xf32>
      %510 = vector.shape_cast %509 : vector<1x4x64xf32> to vector<4x64xf32>
      %c0_425 = arith.constant 0 : index
      %c1216_426 = arith.constant 1216 : index
      %511 = vector.load %arg22[%c0_425, %c1216_426] : memref<4x2304xf32, #tpu.memory_space<vmem>>, vector<4x64xf32>
      tpu.vector_store %arg22[%c0_425, %c1216_426], %510 {strides = array<i32>} : memref<4x2304xf32, #tpu.memory_space<vmem>>, vector<4x64xf32>,
      %c3_i32_427 = arith.constant 3 : i32
      %512 = arith.addi %411, %c3_i32_427 : i32
      %513 = arith.index_cast %512 : i32 to index
      %c2_428 = arith.constant 2 : index
      %c0_429 = arith.constant 0 : index
      %514 = vector.load %arg17[%513, %c2_428, %c0_429] : memref<9x9x64xf32, #tpu.memory_space<vmem>>, vector<1x4x64xf32>
      %515 = vector.shape_cast %514 : vector<1x4x64xf32> to vector<4x64xf32>
      %c0_430 = arith.constant 0 : index
      %c1280_431 = arith.constant 1280 : index
      %516 = vector.load %arg22[%c0_430, %c1280_431] : memref<4x2304xf32, #tpu.memory_space<vmem>>, vector<4x64xf32>
      tpu.vector_store %arg22[%c0_430, %c1280_431], %515 {strides = array<i32>} : memref<4x2304xf32, #tpu.memory_space<vmem>>, vector<4x64xf32>,
      %c3_i32_432 = arith.constant 3 : i32
      %517 = arith.addi %411, %c3_i32_432 : i32
      %518 = arith.index_cast %517 : i32 to index
      %c3_433 = arith.constant 3 : index
      %c0_434 = arith.constant 0 : index
      %519 = vector.load %arg17[%518, %c3_433, %c0_434] : memref<9x9x64xf32, #tpu.memory_space<vmem>>, vector<1x4x64xf32>
      %520 = vector.shape_cast %519 : vector<1x4x64xf32> to vector<4x64xf32>
      %c0_435 = arith.constant 0 : index
      %c1344_436 = arith.constant 1344 : index
      %521 = vector.load %arg22[%c0_435, %c1344_436] : memref<4x2304xf32, #tpu.memory_space<vmem>>, vector<4x64xf32>
      tpu.vector_store %arg22[%c0_435, %c1344_436], %520 {strides = array<i32>} : memref<4x2304xf32, #tpu.memory_space<vmem>>, vector<4x64xf32>,
      %c3_i32_437 = arith.constant 3 : i32
      %522 = arith.addi %411, %c3_i32_437 : i32
      %523 = arith.index_cast %522 : i32 to index
      %c4_438 = arith.constant 4 : index
      %c0_439 = arith.constant 0 : index
      %524 = vector.load %arg17[%523, %c4_438, %c0_439] : memref<9x9x64xf32, #tpu.memory_space<vmem>>, vector<1x4x64xf32>
      %525 = vector.shape_cast %524 : vector<1x4x64xf32> to vector<4x64xf32>
      %c0_440 = arith.constant 0 : index
      %c1408_441 = arith.constant 1408 : index
      %526 = vector.load %arg22[%c0_440, %c1408_441] : memref<4x2304xf32, #tpu.memory_space<vmem>>, vector<4x64xf32>
      tpu.vector_store %arg22[%c0_440, %c1408_441], %525 {strides = array<i32>} : memref<4x2304xf32, #tpu.memory_space<vmem>>, vector<4x64xf32>,
      %c3_i32_442 = arith.constant 3 : i32
      %527 = arith.addi %411, %c3_i32_442 : i32
      %528 = arith.index_cast %527 : i32 to index
      %c5_443 = arith.constant 5 : index
      %c0_444 = arith.constant 0 : index
      %529 = vector.load %arg17[%528, %c5_443, %c0_444] : memref<9x9x64xf32, #tpu.memory_space<vmem>>, vector<1x4x64xf32>
      %530 = vector.shape_cast %529 : vector<1x4x64xf32> to vector<4x64xf32>
      %c0_445 = arith.constant 0 : index
      %c1472_446 = arith.constant 1472 : index
      %531 = vector.load %arg22[%c0_445, %c1472_446] : memref<4x2304xf32, #tpu.memory_space<vmem>>, vector<4x64xf32>
      tpu.vector_store %arg22[%c0_445, %c1472_446], %530 {strides = array<i32>} : memref<4x2304xf32, #tpu.memory_space<vmem>>, vector<4x64xf32>,
      %c4_i32_447 = arith.constant 4 : i32
      %532 = arith.addi %411, %c4_i32_447 : i32
      %533 = arith.index_cast %532 : i32 to index
      %c0_448 = arith.constant 0 : index
      %c0_449 = arith.constant 0 : index
      %534 = vector.load %arg17[%533, %c0_448, %c0_449] : memref<9x9x64xf32, #tpu.memory_space<vmem>>, vector<1x4x64xf32>
      %535 = vector.shape_cast %534 : vector<1x4x64xf32> to vector<4x64xf32>
      %c0_450 = arith.constant 0 : index
      %c1536_451 = arith.constant 1536 : index
      %536 = vector.load %arg22[%c0_450, %c1536_451] : memref<4x2304xf32, #tpu.memory_space<vmem>>, vector<4x64xf32>
      tpu.vector_store %arg22[%c0_450, %c1536_451], %535 {strides = array<i32>} : memref<4x2304xf32, #tpu.memory_space<vmem>>, vector<4x64xf32>,
      %c4_i32_452 = arith.constant 4 : i32
      %537 = arith.addi %411, %c4_i32_452 : i32
      %538 = arith.index_cast %537 : i32 to index
      %c1_453 = arith.constant 1 : index
      %c0_454 = arith.constant 0 : index
      %539 = vector.load %arg17[%538, %c1_453, %c0_454] : memref<9x9x64xf32, #tpu.memory_space<vmem>>, vector<1x4x64xf32>
      %540 = vector.shape_cast %539 : vector<1x4x64xf32> to vector<4x64xf32>
      %c0_455 = arith.constant 0 : index
      %c1600_456 = arith.constant 1600 : index
      %541 = vector.load %arg22[%c0_455, %c1600_456] : memref<4x2304xf32, #tpu.memory_space<vmem>>, vector<4x64xf32>
      tpu.vector_store %arg22[%c0_455, %c1600_456], %540 {strides = array<i32>} : memref<4x2304xf32, #tpu.memory_space<vmem>>, vector<4x64xf32>,
      %c4_i32_457 = arith.constant 4 : i32
      %542 = arith.addi %411, %c4_i32_457 : i32
      %543 = arith.index_cast %542 : i32 to index
      %c2_458 = arith.constant 2 : index
      %c0_459 = arith.constant 0 : index
      %544 = vector.load %arg17[%543, %c2_458, %c0_459] : memref<9x9x64xf32, #tpu.memory_space<vmem>>, vector<1x4x64xf32>
      %545 = vector.shape_cast %544 : vector<1x4x64xf32> to vector<4x64xf32>
      %c0_460 = arith.constant 0 : index
      %c1664_461 = arith.constant 1664 : index
      %546 = vector.load %arg22[%c0_460, %c1664_461] : memref<4x2304xf32, #tpu.memory_space<vmem>>, vector<4x64xf32>
      tpu.vector_store %arg22[%c0_460, %c1664_461], %545 {strides = array<i32>} : memref<4x2304xf32, #tpu.memory_space<vmem>>, vector<4x64xf32>,
      %c4_i32_462 = arith.constant 4 : i32
      %547 = arith.addi %411, %c4_i32_462 : i32
      %548 = arith.index_cast %547 : i32 to index
      %c3_463 = arith.constant 3 : index
      %c0_464 = arith.constant 0 : index
      %549 = vector.load %arg17[%548, %c3_463, %c0_464] : memref<9x9x64xf32, #tpu.memory_space<vmem>>, vector<1x4x64xf32>
      %550 = vector.shape_cast %549 : vector<1x4x64xf32> to vector<4x64xf32>
      %c0_465 = arith.constant 0 : index
      %c1728_466 = arith.constant 1728 : index
      %551 = vector.load %arg22[%c0_465, %c1728_466] : memref<4x2304xf32, #tpu.memory_space<vmem>>, vector<4x64xf32>
      tpu.vector_store %arg22[%c0_465, %c1728_466], %550 {strides = array<i32>} : memref<4x2304xf32, #tpu.memory_space<vmem>>, vector<4x64xf32>,
      %c4_i32_467 = arith.constant 4 : i32
      %552 = arith.addi %411, %c4_i32_467 : i32
      %553 = arith.index_cast %552 : i32 to index
      %c4_468 = arith.constant 4 : index
      %c0_469 = arith.constant 0 : index
      %554 = vector.load %arg17[%553, %c4_468, %c0_469] : memref<9x9x64xf32, #tpu.memory_space<vmem>>, vector<1x4x64xf32>
      %555 = vector.shape_cast %554 : vector<1x4x64xf32> to vector<4x64xf32>
      %c0_470 = arith.constant 0 : index
      %c1792_471 = arith.constant 1792 : index
      %556 = vector.load %arg22[%c0_470, %c1792_471] : memref<4x2304xf32, #tpu.memory_space<vmem>>, vector<4x64xf32>
      tpu.vector_store %arg22[%c0_470, %c1792_471], %555 {strides = array<i32>} : memref<4x2304xf32, #tpu.memory_space<vmem>>, vector<4x64xf32>,
      %c4_i32_472 = arith.constant 4 : i32
      %557 = arith.addi %411, %c4_i32_472 : i32
      %558 = arith.index_cast %557 : i32 to index
      %c5_473 = arith.constant 5 : index
      %c0_474 = arith.constant 0 : index
      %559 = vector.load %arg17[%558, %c5_473, %c0_474] : memref<9x9x64xf32, #tpu.memory_space<vmem>>, vector<1x4x64xf32>
      %560 = vector.shape_cast %559 : vector<1x4x64xf32> to vector<4x64xf32>
      %c0_475 = arith.constant 0 : index
      %c1856_476 = arith.constant 1856 : index
      %561 = vector.load %arg22[%c0_475, %c1856_476] : memref<4x2304xf32, #tpu.memory_space<vmem>>, vector<4x64xf32>
      tpu.vector_store %arg22[%c0_475, %c1856_476], %560 {strides = array<i32>} : memref<4x2304xf32, #tpu.memory_space<vmem>>, vector<4x64xf32>,
      %c5_i32_477 = arith.constant 5 : i32
      %562 = arith.addi %411, %c5_i32_477 : i32
      %563 = arith.index_cast %562 : i32 to index
      %c0_478 = arith.constant 0 : index
      %c0_479 = arith.constant 0 : index
      %564 = vector.load %arg17[%563, %c0_478, %c0_479] : memref<9x9x64xf32, #tpu.memory_space<vmem>>, vector<1x4x64xf32>
      %565 = vector.shape_cast %564 : vector<1x4x64xf32> to vector<4x64xf32>
      %c0_480 = arith.constant 0 : index
      %c1920_481 = arith.constant 1920 : index
      %566 = vector.load %arg22[%c0_480, %c1920_481] : memref<4x2304xf32, #tpu.memory_space<vmem>>, vector<4x64xf32>
      tpu.vector_store %arg22[%c0_480, %c1920_481], %565 {strides = array<i32>} : memref<4x2304xf32, #tpu.memory_space<vmem>>, vector<4x64xf32>,
      %c5_i32_482 = arith.constant 5 : i32
      %567 = arith.addi %411, %c5_i32_482 : i32
      %568 = arith.index_cast %567 : i32 to index
      %c1_483 = arith.constant 1 : index
      %c0_484 = arith.constant 0 : index
      %569 = vector.load %arg17[%568, %c1_483, %c0_484] : memref<9x9x64xf32, #tpu.memory_space<vmem>>, vector<1x4x64xf32>
      %570 = vector.shape_cast %569 : vector<1x4x64xf32> to vector<4x64xf32>
      %c0_485 = arith.constant 0 : index
      %c1984_486 = arith.constant 1984 : index
      %571 = vector.load %arg22[%c0_485, %c1984_486] : memref<4x2304xf32, #tpu.memory_space<vmem>>, vector<4x64xf32>
      tpu.vector_store %arg22[%c0_485, %c1984_486], %570 {strides = array<i32>} : memref<4x2304xf32, #tpu.memory_space<vmem>>, vector<4x64xf32>,
      %c5_i32_487 = arith.constant 5 : i32
      %572 = arith.addi %411, %c5_i32_487 : i32
      %573 = arith.index_cast %572 : i32 to index
      %c2_488 = arith.constant 2 : index
      %c0_489 = arith.constant 0 : index
      %574 = vector.load %arg17[%573, %c2_488, %c0_489] : memref<9x9x64xf32, #tpu.memory_space<vmem>>, vector<1x4x64xf32>
      %575 = vector.shape_cast %574 : vector<1x4x64xf32> to vector<4x64xf32>
      %c0_490 = arith.constant 0 : index
      %c2048_491 = arith.constant 2048 : index
      %576 = vector.load %arg22[%c0_490, %c2048_491] : memref<4x2304xf32, #tpu.memory_space<vmem>>, vector<4x64xf32>
      tpu.vector_store %arg22[%c0_490, %c2048_491], %575 {strides = array<i32>} : memref<4x2304xf32, #tpu.memory_space<vmem>>, vector<4x64xf32>,
      %c5_i32_492 = arith.constant 5 : i32
      %577 = arith.addi %411, %c5_i32_492 : i32
      %578 = arith.index_cast %577 : i32 to index
      %c3_493 = arith.constant 3 : index
      %c0_494 = arith.constant 0 : index
      %579 = vector.load %arg17[%578, %c3_493, %c0_494] : memref<9x9x64xf32, #tpu.memory_space<vmem>>, vector<1x4x64xf32>
      %580 = vector.shape_cast %579 : vector<1x4x64xf32> to vector<4x64xf32>
      %c0_495 = arith.constant 0 : index
      %c2112_496 = arith.constant 2112 : index
      %581 = vector.load %arg22[%c0_495, %c2112_496] : memref<4x2304xf32, #tpu.memory_space<vmem>>, vector<4x64xf32>
      tpu.vector_store %arg22[%c0_495, %c2112_496], %580 {strides = array<i32>} : memref<4x2304xf32, #tpu.memory_space<vmem>>, vector<4x64xf32>,
      %c5_i32_497 = arith.constant 5 : i32
      %582 = arith.addi %411, %c5_i32_497 : i32
      %583 = arith.index_cast %582 : i32 to index
      %c4_498 = arith.constant 4 : index
      %c0_499 = arith.constant 0 : index
      %584 = vector.load %arg17[%583, %c4_498, %c0_499] : memref<9x9x64xf32, #tpu.memory_space<vmem>>, vector<1x4x64xf32>
      %585 = vector.shape_cast %584 : vector<1x4x64xf32> to vector<4x64xf32>
      %c0_500 = arith.constant 0 : index
      %c2176_501 = arith.constant 2176 : index
      %586 = vector.load %arg22[%c0_500, %c2176_501] : memref<4x2304xf32, #tpu.memory_space<vmem>>, vector<4x64xf32>
      tpu.vector_store %arg22[%c0_500, %c2176_501], %585 {strides = array<i32>} : memref<4x2304xf32, #tpu.memory_space<vmem>>, vector<4x64xf32>,
      %c5_i32_502 = arith.constant 5 : i32
      %587 = arith.addi %411, %c5_i32_502 : i32
      %588 = arith.index_cast %587 : i32 to index
      %c5_503 = arith.constant 5 : index
      %c0_504 = arith.constant 0 : index
      %589 = vector.load %arg17[%588, %c5_503, %c0_504] : memref<9x9x64xf32, #tpu.memory_space<vmem>>, vector<1x4x64xf32>
      %590 = vector.shape_cast %589 : vector<1x4x64xf32> to vector<4x64xf32>
      %c0_505 = arith.constant 0 : index
      %c2240_506 = arith.constant 2240 : index
      %591 = vector.load %arg22[%c0_505, %c2240_506] : memref<4x2304xf32, #tpu.memory_space<vmem>>, vector<4x64xf32>
      tpu.vector_store %arg22[%c0_505, %c2240_506], %590 {strides = array<i32>} : memref<4x2304xf32, #tpu.memory_space<vmem>>, vector<4x64xf32>,
      %c0_507 = arith.constant 0 : index
      %c0_508 = arith.constant 0 : index
      %592 = vector.load %arg22[%c0_507, %c0_508] : memref<4x2304xf32, #tpu.memory_space<vmem>>, vector<4x2304xf32>
      %593 = arith.truncf %592 : vector<4x2304xf32> to vector<4x2304xbf16>
      %c0_509 = arith.constant 0 : index
      %c0_510 = arith.constant 0 : index
      %594 = vector.load %arg6[%c0_509, %c0_510] : memref<2304x128xbf16, #tpu.memory_space<vmem>>, vector<2304x128xbf16>
      %cst_511 = arith.constant dense<0.000000e+00> : vector<4x128xf32>
      %595 = tpu.matmul %593, %594, %cst_511 {dimension_numbers = #tpu.dot_dimension_numbers<[1], [0], [0], [1], [0, 0, 1, 1], [], []>} : vector<4x2304xbf16>, vector<2304x128xbf16>, vector<4x128xf32> -> vector<4x128xf32>
      %596 = vector.broadcast %43 : vector<1x128xf32> to vector<4x128xf32>
      %597 = arith.addf %595, %596 : vector<4x128xf32>
      %cst_512 = arith.constant 0.000000e+00 : f32
      %598 = vector.broadcast %cst_512 : f32 to vector<4x128xf32>
      %599 = arith.cmpf oge, %597, %598 : vector<4x128xf32>
      %cst_513 = arith.constant 1.000000e-01 : f32
      %600 = vector.broadcast %cst_513 : f32 to vector<4x128xf32>
      %601 = arith.mulf %600, %597 : vector<4x128xf32>
      %602 = arith.select %599, %597, %601 : vector<4x128xi1>, vector<4x128xf32>
      %603 = arith.maximumf %409, %602 : vector<4x128xf32>
      %cst_514 = arith.constant dense<0.000000e+00> : vector<2x128xf32>
      %604 = tpu.matmul %50, %603, %cst_514 {dimension_numbers = #tpu.dot_dimension_numbers<[1], [0], [0], [1], [0, 0, 1, 1], [], []>} : vector<2x4xf32>, vector<4x128xf32>, vector<2x128xf32> -> vector<2x128xf32>
      %cst_515 = arith.constant dense<0.000000e+00> : vector<2x128xf32>
      %605 = tpu.matmul %57, %603, %cst_515 {dimension_numbers = #tpu.dot_dimension_numbers<[1], [0], [0], [1], [0, 0, 1, 1], [], []>} : vector<2x4xf32>, vector<4x128xf32>, vector<2x128xf32> -> vector<2x128xf32>
      %606 = arith.maximumf %604, %605 : vector<2x128xf32>
      %c1_i32_516 = arith.constant 1 : i32
      %607 = arith.addi %c1_i32_516, %arg24 : i32
      %608 = arith.index_cast %607 : i32 to index
      %c1_517 = arith.constant 1 : index
      %c0_518 = arith.constant 0 : index
      %609 = vector.load %arg18[%608, %c1_517, %c0_518] : memref<4x4x128xf32, #tpu.memory_space<vmem>>, vector<1x2x128xf32>
      %610 = vector.shape_cast %609 : vector<1x2x128xf32> to vector<2x128xf32>
      %611 = vector.shape_cast %606 : vector<2x128xf32> to vector<1x2x128xf32>
      tpu.vector_store %arg18[%608, %c1_517, %c0_518], %611 {strides = array<i32>} : memref<4x4x128xf32, #tpu.memory_space<vmem>>, vector<1x2x128xf32>,
    }
    %c2_i32_41 = arith.constant 2 : i32
    %c0_42 = arith.constant 0 : index
    %c0_43 = arith.constant 0 : index
    %59 = vector.load %arg9[%c0_42, %c0_43] : memref<1x256xf32, #tpu.memory_space<vmem>>, vector<1x256xf32>
    %60 = tpu.iota {dimensions = array<i32: 0>} : vector<1x2xi32>
    %61 = tpu.iota {dimensions = array<i32: 1>} : vector<1x2xi32>
    %c2_i32_44 = arith.constant 2 : i32
    %62 = vector.broadcast %c2_i32_44 : i32 to vector<1x2xi32>
    %63 = arith.muli %62, %60 : vector<1x2xi32>
    %64 = arith.cmpi eq, %61, %63 : vector<1x2xi32>
    %65 = arith.extui %64 : vector<1x2xi1> to vector<1x2xi32>
    %66 = arith.sitofp %65 : vector<1x2xi32> to vector<1x2xf32>
    %c2_i32_45 = arith.constant 2 : i32
    %67 = vector.broadcast %c2_i32_45 : i32 to vector<1x2xi32>
    %68 = arith.muli %67, %60 : vector<1x2xi32>
    %c1_i32_46 = arith.constant 1 : i32
    %69 = vector.broadcast %c1_i32_46 : i32 to vector<1x2xi32>
    %70 = arith.addi %68, %69 : vector<1x2xi32>
    %71 = arith.cmpi eq, %61, %70 : vector<1x2xi32>
    %72 = arith.extui %71 : vector<1x2xi1> to vector<1x2xi32>
    %73 = arith.sitofp %72 : vector<1x2xi32> to vector<1x2xf32>
    %c0_i32_47 = arith.constant 0 : i32
    %c2_i32_48 = arith.constant 2 : i32
    %74 = arith.muli %c2_i32_48, %c0_i32_47 : i32
    %c0_i32_49 = arith.constant 0 : i32
    %75 = arith.addi %74, %c0_i32_49 : i32
    %76 = arith.index_cast %75 : i32 to index
    %c0_50 = arith.constant 0 : index
    %c0_51 = arith.constant 0 : index
    %77 = vector.load %arg18[%76, %c0_50, %c0_51] : memref<4x4x128xf32, #tpu.memory_space<vmem>>, vector<1x2x128xf32>
    %78 = vector.shape_cast %77 : vector<1x2x128xf32> to vector<2x128xf32>
    %c0_52 = arith.constant 0 : index
    %c0_53 = arith.constant 0 : index
    %79 = vector.load %arg23[%c0_52, %c0_53] : memref<2x1152xf32, #tpu.memory_space<vmem>>, vector<2x128xf32>
    tpu.vector_store %arg23[%c0_52, %c0_53], %78 {strides = array<i32>} : memref<2x1152xf32, #tpu.memory_space<vmem>>, vector<2x128xf32>,
    %c0_i32_54 = arith.constant 0 : i32
    %80 = arith.addi %74, %c0_i32_54 : i32
    %81 = arith.index_cast %80 : i32 to index
    %c1_55 = arith.constant 1 : index
    %c0_56 = arith.constant 0 : index
    %82 = vector.load %arg18[%81, %c1_55, %c0_56] : memref<4x4x128xf32, #tpu.memory_space<vmem>>, vector<1x2x128xf32>
    %83 = vector.shape_cast %82 : vector<1x2x128xf32> to vector<2x128xf32>
    %c0_57 = arith.constant 0 : index
    %c128 = arith.constant 128 : index
    %84 = vector.load %arg23[%c0_57, %c128] : memref<2x1152xf32, #tpu.memory_space<vmem>>, vector<2x128xf32>
    tpu.vector_store %arg23[%c0_57, %c128], %83 {strides = array<i32>} : memref<2x1152xf32, #tpu.memory_space<vmem>>, vector<2x128xf32>,
    %c0_i32_58 = arith.constant 0 : i32
    %85 = arith.addi %74, %c0_i32_58 : i32
    %86 = arith.index_cast %85 : i32 to index
    %c2 = arith.constant 2 : index
    %c0_59 = arith.constant 0 : index
    %87 = vector.load %arg18[%86, %c2, %c0_59] : memref<4x4x128xf32, #tpu.memory_space<vmem>>, vector<1x2x128xf32>
    %88 = vector.shape_cast %87 : vector<1x2x128xf32> to vector<2x128xf32>
    %c0_60 = arith.constant 0 : index
    %c256 = arith.constant 256 : index
    %89 = vector.load %arg23[%c0_60, %c256] : memref<2x1152xf32, #tpu.memory_space<vmem>>, vector<2x128xf32>
    tpu.vector_store %arg23[%c0_60, %c256], %88 {strides = array<i32>} : memref<2x1152xf32, #tpu.memory_space<vmem>>, vector<2x128xf32>,
    %c1_i32_61 = arith.constant 1 : i32
    %90 = arith.addi %74, %c1_i32_61 : i32
    %91 = arith.index_cast %90 : i32 to index
    %c0_62 = arith.constant 0 : index
    %c0_63 = arith.constant 0 : index
    %92 = vector.load %arg18[%91, %c0_62, %c0_63] : memref<4x4x128xf32, #tpu.memory_space<vmem>>, vector<1x2x128xf32>
    %93 = vector.shape_cast %92 : vector<1x2x128xf32> to vector<2x128xf32>
    %c0_64 = arith.constant 0 : index
    %c384 = arith.constant 384 : index
    %94 = vector.load %arg23[%c0_64, %c384] : memref<2x1152xf32, #tpu.memory_space<vmem>>, vector<2x128xf32>
    tpu.vector_store %arg23[%c0_64, %c384], %93 {strides = array<i32>} : memref<2x1152xf32, #tpu.memory_space<vmem>>, vector<2x128xf32>,
    %c1_i32_65 = arith.constant 1 : i32
    %95 = arith.addi %74, %c1_i32_65 : i32
    %96 = arith.index_cast %95 : i32 to index
    %c1_66 = arith.constant 1 : index
    %c0_67 = arith.constant 0 : index
    %97 = vector.load %arg18[%96, %c1_66, %c0_67] : memref<4x4x128xf32, #tpu.memory_space<vmem>>, vector<1x2x128xf32>
    %98 = vector.shape_cast %97 : vector<1x2x128xf32> to vector<2x128xf32>
    %c0_68 = arith.constant 0 : index
    %c512 = arith.constant 512 : index
    %99 = vector.load %arg23[%c0_68, %c512] : memref<2x1152xf32, #tpu.memory_space<vmem>>, vector<2x128xf32>
    tpu.vector_store %arg23[%c0_68, %c512], %98 {strides = array<i32>} : memref<2x1152xf32, #tpu.memory_space<vmem>>, vector<2x128xf32>,
    %c1_i32_69 = arith.constant 1 : i32
    %100 = arith.addi %74, %c1_i32_69 : i32
    %101 = arith.index_cast %100 : i32 to index
    %c2_70 = arith.constant 2 : index
    %c0_71 = arith.constant 0 : index
    %102 = vector.load %arg18[%101, %c2_70, %c0_71] : memref<4x4x128xf32, #tpu.memory_space<vmem>>, vector<1x2x128xf32>
    %103 = vector.shape_cast %102 : vector<1x2x128xf32> to vector<2x128xf32>
    %c0_72 = arith.constant 0 : index
    %c640 = arith.constant 640 : index
    %104 = vector.load %arg23[%c0_72, %c640] : memref<2x1152xf32, #tpu.memory_space<vmem>>, vector<2x128xf32>
    tpu.vector_store %arg23[%c0_72, %c640], %103 {strides = array<i32>} : memref<2x1152xf32, #tpu.memory_space<vmem>>, vector<2x128xf32>,
    %c2_i32_73 = arith.constant 2 : i32
    %105 = arith.addi %74, %c2_i32_73 : i32
    %106 = arith.index_cast %105 : i32 to index
    %c0_74 = arith.constant 0 : index
    %c0_75 = arith.constant 0 : index
    %107 = vector.load %arg18[%106, %c0_74, %c0_75] : memref<4x4x128xf32, #tpu.memory_space<vmem>>, vector<1x2x128xf32>
    %108 = vector.shape_cast %107 : vector<1x2x128xf32> to vector<2x128xf32>
    %c0_76 = arith.constant 0 : index
    %c768 = arith.constant 768 : index
    %109 = vector.load %arg23[%c0_76, %c768] : memref<2x1152xf32, #tpu.memory_space<vmem>>, vector<2x128xf32>
    tpu.vector_store %arg23[%c0_76, %c768], %108 {strides = array<i32>} : memref<2x1152xf32, #tpu.memory_space<vmem>>, vector<2x128xf32>,
    %c2_i32_77 = arith.constant 2 : i32
    %110 = arith.addi %74, %c2_i32_77 : i32
    %111 = arith.index_cast %110 : i32 to index
    %c1_78 = arith.constant 1 : index
    %c0_79 = arith.constant 0 : index
    %112 = vector.load %arg18[%111, %c1_78, %c0_79] : memref<4x4x128xf32, #tpu.memory_space<vmem>>, vector<1x2x128xf32>
    %113 = vector.shape_cast %112 : vector<1x2x128xf32> to vector<2x128xf32>
    %c0_80 = arith.constant 0 : index
    %c896 = arith.constant 896 : index
    %114 = vector.load %arg23[%c0_80, %c896] : memref<2x1152xf32, #tpu.memory_space<vmem>>, vector<2x128xf32>
    tpu.vector_store %arg23[%c0_80, %c896], %113 {strides = array<i32>} : memref<2x1152xf32, #tpu.memory_space<vmem>>, vector<2x128xf32>,
    %c2_i32_81 = arith.constant 2 : i32
    %115 = arith.addi %74, %c2_i32_81 : i32
    %116 = arith.index_cast %115 : i32 to index
    %c2_82 = arith.constant 2 : index
    %c0_83 = arith.constant 0 : index
    %117 = vector.load %arg18[%116, %c2_82, %c0_83] : memref<4x4x128xf32, #tpu.memory_space<vmem>>, vector<1x2x128xf32>
    %118 = vector.shape_cast %117 : vector<1x2x128xf32> to vector<2x128xf32>
    %c0_84 = arith.constant 0 : index
    %c1024 = arith.constant 1024 : index
    %119 = vector.load %arg23[%c0_84, %c1024] : memref<2x1152xf32, #tpu.memory_space<vmem>>, vector<2x128xf32>
    tpu.vector_store %arg23[%c0_84, %c1024], %118 {strides = array<i32>} : memref<2x1152xf32, #tpu.memory_space<vmem>>, vector<2x128xf32>,
    %c0_85 = arith.constant 0 : index
    %c0_86 = arith.constant 0 : index
    %120 = vector.load %arg23[%c0_85, %c0_86] : memref<2x1152xf32, #tpu.memory_space<vmem>>, vector<2x1152xf32>
    %121 = arith.truncf %120 : vector<2x1152xf32> to vector<2x1152xbf16>
    %c0_87 = arith.constant 0 : index
    %c0_88 = arith.constant 0 : index
    %122 = vector.load %arg8[%c0_87, %c0_88] : memref<1152x256xbf16, #tpu.memory_space<vmem>>, vector<1152x256xbf16>
    %cst_89 = arith.constant dense<0.000000e+00> : vector<2x256xf32>
    %123 = tpu.matmul %121, %122, %cst_89 {dimension_numbers = #tpu.dot_dimension_numbers<[1], [0], [0], [1], [0, 0, 1, 1], [], []>} : vector<2x1152xbf16>, vector<1152x256xbf16>, vector<2x256xf32> -> vector<2x256xf32>
    %124 = vector.broadcast %59 : vector<1x256xf32> to vector<2x256xf32>
    %125 = arith.addf %123, %124 : vector<2x256xf32>
    %cst_90 = arith.constant 0.000000e+00 : f32
    %126 = vector.broadcast %cst_90 : f32 to vector<2x256xf32>
    %127 = arith.cmpf oge, %125, %126 : vector<2x256xf32>
    %cst_91 = arith.constant 1.000000e-01 : f32
    %128 = vector.broadcast %cst_91 : f32 to vector<2x256xf32>
    %129 = arith.mulf %128, %125 : vector<2x256xf32>
    %130 = arith.select %127, %125, %129 : vector<2x256xi1>, vector<2x256xf32>
    %c2_i32_92 = arith.constant 2 : i32
    %131 = arith.muli %c2_i32_92, %c0_i32_47 : i32
    %c1_i32_93 = arith.constant 1 : i32
    %132 = arith.addi %131, %c1_i32_93 : i32
    %c0_i32_94 = arith.constant 0 : i32
    %133 = arith.addi %132, %c0_i32_94 : i32
    %134 = arith.index_cast %133 : i32 to index
    %c0_95 = arith.constant 0 : index
    %c0_96 = arith.constant 0 : index
    %135 = vector.load %arg18[%134, %c0_95, %c0_96] : memref<4x4x128xf32, #tpu.memory_space<vmem>>, vector<1x2x128xf32>
    %136 = vector.shape_cast %135 : vector<1x2x128xf32> to vector<2x128xf32>
    %c0_97 = arith.constant 0 : index
    %c0_98 = arith.constant 0 : index
    %137 = vector.load %arg23[%c0_97, %c0_98] : memref<2x1152xf32, #tpu.memory_space<vmem>>, vector<2x128xf32>
    tpu.vector_store %arg23[%c0_97, %c0_98], %136 {strides = array<i32>} : memref<2x1152xf32, #tpu.memory_space<vmem>>, vector<2x128xf32>,
    %c0_i32_99 = arith.constant 0 : i32
    %138 = arith.addi %132, %c0_i32_99 : i32
    %139 = arith.index_cast %138 : i32 to index
    %c1_100 = arith.constant 1 : index
    %c0_101 = arith.constant 0 : index
    %140 = vector.load %arg18[%139, %c1_100, %c0_101] : memref<4x4x128xf32, #tpu.memory_space<vmem>>, vector<1x2x128xf32>
    %141 = vector.shape_cast %140 : vector<1x2x128xf32> to vector<2x128xf32>
    %c0_102 = arith.constant 0 : index
    %c128_103 = arith.constant 128 : index
    %142 = vector.load %arg23[%c0_102, %c128_103] : memref<2x1152xf32, #tpu.memory_space<vmem>>, vector<2x128xf32>
    tpu.vector_store %arg23[%c0_102, %c128_103], %141 {strides = array<i32>} : memref<2x1152xf32, #tpu.memory_space<vmem>>, vector<2x128xf32>,
    %c0_i32_104 = arith.constant 0 : i32
    %143 = arith.addi %132, %c0_i32_104 : i32
    %144 = arith.index_cast %143 : i32 to index
    %c2_105 = arith.constant 2 : index
    %c0_106 = arith.constant 0 : index
    %145 = vector.load %arg18[%144, %c2_105, %c0_106] : memref<4x4x128xf32, #tpu.memory_space<vmem>>, vector<1x2x128xf32>
    %146 = vector.shape_cast %145 : vector<1x2x128xf32> to vector<2x128xf32>
    %c0_107 = arith.constant 0 : index
    %c256_108 = arith.constant 256 : index
    %147 = vector.load %arg23[%c0_107, %c256_108] : memref<2x1152xf32, #tpu.memory_space<vmem>>, vector<2x128xf32>
    tpu.vector_store %arg23[%c0_107, %c256_108], %146 {strides = array<i32>} : memref<2x1152xf32, #tpu.memory_space<vmem>>, vector<2x128xf32>,
    %c1_i32_109 = arith.constant 1 : i32
    %148 = arith.addi %132, %c1_i32_109 : i32
    %149 = arith.index_cast %148 : i32 to index
    %c0_110 = arith.constant 0 : index
    %c0_111 = arith.constant 0 : index
    %150 = vector.load %arg18[%149, %c0_110, %c0_111] : memref<4x4x128xf32, #tpu.memory_space<vmem>>, vector<1x2x128xf32>
    %151 = vector.shape_cast %150 : vector<1x2x128xf32> to vector<2x128xf32>
    %c0_112 = arith.constant 0 : index
    %c384_113 = arith.constant 384 : index
    %152 = vector.load %arg23[%c0_112, %c384_113] : memref<2x1152xf32, #tpu.memory_space<vmem>>, vector<2x128xf32>
    tpu.vector_store %arg23[%c0_112, %c384_113], %151 {strides = array<i32>} : memref<2x1152xf32, #tpu.memory_space<vmem>>, vector<2x128xf32>,
    %c1_i32_114 = arith.constant 1 : i32
    %153 = arith.addi %132, %c1_i32_114 : i32
    %154 = arith.index_cast %153 : i32 to index
    %c1_115 = arith.constant 1 : index
    %c0_116 = arith.constant 0 : index
    %155 = vector.load %arg18[%154, %c1_115, %c0_116] : memref<4x4x128xf32, #tpu.memory_space<vmem>>, vector<1x2x128xf32>
    %156 = vector.shape_cast %155 : vector<1x2x128xf32> to vector<2x128xf32>
    %c0_117 = arith.constant 0 : index
    %c512_118 = arith.constant 512 : index
    %157 = vector.load %arg23[%c0_117, %c512_118] : memref<2x1152xf32, #tpu.memory_space<vmem>>, vector<2x128xf32>
    tpu.vector_store %arg23[%c0_117, %c512_118], %156 {strides = array<i32>} : memref<2x1152xf32, #tpu.memory_space<vmem>>, vector<2x128xf32>,
    %c1_i32_119 = arith.constant 1 : i32
    %158 = arith.addi %132, %c1_i32_119 : i32
    %159 = arith.index_cast %158 : i32 to index
    %c2_120 = arith.constant 2 : index
    %c0_121 = arith.constant 0 : index
    %160 = vector.load %arg18[%159, %c2_120, %c0_121] : memref<4x4x128xf32, #tpu.memory_space<vmem>>, vector<1x2x128xf32>
    %161 = vector.shape_cast %160 : vector<1x2x128xf32> to vector<2x128xf32>
    %c0_122 = arith.constant 0 : index
    %c640_123 = arith.constant 640 : index
    %162 = vector.load %arg23[%c0_122, %c640_123] : memref<2x1152xf32, #tpu.memory_space<vmem>>, vector<2x128xf32>
    tpu.vector_store %arg23[%c0_122, %c640_123], %161 {strides = array<i32>} : memref<2x1152xf32, #tpu.memory_space<vmem>>, vector<2x128xf32>,
    %c2_i32_124 = arith.constant 2 : i32
    %163 = arith.addi %132, %c2_i32_124 : i32
    %164 = arith.index_cast %163 : i32 to index
    %c0_125 = arith.constant 0 : index
    %c0_126 = arith.constant 0 : index
    %165 = vector.load %arg18[%164, %c0_125, %c0_126] : memref<4x4x128xf32, #tpu.memory_space<vmem>>, vector<1x2x128xf32>
    %166 = vector.shape_cast %165 : vector<1x2x128xf32> to vector<2x128xf32>
    %c0_127 = arith.constant 0 : index
    %c768_128 = arith.constant 768 : index
    %167 = vector.load %arg23[%c0_127, %c768_128] : memref<2x1152xf32, #tpu.memory_space<vmem>>, vector<2x128xf32>
    tpu.vector_store %arg23[%c0_127, %c768_128], %166 {strides = array<i32>} : memref<2x1152xf32, #tpu.memory_space<vmem>>, vector<2x128xf32>,
    %c2_i32_129 = arith.constant 2 : i32
    %168 = arith.addi %132, %c2_i32_129 : i32
    %169 = arith.index_cast %168 : i32 to index
    %c1_130 = arith.constant 1 : index
    %c0_131 = arith.constant 0 : index
    %170 = vector.load %arg18[%169, %c1_130, %c0_131] : memref<4x4x128xf32, #tpu.memory_space<vmem>>, vector<1x2x128xf32>
    %171 = vector.shape_cast %170 : vector<1x2x128xf32> to vector<2x128xf32>
    %c0_132 = arith.constant 0 : index
    %c896_133 = arith.constant 896 : index
    %172 = vector.load %arg23[%c0_132, %c896_133] : memref<2x1152xf32, #tpu.memory_space<vmem>>, vector<2x128xf32>
    tpu.vector_store %arg23[%c0_132, %c896_133], %171 {strides = array<i32>} : memref<2x1152xf32, #tpu.memory_space<vmem>>, vector<2x128xf32>,
    %c2_i32_134 = arith.constant 2 : i32
    %173 = arith.addi %132, %c2_i32_134 : i32
    %174 = arith.index_cast %173 : i32 to index
    %c2_135 = arith.constant 2 : index
    %c0_136 = arith.constant 0 : index
    %175 = vector.load %arg18[%174, %c2_135, %c0_136] : memref<4x4x128xf32, #tpu.memory_space<vmem>>, vector<1x2x128xf32>
    %176 = vector.shape_cast %175 : vector<1x2x128xf32> to vector<2x128xf32>
    %c0_137 = arith.constant 0 : index
    %c1024_138 = arith.constant 1024 : index
    %177 = vector.load %arg23[%c0_137, %c1024_138] : memref<2x1152xf32, #tpu.memory_space<vmem>>, vector<2x128xf32>
    tpu.vector_store %arg23[%c0_137, %c1024_138], %176 {strides = array<i32>} : memref<2x1152xf32, #tpu.memory_space<vmem>>, vector<2x128xf32>,
    %c0_139 = arith.constant 0 : index
    %c0_140 = arith.constant 0 : index
    %178 = vector.load %arg23[%c0_139, %c0_140] : memref<2x1152xf32, #tpu.memory_space<vmem>>, vector<2x1152xf32>
    %179 = arith.truncf %178 : vector<2x1152xf32> to vector<2x1152xbf16>
    %c0_141 = arith.constant 0 : index
    %c0_142 = arith.constant 0 : index
    %180 = vector.load %arg8[%c0_141, %c0_142] : memref<1152x256xbf16, #tpu.memory_space<vmem>>, vector<1152x256xbf16>
    %cst_143 = arith.constant dense<0.000000e+00> : vector<2x256xf32>
    %181 = tpu.matmul %179, %180, %cst_143 {dimension_numbers = #tpu.dot_dimension_numbers<[1], [0], [0], [1], [0, 0, 1, 1], [], []>} : vector<2x1152xbf16>, vector<1152x256xbf16>, vector<2x256xf32> -> vector<2x256xf32>
    %182 = vector.broadcast %59 : vector<1x256xf32> to vector<2x256xf32>
    %183 = arith.addf %181, %182 : vector<2x256xf32>
    %cst_144 = arith.constant 0.000000e+00 : f32
    %184 = vector.broadcast %cst_144 : f32 to vector<2x256xf32>
    %185 = arith.cmpf oge, %183, %184 : vector<2x256xf32>
    %cst_145 = arith.constant 1.000000e-01 : f32
    %186 = vector.broadcast %cst_145 : f32 to vector<2x256xf32>
    %187 = arith.mulf %186, %183 : vector<2x256xf32>
    %188 = arith.select %185, %183, %187 : vector<2x256xi1>, vector<2x256xf32>
    %189 = arith.maximumf %130, %188 : vector<2x256xf32>
    %cst_146 = arith.constant dense<0.000000e+00> : vector<1x256xf32>
    %190 = tpu.matmul %66, %189, %cst_146 {dimension_numbers = #tpu.dot_dimension_numbers<[1], [0], [0], [1], [0, 0, 1, 1], [], []>} : vector<1x2xf32>, vector<2x256xf32>, vector<1x256xf32> -> vector<1x256xf32>
    %cst_147 = arith.constant dense<0.000000e+00> : vector<1x256xf32>
    %191 = tpu.matmul %73, %189, %cst_147 {dimension_numbers = #tpu.dot_dimension_numbers<[1], [0], [0], [1], [0, 0, 1, 1], [], []>} : vector<1x2xf32>, vector<2x256xf32>, vector<1x256xf32> -> vector<1x256xf32>
    %192 = arith.maximumf %190, %191 : vector<1x256xf32>
    %c1_i32_148 = arith.constant 1 : i32
    %193 = arith.addi %c1_i32_148, %c0_i32_47 : i32
    %194 = arith.index_cast %193 : i32 to index
    %c1_149 = arith.constant 1 : index
    %c0_150 = arith.constant 0 : index
    %195 = vector.load %arg19[%194, %c1_149, %c0_150] : memref<2x2x256xf32, #tpu.memory_space<vmem>>, vector<1x1x256xf32>
    %196 = vector.shape_cast %195 : vector<1x1x256xf32> to vector<1x256xf32>
    %197 = vector.shape_cast %192 : vector<1x256xf32> to vector<1x1x256xf32>
    tpu.vector_store %arg19[%194, %c1_149, %c0_150], %197 {strides = array<i32>} : memref<2x2x256xf32, #tpu.memory_space<vmem>>, vector<1x1x256xf32>,
    %c1_i32_151 = arith.constant 1 : i32
    %c1_152 = arith.constant 1 : index
    %c1_153 = arith.constant 1 : index
    %c0_154 = arith.constant 0 : index
    %198 = vector.load %arg19[%c1_152, %c1_153, %c0_154] : memref<2x2x256xf32, #tpu.memory_space<vmem>>, vector<1x1x256xf32>
    %199 = vector.shape_cast %198 : vector<1x1x256xf32> to vector<1x256xf32>
    %200 = arith.truncf %199 : vector<1x256xf32> to vector<1x256xbf16>
    %c0_155 = arith.constant 0 : index
    %c0_156 = arith.constant 0 : index
    %201 = vector.load %arg10[%c0_155, %c0_156] : memref<256x128xbf16, #tpu.memory_space<vmem>>, vector<256x128xbf16>
    %cst_157 = arith.constant dense<0.000000e+00> : vector<1x128xf32>
    %202 = tpu.matmul %200, %201, %cst_157 {dimension_numbers = #tpu.dot_dimension_numbers<[1], [0], [0], [1], [0, 0, 1, 1], [], []>} : vector<1x256xbf16>, vector<256x128xbf16>, vector<1x128xf32> -> vector<1x128xf32>
    %c0_158 = arith.constant 0 : index
    %c0_159 = arith.constant 0 : index
    %203 = vector.load %arg11[%c0_158, %c0_159] : memref<1x128xf32, #tpu.memory_space<vmem>>, vector<1x128xf32>
    %204 = arith.addf %202, %203 : vector<1x128xf32>
    %cst_160 = arith.constant 0.000000e+00 : f32
    %205 = vector.broadcast %cst_160 : f32 to vector<1x128xf32>
    %206 = arith.cmpf oge, %204, %205 : vector<1x128xf32>
    %cst_161 = arith.constant 1.000000e-01 : f32
    %207 = vector.broadcast %cst_161 : f32 to vector<1x128xf32>
    %208 = arith.mulf %207, %204 : vector<1x128xf32>
    %209 = arith.select %206, %204, %208 : vector<1x128xi1>, vector<1x128xf32>
    %210 = arith.truncf %209 : vector<1x128xf32> to vector<1x128xbf16>
    %c0_162 = arith.constant 0 : index
    %c0_163 = arith.constant 0 : index
    %211 = vector.load %arg12[%c0_162, %c0_163] : memref<128x128xbf16, #tpu.memory_space<vmem>>, vector<128x128xbf16>
    %cst_164 = arith.constant dense<0.000000e+00> : vector<1x128xf32>
    %212 = tpu.matmul %210, %211, %cst_164 {dimension_numbers = #tpu.dot_dimension_numbers<[1], [0], [0], [1], [0, 0, 1, 1], [], []>} : vector<1x128xbf16>, vector<128x128xbf16>, vector<1x128xf32> -> vector<1x128xf32>
    %c0_165 = arith.constant 0 : index
    %c0_166 = arith.constant 0 : index
    %213 = vector.load %arg13[%c0_165, %c0_166] : memref<1x128xf32, #tpu.memory_space<vmem>>, vector<1x128xf32>
    %214 = arith.addf %212, %213 : vector<1x128xf32>
    %c0_167 = arith.constant 0 : index
    %c0_168 = arith.constant 0 : index
    %c0_169 = arith.constant 0 : index
    %215 = vector.load %arg14[%c0_167, %c0_168, %c0_169] : memref<1x1x128xf32, #tpu.memory_space<vmem>>, vector<1x1x128xf32>
    %216 = vector.shape_cast %215 : vector<1x1x128xf32> to vector<1x128xf32>
    %217 = vector.shape_cast %214 : vector<1x128xf32> to vector<1x1x128xf32>
    tpu.vector_store %arg14[%c0_167, %c0_168, %c0_169], %217 {strides = array<i32>} : memref<1x1x128xf32, #tpu.memory_space<vmem>>, vector<1x1x128xf32>,
    return
  }
  func.func @transform_0(%arg0: i32) -> (i32, i32, i32, i32) {
    %c0_i32 = arith.constant 0 : i32
    %c0_i32_0 = arith.constant 0 : i32
    %c0_i32_1 = arith.constant 0 : i32
    %c0_i32_2 = arith.constant 0 : i32
    return %arg0, %c0_i32, %c0_i32_0, %c0_i32_1 : i32, i32, i32, i32
  }
  func.func @transform_1(%arg0: i32) -> (i32, i32) {
    %c0_i32 = arith.constant 0 : i32
    %c0_i32_0 = arith.constant 0 : i32
    %c0_i32_1 = arith.constant 0 : i32
    return %c0_i32, %c0_i32_0 : i32, i32
  }
  func.func @transform_2(%arg0: i32) -> (i32, i32) {
    %c0_i32 = arith.constant 0 : i32
    %c0_i32_0 = arith.constant 0 : i32
    %c0_i32_1 = arith.constant 0 : i32
    return %c0_i32, %c0_i32_0 : i32, i32
  }
  func.func @transform_3(%arg0: i32) -> (i32, i32) {
    %c0_i32 = arith.constant 0 : i32
    %c0_i32_0 = arith.constant 0 : i32
    %c0_i32_1 = arith.constant 0 : i32
    return %c0_i32, %c0_i32_0 : i32, i32
  }
  func.func @transform_4(%arg0: i32) -> (i32, i32) {
    %c0_i32 = arith.constant 0 : i32
    %c0_i32_0 = arith.constant 0 : i32
    %c0_i32_1 = arith.constant 0 : i32
    return %c0_i32, %c0_i32_0 : i32, i32
  }
  func.func @transform_5(%arg0: i32) -> (i32, i32) {
    %c0_i32 = arith.constant 0 : i32
    %c0_i32_0 = arith.constant 0 : i32
    %c0_i32_1 = arith.constant 0 : i32
    return %c0_i32, %c0_i32_0 : i32, i32
  }
  func.func @transform_6(%arg0: i32) -> (i32, i32) {
    %c0_i32 = arith.constant 0 : i32
    %c0_i32_0 = arith.constant 0 : i32
    %c0_i32_1 = arith.constant 0 : i32
    return %c0_i32, %c0_i32_0 : i32, i32
  }
  func.func @transform_7(%arg0: i32) -> (i32, i32) {
    %c0_i32 = arith.constant 0 : i32
    %c0_i32_0 = arith.constant 0 : i32
    %c0_i32_1 = arith.constant 0 : i32
    return %c0_i32, %c0_i32_0 : i32, i32
  }
  func.func @transform_8(%arg0: i32) -> (i32, i32) {
    %c0_i32 = arith.constant 0 : i32
    %c0_i32_0 = arith.constant 0 : i32
    %c0_i32_1 = arith.constant 0 : i32
    return %c0_i32, %c0_i32_0 : i32, i32
  }
  func.func @transform_9(%arg0: i32) -> (i32, i32) {
    %c0_i32 = arith.constant 0 : i32
    %c0_i32_0 = arith.constant 0 : i32
    %c0_i32_1 = arith.constant 0 : i32
    return %c0_i32, %c0_i32_0 : i32, i32
  }
  func.func @transform_10(%arg0: i32) -> (i32, i32) {
    %c0_i32 = arith.constant 0 : i32
    %c0_i32_0 = arith.constant 0 : i32
    %c0_i32_1 = arith.constant 0 : i32
    return %c0_i32, %c0_i32_0 : i32, i32
  }
  func.func @transform_11(%arg0: i32) -> (i32, i32) {
    %c0_i32 = arith.constant 0 : i32
    %c0_i32_0 = arith.constant 0 : i32
    %c0_i32_1 = arith.constant 0 : i32
    return %c0_i32, %c0_i32_0 : i32, i32
  }
  func.func @transform_12(%arg0: i32) -> (i32, i32) {
    %c0_i32 = arith.constant 0 : i32
    %c0_i32_0 = arith.constant 0 : i32
    %c0_i32_1 = arith.constant 0 : i32
    return %c0_i32, %c0_i32_0 : i32, i32
  }
  func.func @transform_13(%arg0: i32) -> (i32, i32, i32) {
    %c0_i32 = arith.constant 0 : i32
    %c0_i32_0 = arith.constant 0 : i32
    %c0_i32_1 = arith.constant 0 : i32
    return %arg0, %c0_i32, %c0_i32_0 : i32, i32, i32
  }
}

</mosaic_0001>

<bundles_post_ra>
// kernel: forward.1
= control target key start
LH: loop header
LB: loop body
LE: loop exit
PB: predicated region body
PF: predicated region fallthrough
CT: control target
= control target key end

     0   :  { %s14427_s0 = inlined_call_operand.vmem [shape: f32[2,28,28,1], index: 0, kind: input, shape index: {}]   ;;  %s14428_s1 = inlined_call_operand.vmem [shape: bf16[9,32], index: 1, kind: input, shape index: {}]   ;;  %s14429_s2 = inlined_call_operand.vmem [shape: f32[1,32], index: 2, kind: input, shape index: {}]   ;;  %s14430_s3 = inlined_call_operand.vmem [shape: bf16[288,64], index: 3, kind: input, shape index: {}]   ;;  %s14431_s4 = inlined_call_operand.vmem [shape: f32[1,64], index: 4, kind: input, shape index: {}]   ;;  %s14432_s5 = inlined_call_operand.vmem [shape: bf16[2304,128], index: 5, kind: input, shape index: {}]   ;;  %s14433_s6 = inlined_call_operand.vmem [shape: f32[1,128], index: 6, kind: input, shape index: {}]   ;;  %s14434_s7 = inlined_call_operand.hbm [shape: bf16[1152,256], index: 7, kind: input, shape index: {}]   ;;  %s14435_s8 = inlined_call_operand.vmem [shape: f32[1,256], index: 8, kind: input, shape index: {}]   ;;  %s14436_s9 = inlined_call_operand.vmem [shape: bf16[256,128], index: 9, kind: input, shape index: {}]   ;;  %s14437_s10 = inlined_call_operand.vmem [shape: f32[1,128], index: 10, kind: input, shape index: {}]   ;;  %s14438_s11 = inlined_call_operand.vmem [shape: bf16[128,128], index: 11, kind: input, shape index: {}]   ;;  %s14439_s12 = inlined_call_operand.vmem [shape: f32[1,128], index: 12, kind: input, shape index: {}]   ;;  %s14440_s13 = inlined_call_operand.hbm [shape: f32[2,1,128], index: 13, kind: output, shape index: {}]  }
   0x1   :  { %14482 = sst [smem:[#allocation32_spill]] %s14427_s0 }
   0x2   :  { %14483 = sst [smem:[#allocation33_spill]] %s14428_s1 }
   0x3   :  { %14484 = sst [smem:[#allocation34_spill]] %s14429_s2 }
   0x4   :  { %14485 = sst [smem:[#allocation35_spill]] %s14431_s4 }
   0x5   :  { %14486 = sst [smem:[#allocation36_spill]] %s14434_s7 }
   0x6   :  { %18 = vsyncpa [#allocation12], 0 }
   0x7   :  { %19 = vsyncpa [#allocation13], 0 }
   0x8   :  { %21 = vsyncpa [#allocation13 + $0x1], 0  ;;  %s11595_s25 = smov 0   ;;  %s11597_s26 = smov 0  }
   0x9   :  { %s11599_s27 = smov 0   ;;  %s11601_s28 = smov 0  }
   0xa LB: > { %s11616_s29 = sadd.s32 4294967295, %s11485_s28   ;;  %s9104_s30 = sadd.s32 4294967294, %s11485_s28   ;;  %s11485_s28 = sphi %s11601_s28, %s14559_s28   ;;  %s11481_s27 = sphi %s11599_s27, %s14558_s27   ;;  %s11477_s26 = sphi %s11597_s26, %s14557_s26   ;;  %s11473_s25 = sphi %s11595_s25, %s14556_s25  }
   0xb   : > { %s11620_s14 = sadd.s32 1, %s11485_s28   ;;  %s312_s15 = sadd.s32 1, %s11481_s27 }
   0xc   : > { %s309_s16 = ssub.s32 %s11485_s28, %s11620_s14  ;;  %p322_p0 = scmp.ne.s32.totalorder %s11481_s27, %s11477_s26 }
   0xd   : > { %p310_p1 = scmp.eq.s32.totalorder %s309_s16, 0  ;;  %p323_p2 = scmp.eq.s32.totalorder %s11616_s29, 1 }
   0xe   : > { %p328_p3 = scmp.ne.s32.totalorder %s11477_s26, %s11473_s25  ;;  %p329_p4 = scmp.eq.s32.totalorder %s9104_s30, 1 }
   0xf   : > { %s11631_s17 = scalar_select %p310_p1, %s11481_s27, %s312_s15  }
  0x10   : > { %p11633_p5 = por %p323_p2, %p322_p0  ;;  %p11637_p6 = por %p329_p4, %p328_p3 }
  0x11   : > { %p9105_p7 = scmp.ge.s32.totalorder %s11485_s28, 1  ;;  %p336_p8 = scmp.lt.s32.totalorder %s11485_s28, 3 }
  0x12   : > { %s14488_s19 = scalar_select %p11637_p6, 1, 0 }
  0x13   : > { %p10609_p9 = scmp.eq.s32.totalorder %s11616_s29, 0  ;;  %p11644_p10 = pnand %p9105_p7, %p336_p8 }
  0x14   : > { %s11499_s21 = smov [#allocation11]  }
  0x15   : > { %s366_s22 = sshll.u32 %s11499_s21, 4  ;;  %p10601_p11 = pneg %p11644_p10  ;;  %s367_s22 = int_to_ptr.vmem [resolvable:$true] %s366_s22 }
  0x16   : > { %s11394_s23 = scalar_lea.vmem %s367_s22, 18432  ;;  %p11402_p3 = scmp.lt.s32.totalorder %s367_s22, %s367_s22 }
  0x17   : > { %p10602_p12 = pnand %p10609_p9, %p10601_p11  ;;  %p11395_p0 = scmp.ne.s32.totalorder %s367_s22, %s11394_s23 }
  0x18   : > { %p11403_p4 = scmp.lt.s32.totalorder %s11394_s23, %s11394_s23 }
  0x19   : > { %p11385_p13 = pneg %p10602_p12 }
  0x1a   : > { %p11404_p6 = por %p11403_p4, %p11402_p3 }
  0x1b   : > { %p11397_p1 = pnand %p11395_p0, %p11385_p13 }
  0x1d   : > { %p11398_p2 = pneg %p11397_p1 }
  0x1f   : > { %p11405_p7 = pnand %p11404_p6, %p11398_p2 }
  0x21   : > { %11408 = shalt.err (!%p11405_p7)
}
  0x22   : > { %s11500_s24 = smov 128   ;;  %s11501_s30 = smov 8  }
  0x23   : > { %s14490_s7 = sld [smem:[#allocation36_spill]] }
  0x25   : > { %405 = sbr.rel (%p11644_p10) target bundleno = 3321 (0xcf9), region = 72 }
  0x29   : > { %10604 = dma.hbm_to_vmem [thread:$0]  (!%p10602_p12), %s14490_s7, 18432, %s367_s22, [#allocation12], %s11500_s24, %s11500_s24, %s11501_s30  }
  0x2a   : > { %11464 = dma.done.wait (%p10609_p9), [#allocation12], 18432  }
  0x2b   : > { %11466 = vsyncadd (%p10609_p9), [#allocation12], 4294948864  ;;  %vm454_vm0 = vcmask 7168   ;;  %v14463_v0 = vlaneseq  ;;  %vm458_vm1 = vcmask 5120   ;;  %s14441_s21 = sand.u32 1, %s11477_s26   ;;  %v14464_v1 = vmov 0.0  }
  0x2c   : > { %460 = vst.msk [vmem:[#allocation2 + $0x20] sm:$0xff] %vm454_vm0, %v14464_v1  ;;  %455 = vst.msk [vmem:[#allocation2] sm:$0xff] %vm454_vm0, %v14464_v1  ;;  %vm14452_vm2 = vcmask 261120   ;;  %vm609_vm3 = vcmask 523264   ;;  %vm611_vm4 = vcmask 516096   ;;  %p448_p6 = scmp.lt.s32.totalorder %s11616_s29, 1 }
  0x2d   : > { %456 = vst.msk [vmem:[#allocation2 + $0x8] sm:$0xff] %vm454_vm0, %v14464_v1  ;;  %457 = vst.msk [vmem:[#allocation2 + $0x10] sm:$0xff] %vm454_vm0, %v14464_v1  ;;  %v11908_v2 = vshrl.u32 %v14463_v0, 7  ;;  %v11911_v3 = vand.u32 127, %v14463_v0  ;;  %s14491_s2 = sld [smem:[#allocation34_spill]]  ;;  %vm749_vm6 = vcmask 3072  }
  0x2e   : > { %461 = vst.msk [vmem:[#allocation2 + $0x28] sm:$0xff] %vm454_vm0, %v14464_v1  ;;  %462 = vst.msk [vmem:[#allocation2 + $0x30] sm:$0xff] %vm454_vm0, %v14464_v1  ;;  %s449_s20 = scalar_select %p448_p6, %s11616_s29, 1 }
  0x2f   : > { %464 = vst.msk [vmem:[#allocation2 + $0x40] sm:$0xff] %vm454_vm0, %v14464_v1  ;;  %465 = vst.msk [vmem:[#allocation2 + $0x48] sm:$0xff] %vm454_vm0, %v14464_v1  ;;  %v862_v4 = vadd.s32 8, %v11908_v2  ;;  %v865_v5 = vmul.u32 2, %v11908_v2  ;;  %s14493_s0 = sld [smem:[#allocation32_spill]] }
  0x30   : > { %466 = vst.msk [vmem:[#allocation2 + $0x50] sm:$0xff] %vm454_vm0, %v14464_v1  ;;  %468 = vst.msk [vmem:[#allocation2 + $0x60] sm:$0xff] %vm454_vm0, %v14464_v1  ;;  %s10594_s22 = smul.u32 896, %s449_s20  ;;  %s12270_s20 = scalar_lea.vmem [#allocation14], %s14441_s21 }
  0x31   : > { %469 = vst.msk [vmem:[#allocation2 + $0x68] sm:$0xff] %vm454_vm0, %v14464_v1  ;;  %470 = vst.msk [vmem:[#allocation2 + $0x70] sm:$0xff] %vm454_vm0, %v14464_v1  ;;  %v866_v6 = vmul.u32 2, %v862_v4  ;;  %vm867_vm5 = vcmp.eq.s32.totalorder %v11911_v3, %v865_v5  ;;  %v873_v7 = vadd.s32 1, %v865_v5 }
  0x32   : > { %472 = vst.msk [vmem:[#allocation2 + $0x80] sm:$0xff] %vm454_vm0, %v14464_v1  ;;  %473 = vst.msk [vmem:[#allocation2 + $0x88] sm:$0xff] %vm454_vm0, %v14464_v1  ;;  %v12025_v9 = vsel %vm867_vm5, 1.0, %v14464_v1 }
  0x33   : > { %474 = vst.msk [vmem:[#allocation2 + $0x90] sm:$0xff] %vm454_vm0, %v14464_v1  ;;  %476 = vst.msk [vmem:[#allocation2 + $0xa0] sm:$0xff] %vm454_vm0, %v14464_v1  ;;  %v12022_v8 = vld [vmem:[%s14491_s2] ss:$0 sm:$0xff]  ;;  %vm868_vm7 = vcmp.eq.s32.totalorder %v11911_v3, %v866_v6  ;;  %v874_v10 = vadd.s32 1, %v866_v6  ;;  %vm875_vm8 = vcmp.eq.s32.totalorder %v11911_v3, %v873_v7 }
  0x34   : > { %477 = vst.msk [vmem:[#allocation2 + $0xa8] sm:$0xff] %vm454_vm0, %v14464_v1  ;;  %478 = vst.msk [vmem:[#allocation2 + $0xb0] sm:$0xff] %vm454_vm0, %v14464_v1  ;;  %v12038_v14 = vsel %vm868_vm7, 1.0, %v14464_v1  ;;  %v12041_v15 = vsel %vm875_vm8, 1.0, %v14464_v1 }
  0x35   : > { %480 = vst.msk [vmem:[#allocation2 + $0xc0] sm:$0xff] %vm454_vm0, %v14464_v1  ;;  %481 = vst.msk [vmem:[#allocation2 + $0xc8] sm:$0xff] %vm454_vm0, %v14464_v1  ;;  %s12030_s16 = scalar_lea.vmem %s14493_s0, %s10594_s22  ;;  %vm876_vm9 = vcmp.eq.s32.totalorder %v11911_v3, %v874_v10  ;;  %s12272_s22 = smov 0  }
  0x36   : > { %482 = vst.msk [vmem:[#allocation2 + $0xd0] sm:$0xff] %vm454_vm0, %v14464_v1  ;;  %484 = vst.msk [vmem:[#allocation2 + $0xe0] sm:$0xff] %vm454_vm0, %v14464_v1  ;;  %v633_v11 = vld [vmem:[%s12030_s16] sm:$0xff]  ;;  %v634_v12 = vld [vmem:[%s12030_s16 + $0x8] sm:$0xff]  ;;  %v12057_v22 = vsel %vm876_vm9, 1.0, %v14464_v1 }
  0x37   : > { %485 = vst.msk [vmem:[#allocation2 + $0xe8] sm:$0xff] %vm454_vm0, %v14464_v1  ;;  %486 = vst.msk [vmem:[#allocation2 + $0xf0] sm:$0xff] %vm454_vm0, %v14464_v1  ;;  %v635_v13 = vld [vmem:[%s12030_s16 + $0x10] sm:$0xff]  ;;  %v636_v16 = vld [vmem:[%s12030_s16 + $0x18] sm:$0xf] }
  0x38   : > { %488 = vst.msk [vmem:[#allocation2 + $0x100] sm:$0xff] %vm454_vm0, %v14464_v1  ;;  %489 = vst.msk [vmem:[#allocation2 + $0x108] sm:$0xff] %vm454_vm0, %v14464_v1  ;;  %v637_v17 = vld [vmem:[%s12030_s16 + $0x20] sm:$0xff]  ;;  %v638_v18 = vld [vmem:[%s12030_s16 + $0x28] sm:$0xff] }
  0x39   : > { %490 = vst.msk [vmem:[#allocation2 + $0x110] sm:$0xff] %vm454_vm0, %v14464_v1  ;;  %492 = vst.msk [vmem:[#allocation2 + $0x120] sm:$0xff] %vm454_vm0, %v14464_v1  ;;  %v639_v19 = vld [vmem:[%s12030_s16 + $0x30] sm:$0xff]  ;;  %v640_v20 = vld [vmem:[%s12030_s16 + $0x38] sm:$0xf] }
  0x3a   : > { %493 = vst.msk [vmem:[#allocation2 + $0x128] sm:$0xff] %vm454_vm0, %v14464_v1  ;;  %494 = vst.msk [vmem:[#allocation2 + $0x130] sm:$0xff] %vm454_vm0, %v14464_v1  ;;  %v641_v21 = vld [vmem:[%s12030_s16 + $0x40] sm:$0xff]  ;;  %v642_v23 = vld [vmem:[%s12030_s16 + $0x48] sm:$0xff] }
  0x3b   : > { %496 = vst.msk [vmem:[#allocation2 + $0x140] sm:$0xff] %vm454_vm0, %v14464_v1  ;;  %497 = vst.msk [vmem:[#allocation2 + $0x148] sm:$0xff] %vm454_vm0, %v14464_v1  ;;  %v643_v24 = vld [vmem:[%s12030_s16 + $0x50] sm:$0xff]  ;;  %v644_v25 = vld [vmem:[%s12030_s16 + $0x58] sm:$0xf] }
  0x3c   : > { %498 = vst.msk [vmem:[#allocation2 + $0x150] sm:$0xff] %vm454_vm0, %v14464_v1  ;;  %500 = vst.msk [vmem:[#allocation2 + $0x160] sm:$0xff] %vm454_vm0, %v14464_v1  ;;  %v645_v26 = vld [vmem:[%s12030_s16 + $0x60] sm:$0xff]  ;;  %v646_v27 = vld [vmem:[%s12030_s16 + $0x68] sm:$0xff] }
  0x3d   : > { %501 = vst.msk [vmem:[#allocation2 + $0x168] sm:$0xff] %vm454_vm0, %v14464_v1  ;;  %502 = vst.msk [vmem:[#allocation2 + $0x170] sm:$0xff] %vm454_vm0, %v14464_v1  ;;  %v647_v28 = vld [vmem:[%s12030_s16 + $0x70] sm:$0xff]  ;;  %v648_v29 = vld [vmem:[%s12030_s16 + $0x78] sm:$0xf] }
  0x3e   : > { %504 = vst.msk [vmem:[#allocation2 + $0x180] sm:$0xff] %vm454_vm0, %v14464_v1  ;;  %505 = vst.msk [vmem:[#allocation2 + $0x188] sm:$0xff] %vm454_vm0, %v14464_v1  ;;  %v649_v30 = vld [vmem:[%s12030_s16 + $0x80] sm:$0xff]  ;;  %v650_v31 = vld [vmem:[%s12030_s16 + $0x88] sm:$0xff] }
  0x3f   : > { %506 = vst.msk [vmem:[#allocation2 + $0x190] sm:$0xff] %vm454_vm0, %v14464_v1  ;;  %508 = vst.msk [vmem:[#allocation2 + $0x1a0] sm:$0xff] %vm454_vm0, %v14464_v1  ;;  %v651_v32 = vld [vmem:[%s12030_s16 + $0x90] sm:$0xff]  ;;  %v652_v33 = vld [vmem:[%s12030_s16 + $0x98] sm:$0xf] }
  0x40   : > { %509 = vst.msk [vmem:[#allocation2 + $0x1a8] sm:$0xff] %vm454_vm0, %v14464_v1  ;;  %510 = vst.msk [vmem:[#allocation2 + $0x1b0] sm:$0xff] %vm454_vm0, %v14464_v1  ;;  %v653_v34 = vld [vmem:[%s12030_s16 + $0xa0] sm:$0xff]  ;;  %v654_v35 = vld [vmem:[%s12030_s16 + $0xa8] sm:$0xff] }
  0x41   : > { %512 = vst.msk [vmem:[#allocation2 + $0x1c0] sm:$0xff] %vm454_vm0, %v14464_v1  ;;  %513 = vst.msk [vmem:[#allocation2 + $0x1c8] sm:$0xff] %vm454_vm0, %v14464_v1  ;;  %v655_v36 = vld [vmem:[%s12030_s16 + $0xb0] sm:$0xff]  ;;  %v656_v37 = vld [vmem:[%s12030_s16 + $0xb8] sm:$0xf] }
  0x42   : > { %514 = vst.msk [vmem:[#allocation2 + $0x1d0] sm:$0xff] %vm454_vm0, %v14464_v1  ;;  %516 = vst.msk [vmem:[#allocation2 + $0x1e0] sm:$0xff] %vm454_vm0, %v14464_v1  ;;  %v657_v38 = vld [vmem:[%s12030_s16 + $0xc0] sm:$0xff]  ;;  %v658_v39 = vld [vmem:[%s12030_s16 + $0xc8] sm:$0xff] }
  0x43   : > { %517 = vst.msk [vmem:[#allocation2 + $0x1e8] sm:$0xff] %vm454_vm0, %v14464_v1  ;;  %518 = vst.msk [vmem:[#allocation2 + $0x1f0] sm:$0xff] %vm454_vm0, %v14464_v1  ;;  %v659_v40 = vld [vmem:[%s12030_s16 + $0xd0] sm:$0xff]  ;;  %v660_v41 = vld [vmem:[%s12030_s16 + $0xd8] sm:$0xf] }
  0x44   : > { %520 = vst.msk [vmem:[#allocation2 + $0x200] sm:$0xff] %vm454_vm0, %v14464_v1  ;;  %521 = vst.msk [vmem:[#allocation2 + $0x208] sm:$0xff] %vm454_vm0, %v14464_v1  ;;  %v661_v42 = vld [vmem:[%s12030_s16 + $0xe0] sm:$0xff]  ;;  %v662_v43 = vld [vmem:[%s12030_s16 + $0xe8] sm:$0xff] }
  0x45   : > { %522 = vst.msk [vmem:[#allocation2 + $0x210] sm:$0xff] %vm454_vm0, %v14464_v1  ;;  %524 = vst.msk [vmem:[#allocation2 + $0x220] sm:$0xff] %vm454_vm0, %v14464_v1  ;;  %v663_v44 = vld [vmem:[%s12030_s16 + $0xf0] sm:$0xff]  ;;  %v664_v45 = vld [vmem:[%s12030_s16 + $0xf8] sm:$0xf] }
  0x46   : > { %525 = vst.msk [vmem:[#allocation2 + $0x228] sm:$0xff] %vm454_vm0, %v14464_v1  ;;  %526 = vst.msk [vmem:[#allocation2 + $0x230] sm:$0xff] %vm454_vm0, %v14464_v1  ;;  %v665_v46 = vld [vmem:[%s12030_s16 + $0x100] sm:$0xff]  ;;  %v666_v47 = vld [vmem:[%s12030_s16 + $0x108] sm:$0xff] }
  0x47   : > { %528 = vst.msk [vmem:[#allocation2 + $0x240] sm:$0xff] %vm454_vm0, %v14464_v1  ;;  %529 = vst.msk [vmem:[#allocation2 + $0x248] sm:$0xff] %vm454_vm0, %v14464_v1  ;;  %v667_v48 = vld [vmem:[%s12030_s16 + $0x110] sm:$0xff]  ;;  %v668_v49 = vld [vmem:[%s12030_s16 + $0x118] sm:$0xf] }
  0x48   : > { %530 = vst.msk [vmem:[#allocation2 + $0x250] sm:$0xff] %vm454_vm0, %v14464_v1  ;;  %532 = vst.msk [vmem:[#allocation2 + $0x260] sm:$0xff] %vm454_vm0, %v14464_v1  ;;  %v669_v50 = vld [vmem:[%s12030_s16 + $0x120] sm:$0xff]  ;;  %v670_v51 = vld [vmem:[%s12030_s16 + $0x128] sm:$0xff] }
  0x49   : > { %533 = vst.msk [vmem:[#allocation2 + $0x268] sm:$0xff] %vm454_vm0, %v14464_v1  ;;  %534 = vst.msk [vmem:[#allocation2 + $0x270] sm:$0xff] %vm454_vm0, %v14464_v1  ;;  %v671_v52 = vld [vmem:[%s12030_s16 + $0x130] sm:$0xff]  ;;  %v672_v53 = vld [vmem:[%s12030_s16 + $0x138] sm:$0xf] }
  0x4a   : > { %536 = vst.msk [vmem:[#allocation2 + $0x280] sm:$0xff] %vm454_vm0, %v14464_v1  ;;  %537 = vst.msk [vmem:[#allocation2 + $0x288] sm:$0xff] %vm454_vm0, %v14464_v1  ;;  %v673_v54 = vld [vmem:[%s12030_s16 + $0x140] sm:$0xff]  ;;  %v674_v55 = vld [vmem:[%s12030_s16 + $0x148] sm:$0xff] }
  0x4b   : > { %538 = vst.msk [vmem:[#allocation2 + $0x290] sm:$0xff] %vm454_vm0, %v14464_v1  ;;  %540 = vst.msk [vmem:[#allocation2 + $0x2a0] sm:$0xff] %vm454_vm0, %v14464_v1  ;;  %v675_v56 = vld [vmem:[%s12030_s16 + $0x150] sm:$0xff]  ;;  %v676_v57 = vld [vmem:[%s12030_s16 + $0x158] sm:$0xf] }
  0x4c   : > { %541 = vst.msk [vmem:[#allocation2 + $0x2a8] sm:$0xff] %vm454_vm0, %v14464_v1  ;;  %542 = vst.msk [vmem:[#allocation2 + $0x2b0] sm:$0xff] %vm454_vm0, %v14464_v1  ;;  %v677_v58 = vld [vmem:[%s12030_s16 + $0x160] sm:$0xff]  ;;  %v678_v59 = vld [vmem:[%s12030_s16 + $0x168] sm:$0xff] }
  0x4d   : > { %544 = vst.msk [vmem:[#allocation2 + $0x2c0] sm:$0xff] %vm454_vm0, %v14464_v1  ;;  %545 = vst.msk [vmem:[#allocation2 + $0x2c8] sm:$0xff] %vm454_vm0, %v14464_v1  ;;  %v679_v60 = vld [vmem:[%s12030_s16 + $0x170] sm:$0xff]  ;;  %v680_v61 = vld [vmem:[%s12030_s16 + $0x178] sm:$0xf] }
  0x4e   : > { %546 = vst.msk [vmem:[#allocation2 + $0x2d0] sm:$0xff] %vm454_vm0, %v14464_v1  ;;  %548 = vst.msk [vmem:[#allocation2 + $0x2e0] sm:$0xff] %vm454_vm0, %v14464_v1  ;;  %v681_v62 = vld [vmem:[%s12030_s16 + $0x180] sm:$0xff]  ;;  %v682_v63 = vld [vmem:[%s12030_s16 + $0x188] sm:$0xff] }
  0x4f   : > { %549 = vst.msk [vmem:[#allocation2 + $0x2e8] sm:$0xff] %vm454_vm0, %v14464_v1  ;;  %550 = vst.msk [vmem:[#allocation2 + $0x2f0] sm:$0xff] %vm454_vm0, %v14464_v1  ;;  %v683_v3 = vld [vmem:[%s12030_s16 + $0x190] sm:$0xff]  ;;  %v684_v4 = vld [vmem:[%s12030_s16 + $0x198] sm:$0xf] }
  0x50   : > { %552 = vst.msk [vmem:[#allocation2 + $0x300] sm:$0xff] %vm454_vm0, %v14464_v1  ;;  %553 = vst.msk [vmem:[#allocation2 + $0x308] sm:$0xff] %vm454_vm0, %v14464_v1  ;;  %v685_v5 = vld [vmem:[%s12030_s16 + $0x1a0] sm:$0xff]  ;;  %v686_v6 = vld [vmem:[%s12030_s16 + $0x1a8] sm:$0xff] }
  0x51   : > { %554 = vst.msk [vmem:[#allocation2 + $0x310] sm:$0xff] %vm454_vm0, %v14464_v1  ;;  %556 = vst.msk [vmem:[#allocation2 + $0x320] sm:$0xff] %vm454_vm0, %v14464_v1  ;;  %v687_v7 = vld [vmem:[%s12030_s16 + $0x1b0] sm:$0xff]  ;;  %v688_v10 = vld [vmem:[%s12030_s16 + $0x1b8] sm:$0xf] }
  0x52   : > { %557 = vst.msk [vmem:[#allocation2 + $0x328] sm:$0xff] %vm454_vm0, %v14464_v1  ;;  %558 = vst.msk [vmem:[#allocation2 + $0x330] sm:$0xff] %vm454_vm0, %v14464_v1 }
  0x53   : > { %560 = vst.msk [vmem:[#allocation2 + $0x340] sm:$0xff] %vm454_vm0, %v14464_v1  ;;  %561 = vst.msk [vmem:[#allocation2 + $0x348] sm:$0xff] %vm454_vm0, %v14464_v1 }
  0x54   : > { %562 = vst.msk [vmem:[#allocation2 + $0x350] sm:$0xff] %vm454_vm0, %v14464_v1  ;;  %564 = vst.msk [vmem:[#allocation2 + $0x360] sm:$0xff] %vm454_vm0, %v14464_v1 }
  0x55   : > { %565 = vst.msk [vmem:[#allocation2 + $0x368] sm:$0xff] %vm454_vm0, %v14464_v1  ;;  %566 = vst.msk [vmem:[#allocation2 + $0x370] sm:$0xff] %vm454_vm0, %v14464_v1 }
  0x56   : > { %568 = vst.msk [vmem:[#allocation2 + $0x380] sm:$0xff] %vm454_vm0, %v14464_v1  ;;  %569 = vst.msk [vmem:[#allocation2 + $0x388] sm:$0xff] %vm454_vm0, %v14464_v1 }
  0x57   : > { %570 = vst.msk [vmem:[#allocation2 + $0x390] sm:$0xff] %vm454_vm0, %v14464_v1  ;;  %572 = vst.msk [vmem:[#allocation2 + $0x3a0] sm:$0xff] %vm454_vm0, %v14464_v1 }
  0x58   : > { %573 = vst.msk [vmem:[#allocation2 + $0x3a8] sm:$0xff] %vm454_vm0, %v14464_v1  ;;  %574 = vst.msk [vmem:[#allocation2 + $0x3b0] sm:$0xff] %vm454_vm0, %v14464_v1 }
  0x59   : > { %629 = vst [vmem:[#allocation5] sm:$0xf] %v14464_v1  ;;  %630 = vst [vmem:[#allocation5 + $0x4] sm:$0xf] %v14464_v1 }
  0x5a   : > { %631 = vst [vmem:[#allocation5 + $0x8] sm:$0xf] %v14464_v1  ;;  %632 = vst [vmem:[#allocation5 + $0xc] sm:$0xf] %v14464_v1 }
  0x5b   : > { %463 = vst.msk [vmem:[#allocation2 + $0x38] sm:$0x3f] %vm458_vm1, %v14464_v1  ;;  %459 = vst.msk [vmem:[#allocation2 + $0x18] sm:$0x3f] %vm458_vm1, %v14464_v1 }
  0x5c   : > { %467 = vst.msk [vmem:[#allocation2 + $0x58] sm:$0x3f] %vm458_vm1, %v14464_v1  ;;  %471 = vst.msk [vmem:[#allocation2 + $0x78] sm:$0x3f] %vm458_vm1, %v14464_v1 }
  0x5d   : > { %475 = vst.msk [vmem:[#allocation2 + $0x98] sm:$0x3f] %vm458_vm1, %v14464_v1  ;;  %479 = vst.msk [vmem:[#allocation2 + $0xb8] sm:$0x3f] %vm458_vm1, %v14464_v1 }
  0x5e   : > { %483 = vst.msk [vmem:[#allocation2 + $0xd8] sm:$0x3f] %vm458_vm1, %v14464_v1  ;;  %487 = vst.msk [vmem:[#allocation2 + $0xf8] sm:$0x3f] %vm458_vm1, %v14464_v1 }
  0x5f   : > { %491 = vst.msk [vmem:[#allocation2 + $0x118] sm:$0x3f] %vm458_vm1, %v14464_v1  ;;  %495 = vst.msk [vmem:[#allocation2 + $0x138] sm:$0x3f] %vm458_vm1, %v14464_v1 }
  0x60   : > { %499 = vst.msk [vmem:[#allocation2 + $0x158] sm:$0x3f] %vm458_vm1, %v14464_v1  ;;  %503 = vst.msk [vmem:[#allocation2 + $0x178] sm:$0x3f] %vm458_vm1, %v14464_v1 }
  0x61   : > { %507 = vst.msk [vmem:[#allocation2 + $0x198] sm:$0x3f] %vm458_vm1, %v14464_v1  ;;  %511 = vst.msk [vmem:[#allocation2 + $0x1b8] sm:$0x3f] %vm458_vm1, %v14464_v1 }
  0x62   : > { %515 = vst.msk [vmem:[#allocation2 + $0x1d8] sm:$0x3f] %vm458_vm1, %v14464_v1  ;;  %519 = vst.msk [vmem:[#allocation2 + $0x1f8] sm:$0x3f] %vm458_vm1, %v14464_v1 }
  0x63   : > { %523 = vst.msk [vmem:[#allocation2 + $0x218] sm:$0x3f] %vm458_vm1, %v14464_v1  ;;  %527 = vst.msk [vmem:[#allocation2 + $0x238] sm:$0x3f] %vm458_vm1, %v14464_v1 }
  0x64   : > { %531 = vst.msk [vmem:[#allocation2 + $0x258] sm:$0x3f] %vm458_vm1, %v14464_v1  ;;  %535 = vst.msk [vmem:[#allocation2 + $0x278] sm:$0x3f] %vm458_vm1, %v14464_v1 }
  0x65   : > { %539 = vst.msk [vmem:[#allocation2 + $0x298] sm:$0x3f] %vm458_vm1, %v14464_v1  ;;  %543 = vst.msk [vmem:[#allocation2 + $0x2b8] sm:$0x3f] %vm458_vm1, %v14464_v1 }
  0x66   : > { %547 = vst.msk [vmem:[#allocation2 + $0x2d8] sm:$0x3f] %vm458_vm1, %v14464_v1  ;;  %551 = vst.msk [vmem:[#allocation2 + $0x2f8] sm:$0x3f] %vm458_vm1, %v14464_v1 }
  0x67   : > { %555 = vst.msk [vmem:[#allocation2 + $0x318] sm:$0x3f] %vm458_vm1, %v14464_v1  ;;  %559 = vst.msk [vmem:[#allocation2 + $0x338] sm:$0x3f] %vm458_vm1, %v14464_v1 }
  0x68   : > { %563 = vst.msk [vmem:[#allocation2 + $0x358] sm:$0x3f] %vm458_vm1, %v14464_v1  ;;  %567 = vst.msk [vmem:[#allocation2 + $0x378] sm:$0x3f] %vm458_vm1, %v14464_v1 }
  0x69   : > { %571 = vst.msk [vmem:[#allocation2 + $0x398] sm:$0x3f] %vm458_vm1, %v14464_v1  ;;  %575 = vst.msk [vmem:[#allocation2 + $0x3b8] sm:$0x3f] %vm458_vm1, %v14464_v1 }
  0x6a   : > { %577 = vst.msk [vmem:[#allocation3] sm:$0xff] %vm14452_vm2, %v14464_v1  ;;  %578 = vst.msk [vmem:[#allocation3 + $0x8] sm:$0xff] %vm14452_vm2, %v14464_v1 }
  0x6b   : > { %579 = vst.msk [vmem:[#allocation3 + $0x10] sm:$0xff] %vm14452_vm2, %v14464_v1  ;;  %580 = vst.msk [vmem:[#allocation3 + $0x18] sm:$0xff] %vm14452_vm2, %v14464_v1 }
  0x6c   : > { %581 = vst.msk [vmem:[#allocation3 + $0x20] sm:$0xff] %vm14452_vm2, %v14464_v1  ;;  %582 = vst.msk [vmem:[#allocation3 + $0x28] sm:$0xff] %vm14452_vm2, %v14464_v1 }
  0x6d   : > { %583 = vst.msk [vmem:[#allocation3 + $0x30] sm:$0xff] %vm14452_vm2, %v14464_v1  ;;  %584 = vst.msk [vmem:[#allocation3 + $0x38] sm:$0xff] %vm14452_vm2, %v14464_v1 }
  0x6e   : > { %585 = vst.msk [vmem:[#allocation3 + $0x40] sm:$0xff] %vm14452_vm2, %v14464_v1  ;;  %586 = vst.msk [vmem:[#allocation3 + $0x48] sm:$0xff] %vm14452_vm2, %v14464_v1 }
  0x6f   : > { %587 = vst.msk [vmem:[#allocation3 + $0x50] sm:$0xff] %vm14452_vm2, %v14464_v1  ;;  %588 = vst.msk [vmem:[#allocation3 + $0x58] sm:$0xff] %vm14452_vm2, %v14464_v1 }
  0x70   : > { %589 = vst.msk [vmem:[#allocation3 + $0x60] sm:$0xff] %vm14452_vm2, %v14464_v1  ;;  %590 = vst.msk [vmem:[#allocation3 + $0x68] sm:$0xff] %vm14452_vm2, %v14464_v1 }
  0x71   : > { %591 = vst.msk [vmem:[#allocation3 + $0x70] sm:$0xff] %vm14452_vm2, %v14464_v1  ;;  %592 = vst.msk [vmem:[#allocation3 + $0x78] sm:$0xff] %vm14452_vm2, %v14464_v1 }
  0x72   : > { %593 = vst.msk [vmem:[#allocation3 + $0x80] sm:$0xff] %vm14452_vm2, %v14464_v1  ;;  %594 = vst.msk [vmem:[#allocation3 + $0x88] sm:$0xff] %vm14452_vm2, %v14464_v1 }
  0x73   : > { %595 = vst.msk [vmem:[#allocation3 + $0x90] sm:$0xff] %vm14452_vm2, %v14464_v1  ;;  %596 = vst.msk [vmem:[#allocation3 + $0x98] sm:$0xff] %vm14452_vm2, %v14464_v1 }
  0x74   : > { %597 = vst.msk [vmem:[#allocation3 + $0xa0] sm:$0xff] %vm14452_vm2, %v14464_v1  ;;  %598 = vst.msk [vmem:[#allocation3 + $0xa8] sm:$0xff] %vm14452_vm2, %v14464_v1 }
  0x75   : > { %599 = vst.msk [vmem:[#allocation3 + $0xb0] sm:$0xff] %vm14452_vm2, %v14464_v1  ;;  %600 = vst.msk [vmem:[#allocation3 + $0xb8] sm:$0xff] %vm14452_vm2, %v14464_v1 }
  0x76   : > { %601 = vst.msk [vmem:[#allocation3 + $0xc0] sm:$0xff] %vm14452_vm2, %v14464_v1  ;;  %602 = vst.msk [vmem:[#allocation3 + $0xc8] sm:$0xff] %vm14452_vm2, %v14464_v1 }
  0x77   : > { %603 = vst.msk [vmem:[#allocation3 + $0xd0] sm:$0xff] %vm14452_vm2, %v14464_v1  ;;  %604 = vst.msk [vmem:[#allocation3 + $0xd8] sm:$0xff] %vm14452_vm2, %v14464_v1 }
  0x78   : > { %605 = vst.msk [vmem:[#allocation3 + $0xe0] sm:$0xff] %vm14452_vm2, %v14464_v1  ;;  %606 = vst.msk [vmem:[#allocation3 + $0xe8] sm:$0xff] %vm14452_vm2, %v14464_v1 }
  0x79   : > { %607 = vst.msk [vmem:[#allocation3 + $0xf0] sm:$0xff] %vm14452_vm2, %v14464_v1  ;;  %608 = vst.msk [vmem:[#allocation3 + $0xf8] sm:$0xff] %vm14452_vm2, %v14464_v1 }
  0x7a   : > { %610 = vst.msk [vmem:[#allocation4] sm:$0xff] %vm609_vm3, %v14464_v1  ;;  %613 = vst.msk [vmem:[#allocation4 + $0x10] sm:$0xff] %vm609_vm3, %v14464_v1 }
  0x7b   : > { %615 = vst.msk [vmem:[#allocation4 + $0x20] sm:$0xff] %vm609_vm3, %v14464_v1  ;;  %617 = vst.msk [vmem:[#allocation4 + $0x30] sm:$0xff] %vm609_vm3, %v14464_v1 }
  0x7c   : > { %619 = vst.msk [vmem:[#allocation4 + $0x40] sm:$0xff] %vm609_vm3, %v14464_v1  ;;  %621 = vst.msk [vmem:[#allocation4 + $0x50] sm:$0xff] %vm609_vm3, %v14464_v1 }
  0x7d   : > { %623 = vst.msk [vmem:[#allocation4 + $0x60] sm:$0xff] %vm609_vm3, %v14464_v1  ;;  %625 = vst.msk [vmem:[#allocation4 + $0x70] sm:$0xff] %vm609_vm3, %v14464_v1 }
  0x7e   : > { %627 = vst.msk [vmem:[#allocation4 + $0x80] sm:$0xff] %vm609_vm3, %v14464_v1  ;;  %14492 = vst [vmem:[#allocation17_spill] sm:$0xff] %v12025_v9 }
  0x7f   : > { %612 = vst.msk [vmem:[#allocation4 + $0x8] sm:$0x1] %vm611_vm4, %v14464_v1  ;;  %614 = vst.msk [vmem:[#allocation4 + $0x18] sm:$0x1] %vm611_vm4, %v14464_v1 }
  0x80   : > { %616 = vst.msk [vmem:[#allocation4 + $0x28] sm:$0x1] %vm611_vm4, %v14464_v1  ;;  %618 = vst.msk [vmem:[#allocation4 + $0x38] sm:$0x1] %vm611_vm4, %v14464_v1 }
  0x81   : > { %620 = vst.msk [vmem:[#allocation4 + $0x48] sm:$0x1] %vm611_vm4, %v14464_v1  ;;  %622 = vst.msk [vmem:[#allocation4 + $0x58] sm:$0x1] %vm611_vm4, %v14464_v1 }
  0x82   : > { %624 = vst.msk [vmem:[#allocation4 + $0x68] sm:$0x1] %vm611_vm4, %v14464_v1  ;;  %626 = vst.msk [vmem:[#allocation4 + $0x78] sm:$0x1] %vm611_vm4, %v14464_v1 }
  0x83   : > { %628 = vst.msk [vmem:[#allocation4 + $0x88] sm:$0x1] %vm611_vm4, %v14464_v1  ;;  %14494 = vst [vmem:[#allocation18_spill] sm:$0xff] %v12041_v15 }
  0x84   : > { %746 = vst.msk [vmem:[#allocation2 + $0x21] sm:$0xff] %vm454_vm0, %v633_v11  ;;  %747 = vst.msk [vmem:[#allocation2 + $0x29] sm:$0xff] %vm454_vm0, %v634_v12  ;;  %v689_v11 = vld [vmem:[%s12030_s16 + $0x1c0] sm:$0xff]  ;;  %v690_v12 = vld [vmem:[%s12030_s16 + $0x1c8] sm:$0xff] }
  0x85   : > { %748 = vst.msk [vmem:[#allocation2 + $0x31] sm:$0xff] %vm454_vm0, %v635_v13  ;;  %751 = vst.msk [vmem:[#allocation2 + $0x41] sm:$0xff] %vm454_vm0, %v637_v17  ;;  %v691_v13 = vld [vmem:[%s12030_s16 + $0x1d0] sm:$0xff]  ;;  %v693_v17 = vld [vmem:[%s12030_s16 + $0x1e0] sm:$0xff] }
  0x86   : > { %750 = vst.msk [vmem:[#allocation2 + $0x39] sm:$0xf] %vm749_vm6, %v636_v16  ;;  %754 = vst.msk [vmem:[#allocation2 + $0x59] sm:$0xf] %vm749_vm6, %v640_v20  ;;  %v692_v16 = vld [vmem:[%s12030_s16 + $0x1d8] sm:$0xf] }
  0x87   : > { %752 = vst.msk [vmem:[#allocation2 + $0x49] sm:$0xff] %vm454_vm0, %v638_v18  ;;  %753 = vst.msk [vmem:[#allocation2 + $0x51] sm:$0xff] %vm454_vm0, %v639_v19  ;;  %v694_v18 = vld [vmem:[%s12030_s16 + $0x1e8] sm:$0xff]  ;;  %v695_v19 = vld [vmem:[%s12030_s16 + $0x1f0] sm:$0xff] }
  0x88   : > { %755 = vst.msk [vmem:[#allocation2 + $0x61] sm:$0xff] %vm454_vm0, %v641_v21  ;;  %756 = vst.msk [vmem:[#allocation2 + $0x69] sm:$0xff] %vm454_vm0, %v642_v23  ;;  %v696_v20 = vld [vmem:[%s12030_s16 + $0x1f8] sm:$0xf]  ;;  %v697_v21 = vld [vmem:[%s12030_s16 + $0x200] sm:$0xff] }
  0x89   : > { %757 = vst.msk [vmem:[#allocation2 + $0x71] sm:$0xff] %vm454_vm0, %v643_v24  ;;  %759 = vst.msk [vmem:[#allocation2 + $0x81] sm:$0xff] %vm454_vm0, %v645_v26  ;;  %v698_v23 = vld [vmem:[%s12030_s16 + $0x208] sm:$0xff]  ;;  %v699_v24 = vld [vmem:[%s12030_s16 + $0x210] sm:$0xff] }
  0x8a   : > { %758 = vst.msk [vmem:[#allocation2 + $0x79] sm:$0xf] %vm749_vm6, %v644_v25  ;;  %762 = vst.msk [vmem:[#allocation2 + $0x99] sm:$0xf] %vm749_vm6, %v648_v29  ;;  %v700_v25 = vld [vmem:[%s12030_s16 + $0x218] sm:$0xf] }
  0x8b   : > { %760 = vst.msk [vmem:[#allocation2 + $0x89] sm:$0xff] %vm454_vm0, %v646_v27  ;;  %761 = vst.msk [vmem:[#allocation2 + $0x91] sm:$0xff] %vm454_vm0, %v647_v28  ;;  %v701_v26 = vld [vmem:[%s12030_s16 + $0x220] sm:$0xff]  ;;  %v702_v27 = vld [vmem:[%s12030_s16 + $0x228] sm:$0xff] }
  0x8c   : > { %763 = vst.msk [vmem:[#allocation2 + $0xa1] sm:$0xff] %vm454_vm0, %v649_v30  ;;  %764 = vst.msk [vmem:[#allocation2 + $0xa9] sm:$0xff] %vm454_vm0, %v650_v31  ;;  %v703_v28 = vld [vmem:[%s12030_s16 + $0x230] sm:$0xff]  ;;  %v704_v29 = vld [vmem:[%s12030_s16 + $0x238] sm:$0xf] }
  0x8d   : > { %765 = vst.msk [vmem:[#allocation2 + $0xb1] sm:$0xff] %vm454_vm0, %v651_v32  ;;  %767 = vst.msk [vmem:[#allocation2 + $0xc1] sm:$0xff] %vm454_vm0, %v653_v34  ;;  %v705_v30 = vld [vmem:[%s12030_s16 + $0x240] sm:$0xff]  ;;  %v706_v31 = vld [vmem:[%s12030_s16 + $0x248] sm:$0xff] }
  0x8e   : > { %766 = vst.msk [vmem:[#allocation2 + $0xb9] sm:$0xf] %vm749_vm6, %v652_v33  ;;  %770 = vst.msk [vmem:[#allocation2 + $0xd9] sm:$0xf] %vm749_vm6, %v656_v37  ;;  %v707_v32 = vld [vmem:[%s12030_s16 + $0x250] sm:$0xff]  ;;  %v709_v34 = vld [vmem:[%s12030_s16 + $0x260] sm:$0xff] }
  0x8f   : > { %768 = vst.msk [vmem:[#allocation2 + $0xc9] sm:$0xff] %vm454_vm0, %v654_v35  ;;  %769 = vst.msk [vmem:[#allocation2 + $0xd1] sm:$0xff] %vm454_vm0, %v655_v36  ;;  %v708_v33 = vld [vmem:[%s12030_s16 + $0x258] sm:$0xf]  ;;  %v710_v35 = vld [vmem:[%s12030_s16 + $0x268] sm:$0xff] }
  0x90   : > { %771 = vst.msk [vmem:[#allocation2 + $0xe1] sm:$0xff] %vm454_vm0, %v657_v38  ;;  %772 = vst.msk [vmem:[#allocation2 + $0xe9] sm:$0xff] %vm454_vm0, %v658_v39  ;;  %v711_v36 = vld [vmem:[%s12030_s16 + $0x270] sm:$0xff]  ;;  %v712_v37 = vld [vmem:[%s12030_s16 + $0x278] sm:$0xf] }
  0x91   : > { %773 = vst.msk [vmem:[#allocation2 + $0xf1] sm:$0xff] %vm454_vm0, %v659_v40  ;;  %775 = vst.msk [vmem:[#allocation2 + $0x101] sm:$0xff] %vm454_vm0, %v661_v42  ;;  %v713_v38 = vld [vmem:[%s12030_s16 + $0x280] sm:$0xff]  ;;  %v714_v39 = vld [vmem:[%s12030_s16 + $0x288] sm:$0xff] }
  0x92   : > { %774 = vst.msk [vmem:[#allocation2 + $0xf9] sm:$0xf] %vm749_vm6, %v660_v41  ;;  %778 = vst.msk [vmem:[#allocation2 + $0x119] sm:$0xf] %vm749_vm6, %v664_v45  ;;  %v715_v40 = vld [vmem:[%s12030_s16 + $0x290] sm:$0xff]  ;;  %v717_v42 = vld [vmem:[%s12030_s16 + $0x2a0] sm:$0xff] }
  0x93   : > { %776 = vst.msk [vmem:[#allocation2 + $0x109] sm:$0xff] %vm454_vm0, %v662_v43  ;;  %777 = vst.msk [vmem:[#allocation2 + $0x111] sm:$0xff] %vm454_vm0, %v663_v44  ;;  %v716_v41 = vld [vmem:[%s12030_s16 + $0x298] sm:$0xf]  ;;  %v718_v43 = vld [vmem:[%s12030_s16 + $0x2a8] sm:$0xff] }
  0x94   : > { %779 = vst.msk [vmem:[#allocation2 + $0x121] sm:$0xff] %vm454_vm0, %v665_v46  ;;  %780 = vst.msk [vmem:[#allocation2 + $0x129] sm:$0xff] %vm454_vm0, %v666_v47  ;;  %v719_v44 = vld [vmem:[%s12030_s16 + $0x2b0] sm:$0xff]  ;;  %v720_v45 = vld [vmem:[%s12030_s16 + $0x2b8] sm:$0xf] }
  0x95   : > { %781 = vst.msk [vmem:[#allocation2 + $0x131] sm:$0xff] %vm454_vm0, %v667_v48  ;;  %783 = vst.msk [vmem:[#allocation2 + $0x141] sm:$0xff] %vm454_vm0, %v669_v50  ;;  %v721_v46 = vld [vmem:[%s12030_s16 + $0x2c0] sm:$0xff]  ;;  %v722_v47 = vld [vmem:[%s12030_s16 + $0x2c8] sm:$0xff] }
  0x96   : > { %782 = vst.msk [vmem:[#allocation2 + $0x139] sm:$0xf] %vm749_vm6, %v668_v49  ;;  %786 = vst.msk [vmem:[#allocation2 + $0x159] sm:$0xf] %vm749_vm6, %v672_v53  ;;  %v723_v48 = vld [vmem:[%s12030_s16 + $0x2d0] sm:$0xff]  ;;  %v725_v50 = vld [vmem:[%s12030_s16 + $0x2e0] sm:$0xff] }
  0x97   : > { %784 = vst.msk [vmem:[#allocation2 + $0x149] sm:$0xff] %vm454_vm0, %v670_v51  ;;  %785 = vst.msk [vmem:[#allocation2 + $0x151] sm:$0xff] %vm454_vm0, %v671_v52  ;;  %v724_v49 = vld [vmem:[%s12030_s16 + $0x2d8] sm:$0xf]  ;;  %v726_v51 = vld [vmem:[%s12030_s16 + $0x2e8] sm:$0xff] }
  0x98   : > { %787 = vst.msk [vmem:[#allocation2 + $0x161] sm:$0xff] %vm454_vm0, %v673_v54  ;;  %788 = vst.msk [vmem:[#allocation2 + $0x169] sm:$0xff] %vm454_vm0, %v674_v55  ;;  %v727_v52 = vld [vmem:[%s12030_s16 + $0x2f0] sm:$0xff]  ;;  %v728_v53 = vld [vmem:[%s12030_s16 + $0x2f8] sm:$0xf] }
  0x99   : > { %789 = vst.msk [vmem:[#allocation2 + $0x171] sm:$0xff] %vm454_vm0, %v675_v56  ;;  %791 = vst.msk [vmem:[#allocation2 + $0x181] sm:$0xff] %vm454_vm0, %v677_v58  ;;  %v729_v54 = vld [vmem:[%s12030_s16 + $0x300] sm:$0xff]  ;;  %v730_v55 = vld [vmem:[%s12030_s16 + $0x308] sm:$0xff] }
  0x9a   : > { %790 = vst.msk [vmem:[#allocation2 + $0x179] sm:$0xf] %vm749_vm6, %v676_v57  ;;  %794 = vst.msk [vmem:[#allocation2 + $0x199] sm:$0xf] %vm749_vm6, %v680_v61  ;;  %v731_v56 = vld [vmem:[%s12030_s16 + $0x310] sm:$0xff]  ;;  %v733_v58 = vld [vmem:[%s12030_s16 + $0x320] sm:$0xff] }
  0x9b   : > { %792 = vst.msk [vmem:[#allocation2 + $0x189] sm:$0xff] %vm454_vm0, %v678_v59  ;;  %793 = vst.msk [vmem:[#allocation2 + $0x191] sm:$0xff] %vm454_vm0, %v679_v60  ;;  %v732_v57 = vld [vmem:[%s12030_s16 + $0x318] sm:$0xf]  ;;  %v734_v59 = vld [vmem:[%s12030_s16 + $0x328] sm:$0xff] }
  0x9c   : > { %795 = vst.msk [vmem:[#allocation2 + $0x1a1] sm:$0xff] %vm454_vm0, %v681_v62  ;;  %796 = vst.msk [vmem:[#allocation2 + $0x1a9] sm:$0xff] %vm454_vm0, %v682_v63  ;;  %v735_v60 = vld [vmem:[%s12030_s16 + $0x330] sm:$0xff]  ;;  %v736_v61 = vld [vmem:[%s12030_s16 + $0x338] sm:$0xf] }
  0x9d   : > { %797 = vst.msk [vmem:[#allocation2 + $0x1b1] sm:$0xff] %vm454_vm0, %v683_v3  ;;  %799 = vst.msk [vmem:[#allocation2 + $0x1c1] sm:$0xff] %vm454_vm0, %v685_v5  ;;  %v737_v62 = vld [vmem:[%s12030_s16 + $0x340] sm:$0xff]  ;;  %v738_v63 = vld [vmem:[%s12030_s16 + $0x348] sm:$0xff] }
  0x9e   : > { %798 = vst.msk [vmem:[#allocation2 + $0x1b9] sm:$0xf] %vm749_vm6, %v684_v4  ;;  %802 = vst.msk [vmem:[#allocation2 + $0x1d9] sm:$0xf] %vm749_vm6, %v688_v10  ;;  %v739_v3 = vld [vmem:[%s12030_s16 + $0x350] sm:$0xff]  ;;  %v741_v5 = vld [vmem:[%s12030_s16 + $0x360] sm:$0xff] }
  0x9f   : > { %800 = vst.msk [vmem:[#allocation2 + $0x1c9] sm:$0xff] %vm454_vm0, %v686_v6  ;;  %801 = vst.msk [vmem:[#allocation2 + $0x1d1] sm:$0xff] %vm454_vm0, %v687_v7  ;;  %v740_v4 = vld [vmem:[%s12030_s16 + $0x358] sm:$0xf]  ;;  %v742_v6 = vld [vmem:[%s12030_s16 + $0x368] sm:$0xff] }
  0xa0   : > { %803 = vst.msk [vmem:[#allocation2 + $0x1e1] sm:$0xff] %vm454_vm0, %v689_v11  ;;  %804 = vst.msk [vmem:[#allocation2 + $0x1e9] sm:$0xff] %vm454_vm0, %v690_v12  ;;  %v743_v7 = vld [vmem:[%s12030_s16 + $0x370] sm:$0xff]  ;;  %v744_v10 = vld [vmem:[%s12030_s16 + $0x378] sm:$0xf] }
  0xa1   : > { %805 = vst.msk [vmem:[#allocation2 + $0x1f1] sm:$0xff] %vm454_vm0, %v691_v13  ;;  %807 = vst.msk [vmem:[#allocation2 + $0x201] sm:$0xff] %vm454_vm0, %v693_v17 }
  0xa2   : > { %806 = vst.msk [vmem:[#allocation2 + $0x1f9] sm:$0xf] %vm749_vm6, %v692_v16  ;;  %810 = vst.msk [vmem:[#allocation2 + $0x219] sm:$0xf] %vm749_vm6, %v696_v20 }
  0xa3   : > { %808 = vst.msk [vmem:[#allocation2 + $0x209] sm:$0xff] %vm454_vm0, %v694_v18  ;;  %809 = vst.msk [vmem:[#allocation2 + $0x211] sm:$0xff] %vm454_vm0, %v695_v19 }
  0xa4   : > { %811 = vst.msk [vmem:[#allocation2 + $0x221] sm:$0xff] %vm454_vm0, %v697_v21  ;;  %812 = vst.msk [vmem:[#allocation2 + $0x229] sm:$0xff] %vm454_vm0, %v698_v23 }
  0xa5   : > { %813 = vst.msk [vmem:[#allocation2 + $0x231] sm:$0xff] %vm454_vm0, %v699_v24  ;;  %815 = vst.msk [vmem:[#allocation2 + $0x241] sm:$0xff] %vm454_vm0, %v701_v26 }
  0xa6   : > { %814 = vst.msk [vmem:[#allocation2 + $0x239] sm:$0xf] %vm749_vm6, %v700_v25  ;;  %818 = vst.msk [vmem:[#allocation2 + $0x259] sm:$0xf] %vm749_vm6, %v704_v29 }
  0xa7   : > { %816 = vst.msk [vmem:[#allocation2 + $0x249] sm:$0xff] %vm454_vm0, %v702_v27  ;;  %817 = vst.msk [vmem:[#allocation2 + $0x251] sm:$0xff] %vm454_vm0, %v703_v28 }
  0xa8   : > { %819 = vst.msk [vmem:[#allocation2 + $0x261] sm:$0xff] %vm454_vm0, %v705_v30  ;;  %820 = vst.msk [vmem:[#allocation2 + $0x269] sm:$0xff] %vm454_vm0, %v706_v31 }
  0xa9   : > { %821 = vst.msk [vmem:[#allocation2 + $0x271] sm:$0xff] %vm454_vm0, %v707_v32  ;;  %823 = vst.msk [vmem:[#allocation2 + $0x281] sm:$0xff] %vm454_vm0, %v709_v34 }
  0xaa   : > { %822 = vst.msk [vmem:[#allocation2 + $0x279] sm:$0xf] %vm749_vm6, %v708_v33  ;;  %826 = vst.msk [vmem:[#allocation2 + $0x299] sm:$0xf] %vm749_vm6, %v712_v37 }
  0xab   : > { %824 = vst.msk [vmem:[#allocation2 + $0x289] sm:$0xff] %vm454_vm0, %v710_v35  ;;  %825 = vst.msk [vmem:[#allocation2 + $0x291] sm:$0xff] %vm454_vm0, %v711_v36 }
  0xac   : > { %827 = vst.msk [vmem:[#allocation2 + $0x2a1] sm:$0xff] %vm454_vm0, %v713_v38  ;;  %828 = vst.msk [vmem:[#allocation2 + $0x2a9] sm:$0xff] %vm454_vm0, %v714_v39 }
  0xad   : > { %829 = vst.msk [vmem:[#allocation2 + $0x2b1] sm:$0xff] %vm454_vm0, %v715_v40  ;;  %831 = vst.msk [vmem:[#allocation2 + $0x2c1] sm:$0xff] %vm454_vm0, %v717_v42 }
  0xae   : > { %830 = vst.msk [vmem:[#allocation2 + $0x2b9] sm:$0xf] %vm749_vm6, %v716_v41  ;;  %834 = vst.msk [vmem:[#allocation2 + $0x2d9] sm:$0xf] %vm749_vm6, %v720_v45 }
  0xaf   : > { %832 = vst.msk [vmem:[#allocation2 + $0x2c9] sm:$0xff] %vm454_vm0, %v718_v43  ;;  %833 = vst.msk [vmem:[#allocation2 + $0x2d1] sm:$0xff] %vm454_vm0, %v719_v44 }
  0xb0   : > { %835 = vst.msk [vmem:[#allocation2 + $0x2e1] sm:$0xff] %vm454_vm0, %v721_v46  ;;  %836 = vst.msk [vmem:[#allocation2 + $0x2e9] sm:$0xff] %vm454_vm0, %v722_v47 }
  0xb1   : > { %837 = vst.msk [vmem:[#allocation2 + $0x2f1] sm:$0xff] %vm454_vm0, %v723_v48  ;;  %839 = vst.msk [vmem:[#allocation2 + $0x301] sm:$0xff] %vm454_vm0, %v725_v50 }
  0xb2   : > { %838 = vst.msk [vmem:[#allocation2 + $0x2f9] sm:$0xf] %vm749_vm6, %v724_v49  ;;  %842 = vst.msk [vmem:[#allocation2 + $0x319] sm:$0xf] %vm749_vm6, %v728_v53 }
  0xb3   : > { %840 = vst.msk [vmem:[#allocation2 + $0x309] sm:$0xff] %vm454_vm0, %v726_v51  ;;  %841 = vst.msk [vmem:[#allocation2 + $0x311] sm:$0xff] %vm454_vm0, %v727_v52 }
  0xb4   : > { %843 = vst.msk [vmem:[#allocation2 + $0x321] sm:$0xff] %vm454_vm0, %v729_v54  ;;  %844 = vst.msk [vmem:[#allocation2 + $0x329] sm:$0xff] %vm454_vm0, %v730_v55 }
  0xb5   : > { %845 = vst.msk [vmem:[#allocation2 + $0x331] sm:$0xff] %vm454_vm0, %v731_v56  ;;  %847 = vst.msk [vmem:[#allocation2 + $0x341] sm:$0xff] %vm454_vm0, %v733_v58 }
  0xb6   : > { %846 = vst.msk [vmem:[#allocation2 + $0x339] sm:$0xf] %vm749_vm6, %v732_v57  ;;  %850 = vst.msk [vmem:[#allocation2 + $0x359] sm:$0xf] %vm749_vm6, %v736_v61 }
  0xb7   : > { %848 = vst.msk [vmem:[#allocation2 + $0x349] sm:$0xff] %vm454_vm0, %v734_v59  ;;  %849 = vst.msk [vmem:[#allocation2 + $0x351] sm:$0xff] %vm454_vm0, %v735_v60 }
  0xb8   : > { %851 = vst.msk [vmem:[#allocation2 + $0x361] sm:$0xff] %vm454_vm0, %v737_v62  ;;  %852 = vst.msk [vmem:[#allocation2 + $0x369] sm:$0xff] %vm454_vm0, %v738_v63 }
  0xb9   : > { %853 = vst.msk [vmem:[#allocation2 + $0x371] sm:$0xff] %vm454_vm0, %v739_v3  ;;  %855 = vst.msk [vmem:[#allocation2 + $0x381] sm:$0xff] %vm454_vm0, %v741_v5 }
  0xba   : > { %854 = vst.msk [vmem:[#allocation2 + $0x379] sm:$0xf] %vm749_vm6, %v740_v4  ;;  %858 = vst.msk [vmem:[#allocation2 + $0x399] sm:$0xf] %vm749_vm6, %v744_v10 }
  0xbb   : > { %856 = vst.msk [vmem:[#allocation2 + $0x389] sm:$0xff] %vm454_vm0, %v742_v6  ;;  %857 = vst.msk [vmem:[#allocation2 + $0x391] sm:$0xff] %vm454_vm0, %v743_v7 }
  0xbc LB: >> { %s9980_s23 = sshll.u32 %s11489_s22, 6  ;;  %s11503_s30 = smov 1   ;;  %vm14453_vm10 = vcmask 1043456   ;;  %vm1139_vm11 = vcmask 1044480   ;;  %v11510_v47 = vmov 65535   ;;  %vm918_vm12 = vcmask 15368   ;;  %s11489_s22 = sphi %s12272_s22, %s886_s22  }
  0xbd   : >> { %s12278_s24 = scalar_lea.vmem [#allocation2], %s9980_s23  ;;  %s14448_s15 = smov 2   ;;  %v1140_v48 = vsel %vm14453_vm10, 4294967295, %v11510_v47  ;;  %vm922_vm13 = vcmask 11272   ;;  %vm944_vm14 = vcmask 23568   ;;  %vm948_vm15 = vcmask 19472  }
  0xbe   : >> { %s14444_s16 = smov 3   ;;  %s14442_s23 = smov 4   ;;  %v1141_v49 = vsel %vm1139_vm11, %v1140_v48, 0  ;;  %vm973_vm1 = vcmask 31768   ;;  %vm977_vm3 = vcmask 27672   ;;  %vm999_vm4 = vcmask 39968  }
  0xbf   : >> { %s14446_s21 = smov 5   ;;  %s14495_s1 = sld [smem:[#allocation33_spill]]  ;;  %vm1003_vm5 = vcmask 35872   ;;  %vm1025_vm7 = vcmask 48168   ;;  %vm14454_vm8 = vcmask 44072   ;;  %vm1054_vm9 = vcmask 56368  }
  0xc0   : >> { %vm14455_vm11 = vcmask 52272   ;;  %vm1080_vm2 = vcmask 64568   ;;  %vm14456_vm10 = vcmask 60472  }
  0xc2   : >> { %v900_v11 = vld [vmem:[%s12278_s24 + $0x11] sm:$0xff]  ;;  %v898_v12 = vld [vmem:[%s12278_s24 + $0x1] sm:$0xff]  ;;  %v901_v13 = vld [vmem:[%s12278_s24 + $0x19] sm:$0xf] }
  0xc3   : >> { %910 = vrot.lane.b32.xlu1 %v900_v11, %s11503_s30  ;;  %906 = vrot.lane.b32.xlu0 %v898_v12, %s11503_s30  ;;  %v899_v16 = vld [vmem:[%s12278_s24 + $0x9] sm:$0xff]  ;;  %v927_v19 = vld [vmem:[%s12278_s24 + $0x1a] sm:$0xf] }
  0xc4   : >> { %v925_v17 = vld [vmem:[%s12278_s24 + $0xa] sm:$0xff]  ;;  %v924_v18 = vld [vmem:[%s12278_s24 + $0x2] sm:$0xff]  ;;  %v926_v20 = vld [vmem:[%s12278_s24 + $0x12] sm:$0xff] }
  0xc5   : >> { %v12297_v21 = vld [vmem:[%s12278_s24 + $0x28] sm:$0xff]  ;;  %v12300_v23 = vld [vmem:[%s12278_s24 + $0x20] sm:$0xff]  ;;  %v892_v24 = vld [vmem:[%s12278_s24 + $0x10] sm:$0xff] }
  0xc6   : >> { %896 = vst.msk [vmem:[#allocation7 + $0x10] sm:$0xff] %vm454_vm0, %v892_v24  ;;  %v890_v25 = vld [vmem:[%s12278_s24] sm:$0xff]  ;;  %v893_v26 = vld [vmem:[%s12278_s24 + $0x18] sm:$0xf]  ;;  %v891_v27 = vld [vmem:[%s12278_s24 + $0x8] sm:$0xff] }
  0xc7   : >> { %912 = vrot.lane.b32.xlu1 %v901_v13, %s11503_s30  ;;  %908 = vrot.lane.b32.xlu0 %v899_v16, %s11503_s30  ;;  %894 = vst.msk [vmem:[#allocation7] sm:$0xff] %vm454_vm0, %v890_v25  ;;  %v9122_v28 = vld [vmem:[%s12278_s24 + $0x38] sm:$0xf]  ;;  %v12314_v29 = vld [vmem:[%s12278_s24 + $0x30] sm:$0xff]  ;;  %895 = vst.msk [vmem:[#allocation7 + $0x8] sm:$0xff] %vm454_vm0, %v891_v27 }
  0xc8   : >> { %897 = vst.msk [vmem:[#allocation7 + $0x18] sm:$0xf] %vm749_vm6, %v893_v26  ;;  %v9124_v30 = vld [vmem:[%s12278_s24 + $0x29] sm:$0xff]  ;;  %v9123_v31 = vld [vmem:[%s12278_s24 + $0x21] sm:$0xff]  ;;  %v9126_v32 = vld [vmem:[%s12278_s24 + $0x39] sm:$0xf] }
  0xc9   : >> { %v9125_v33 = vld [vmem:[%s12278_s24 + $0x31] sm:$0xff]  ;;  %v9127_v35 = vld [vmem:[%s12278_s24 + $0x22] sm:$0xff]  ;;  %v9130_v36 = vld [vmem:[%s12278_s24 + $0x3a] sm:$0xf] }
  0xca   : >> { %v9128_v34 = vld [vmem:[%s12278_s24 + $0x2a] sm:$0xff]  ;;  %v9129_v37 = vld [vmem:[%s12278_s24 + $0x32] sm:$0xff]  ;;  %v9133_v39 = vld [vmem:[%s12278_s24 + $0x40] sm:$0xff] }
  0xcb   : >> { %934 = vrot.lane.b32.xlu1 %v925_v17, %s14448_s15  ;;  %932 = vrot.lane.b32.xlu0 %v924_v18, %s14448_s15  ;;  %v9134_v38 = vld [vmem:[%s12278_s24 + $0x48] sm:$0xff]  ;;  %v9136_v40 = vld [vmem:[%s12278_s24 + $0x58] sm:$0xf] }
  0xcc   : >> { %v9135_v41 = vld [vmem:[%s12278_s24 + $0x50] sm:$0xff]  ;;  %v9137_v43 = vld [vmem:[%s12278_s24 + $0x41] sm:$0xff]  ;;  %v9140_v44 = vld [vmem:[%s12278_s24 + $0x59] sm:$0xf] }
  0xcd   : >> { %v9138_v42 = vld [vmem:[%s12278_s24 + $0x49] sm:$0xff]  ;;  %v9139_v45 = vld [vmem:[%s12278_s24 + $0x51] sm:$0xff]  ;;  %v10693_v46 = vld [vmem:[%s14495_s1] sm:$0x1f]  }
  0xce   : >> { %v1143_v50 = vand.u32 %v10693_v46, %v1141_v49  ;;  %v9142_v51 = vld [vmem:[%s12278_s24 + $0x4a] sm:$0xff]  ;;  %v9141_v52 = vld [vmem:[%s12278_s24 + $0x42] sm:$0xff]  ;;  %v9144_v53 = vld [vmem:[%s12278_s24 + $0x5a] sm:$0xf] }
  0xcf   : >> { %938 = vrot.lane.b32.xlu1 %v927_v19, %s14448_s15  ;;  %936 = vrot.lane.b32.xlu0 %v926_v20, %s14448_s15  ;;  %v9143_v54 = vld [vmem:[%s12278_s24 + $0x52] sm:$0xff]  ;;  %s14496_s15 = smov 2   ;;  %v9160_v56 = vld [vmem:[%s12278_s24 + $0x3a] sm:$0xf] }
  0xd0   : >> { %10500 = vmatprep.subr.bf16.mxu0 %v1143_v50  ;;  %v9156_v55 = vld [vmem:[%s12278_s24 + $0x39] sm:$0xf]  ;;  %v9176_v60 = vld [vmem:[%s12278_s24 + $0x68] sm:$0xff]  ;;  %v9175_v61 = vld [vmem:[%s12278_s24 + $0x60] sm:$0xff] }
  0xd1   : >> { %10501 = vmatpush3.bf16.msra.mxu0 %v1143_v50  ;;  %v9164_v57 = vld [vmem:[%s12278_s24 + $0x58] sm:$0xf]  ;;  %v9177_v63 = vld [vmem:[%s12278_s24 + $0x70] sm:$0xff]  ;;  %v9179_v4 = vld [vmem:[%s12278_s24 + $0x61] sm:$0xff] }
  0xd2   : >> { %v9168_v58 = vld [vmem:[%s12278_s24 + $0x59] sm:$0xf]  ;;  %v9180_v3 = vld [vmem:[%s12278_s24 + $0x69] sm:$0xff]  ;;  %v10694_v5 = vld [vmem:[%s14495_s1] sm:$0x1f]  }
  0xd3   : >> { %963 = vrot.lane.b32.xlu1 %v12297_v21, %s14444_s16  ;;  %961 = vrot.lane.b32.xlu0 %v12300_v23, %s14444_s16  ;;  %v9172_v59 = vld [vmem:[%s12278_s24 + $0x5a] sm:$0xf]  ;;  %v9181_v7 = vld [vmem:[%s12278_s24 + $0x71] sm:$0xff]  ;;  %v1429_v10 = vand.u32 %v10694_v5, %v1141_v49 }
  0xd4   : >> { %v9178_v62 = vld [vmem:[%s12278_s24 + $0x78] sm:$0xf]  ;;  %v9184_v13 = vld [vmem:[%s12278_s24 + $0x6a] sm:$0xff]  ;;  %v9183_v16 = vld [vmem:[%s12278_s24 + $0x62] sm:$0xff] }
  0xd5   : >> { %v9182_v6 = vld [vmem:[%s12278_s24 + $0x79] sm:$0xf]  ;;  %10506 = vmatprep.subr.bf16.mxu1 %v1429_v10 }
  0xd6   : >> { %10507 = vmatpush3.bf16.msra.mxu1 %v1429_v10  ;;  %v9186_v19 = vld [vmem:[%s12278_s24 + $0x7a] sm:$0xf]  ;;  %v9185_v20 = vld [vmem:[%s12278_s24 + $0x72] sm:$0xff] }
  0xd7   : >> { %967 = vrot.lane.b32.xlu1 %v9122_v28, %s14444_s16  ;;  %965 = vrot.lane.b32.xlu0 %v12314_v29, %s14444_s16  ;;  %s11509_s16 = smov 7  }
  0xdb   : >> { %989 = vrot.lane.b32.xlu1 %v9124_v30, %s14442_s23  ;;  %987 = vrot.lane.b32.xlu0 %v9123_v31, %s14442_s23 }
  0xdf   : >> { %993 = vrot.lane.b32.xlu1 %v9126_v32, %s14442_s23  ;;  %991 = vrot.lane.b32.xlu0 %v9125_v33, %s14442_s23  ;;  %s11508_s23 = smov 6  }
  0xe3   : >> { %1015 = vrot.lane.b32.xlu1 %v9128_v34, %s14446_s21  ;;  %1013 = vrot.lane.b32.xlu0 %v9127_v35, %s14446_s21 }
  0xe7   : >> { %1019 = vrot.lane.b32.xlu1 %v9130_v36, %s14446_s21  ;;  %1017 = vrot.lane.b32.xlu0 %v9129_v37, %s14446_s21  ;;  %s14450_s21 = smov 8  }
  0xeb   : >> { %1044 = vrot.lane.b32.xlu1 %v9134_v38, %s11508_s23  ;;  %1042 = vrot.lane.b32.xlu0 %v9133_v39, %s11508_s23 }
  0xef   : >> { %1048 = vrot.lane.b32.xlu1 %v9136_v40, %s11508_s23  ;;  %1046 = vrot.lane.b32.xlu0 %v9135_v41, %s11508_s23 }
  0xf3   : >> { %1070 = vrot.lane.b32.xlu1 %v9138_v42, %s11509_s16  ;;  %1068 = vrot.lane.b32.xlu0 %v9137_v43, %s11509_s16 }
  0xf7   : >> { %1074 = vrot.lane.b32.xlu1 %v9140_v44, %s11509_s16  ;;  %1072 = vrot.lane.b32.xlu0 %v9139_v45, %s11509_s16 }
  0xfb   : >> { %1096 = vrot.lane.b32.xlu1 %v9142_v51, %s14450_s21  ;;  %1094 = vrot.lane.b32.xlu0 %v9141_v52, %s14450_s21 }
  0xff   : >> { %1100 = vrot.lane.b32.xlu1 %v9144_v53, %s14450_s21  ;;  %1098 = vrot.lane.b32.xlu0 %v9143_v54, %s14450_s21  ;;  %s14497_s21 = smov 3  }
 0x103   : >> { %1224 = vrot.lane.b32.xlu1 %v9124_v30, %s11503_s30  ;;  %1222 = vrot.lane.b32.xlu0 %v9123_v31, %s11503_s30 }
 0x107   : >> { %1228 = vrot.lane.b32.xlu1 %v9156_v55, %s11503_s30  ;;  %1226 = vrot.lane.b32.xlu0 %v9125_v33, %s11503_s30  ;;  %s14498_s30 = smov 4  }
 0x10b   : >> { %1248 = vrot.lane.b32.xlu1 %v9128_v34, %s14496_s15  ;;  %1246 = vrot.lane.b32.xlu0 %v9127_v35, %s14496_s15 }
 0x10f   : >> { %1252 = vrot.lane.b32.xlu1 %v9160_v56, %s14496_s15  ;;  %1250 = vrot.lane.b32.xlu0 %v9129_v37, %s14496_s15  ;;  %s14499_s15 = smov 5  }
 0x113   : >> { %1272 = vrot.lane.b32.xlu1 %v9134_v38, %s14497_s21  ;;  %1270 = vrot.lane.b32.xlu0 %v9133_v39, %s14497_s21 }
 0x117   : >> { %1276 = vrot.lane.b32.xlu1 %v9164_v57, %s14497_s21  ;;  %1274 = vrot.lane.b32.xlu0 %v9135_v41, %s14497_s21 }
 0x11b   : >> { %1296 = vrot.lane.b32.xlu1 %v9138_v42, %s14498_s30  ;;  %1294 = vrot.lane.b32.xlu0 %v9137_v43, %s14498_s30 }
 0x11f   : >> { %1300 = vrot.lane.b32.xlu1 %v9168_v58, %s14498_s30  ;;  %1298 = vrot.lane.b32.xlu0 %v9139_v45, %s14498_s30  ;;  %v9152_v58 = vld [vmem:[%s12278_s24 + $0x38] sm:$0xf]  ;;  %s9196_s24 = sshll.u32 %s11489_s22, 4  ;;  %s886_s22 = sadd.s32 1, %s11489_s22  }
 0x120   : >> { %p883_p8 = scmp.ge.s32.totalorder %s886_s22, 14  }
 0x121   : > { %s14509_s4 = sld [smem:[#allocation35_spill]] (%p883_p8)  ;;  %s12524_s30 = smov (%p883_p8), 0  }
 0x123   : >> { %1320 = vrot.lane.b32.xlu1 %v9142_v51, %s14499_s15  ;;  %1318 = vrot.lane.b32.xlu0 %v9141_v52, %s14499_s15 }
 0x127   : >> { %1324 = vrot.lane.b32.xlu1 %v9172_v59, %s14499_s15  ;;  %1322 = vrot.lane.b32.xlu0 %v9143_v54, %s14499_s15 }
 0x12b   : >> { %1347 = vrot.lane.b32.xlu1 %v9176_v60, %s11508_s23  ;;  %1345 = vrot.lane.b32.xlu0 %v9175_v61, %s11508_s23 }
 0x12f   : >> { %1351 = vrot.lane.b32.xlu1 %v9178_v62, %s11508_s23  ;;  %1349 = vrot.lane.b32.xlu0 %v9177_v63, %s11508_s23  ;;  %s14500_s23 = smov 8  }
 0x133   : >> { %1371 = vrot.lane.b32.xlu1 %v9180_v3, %s11509_s16  ;;  %1369 = vrot.lane.b32.xlu0 %v9179_v4, %s11509_s16 }
 0x135   : >> { %v911_v11 = vpop.permute.xlu1 %910  ;;  %v907_v12 = vpop.permute.xlu0 %906 }
 0x136   : >> { %921 = vst.msk [vmem:[#allocation7 + $0x10] sm:$0xff] %vm918_vm12, %v911_v11  ;;  %919 = vst.msk [vmem:[#allocation7] sm:$0xff] %vm918_vm12, %v907_v12 }
 0x137   : >> { %1375 = vrot.lane.b32.xlu1 %v9182_v6, %s11509_s16  ;;  %1373 = vrot.lane.b32.xlu0 %v9181_v7, %s11509_s16  ;;  %s9004_s16 = scalar_lea.vmem [#allocation3], %s9196_s24 }
 0x139   : >> { %v913_v17 = vpop.permute.xlu1 %912  ;;  %v909_v18 = vpop.permute.xlu0 %908 }
 0x13a   : >> { %923 = vst.msk [vmem:[#allocation7 + $0x18] sm:$0xf] %vm922_vm13, %v913_v17 }
 0x13b   : >> { %920 = vst.msk [vmem:[#allocation7 + $0x8] sm:$0xff] %vm918_vm12, %v909_v18  ;;  %1395 = vrot.lane.b32.xlu1 %v9184_v13, %s14500_s23  ;;  %1393 = vrot.lane.b32.xlu0 %v9183_v16, %s14500_s23 }
 0x13d   : >> { %v935_v24 = vpop.permute.xlu1 %934  ;;  %v933_v25 = vpop.permute.xlu0 %932 }
 0x13e   : >> { %946 = vst.msk [vmem:[#allocation7 + $0x8] sm:$0xff] %vm944_vm14, %v935_v24  ;;  %945 = vst.msk [vmem:[#allocation7] sm:$0xff] %vm944_vm14, %v933_v25 }
 0x13f   : >> { %1399 = vrot.lane.b32.xlu1 %v9186_v19, %s14500_s23  ;;  %1397 = vrot.lane.b32.xlu0 %v9185_v20, %s14500_s23 }
 0x141   : >> { %v939_v26 = vpop.permute.xlu1 %938  ;;  %v937_v27 = vpop.permute.xlu0 %936 }
 0x142   : >> { %949 = vst.msk [vmem:[#allocation7 + $0x18] sm:$0xf] %vm948_vm15, %v939_v26 }
 0x143   : >> { %947 = vst.msk [vmem:[#allocation7 + $0x10] sm:$0xff] %vm944_vm14, %v937_v27 }
 0x145   : >> { %v964_v28 = vpop.permute.xlu1 %963  ;;  %v962_v30 = vpop.permute.xlu0 %961 }
 0x146   : >> { %975 = vst.msk [vmem:[#allocation7 + $0x8] sm:$0xff] %vm973_vm1, %v964_v28  ;;  %974 = vst.msk [vmem:[#allocation7] sm:$0xff] %vm973_vm1, %v962_v30 }
 0x149   : >> { %v968_v31 = vpop.permute.xlu1 %967  ;;  %v966_v32 = vpop.permute.xlu0 %965 }
 0x14a   : >> { %978 = vst.msk [vmem:[#allocation7 + $0x18] sm:$0xf] %vm977_vm3, %v968_v31 }
 0x14b   : >> { %976 = vst.msk [vmem:[#allocation7 + $0x10] sm:$0xff] %vm973_vm1, %v966_v32 }
 0x14d   : >> { %v990_v33 = vpop.permute.xlu1 %989  ;;  %v988_v34 = vpop.permute.xlu0 %987 }
 0x14e   : >> { %1001 = vst.msk [vmem:[#allocation7 + $0x8] sm:$0xff] %vm999_vm4, %v990_v33  ;;  %1000 = vst.msk [vmem:[#allocation7] sm:$0xff] %vm999_vm4, %v988_v34 }
 0x151   : >> { %v994_v35 = vpop.permute.xlu1 %993  ;;  %v992_v36 = vpop.permute.xlu0 %991 }
 0x152   : >> { %1004 = vst.msk [vmem:[#allocation7 + $0x18] sm:$0xf] %vm1003_vm5, %v994_v35 }
 0x153   : >> { %1002 = vst.msk [vmem:[#allocation7 + $0x10] sm:$0xff] %vm999_vm4, %v992_v36 }
 0x155   : >> { %v1016_v37 = vpop.permute.xlu1 %1015  ;;  %v1014_v38 = vpop.permute.xlu0 %1013 }
 0x156   : >> { %1027 = vst.msk [vmem:[#allocation7 + $0x8] sm:$0xff] %vm1025_vm7, %v1016_v37  ;;  %1026 = vst.msk [vmem:[#allocation7] sm:$0xff] %vm1025_vm7, %v1014_v38 }
 0x159   : >> { %v1020_v39 = vpop.permute.xlu1 %1019  ;;  %v1018_v40 = vpop.permute.xlu0 %1017 }
 0x15a   : >> { %1030 = vst.msk [vmem:[#allocation7 + $0x18] sm:$0xf] %vm14454_vm8, %v1020_v39  ;;  %vm1106_vm8 = vcmask 72768  }
 0x15b   : >> { %1028 = vst.msk [vmem:[#allocation7 + $0x10] sm:$0xff] %vm1025_vm7, %v1018_v40 }
 0x15d   : >> { %v1045_v41 = vpop.permute.xlu1 %1044  ;;  %v1043_v42 = vpop.permute.xlu0 %1042 }
 0x15e   : >> { %1056 = vst.msk [vmem:[#allocation7 + $0x8] sm:$0xff] %vm1054_vm9, %v1045_v41  ;;  %1055 = vst.msk [vmem:[#allocation7] sm:$0xff] %vm1054_vm9, %v1043_v42 }
 0x161   : >> { %v1049_v43 = vpop.permute.xlu1 %1048  ;;  %v1047_v44 = vpop.permute.xlu0 %1046 }
 0x162   : >> { %1059 = vst.msk [vmem:[#allocation7 + $0x18] sm:$0xf] %vm14455_vm11, %v1049_v43  ;;  %vm1110_vm11 = vcmask 68672  }
 0x163   : >> { %1057 = vst.msk [vmem:[#allocation7 + $0x10] sm:$0xff] %vm1054_vm9, %v1047_v44 }
 0x165   : >> { %v1071_v45 = vpop.permute.xlu1 %1070  ;;  %v1069_v46 = vpop.permute.xlu0 %1068 }
 0x166   : >> { %1082 = vst.msk [vmem:[#allocation7 + $0x8] sm:$0xff] %vm1080_vm2, %v1071_v45  ;;  %1081 = vst.msk [vmem:[#allocation7] sm:$0xff] %vm1080_vm2, %v1069_v46 }
 0x169   : >> { %v1075_v47 = vpop.permute.xlu1 %1074  ;;  %v1073_v48 = vpop.permute.xlu0 %1072 }
 0x16a   : >> { %1085 = vst.msk [vmem:[#allocation7 + $0x18] sm:$0xf] %vm14456_vm10, %v1075_v47  ;;  %vm1131_vm10 = vcmask 72704  }
 0x16b   : >> { %1083 = vst.msk [vmem:[#allocation7 + $0x10] sm:$0xff] %vm1080_vm2, %v1073_v48 }
 0x16d   : >> { %v1097_v49 = vpop.permute.xlu1 %1096  ;;  %v1095_v50 = vpop.permute.xlu0 %1094 }
 0x16e   : >> { %1108 = vst.msk [vmem:[#allocation7 + $0x8] sm:$0xff] %vm1106_vm8, %v1097_v49  ;;  %1107 = vst.msk [vmem:[#allocation7] sm:$0xff] %vm1106_vm8, %v1095_v50 }
 0x171   : >> { %v1101_v51 = vpop.permute.xlu1 %1100  ;;  %v1099_v52 = vpop.permute.xlu0 %1098 }
 0x172   : >> { %1111 = vst.msk [vmem:[#allocation7 + $0x18] sm:$0xf] %vm1110_vm11, %v1101_v51 }
 0x173   : >> { %1109 = vst.msk [vmem:[#allocation7 + $0x10] sm:$0xff] %vm1106_vm8, %v1099_v52 }
 0x175   : >> { %v1225_v53 = vpop.permute.xlu1 %1224  ;;  %v1113_v54 = vld [vmem:[#allocation7 + $0x8] sm:$0xff]  ;;  %v1223_v55 = vpop.permute.xlu0 %1222  ;;  %v1112_v56 = vld [vmem:[#allocation7] sm:$0xff] }
 0x176   : >> { %1211 = vst.msk [vmem:[#allocation7 + $0x8] sm:$0xff] %vm454_vm0, %v12297_v21  ;;  %1210 = vst.msk [vmem:[#allocation7] sm:$0xff] %vm454_vm0, %v12300_v23  ;;  %v1116_v57 = vpack.c.bf16 %v1113_v54, %v1112_v56 }
 0x177   : >> { %1235 = vst.msk [vmem:[#allocation7 + $0x8] sm:$0xff] %vm918_vm12, %v1225_v53  ;;  %1234 = vst.msk [vmem:[#allocation7] sm:$0xff] %vm918_vm12, %v1223_v55 }
 0x178   : >> { %10502 = vmatprep.mubr.msk.bf16.mxu0 %vm1131_vm10, %v1116_v57 }
 0x179   : >> { %v1115_v59 = vld [vmem:[#allocation7 + $0x18] sm:$0xf]  ;;  %v1229_v60 = vpop.permute.xlu1 %1228  ;;  %v1227_v61 = vpop.permute.xlu0 %1226 }
 0x17a   : >> { %v1114_v62 = vld [vmem:[#allocation7 + $0x10] sm:$0xff]  ;;  %1213 = vst.msk [vmem:[#allocation7 + $0x18] sm:$0xf] %vm749_vm6, %v9152_v58 }
 0x17b   : >> { %v1117_v63 = vpack.c.bf16 %v1115_v59, %v1114_v62  ;;  %1212 = vst.msk [vmem:[#allocation7 + $0x10] sm:$0xff] %vm454_vm0, %v12314_v29 }
 0x17c   : >> { %1237 = vst.msk [vmem:[#allocation7 + $0x18] sm:$0xf] %vm922_vm13, %v1229_v60  ;;  %vm14502_vm13 = vcmask 52272  }
 0x17d   : >> { %1236 = vst.msk [vmem:[#allocation7 + $0x10] sm:$0xff] %vm918_vm12, %v1227_v61  ;;  %10503 = vmatmul.mubr.msk.bf16.vlgmr.msra.gmra.mxu0 %vm1131_vm10, %v1117_v63  ;;  %v1249_v21 = vpop.permute.xlu1 %1248  ;;  %v1247_v23 = vpop.permute.xlu0 %1246  ;;  %vm14501_vm12 = vcmask 44072  }
 0x17e   : >> { %1259 = vst.msk [vmem:[#allocation7 + $0x8] sm:$0xff] %vm944_vm14, %v1249_v21  ;;  %1258 = vst.msk [vmem:[#allocation7] sm:$0xff] %vm944_vm14, %v1247_v23 }
 0x181   : >> { %v1253_v3 = vpop.permute.xlu1 %1252  ;;  %v1251_v4 = vpop.permute.xlu0 %1250 }
 0x182   : >> { %1261 = vst.msk [vmem:[#allocation7 + $0x18] sm:$0xf] %vm948_vm15, %v1253_v3 }
 0x183   : >> { %1260 = vst.msk [vmem:[#allocation7 + $0x10] sm:$0xff] %vm944_vm14, %v1251_v4  ;;  %vm14503_vm14 = vcmask 60472  }
 0x185   : >> { %v1273_v5 = vpop.permute.xlu1 %1272  ;;  %v1271_v29 = vpop.permute.xlu0 %1270 }
 0x186   : >> { %1283 = vst.msk [vmem:[#allocation7 + $0x8] sm:$0xff] %vm973_vm1, %v1273_v5  ;;  %1282 = vst.msk [vmem:[#allocation7] sm:$0xff] %vm973_vm1, %v1271_v29 }
 0x189   : >> { %v1277_v6 = vpop.permute.xlu1 %1276  ;;  %v1275_v7 = vpop.permute.xlu0 %1274 }
 0x18a   : >> { %1285 = vst.msk [vmem:[#allocation7 + $0x18] sm:$0xf] %vm977_vm3, %v1277_v6 }
 0x18b   : >> { %1284 = vst.msk [vmem:[#allocation7 + $0x10] sm:$0xff] %vm973_vm1, %v1275_v7 }
 0x18d   : >> { %v1297_v10 = vpop.permute.xlu1 %1296  ;;  %v1295_v11 = vpop.permute.xlu0 %1294 }
 0x18e   : >> { %1307 = vst.msk [vmem:[#allocation7 + $0x8] sm:$0xff] %vm999_vm4, %v1297_v10  ;;  %1306 = vst.msk [vmem:[#allocation7] sm:$0xff] %vm999_vm4, %v1295_v11 }
 0x191   : >> { %v1301_v12 = vpop.permute.xlu1 %1300  ;;  %v1299_v13 = vpop.permute.xlu0 %1298 }
 0x192   : >> { %1309 = vst.msk [vmem:[#allocation7 + $0x18] sm:$0xf] %vm1003_vm5, %v1301_v12 }
 0x193   : >> { %1308 = vst.msk [vmem:[#allocation7 + $0x10] sm:$0xff] %vm999_vm4, %v1299_v13 }
 0x195   : >> { %v1321_v16 = vpop.permute.xlu1 %1320  ;;  %v1319_v17 = vpop.permute.xlu0 %1318 }
 0x196   : >> { %1331 = vst.msk [vmem:[#allocation7 + $0x8] sm:$0xff] %vm1025_vm7, %v1321_v16  ;;  %1330 = vst.msk [vmem:[#allocation7] sm:$0xff] %vm1025_vm7, %v1319_v17 }
 0x199   : >> { %v1325_v18 = vpop.permute.xlu1 %1324  ;;  %v1323_v19 = vpop.permute.xlu0 %1322 }
 0x19a   : >> { %1333 = vst.msk [vmem:[#allocation7 + $0x18] sm:$0xf] %vm14501_vm12, %v1325_v18 }
 0x19b   : >> { %1332 = vst.msk [vmem:[#allocation7 + $0x10] sm:$0xff] %vm1025_vm7, %v1323_v19 }
 0x19d   : >> { %v1348_v20 = vpop.permute.xlu1 %1347  ;;  %v1346_v24 = vpop.permute.xlu0 %1345 }
 0x19e   : >> { %1358 = vst.msk [vmem:[#allocation7 + $0x8] sm:$0xff] %vm1054_vm9, %v1348_v20  ;;  %1357 = vst.msk [vmem:[#allocation7] sm:$0xff] %vm1054_vm9, %v1346_v24 }
 0x1a1   : >> { %v1352_v25 = vpop.permute.xlu1 %1351  ;;  %v1350_v26 = vpop.permute.xlu0 %1349 }
 0x1a2   : >> { %1360 = vst.msk [vmem:[#allocation7 + $0x18] sm:$0xf] %vm14502_vm13, %v1352_v25 }
 0x1a3   : >> { %1359 = vst.msk [vmem:[#allocation7 + $0x10] sm:$0xff] %vm1054_vm9, %v1350_v26  ;;  %vm14504_vm9 = vcmask 1043456  }
 0x1a4   : >> { %vm14506_vm12 = vmmov %vm14504_vm9 }
 0x1a5   : >> { %v1372_v27 = vpop.permute.xlu1 %1371  ;;  %v1370_v28 = vpop.permute.xlu0 %1369  ;;  %vm14507_vm13 = vmmov %vm14504_vm9 }
 0x1a6   : >> { %1382 = vst.msk [vmem:[#allocation7 + $0x8] sm:$0xff] %vm1080_vm2, %v1372_v27  ;;  %1381 = vst.msk [vmem:[#allocation7] sm:$0xff] %vm1080_vm2, %v1370_v28  ;;  %v12522_v27 = vld [vmem:[%s14509_s4] ss:$0 sm:$0xff] (%p883_p8) }
 0x1a9   : >> { %v1376_v30 = vpop.permute.xlu1 %1375  ;;  %v1374_v31 = vpop.permute.xlu0 %1373 }
 0x1aa   : >> { %1384 = vst.msk [vmem:[#allocation7 + $0x18] sm:$0xf] %vm14503_vm14, %v1376_v30  ;;  %vm1668_vm14 = vcmask 259072  }
 0x1ab   : >> { %1383 = vst.msk [vmem:[#allocation7 + $0x10] sm:$0xff] %vm1080_vm2, %v1374_v31  ;;  %vm1496_vm2 = vcmask 228352  }
 0x1ac   : >> { %10520 = vmatprep.mubr.msk.f32.mxu0 %vm1496_vm2, %v12025_v9 }
 0x1ad   : >> { %v1396_v32 = vpop.permute.xlu1 %1395  ;;  %v1394_v33 = vpop.permute.xlu0 %1393 }
 0x1ae   : >> { %1406 = vst.msk [vmem:[#allocation7 + $0x8] sm:$0xff] %vm1106_vm8, %v1396_v32  ;;  %1405 = vst.msk [vmem:[#allocation7] sm:$0xff] %vm1106_vm8, %v1394_v33 }
 0x1b1   : >> { %v1400_v34 = vpop.permute.xlu1 %1399  ;;  %v1398_v35 = vpop.permute.xlu0 %1397 }
 0x1b2   : >> { %1408 = vst.msk [vmem:[#allocation7 + $0x18] sm:$0xf] %vm1110_vm11, %v1400_v34  ;;  %vm14505_vm11 = vmmov %vm14504_vm9 }
 0x1b3   : >> { %1407 = vst.msk [vmem:[#allocation7 + $0x10] sm:$0xff] %vm1106_vm8, %v1398_v35 }
 0x1b5   : >> { %v1409_v36 = vld [vmem:[#allocation7] sm:$0xff]  ;;  %v1410_v37 = vld [vmem:[#allocation7 + $0x8] sm:$0xff] }
 0x1b6   : >> { %v1413_v38 = vpack.c.bf16 %v1410_v37, %v1409_v36 }
 0x1b8   : >> { %10508 = vmatprep.mubr.msk.bf16.mxu1 %vm1131_vm10, %v1413_v38 }
 0x1b9   : >> { %v1412_v40 = vld [vmem:[#allocation7 + $0x18] sm:$0xf] }
 0x1ba   : >> { %v1411_v39 = vld [vmem:[#allocation7 + $0x10] sm:$0xff] }
 0x1bb   : >> { %v1414_v41 = vpack.c.bf16 %v1412_v40, %v1411_v39 }
 0x1bd   : >> { %10509 = vmatmul.mubr.msk.bf16.vlgmr.msra.gmra.mxu1 %vm1131_vm10, %v1414_v41 }
 0x1be   : >> { %10531 = vmatprep.mubr.msk.f32.mxu1 %vm1496_vm2, %v12041_v15 }
 0x23d   : >> { %v10504_v42 = vpop.f32.mrf.mxu0 }
 0x23e   : >> { %v1188_v49 = vadd.f32 %v10504_v42, %v12022_v8 }
 0x23f   : >> { %v1179_v43 = vpop.f32.mrf.mxu0 }
 0x240   : >> { %v1200_v57 = vmul.f32 0.1, %v1188_v49  ;;  %v1180_v59 = vadd.f32 %v12022_v8, %v1179_v43  ;;  %vm1196_vm3 = vcmp.ge.f32.partialorder %v1188_v49, 0.0 }
 0x241   : >> { %v10505_v44 = vpop.f32.mrf.mxu0 }
 0x242   : >> { %v1191_v45 = vadd.f32 %v10505_v44, %v12022_v8  ;;  %v1204_v29 = vsel %vm1196_vm3, %v1188_v49, %v1200_v57  ;;  %v1198_v6 = vmul.f32 0.1, %v1180_v59  ;;  %vm1194_vm8 = vcmp.ge.f32.partialorder %v1180_v59, 0.0 }
 0x243   : >> { %v1182_v47 = vpop.f32.mrf.mxu0 }
 0x244   : >> { %v1201_v51 = vmul.f32 0.1, %v1191_v45  ;;  %v1183_v52 = vadd.f32 %v12022_v8, %v1182_v47  ;;  %vm1197_vm10 = vcmp.ge.f32.partialorder %v1191_v45, 0.0  ;;  %v1202_v16 = vsel %vm1194_vm8, %v1180_v59, %v1198_v6 }
 0x246   : >> { %v1205_v62 = vsel %vm1197_vm10, %v1191_v45, %v1201_v51  ;;  %v1199_v63 = vmul.f32 0.1, %v1183_v52  ;;  %vm1195_vm5 = vcmp.ge.f32.partialorder %v1183_v52, 0.0  ;;  %vm14508_vm10 = vcmask 261120  }
 0x248   : >> { %v1203_v11 = vsel %vm1195_vm5, %v1183_v52, %v1199_v63 }
 0x27d   : >> { %v10510_v46 = vpop.f32.mrf.mxu1 }
 0x27e   : >> { %v1474_v48 = vadd.f32 %v10510_v46, %v12022_v8 }
 0x27f   : >> { %v1465_v50 = vpop.f32.mrf.mxu1 }
 0x280   : >> { %v1486_v53 = vmul.f32 0.1, %v1474_v48  ;;  %vm1482_vm15 = vcmp.ge.f32.partialorder %v1474_v48, 0.0  ;;  %v1466_v55 = vadd.f32 %v12022_v8, %v1465_v50 }
 0x281   : >> { %v10511_v54 = vpop.f32.mrf.mxu1 }
 0x282   : >> { %v1477_v56 = vadd.f32 %v10511_v54, %v12022_v8  ;;  %v1490_v21 = vsel %vm1482_vm15, %v1474_v48, %v1486_v53  ;;  %v1484_v23 = vmul.f32 0.1, %v1466_v55  ;;  %vm1480_vm7 = vcmp.ge.f32.partialorder %v1466_v55, 0.0 }
 0x283   : >> { %v1468_v58 = vpop.f32.mrf.mxu1  ;;  %v1494_v10 = vmax.f32 %v1204_v29, %v1490_v21 }
 0x284   : >> { %vm1483_vm1 = vcmp.ge.f32.partialorder %v1477_v56, 0.0  ;;  %v1487_v60 = vmul.f32 0.1, %v1477_v56  ;;  %v1469_v61 = vadd.f32 %v12022_v8, %v1468_v58  ;;  %v1488_v12 = vsel %vm1480_vm7, %v1466_v55, %v1484_v23 }
 0x285   : >> { %v1492_v17 = vmax.f32 %v1202_v16, %v1488_v12 }
 0x286   : >> { %v1491_v3 = vsel %vm1483_vm1, %v1477_v56, %v1487_v60  ;;  %vm1481_vm4 = vcmp.ge.f32.partialorder %v1469_v61, 0.0  ;;  %v1485_v4 = vmul.f32 0.1, %v1469_v61 }
 0x287   : >> { %v1495_v5 = vmax.f32 %v1205_v62, %v1491_v3 }
 0x288   : >> { %v1489_v7 = vsel %vm1481_vm4, %v1469_v61, %v1485_v4 }
 0x289   : >> { %10512 = vmatprep.subr.msk.mxu0 %vm14504_vm9, %v1495_v5  ;;  %10523 = vmatprep.subr.msk.mxu1 %vm14505_vm11, %v1495_v5  ;;  %v1493_v13 = vmax.f32 %v1203_v11, %v1489_v7 }
 0x28a   : >> { %10513 = vmatpush3.msk.msra.mxu0 %vm14506_vm12, %v1495_v5  ;;  %10524 = vmatpush3.msk.msra.mxu1 %vm14507_vm13, %v1495_v5 }
 0x28b   : >> { %10514 = vmatprep.subr.mxu0 %v1494_v10  ;;  %10525 = vmatprep.subr.mxu1 %v1494_v10 }
 0x28c   : >> { %10515 = vmatpush3.msra.mxu0 %v1494_v10  ;;  %10526 = vmatpush3.msra.mxu1 %v1494_v10 }
 0x28d   : >> { %10516 = vmatprep.subr.mxu0 %v1493_v13  ;;  %10527 = vmatprep.subr.mxu1 %v1493_v13 }
 0x28e   : >> { %10517 = vmatpush3.msra.mxu0 %v1493_v13  ;;  %10528 = vmatpush3.msra.mxu1 %v1493_v13 }
 0x28f   : >> { %10518 = vmatprep.subr.mxu0 %v1492_v17  ;;  %10529 = vmatprep.subr.mxu1 %v1492_v17 }
 0x290   : >> { %10519 = vmatpush3.msra.mxu0 %v1492_v17  ;;  %10530 = vmatpush3.msra.mxu1 %v1492_v17 }
 0x291   : >> { %10521 = vmatmul.mubr.msk.f32.vlgmr.msra.gmra.mxu0 %vm1496_vm2, %v12038_v14  ;;  %10532 = vmatmul.mubr.msk.f32.vlgmr.msra.gmra.mxu1 %vm1496_vm2, %v12057_v22 }
 0x351   : >> { %v10522_v18 = vpop.f32.mrf.mxu0  ;;  %v10533_v19 = vpop.f32.mrf.mxu1 }
 0x352   : >> { %v1663_v20 = vmax.f32 %v10522_v18, %v10533_v19  ;;  %885 = sbr.rel (!%p883_p8) target bundleno = 188 (0xbc), region = 157 }
 0x353   : >> { %v1572_v24 = vpop.f32.mrf.mxu0  ;;  %v1653_v25 = vpop.f32.mrf.mxu1 }
 0x354   : >> { %v1662_v26 = vmax.f32 %v1572_v24, %v1653_v25  ;;  %9198 = vst.msk [vmem:[%s9004_s16 + $0x19] sm:$0x3f] %vm1668_vm14, %v1663_v20 }
 0x356   : >> { %9197 = vst.msk [vmem:[%s9004_s16 + $0x11] sm:$0xff] %vm14508_vm10, %v1662_v26 }
 0x357 LB: >> { %v10695_v28 = vld [vmem:[%s14430_s3 + $0x78] sm:$0xff]   ;;  %s9984_s0 = sshll.u32 %s11493_s30, 5  ;;  %v10697_v14 = vld [vmem:[%s14430_s3 + $0x70] sm:$0xff]   ;;  %s11512_s23 = smov 32   ;;  %v11513_v34 = vmov 0.0   ;;  %vm11514_vm0 = vmmov 0   ;;  %s11493_s30 = sphi %s12524_s30, %s1676_s30  }
 0x358   : >> { %v10696_v8 = vld [vmem:[%s14430_s3 + $0x38] sm:$0xff]   ;;  %10013 = vmatprep.subr.bf16.mxu0 %v10695_v28  ;;  %v10698_v22 = vld [vmem:[%s14430_s3 + $0x30] sm:$0xff]   ;;  %s12542_s4 = scalar_lea.vmem [#allocation3], %s9984_s0  ;;  %10534 = vmatprep.subr.bf16.mxu1 %v11513_v34  ;;  %vm14510_vm6 = vcmask 261120   ;;  %s14459_s0 = smov 64   ;;  %v10699_v44 = vld [vmem:[%s14430_s3 + $0x68] sm:$0xff]  }
 0x359   : >> { %10014 = vmatpush3.bf16.msra.mxu0 %v10696_v8  ;;  %10538 = vmatprep.mubr.msk.bf16.mxu1 %vm11514_vm0, %v11513_v34  ;;  %vm14511_vm2 = vmmov %vm14510_vm6  ;;  %v10700_v45 = vld [vmem:[%s14430_s3 + $0x28] sm:$0xff]   ;;  %v10701_v48 = vld [vmem:[%s14430_s3 + $0x60] sm:$0xff]   ;;  %s14457_s1 = smov 96   ;;  %vm1695_vm4 = vcmask 523520   ;;  %vm1697_vm5 = vcmask 521472   ;;  %vm1709_vm7 = vcmask 785920  }
 0x35a   : >> { %10015 = vmatprep.subr.bf16.mxu0 %v10697_v14  ;;  %vm14512_vm15 = vmmov %vm14511_vm2  ;;  %v10702_v49 = vld [vmem:[%s14430_s3 + $0x88] sm:$0xff]   ;;  %v10703_v50 = vld [vmem:[%s14430_s3 + $0x20] sm:$0xff]   ;;  %vm1711_vm8 = vcmask 783872   ;;  %vm1726_vm9 = vcmask 1048320   ;;  %vm1728_vm11 = vcmask 1046272   ;;  %s9280_s2 = sshll.u32 %s11493_s30, 4 }
 0x35b   : >> { %10535 = vmatpush3.bf16.msra.mxu1 %v10702_v49  ;;  %v10704_v51 = vld [vmem:[%s14430_s3 + $0x58] sm:$0xff]   ;;  %v10705_v53 = vld [vmem:[%s14430_s3 + $0x80] sm:$0xff]   ;;  %vm14513_vm1 = vmmov %vm14511_vm2  ;;  %s9021_s24 = scalar_lea.vmem [#allocation4], %s9280_s2  ;;  %s1676_s30 = sadd.s32 1, %s11493_s30  }
 0x35c   : >> { %10536 = vmatprep.subr.bf16.mxu1 %v11513_v34  ;;  %v10706_v55 = vld [vmem:[%s14430_s3 + $0x18] sm:$0xff]   ;;  %v10707_v59 = vld [vmem:[%s14430_s3 + $0x50] sm:$0xff]   ;;  %v10709_v63 = vld [vmem:[%s14430_s3 + $0x48] sm:$0xff]   ;;  %p1673_p9 = scmp.ge.s32.totalorder %s1676_s30, 7  }
 0x35d   : >> { %v12545_v30 = vld [vmem:[%s12542_s4 + $0x12] sm:$0xff]  ;;  %v1685_v31 = vld [vmem:[%s12542_s4 + $0x1] sm:$0xff]  ;;  %v9208_v32 = vld [vmem:[%s12542_s4 + $0x1a] sm:$0x3f]  ;;  %10016 = vmatpush3.bf16.msra.mxu0 %v10698_v22  ;;  %s12783_s16 = smov (%p1673_p9), 0  }
 0x35e   : >> { %1738 = vrot.lane.b32.xlu0 %v12545_v30, %s11512_s23  ;;  %1689 = vrot.lane.b32.xlu1 %v1685_v31, %s11512_s23  ;;  %v1686_v33 = vld [vmem:[%s12542_s4 + $0x9] sm:$0x3f]  ;;  %v12560_v36 = vld [vmem:[%s12542_s4 + $0x11] sm:$0xff]  ;;  %vm14514_vm3 = vmmov %vm14513_vm1 }
 0x35f   : >> { %v9247_v35 = vld [vmem:[%s12542_s4 + $0x22] sm:$0xff]  ;;  %1732 = vst.msk [vmem:[#allocation8 + $0x8] sm:$0xff] %vm14511_vm2, %v12560_v36  ;;  %v1700_v40 = vld [vmem:[%s12542_s4 + $0xa] sm:$0x3f]  ;;  %v9206_v42 = vld [vmem:[%s12542_s4 + $0x19] sm:$0x3f]  ;;  %10017 = vmatprep.subr.bf16.mxu0 %v10699_v44  ;;  %10537 = vmatpush3.bf16.msra.mxu1 %v10705_v53 }
 0x360   : >> { %1775 = vst.msk [vmem:[#allocation8 + $0x10] sm:$0xff] %vm14510_vm6, %v9247_v35  ;;  %v12564_v37 = vld [vmem:[%s12542_s4 + $0x20] sm:$0xff]  ;;  %v9212_v38 = vld [vmem:[%s12542_s4 + $0x28] sm:$0x3f]  ;;  %v12605_v52 = vld [vmem:[%s12542_s4 + $0x10] sm:$0xff] }
 0x361   : >> { %v1699_v39 = vld [vmem:[%s12542_s4 + $0x2] sm:$0xff]  ;;  %1733 = vst.msk [vmem:[#allocation8 + $0x20] sm:$0x3f] %vm1668_vm14, %v9206_v42  ;;  %10018 = vmatpush3.bf16.msra.mxu0 %v10700_v45  ;;  %v9204_v54 = vld [vmem:[%s12542_s4 + $0x18] sm:$0x3f]  ;;  %v10708_v62 = vld [vmem:[%s14430_s3 + $0x10] sm:$0xff]  }
 0x362   : >> { %1740 = vrot.lane.b32.xlu0 %v9208_v32, %s11512_s23  ;;  %1691 = vrot.lane.b32.xlu1 %v1686_v33, %s11512_s23  ;;  %v1680_v41 = vld [vmem:[%s12542_s4] sm:$0xff]  ;;  %v1681_v43 = vld [vmem:[%s12542_s4 + $0x8] sm:$0x3f]  ;;  %vm14517_vm12 = vmmov %vm14513_vm1 }
 0x363   : >> { %1682 = vst.msk [vmem:[#allocation8] sm:$0xff] %vm14512_vm15, %v1680_v41  ;;  %v12587_v46 = vld [vmem:[%s12542_s4 + $0x21] sm:$0xff]  ;;  %v9214_v47 = vld [vmem:[%s12542_s4 + $0x29] sm:$0x3f]  ;;  %10019 = vmatprep.subr.bf16.mxu0 %v10701_v48  ;;  %v9255_v58 = vld [vmem:[%s12542_s4 + $0x32] sm:$0xff] }
 0x364   : >> { %1684 = vst.msk [vmem:[#allocation8 + $0x18] sm:$0x3f] %vm1668_vm14, %v1681_v43  ;;  %v9216_v56 = vld [vmem:[%s12542_s4 + $0x2a] sm:$0x3f]  ;;  %v9256_v61 = vld [vmem:[%s12542_s4 + $0x3a] sm:$0x3f]  ;;  %vm14518_vm13 = vmmov %vm14513_vm1 }
 0x365   : >> { %10020 = vmatpush3.bf16.msra.mxu0 %v10703_v50  ;;  %1776 = vst.msk [vmem:[#allocation8 + $0x28] sm:$0x3f] %vm1668_vm14, %v9216_v56  ;;  %v9248_v60 = vld [vmem:[%s12542_s4 + $0x2a] sm:$0x3f]  ;;  %v9240_v21 = vld [vmem:[%s12542_s4 + $0x19] sm:$0x3f]  ;;  %vm14519_vm10 = vmmov %vm14513_vm1 }
 0x366   : >> { %1753 = vrot.lane.b32.xlu0 %v12564_v37, %s14459_s0  ;;  %1755 = vrot.lane.b32.xlu1 %v9212_v38, %s14459_s0  ;;  %v10710_v23 = vld [vmem:[%s14430_s3 + $0x78] sm:$0xff]   ;;  %v10711_v3 = vld [vmem:[%s14430_s3 + $0x8] sm:$0xff]  }
 0x367   : >> { %10021 = vmatprep.subr.bf16.mxu0 %v10704_v51  ;;  %v1779_v57 = vld [vmem:[#allocation8 + $0x10] sm:$0xff]  ;;  %10038 = vmatprep.subr.bf16.mxu1 %v10710_v23  ;;  %v10713_v6 = vld [vmem:[%s14430_s3 + $0x40] sm:$0xff]   ;;  %v9251_v7 = vld [vmem:[%s12542_s4 + $0x30] sm:$0xff] }
 0x368   : >> { %2112 = vst.msk [vmem:[#allocation8 + $0x10] sm:$0xff] %vm14513_vm1, %v9255_v58  ;;  %v10712_v5 = vld [vmem:[%s14430_s3 + $0x38] sm:$0xff]   ;;  %v10714_v11 = vld [vmem:[%s14430_s3 + $0x70] sm:$0xff]   ;;  %v10715_v12 = vld [vmem:[%s14430_s3] sm:$0xff]   ;;  %vm2364_vm1 = vcmask 1045504  }
 0x369   : >> { %10022 = vmatpush3.bf16.msra.mxu0 %v10706_v55  ;;  %v9252_v10 = vld [vmem:[%s12542_s4 + $0x38] sm:$0x3f]  ;;  %v10716_v13 = vld [vmem:[%s14430_s3 + $0x30] sm:$0xff]   ;;  %v10717_v16 = vld [vmem:[%s14430_s3 + $0x68] sm:$0xff]  }
 0x36a   : >> { %1703 = vrot.lane.b32.xlu0 %v1699_v39, %s14459_s0  ;;  %1705 = vrot.lane.b32.xlu1 %v1700_v40, %s14459_s0  ;;  %v9242_v17 = vld [vmem:[%s12542_s4 + $0x1a] sm:$0x3f]  ;;  %v10718_v18 = vld [vmem:[%s14430_s3 + $0x28] sm:$0xff]   ;;  %s14516_s0 = smov 96  }
 0x36b   : >> { %10023 = vmatprep.subr.bf16.mxu0 %v10707_v59  ;;  %v10719_v19 = vld [vmem:[%s14430_s3 + $0x60] sm:$0xff]   ;;  %v9253_v20 = vld [vmem:[%s12542_s4 + $0x31] sm:$0xff]  ;;  %v9254_v24 = vld [vmem:[%s12542_s4 + $0x39] sm:$0x3f] }
 0x36c   : >> { %v1782_v4 = vld [vmem:[#allocation8 + $0x28] sm:$0x3f]  ;;  %v10720_v25 = vld [vmem:[%s14430_s3 + $0x20] sm:$0xff]   ;;  %v10721_v26 = vld [vmem:[%s14430_s3 + $0x58] sm:$0xff]  }
 0x36d   : >> { %10024 = vmatpush3.bf16.msra.mxu0 %v10708_v62  ;;  %v1785_v29 = vpack.c.bf16 %v1782_v4, %v1779_v57  ;;  %2113 = vst.msk [vmem:[#allocation8 + $0x28] sm:$0x3f] %vm1668_vm14, %v9256_v61  ;;  %v9244_v28 = vld [vmem:[%s12542_s4 + $0x28] sm:$0x3f]  ;;  %v10722_v8 = vld [vmem:[%s14430_s3 + $0x18] sm:$0xff]   ;;  %v10723_v14 = vld [vmem:[%s14430_s3 + $0x50] sm:$0xff]  }
 0x36e   : >> { %1765 = vrot.lane.b32.xlu0 %v12587_v46, %s14457_s1  ;;  %1767 = vrot.lane.b32.xlu1 %v9214_v47, %s14457_s1  ;;  %v10724_v22 = vld [vmem:[%s14430_s3 + $0x10] sm:$0xff]   ;;  %v10726_v31 = vld [vmem:[%s14430_s3 + $0x8] sm:$0xff]  }
 0x36f   : >> { %10025 = vmatprep.subr.bf16.mxu0 %v10709_v63  ;;  %10539 = vmatmul.mubr.msk.bf16.vlgmr.msra.gmra.mxu1 %vm14514_vm3, %v1785_v29  ;;  %v10728_v32 = vld [vmem:[%s14430_s3 + $0x40] sm:$0xff]   ;;  %v9246_v48 = vld [vmem:[%s12542_s4 + $0x29] sm:$0x3f]  ;;  %v9238_v55 = vld [vmem:[%s12542_s4 + $0x18] sm:$0x3f]  ;;  %vm2360_vm3 = vcmask 113664  }
 0x370   : >> { %10039 = vmatpush3.bf16.msra.mxu1 %v10712_v5  ;;  %v10729_v33 = vld [vmem:[%s14430_s3] sm:$0xff]  }
 0x371   : >> { %10026 = vmatpush3.bf16.msra.mxu0 %v10711_v3  ;;  %10040 = vmatprep.subr.bf16.mxu1 %v10714_v11  ;;  %v10730_v63 = vld [vmem:[%s14430_s3 + $0x80] sm:$0xff]  }
 0x372   : >> { %1720 = vrot.lane.b32.xlu0 %v12605_v52, %s14457_s1  ;;  %1722 = vrot.lane.b32.xlu1 %v9204_v54, %s14457_s1 }
 0x373   : >> { %10027 = vmatprep.subr.bf16.mxu0 %v10713_v6 }
 0x374   : >> { %10041 = vmatpush3.bf16.msra.mxu1 %v10716_v13  ;;  %v2119_v23 = vld [vmem:[#allocation8 + $0x28] sm:$0x3f] }
 0x375   : >> { %10028 = vmatpush3.bf16.msra.mxu0 %v10715_v12  ;;  %10042 = vmatprep.subr.bf16.mxu1 %v10717_v16 }
 0x376   : >> { %2075 = vrot.lane.b32.xlu0 %v9247_v35, %s11512_s23  ;;  %2077 = vrot.lane.b32.xlu1 %v9248_v60, %s11512_s23  ;;  %v10727_v60 = vld [vmem:[%s14430_s3 + $0x88] sm:$0xff]  }
 0x377   : >> { %10542 = vmatprep.subr.bf16.mxu0 %v11513_v34 }
 0x378   : >> { %10043 = vmatpush3.bf16.msra.mxu1 %v10718_v18 }
 0x379   : >> { %10044 = vmatprep.subr.bf16.mxu1 %v10719_v19 }
 0x37a   : >> { %2035 = vrot.lane.b32.xlu0 %v12560_v36, %s11512_s23  ;;  %2037 = vrot.lane.b32.xlu1 %v9240_v21, %s11512_s23  ;;  %s14515_s23 = smov 64   ;;  %v2116_v21 = vld [vmem:[#allocation8 + $0x10] sm:$0xff] }
 0x37c   : >> { %10045 = vmatpush3.bf16.msra.mxu1 %v10720_v25 }
 0x37d   : >> { %10046 = vmatprep.subr.bf16.mxu1 %v10721_v26 }
 0x37e   : >> { %2090 = vrot.lane.b32.xlu0 %v9251_v7, %s14515_s23  ;;  %2092 = vrot.lane.b32.xlu1 %v9252_v10, %s14515_s23 }
 0x380   : >> { %10047 = vmatpush3.bf16.msra.mxu1 %v10722_v8 }
 0x381   : >> { %10048 = vmatprep.subr.bf16.mxu1 %v10723_v14 }
 0x382   : >> { %2047 = vrot.lane.b32.xlu0 %v12545_v30, %s14515_s23  ;;  %2049 = vrot.lane.b32.xlu1 %v9242_v17, %s14515_s23  ;;  %v10725_v30 = vld [vmem:[%s14430_s3 + $0x48] sm:$0xff]  }
 0x384   : >> { %10049 = vmatpush3.bf16.msra.mxu1 %v10724_v22 }
 0x385   : >> { %10050 = vmatprep.subr.bf16.mxu1 %v10725_v30 }
 0x386   : >> { %2102 = vrot.lane.b32.xlu0 %v9253_v20, %s14516_s0  ;;  %2104 = vrot.lane.b32.xlu1 %v9254_v24, %s14516_s0 }
 0x388   : >> { %10051 = vmatpush3.bf16.msra.mxu1 %v10726_v31 }
 0x389   : >> { %10052 = vmatprep.subr.bf16.mxu1 %v10728_v32 }
 0x38a   : >> { %2059 = vrot.lane.b32.xlu0 %v12564_v37, %s14516_s0  ;;  %2061 = vrot.lane.b32.xlu1 %v9244_v28, %s14516_s0 }
 0x38c   : >> { %10053 = vmatpush3.bf16.msra.mxu1 %v10729_v33 }
 0x38d   : >> { %10557 = vmatprep.subr.mxu1 %v11513_v34 }
 0x3d0   : >> { %v1739_v35 = vpop.permute.xlu0 %1738  ;;  %v1690_v36 = vpop.permute.xlu1 %1689 }
 0x3d1   : >> { %1744 = vst.msk [vmem:[#allocation8 + $0x8] sm:$0xff] %vm1695_vm4, %v1739_v35  ;;  %1696 = vst.msk [vmem:[#allocation8] sm:$0xff] %vm1695_vm4, %v1690_v36 }
 0x3d4   : >> { %v1741_v37 = vpop.permute.xlu0 %1740  ;;  %v1692_v38 = vpop.permute.xlu1 %1691 }
 0x3d5   : >> { %1745 = vst.msk [vmem:[#allocation8 + $0x20] sm:$0x3f] %vm1697_vm5, %v1741_v37  ;;  %1698 = vst.msk [vmem:[#allocation8 + $0x18] sm:$0x3f] %vm1697_vm5, %v1692_v38 }
 0x3d8   : >> { %v1754_v39 = vpop.permute.xlu0 %1753  ;;  %v1756_v40 = vpop.permute.xlu1 %1755 }
 0x3d9   : >> { %1759 = vst.msk [vmem:[#allocation8 + $0x8] sm:$0xff] %vm1709_vm7, %v1754_v39 }
 0x3da   : >> { %1760 = vst.msk [vmem:[#allocation8 + $0x20] sm:$0x3f] %vm1711_vm8, %v1756_v40 }
 0x3dc   : >> { %v1704_v41 = vpop.permute.xlu0 %1703  ;;  %v1706_v42 = vpop.permute.xlu1 %1705 }
 0x3dd   : >> { %1710 = vst.msk [vmem:[#allocation8] sm:$0xff] %vm1709_vm7, %v1704_v41 }
 0x3de   : >> { %1712 = vst.msk [vmem:[#allocation8 + $0x18] sm:$0x3f] %vm1711_vm8, %v1706_v42 }
 0x3e0   : >> { %v1766_v43 = vpop.permute.xlu0 %1765  ;;  %v1768_v44 = vpop.permute.xlu1 %1767 }
 0x3e1   : >> { %1771 = vst.msk [vmem:[#allocation8 + $0x8] sm:$0xff] %vm1726_vm9, %v1766_v43 }
 0x3e2   : >> { %1772 = vst.msk [vmem:[#allocation8 + $0x20] sm:$0x3f] %vm1728_vm11, %v1768_v44 }
 0x3e4   : >> { %v1721_v45 = vpop.permute.xlu0 %1720  ;;  %v1723_v47 = vpop.permute.xlu1 %1722 }
 0x3e5   : >> { %1727 = vst.msk [vmem:[#allocation8] sm:$0xff] %vm1726_vm9, %v1721_v45 }
 0x3e6   : >> { %1729 = vst.msk [vmem:[#allocation8 + $0x18] sm:$0x3f] %vm1728_vm11, %v1723_v47 }
 0x3e8   : >> { %v2076_v50 = vpop.permute.xlu0 %2075  ;;  %v2078_v51 = vpop.permute.xlu1 %2077  ;;  %v1778_v53 = vld [vmem:[#allocation8 + $0x8] sm:$0xff] }
 0x3e9   : >> { %v1781_v49 = vld [vmem:[#allocation8 + $0x20] sm:$0x3f]  ;;  %2069 = vst.msk [vmem:[#allocation8 + $0x8] sm:$0xff] %vm14517_vm12, %v12587_v46 }
 0x3ea   : >> { %2070 = vst.msk [vmem:[#allocation8 + $0x20] sm:$0x3f] %vm1668_vm14, %v9246_v48  ;;  %v1784_v54 = vpack.c.bf16 %v1781_v49, %v1778_v53 }
 0x3eb   : >> { %2082 = vst.msk [vmem:[#allocation8 + $0x20] sm:$0x3f] %vm1697_vm5, %v2078_v51 }
 0x3ec   : >> { %2081 = vst.msk [vmem:[#allocation8 + $0x8] sm:$0xff] %vm1695_vm4, %v2076_v50  ;;  %1971 = vmatprep.mubr.bf16.mxu0 %v1784_v54  ;;  %v2036_v57 = vpop.permute.xlu0 %2035  ;;  %v1777_v58 = vld [vmem:[#allocation8] sm:$0xff]  ;;  %v2038_v59 = vpop.permute.xlu1 %2037 }
 0x3ed   : >> { %v1780_v56 = vld [vmem:[#allocation8 + $0x18] sm:$0x3f]  ;;  %2029 = vst.msk [vmem:[#allocation8] sm:$0xff] %vm14518_vm13, %v12605_v52  ;;  %v2122_v52 = vpack.c.bf16 %v2119_v23, %v2116_v21 }
 0x3ee   : >> { %2030 = vst.msk [vmem:[#allocation8 + $0x18] sm:$0x3f] %vm1668_vm14, %v9238_v55  ;;  %v1783_v46 = vpack.c.bf16 %v1780_v56, %v1777_v58 }
 0x3ef   : >> { %2041 = vst.msk [vmem:[#allocation8] sm:$0xff] %vm1695_vm4, %v2036_v57  ;;  %vm2515_vm4 = vcmask 522240  }
 0x3f0   : >> { %2042 = vst.msk [vmem:[#allocation8 + $0x18] sm:$0x3f] %vm1697_vm5, %v2038_v59  ;;  %1972 = vmatmul.mubr.bf16.vlgmr.msra.gmra.mxu0 %v1783_v46  ;;  %v2091_v61 = vpop.permute.xlu0 %2090  ;;  %v2093_v62 = vpop.permute.xlu1 %2092 }
 0x3f1   : >> { %10543 = vmatpush3.bf16.msra.mxu0 %v10727_v60  ;;  %10546 = vmatprep.mubr.msk.bf16.mxu0 %vm11514_vm0, %v11513_v34  ;;  %2096 = vst.msk [vmem:[#allocation8 + $0x8] sm:$0xff] %vm1709_vm7, %v2091_v61 }
 0x3f2   : >> { %2097 = vst.msk [vmem:[#allocation8 + $0x20] sm:$0x3f] %vm1711_vm8, %v2093_v62  ;;  %10544 = vmatprep.subr.bf16.mxu0 %v11513_v34 }
 0x3f4   : >> { %v2048_v3 = vpop.permute.xlu0 %2047  ;;  %v2050_v4 = vpop.permute.xlu1 %2049 }
 0x3f5   : >> { %10545 = vmatpush3.bf16.msra.mxu0 %v10730_v63  ;;  %2053 = vst.msk [vmem:[#allocation8] sm:$0xff] %vm1709_vm7, %v2048_v3 }
 0x3f6   : >> { %2054 = vst.msk [vmem:[#allocation8 + $0x18] sm:$0x3f] %vm1711_vm8, %v2050_v4  ;;  %10550 = vmatprep.subr.mxu0 %v11513_v34 }
 0x3f8   : >> { %10547 = vmatmul.mubr.msk.bf16.vlgmr.msra.gmra.mxu0 %vm14519_vm10, %v2122_v52  ;;  %v2103_v5 = vpop.permute.xlu0 %2102  ;;  %v2105_v29 = vpop.permute.xlu1 %2104 }
 0x3f9   : >> { %10554 = vmatprep.mubr.msk.f32.mxu0 %vm11514_vm0, %v11513_v34  ;;  %2108 = vst.msk [vmem:[#allocation8 + $0x8] sm:$0xff] %vm1726_vm9, %v2103_v5 }
 0x3fa   : >> { %2109 = vst.msk [vmem:[#allocation8 + $0x20] sm:$0x3f] %vm1728_vm11, %v2105_v29 }
 0x3fc   : >> { %v2060_v6 = vpop.permute.xlu0 %2059  ;;  %v2062_v7 = vpop.permute.xlu1 %2061 }
 0x3fd   : >> { %2065 = vst.msk [vmem:[#allocation8] sm:$0xff] %vm1726_vm9, %v2060_v6 }
 0x3fe   : >> { %2066 = vst.msk [vmem:[#allocation8 + $0x18] sm:$0x3f] %vm1728_vm11, %v2062_v7 }
 0x400   : >> { %v2115_v10 = vld [vmem:[#allocation8 + $0x8] sm:$0xff] }
 0x401   : >> { %v2118_v11 = vld [vmem:[#allocation8 + $0x20] sm:$0x3f] }
 0x402   : >> { %v2121_v12 = vpack.c.bf16 %v2118_v11, %v2115_v10 }
 0x404   : >> { %2302 = vmatprep.mubr.bf16.mxu1 %v2121_v12  ;;  %v2114_v13 = vld [vmem:[#allocation8] sm:$0xff] }
 0x405   : >> { %v2117_v16 = vld [vmem:[#allocation8 + $0x18] sm:$0x3f] }
 0x406   : >> { %v2120_v17 = vpack.c.bf16 %v2117_v16, %v2114_v13 }
 0x408   : >> { %2303 = vmatmul.mubr.bf16.vlgmr.msra.gmra.mxu1 %v2120_v17 }
 0x409   : >> { %10561 = vmatprep.mubr.msk.f32.mxu1 %vm11514_vm0, %v11513_v34 }
 0x42f   : >> { %v2014_v18 = vpop.f32.mrf.mxu1 }
 0x431   : >> { %v10540_v19 = vpop.f32.mrf.mxu1 }
 0x433   : >> { %v2017_v20 = vpop.f32.mrf.mxu1 }
 0x435   : >> { %v10541_v24 = vpop.f32.mrf.mxu1 }
 0x4b0   : >> { %v10029_v25 = vpop.f32.mrf.mxu0 }
 0x4b2   : >> { %v10030_v26 = vpop.f32.mrf.mxu0 }
 0x4b3   : >> { %v10031_v35 = vadd.f32 %v10030_v26, %v10029_v25 }
 0x4b4   : >> { %v10032_v28 = vpop.f32.mrf.mxu0 }
 0x4b5   : >> { %v1974_v40 = vadd.f32 %v10031_v35, %v12522_v27 }
 0x4b6   : >> { %v10033_v8 = vpop.f32.mrf.mxu0 }
 0x4b7   : >> { %v10034_v32 = vadd.f32 %v10033_v8, %v10032_v28  ;;  %v2015_v47 = vadd.f32 %v2014_v18, %v1974_v40 }
 0x4b8   : >> { %v2345_v14 = vpop.f32.mrf.mxu0 }
 0x4b9   : >> { %v1977_v37 = vadd.f32 %v10034_v32, %v12522_v27  ;;  %v2023_v53 = vmul.f32 0.1, %v2015_v47  ;;  %vm2021_vm15 = vcmp.ge.f32.partialorder %v2015_v47, 0.0 }
 0x4ba   : >> { %v10548_v22 = vpop.f32.mrf.mxu0 }
 0x4bb   : >> { %v2018_v43 = vadd.f32 %v2017_v20, %v1977_v37  ;;  %v2025_v59 = vsel %vm2021_vm15, %v2015_v47, %v2023_v53 }
 0x4bc   : >> { %v2348_v30 = vpop.f32.mrf.mxu0 }
 0x4bd   : >> { %v2024_v49 = vmul.f32 0.1, %v2018_v43  ;;  %vm2022_vm0 = vcmp.ge.f32.partialorder %v2018_v43, 0.0 }
 0x4be   : >> { %v10549_v31 = vpop.f32.mrf.mxu0 }
 0x4bf   : >> { %v2026_v55 = vsel %vm2022_vm0, %v2018_v43, %v2024_v49 }
 0x4c8   : >> { %v10054_v33 = vpop.f32.mrf.mxu1 }
 0x4ca   : >> { %v10055_v36 = vpop.f32.mrf.mxu1 }
 0x4cb   : >> { %v10056_v38 = vadd.f32 %v10055_v36, %v10054_v33 }
 0x4cc   : >> { %v10057_v39 = vpop.f32.mrf.mxu1 }
 0x4cd   : >> { %v2305_v41 = vadd.f32 %v10056_v38, %v12522_v27 }
 0x4ce   : >> { %v10058_v42 = vpop.f32.mrf.mxu1 }
 0x4cf   : >> { %v2346_v44 = vadd.f32 %v2345_v14, %v2305_v41  ;;  %v10059_v45 = vadd.f32 %v10058_v42, %v10057_v39 }
 0x4d1   : >> { %v2308_v48 = vadd.f32 %v10059_v45, %v12522_v27  ;;  %v2354_v50 = vmul.f32 0.1, %v2346_v44  ;;  %vm2352_vm6 = vcmp.ge.f32.partialorder %v2346_v44, 0.0 }
 0x4d3   : >> { %v2349_v51 = vadd.f32 %v2348_v30, %v2308_v48  ;;  %v2356_v56 = vsel %vm2352_vm6, %v2346_v44, %v2354_v50 }
 0x4d4   : >> { %v2358_v60 = vmax.f32 %v2025_v59, %v2356_v56 }
 0x4d5   : >> { %vm2353_vm2 = vcmp.ge.f32.partialorder %v2349_v51, 0.0  ;;  %v2355_v54 = vmul.f32 0.1, %v2349_v51 }
 0x4d7   : >> { %v2357_v57 = vsel %vm2353_vm2, %v2349_v51, %v2355_v54 }
 0x4d8   : >> { %v2359_v58 = vmax.f32 %v2026_v55, %v2357_v57 }
 0x4da   : >> { %10551 = vmatpush3.msk.msra.mxu0 %vm2364_vm1, %v2359_v58  ;;  %10558 = vmatpush3.msk.msra.mxu1 %vm2364_vm1, %v2359_v58 }
 0x4db   : >> { %10552 = vmatprep.subr.mxu0 %v11513_v34  ;;  %10559 = vmatprep.subr.mxu1 %v11513_v34  ;;  %v12781_v34 = vld [vmem:[%s14433_s6] ss:$0 sm:$0xff] (%p1673_p9) }
 0x4dc   : >> { %10553 = vmatpush3.msra.mxu0 %v2358_v60  ;;  %10560 = vmatpush3.msra.mxu1 %v2358_v60 }
 0x4dd   : >> { %10555 = vmatmul.mubr.msk.f32.vlgmr.msra.gmra.mxu0 %vm2360_vm3, %v12025_v9  ;;  %10562 = vmatmul.mubr.msk.f32.vlgmr.msra.gmra.mxu1 %vm2360_vm3, %v12041_v15 }
 0x59c   : > { %1675 = sbr.rel (!%p1673_p9) target bundleno = 855 (0x357), region = 168 }
 0x59d   : >> { %v2434_v46 = vpop.f32.mrf.mxu0  ;;  %v2507_v61 = vpop.f32.mrf.mxu1 }
 0x59e   : >> { %v2511_v62 = vmax.f32 %v2434_v46, %v2507_v61 }
 0x59f   : >> { %v10556_v63 = vpop.f32.mrf.mxu0  ;;  %v10563_v21 = vpop.f32.mrf.mxu1 }
 0x5a0   : >> { %9281 = vst.msk [vmem:[%s9021_s24 + $0x11] sm:$0x7f] %vm2515_vm4, %v2511_v62 }
 0x5a1 LB: >> { %v10731_v23 = vld [vmem:[%s14432_s5 + $0x78] sm:$0xff]   ;;  %s9988_s15 = sshll.u32 %s11497_s16, 5  ;;  %s14461_s23 = smov 64   ;;  %v10735_v11 = vld [vmem:[%s14432_s5 + $0x70] sm:$0xff]   ;;  %v10739_v19 = vld [vmem:[%s14432_s5 + $0x68] sm:$0xff]   ;;  %vm2528_vm14 = vcmask 519168   ;;  %s11497_s16 = sphi %s12783_s16, %s2523_s16  }
 0x5a2   : >> { %v10732_v27 = vld [vmem:[%s14432_s5 + $0xf8] sm:$0xff]   ;;  %10069 = vmatprep.subr.bf16.mxu0 %v10731_v23  ;;  %s12801_s1 = scalar_lea.vmem [#allocation4], %s9988_s15  ;;  %v10736_v12 = vld [vmem:[%s14432_s5 + $0xf0] sm:$0xff]   ;;  %v10740_v25 = vld [vmem:[%s14432_s5 + $0xe8] sm:$0xff]   ;;  %s14520_s21 = smov 64   ;;  %vm2535_vm5 = vcmask 1043968  }
 0x5a3   : >> { %v10733_v52 = vld [vmem:[%s14432_s5 + $0x38] sm:$0xff]   ;;  %10091 = vmatprep.subr.bf16.mxu1 %v10732_v27  ;;  %v10737_v17 = vld [vmem:[%s14432_s5 + $0x30] sm:$0xff]   ;;  %v10741_v26 = vld [vmem:[%s14432_s5 + $0x28] sm:$0xff]   ;;  %vm11519_vm7 = vmmov 0   ;;  %vm5980_vm11 = vcmask 31744   ;;  %vm14521_vm12 = vcmask 1043456  }
 0x5a4   : >> { %v10734_v3 = vld [vmem:[%s14432_s5 + $0xb8] sm:$0xff]   ;;  %10070 = vmatpush3.bf16.msra.mxu0 %v10733_v52  ;;  %v10738_v18 = vld [vmem:[%s14432_s5 + $0xb0] sm:$0xff]   ;;  %v10742_v28 = vld [vmem:[%s14432_s5 + $0xa8] sm:$0xff]   ;;  %s9655_s7 = sshll.u32 %s11497_s16, 2  ;;  %s2523_s16 = sadd.s32 1, %s11497_s16  }
 0x5a5   : >> { %10092 = vmatpush3.bf16.msra.mxu1 %v10734_v3  ;;  %10071 = vmatprep.subr.bf16.mxu0 %v10735_v11  ;;  %v10743_v8 = vld [vmem:[%s14432_s5 + $0x60] sm:$0xff]   ;;  %v10747_v38 = vld [vmem:[%s14432_s5 + $0x58] sm:$0xff]   ;;  %v10751_v47 = vld [vmem:[%s14432_s5 + $0x50] sm:$0xff]   ;;  %s9050_s30 = scalar_lea.vmem [#allocation5], %s9655_s7  ;;  %p2520_p10 = scmp.ge.s32.totalorder %s2523_s16, 2  }
 0x5a6   : >> { %10093 = vmatprep.subr.bf16.mxu1 %v10736_v12  ;;  %v10744_v30 = vld [vmem:[%s14432_s5 + $0xe0] sm:$0xff]   ;;  %v10748_v39 = vld [vmem:[%s14432_s5 + $0xd8] sm:$0xff]   ;;  %v10752_v48 = vld [vmem:[%s14432_s5 + $0xd0] sm:$0xff]   ;;  %vm8473_vm15 = vcmask (%p2520_p10), 1041408   ;;  %vm8469_vm1 = vcmask (%p2520_p10), 15360   ;;  %vm11523_vm4 = vmmov (%p2520_p10), 0  }
 0x5a7   : >> { %v2547_v4 = vld [vmem:[%s12801_s1 + $0x5] sm:$0xf]  ;;  %v2530_v5 = vld [vmem:[%s12801_s1 + $0x1] sm:$0xf]  ;;  %v9287_v29 = vld [vmem:[%s12801_s1 + $0x11] sm:$0xf] }
 0x5a8   : >> { %2549 = vrot.lane.b32.xlu1 %v2547_v4, %s14461_s23  ;;  %2532 = vrot.lane.b32.xlu0 %v2530_v5, %s14461_s23  ;;  %v2539_v6 = vld [vmem:[%s12801_s1 + $0x3] sm:$0xf]  ;;  %v9291_v7 = vld [vmem:[%s12801_s1 + $0x15] sm:$0xf]  ;;  %vm14522_vm13 = vmmov %vm14521_vm12 }
 0x5a9   : >> { %v9289_v10 = vld [vmem:[%s12801_s1 + $0x13] sm:$0xf]  ;;  %v9297_v13 = vld [vmem:[%s12801_s1 + $0x23] sm:$0xf]  ;;  %10072 = vmatpush3.bf16.msra.mxu0 %v10737_v17  ;;  %10094 = vmatpush3.bf16.msra.mxu1 %v10738_v18  ;;  %v10749_v40 = vld [vmem:[%s14432_s5 + $0x18] sm:$0xff]  }
 0x5aa   : >> { %v9295_v16 = vld [vmem:[%s12801_s1 + $0x21] sm:$0xf]  ;;  %v9303_v20 = vld [vmem:[%s12801_s1 + $0x31] sm:$0xf]  ;;  %v9299_v24 = vld [vmem:[%s12801_s1 + $0x25] sm:$0xf]  ;;  %10073 = vmatprep.subr.bf16.mxu0 %v10739_v19  ;;  %10095 = vmatprep.subr.bf16.mxu1 %v10740_v25 }
 0x5ab   : >> { %v9307_v14 = vld [vmem:[%s12801_s1 + $0x35] sm:$0xf]  ;;  %v10745_v31 = vld [vmem:[%s14432_s5 + $0x20] sm:$0xff]   ;;  %v9319_v42 = vld [vmem:[%s12801_s1 + $0x51] sm:$0xf] }
 0x5ac   : >> { %2560 = vrot.lane.b32.xlu1 %v9287_v29, %s14461_s23  ;;  %2541 = vrot.lane.b32.xlu0 %v2539_v6, %s14461_s23  ;;  %v9305_v22 = vld [vmem:[%s12801_s1 + $0x33] sm:$0xf]  ;;  %v10746_v32 = vld [vmem:[%s14432_s5 + $0xa0] sm:$0xff]  }
 0x5ad   : >> { %10074 = vmatpush3.bf16.msra.mxu0 %v10741_v26  ;;  %10096 = vmatpush3.bf16.msra.mxu1 %v10742_v28  ;;  %v2545_v33 = vld [vmem:[%s12801_s1 + $0x4] sm:$0xf]  ;;  %v2527_v35 = vld [vmem:[%s12801_s1] sm:$0xf]  ;;  %v10750_v41 = vld [vmem:[%s14432_s5 + $0x98] sm:$0xff]  }
 0x5ae   : >> { %10075 = vmatprep.subr.bf16.mxu0 %v10743_v8  ;;  %10097 = vmatprep.subr.bf16.mxu1 %v10744_v30  ;;  %v9313_v36 = vld [vmem:[%s12801_s1 + $0x43] sm:$0xf]  ;;  %2546 = vst.msk [vmem:[#allocation9 + $0x8] sm:$0xf] %vm2528_vm14, %v2545_v33  ;;  %2529 = vst.msk [vmem:[#allocation9] sm:$0xf] %vm2528_vm14, %v2527_v35 }
 0x5af   : >> { %v9311_v37 = vld [vmem:[%s12801_s1 + $0x41] sm:$0xf]  ;;  %v9286_v43 = vld [vmem:[%s12801_s1 + $0x10] sm:$0xf]  ;;  %v9315_v45 = vld [vmem:[%s12801_s1 + $0x45] sm:$0xf] }
 0x5b0   : >> { %2576 = vrot.lane.b32.xlu1 %v9291_v7, %s14461_s23  ;;  %2568 = vrot.lane.b32.xlu0 %v9289_v10, %s14461_s23  ;;  %v2537_v44 = vld [vmem:[%s12801_s1 + $0x2] sm:$0xf]  ;;  %2557 = vst.msk [vmem:[#allocation9 + $0xc] sm:$0xf] %vm2528_vm14, %v9286_v43  ;;  %v10753_v49 = vld [vmem:[%s14432_s5 + $0x10] sm:$0xff]  }
 0x5b1   : >> { %10076 = vmatpush3.bf16.msra.mxu0 %v10745_v31  ;;  %10098 = vmatpush3.bf16.msra.mxu1 %v10746_v32  ;;  %2538 = vst.msk [vmem:[#allocation9 + $0x4] sm:$0xf] %vm2528_vm14, %v2537_v44  ;;  %v10754_v50 = vld [vmem:[%s14432_s5 + $0x90] sm:$0xff]   ;;  %v10755_v51 = vld [vmem:[%s14432_s5 + $0x48] sm:$0xff]   ;;  %v10759_v56 = vld [vmem:[%s14432_s5 + $0x40] sm:$0xff]  }
 0x5b2   : >> { %10077 = vmatprep.subr.bf16.mxu0 %v10747_v38  ;;  %10099 = vmatprep.subr.bf16.mxu1 %v10748_v39  ;;  %v10756_v53 = vld [vmem:[%s14432_s5 + $0xc8] sm:$0xff]   ;;  %v10760_v57 = vld [vmem:[%s14432_s5 + $0xc0] sm:$0xff]   ;;  %v9323_v58 = vld [vmem:[%s12801_s1 + $0x55] sm:$0xf] }
 0x5b3   : >> { %v10757_v54 = vld [vmem:[%s14432_s5 + $0x8] sm:$0xff]   ;;  %v9321_v59 = vld [vmem:[%s12801_s1 + $0x53] sm:$0xf]  ;;  %v10761_v60 = vld [vmem:[%s14432_s5] sm:$0xff]  }
 0x5b4   : >> { %2595 = vrot.lane.b32.xlu1 %v9297_v13, %s14461_s23  ;;  %2587 = vrot.lane.b32.xlu0 %v9295_v16, %s14461_s23  ;;  %v10758_v55 = vld [vmem:[%s14432_s5 + $0x88] sm:$0xff]   ;;  %v10762_v46 = vld [vmem:[%s14432_s5 + $0x80] sm:$0xff]  }
 0x5b5   : >> { %10078 = vmatpush3.bf16.msra.mxu0 %v10749_v40  ;;  %10100 = vmatpush3.bf16.msra.mxu1 %v10750_v41  ;;  %v10763_v61 = vld [vmem:[%s14432_s5 + $0x178] sm:$0xff]   ;;  %v9472_v63 = vld [vmem:[%s12801_s1 + $0x13] sm:$0xf]  ;;  %v9296_v52 = vld [vmem:[%s12801_s1 + $0x22] sm:$0xf] }
 0x5b6   : >> { %10079 = vmatprep.subr.bf16.mxu0 %v10751_v47  ;;  %10101 = vmatprep.subr.bf16.mxu1 %v10752_v48  ;;  %v10764_v62 = vld [vmem:[%s14432_s5 + $0x1f8] sm:$0xff]   ;;  %v9470_v21 = vld [vmem:[%s12801_s1 + $0x11] sm:$0xf]  ;;  %v9294_v3 = vld [vmem:[%s12801_s1 + $0x20] sm:$0xf] }
 0x5b7   : >> { %v9290_v23 = vld [vmem:[%s12801_s1 + $0x14] sm:$0xf]  ;;  %2592 = vst.msk [vmem:[#allocation9 + $0x1c] sm:$0xf] %vm2528_vm14, %v9296_v52  ;;  %2584 = vst.msk [vmem:[#allocation9 + $0x18] sm:$0xf] %vm2528_vm14, %v9294_v3 }
 0x5b8   : >> { %2614 = vrot.lane.b32.xlu1 %v9303_v20, %s14461_s23  ;;  %2603 = vrot.lane.b32.xlu0 %v9299_v24, %s14461_s23  ;;  %v9288_v27 = vld [vmem:[%s12801_s1 + $0x12] sm:$0xf]  ;;  %2573 = vst.msk [vmem:[#allocation9 + $0x14] sm:$0xf] %vm2528_vm14, %v9290_v23  ;;  %v9476_v4 = vld [vmem:[%s12801_s1 + $0x21] sm:$0xf] }
 0x5b9   : >> { %10080 = vmatpush3.bf16.msra.mxu0 %v10753_v49  ;;  %10102 = vmatpush3.bf16.msra.mxu1 %v10754_v50  ;;  %2565 = vst.msk [vmem:[#allocation9 + $0x10] sm:$0xf] %vm2528_vm14, %v9288_v27  ;;  %v9474_v5 = vld [vmem:[%s12801_s1 + $0x15] sm:$0xf]  ;;  %v9480_v29 = vld [vmem:[%s12801_s1 + $0x25] sm:$0xf] }
 0x5ba   : >> { %10081 = vmatprep.subr.bf16.mxu0 %v10755_v51  ;;  %10103 = vmatprep.subr.bf16.mxu1 %v10756_v53  ;;  %v9478_v6 = vld [vmem:[%s12801_s1 + $0x23] sm:$0xf]  ;;  %v9302_v7 = vld [vmem:[%s12801_s1 + $0x30] sm:$0xf]  ;;  %v9306_v11 = vld [vmem:[%s12801_s1 + $0x34] sm:$0xf] }
 0x5bb   : >> { %2611 = vst.msk [vmem:[#allocation9 + $0x24] sm:$0xf] %vm2528_vm14, %v9302_v7  ;;  %v9298_v10 = vld [vmem:[%s12801_s1 + $0x24] sm:$0xf]  ;;  %2627 = vst.msk [vmem:[#allocation9 + $0x2c] sm:$0xf] %vm2528_vm14, %v9306_v11 }
 0x5bc   : >> { %2630 = vrot.lane.b32.xlu1 %v9307_v14, %s14461_s23  ;;  %2622 = vrot.lane.b32.xlu0 %v9305_v22, %s14461_s23  ;;  %2600 = vst.msk [vmem:[#allocation9 + $0x20] sm:$0xf] %vm2528_vm14, %v9298_v10  ;;  %v9304_v12 = vld [vmem:[%s12801_s1 + $0x32] sm:$0xf]  ;;  %v9488_v17 = vld [vmem:[%s12801_s1 + $0x41] sm:$0xf] }
 0x5bd   : >> { %10082 = vmatpush3.bf16.msra.mxu0 %v10757_v54  ;;  %10104 = vmatpush3.bf16.msra.mxu1 %v10758_v55  ;;  %2619 = vst.msk [vmem:[#allocation9 + $0x28] sm:$0xf] %vm2528_vm14, %v9304_v12  ;;  %v9484_v13 = vld [vmem:[%s12801_s1 + $0x33] sm:$0xf]  ;;  %v9475_v8 = vld [vmem:[%s12801_s1 + $0x20] sm:$0xf] }
 0x5be   : >> { %10083 = vmatprep.subr.bf16.mxu0 %v10759_v56  ;;  %10105 = vmatprep.subr.bf16.mxu1 %v10760_v57  ;;  %v9482_v16 = vld [vmem:[%s12801_s1 + $0x31] sm:$0xf]  ;;  %v9486_v18 = vld [vmem:[%s12801_s1 + $0x35] sm:$0xf]  ;;  %v9312_v22 = vld [vmem:[%s12801_s1 + $0x42] sm:$0xf] }
 0x5bf   : >> { %v9471_v14 = vld [vmem:[%s12801_s1 + $0x12] sm:$0xf]  ;;  %v9310_v30 = vld [vmem:[%s12801_s1 + $0x40] sm:$0xf]  ;;  %2646 = vst.msk [vmem:[#allocation9 + $0x34] sm:$0xf] %vm2528_vm14, %v9312_v22 }
 0x5c0   : >> { %2649 = vrot.lane.b32.xlu1 %v9313_v36, %s14461_s23  ;;  %2641 = vrot.lane.b32.xlu0 %v9311_v37, %s14461_s23  ;;  %2638 = vst.msk [vmem:[#allocation9 + $0x30] sm:$0xf] %vm2528_vm14, %v9310_v30  ;;  %v10765_v38 = vld [vmem:[%s14432_s5 + $0x138] sm:$0xff]   ;;  %v10767_v40 = vld [vmem:[%s14432_s5 + $0x170] sm:$0xff]  }
 0x5c1   : >> { %10084 = vmatpush3.bf16.msra.mxu0 %v10761_v60  ;;  %10106 = vmatpush3.bf16.msra.mxu1 %v10762_v46  ;;  %v10766_v39 = vld [vmem:[%s14432_s5 + $0x1b8] sm:$0xff]   ;;  %v9477_v41 = vld [vmem:[%s12801_s1 + $0x22] sm:$0xf]  ;;  %v10768_v44 = vld [vmem:[%s14432_s5 + $0x1f0] sm:$0xff]  }
 0x5c2   : >> { %10113 = vmatprep.subr.bf16.mxu0 %v10763_v61  ;;  %10135 = vmatprep.subr.bf16.mxu1 %v10764_v62  ;;  %v10769_v51 = vld [vmem:[%s14432_s5 + $0x130] sm:$0xff]   ;;  %v9314_v56 = vld [vmem:[%s12801_s1 + $0x44] sm:$0xf]  ;;  %v10772_v60 = vld [vmem:[%s14432_s5 + $0x1e8] sm:$0xff]  }
 0x5c3   : >> { %v10770_v53 = vld [vmem:[%s14432_s5 + $0x1b0] sm:$0xff]   ;;  %2654 = vst.msk [vmem:[#allocation9 + $0x38] sm:$0xf] %vm2528_vm14, %v9314_v56  ;;  %v10775_v52 = vld [vmem:[%s14432_s5 + $0x160] sm:$0xff]   ;;  %v10779_v11 = vld [vmem:[%s14432_s5 + $0x158] sm:$0xff]  }
 0x5c4   : >> { %2668 = vrot.lane.b32.xlu1 %v9319_v42, %s14461_s23  ;;  %2657 = vrot.lane.b32.xlu0 %v9315_v45, %s14461_s23  ;;  %v9318_v55 = vld [vmem:[%s12801_s1 + $0x50] sm:$0xf]  ;;  %v9485_v27 = vld [vmem:[%s12801_s1 + $0x34] sm:$0xf]  ;;  %s8958_s23 = sshll.u32 (%p2520_p10), %s12270_s20, 4  ;;  %s14385_s23 = int_to_ptr.vmem [resolvable:$true] %s8958_s23 }
 0x5c5   : >> { %v9481_v57 = vld [vmem:[%s12801_s1 + $0x30] sm:$0xf]  ;;  %2665 = vst.msk [vmem:[#allocation9 + $0x3c] sm:$0xf] %vm2528_vm14, %v9318_v55  ;;  %v10777_v7 = vld [vmem:[%s14432_s5 + $0x120] sm:$0xff]   ;;  %v10798_v55 = vld [vmem:[%s14432_s5 + $0x2b8] sm:$0xff]  }
 0x5c6   : >> { %v10778_v10 = vld [vmem:[%s14432_s5 + $0x1a0] sm:$0xff]   ;;  %v9496_v22 = vld [vmem:[%s12801_s1 + $0x53] sm:$0xf]  ;;  %s11409_s15 = scalar_lea.vmem (%p2520_p10), %s14385_s23, 16 }
 0x5c7   : >> { %v9489_v12 = vld [vmem:[%s12801_s1 + $0x42] sm:$0xf]  ;;  %v10785_v30 = vld [vmem:[%s14432_s5 + $0x110] sm:$0xff]   ;;  %p11410_p11 = scmp.ne.s32.totalorder (%p2520_p10), %s14385_s23, %s11409_s15 }
 0x5c8   : >> { %2684 = vrot.lane.b32.xlu1 %v9323_v58, %s14520_s21  ;;  %2676 = vrot.lane.b32.xlu0 %v9321_v59, %s14520_s21  ;;  %v10771_v58 = vld [vmem:[%s14432_s5 + $0x168] sm:$0xff]   ;;  %v10799_v56 = vld [vmem:[%s14432_s5 + $0x270] sm:$0xff]  }
 0x5c9   : > { %p11411_p12 = pnand (%p2520_p10), %p11410_p11, %p11633_p5 }
 0x5cb   : > { %p11412_p13 = pneg (%p2520_p10), %p11411_p12 }
 0x5cc   : >> { %4275 = vrot.lane.b32.xlu1 %v9472_v63, %s14520_s21  ;;  %4267 = vrot.lane.b32.xlu0 %v9470_v21, %s14520_s21  ;;  %v10773_v63 = vld [vmem:[%s14432_s5 + $0x128] sm:$0xff]  }
 0x5cd   : >> { %v10774_v21 = vld [vmem:[%s14432_s5 + $0x1a8] sm:$0xff]  }
 0x5d0   : >> { %4291 = vrot.lane.b32.xlu1 %v9476_v4, %s14520_s21  ;;  %4283 = vrot.lane.b32.xlu0 %v9474_v5, %s14520_s21  ;;  %v10776_v4 = vld [vmem:[%s14432_s5 + $0x1e0] sm:$0xff]  }
 0x5d4   : >> { %4307 = vrot.lane.b32.xlu1 %v9480_v29, %s14520_s21  ;;  %4299 = vrot.lane.b32.xlu0 %v9478_v6, %s14520_s21 }
 0x5d8   : >> { %4323 = vrot.lane.b32.xlu1 %v9484_v13, %s14520_s21  ;;  %4315 = vrot.lane.b32.xlu0 %v9482_v16, %s14520_s21  ;;  %v9492_v13 = vld [vmem:[%s12801_s1 + $0x45] sm:$0xf] }
 0x5d9   : >> { %v9490_v16 = vld [vmem:[%s12801_s1 + $0x43] sm:$0xf] }
 0x5dc   : >> { %4339 = vrot.lane.b32.xlu1 %v9488_v17, %s14520_s21  ;;  %4331 = vrot.lane.b32.xlu0 %v9486_v18, %s14520_s21  ;;  %v10780_v17 = vld [vmem:[%s14432_s5 + $0x1d8] sm:$0xff]  }
 0x5e0   : >> { %4355 = vrot.lane.b32.xlu1 %v9492_v13, %s14520_s21  ;;  %4347 = vrot.lane.b32.xlu0 %v9490_v16, %s14520_s21  ;;  %v10812_v16 = vld [vmem:[%s14432_s5 + $0x2d8] sm:$0xff]  }
 0x5e4   : >> { %4371 = vrot.lane.b32.xlu1 %v9496_v22, %s14520_s21  ;;  %v10819_v22 = vld [vmem:[%s14432_s5 + $0x248] sm:$0xff]  }
 0x61a   : >> { %v2550_v19 = vpop.permute.xlu1 %2549  ;;  %v2533_v20 = vpop.permute.xlu0 %2532 }
 0x61b   : >> { %2552 = vst.msk [vmem:[#allocation9 + $0x8] sm:$0xf] %vm2535_vm5, %v2550_v19  ;;  %2536 = vst.msk [vmem:[#allocation9] sm:$0xf] %vm2535_vm5, %v2533_v20 }
 0x61e   : >> { %v2561_v24 = vpop.permute.xlu1 %2560  ;;  %v2542_v25 = vpop.permute.xlu0 %2541 }
 0x61f   : >> { %2563 = vst.msk [vmem:[#allocation9 + $0xc] sm:$0xf] %vm2535_vm5, %v2561_v24  ;;  %2544 = vst.msk [vmem:[#allocation9 + $0x4] sm:$0xf] %vm2535_vm5, %v2542_v25  ;;  %v10781_v24 = vld [vmem:[%s14432_s5 + $0x118] sm:$0xff]  }
 0x620   : >> { %v10782_v25 = vld [vmem:[%s14432_s5 + $0x198] sm:$0xff]  }
 0x622   : >> { %v2577_v26 = vpop.permute.xlu1 %2576  ;;  %v2569_v28 = vpop.permute.xlu0 %2568 }
 0x623   : >> { %2579 = vst.msk [vmem:[#allocation9 + $0x14] sm:$0xf] %vm2535_vm5, %v2577_v26  ;;  %2571 = vst.msk [vmem:[#allocation9 + $0x10] sm:$0xf] %vm2535_vm5, %v2569_v28  ;;  %v9493_v26 = vld [vmem:[%s12801_s1 + $0x50] sm:$0xf] }
 0x624   : >> { %v10783_v28 = vld [vmem:[%s14432_s5 + $0x150] sm:$0xff]  }
 0x626   : >> { %v2689_v31 = vld [vmem:[#allocation9 + $0x8] sm:$0xff]  ;;  %v2688_v32 = vld [vmem:[#allocation9] sm:$0xff]  ;;  %v2596_v33 = vpop.permute.xlu1 %2595  ;;  %v2588_v35 = vpop.permute.xlu0 %2587 }
 0x627   : >> { %4288 = vst.msk [vmem:[#allocation9 + $0xc] sm:$0xf] %vm2528_vm14, %v9475_v8  ;;  %4272 = vst.msk [vmem:[#allocation9 + $0x4] sm:$0xf] %vm2528_vm14, %v9471_v14  ;;  %v2707_v36 = vcombine.high %v2689_v31, %v2689_v31  ;;  %v2706_v37 = vcombine.high %v2688_v32, %v2688_v32  ;;  %v2724_v45 = vpack.c.bf16 %v2688_v32, %v2688_v32  ;;  %v10784_v8 = vld [vmem:[%s14432_s5 + $0x1d0] sm:$0xff]  }
 0x628   : >> { %2598 = vst.msk [vmem:[#allocation9 + $0x1c] sm:$0xf] %vm2535_vm5, %v2596_v33  ;;  %2590 = vst.msk [vmem:[#allocation9 + $0x18] sm:$0xf] %vm2535_vm5, %v2588_v35  ;;  %v2726_v47 = vpack.c.bf16 %v2689_v31, %v2689_v31  ;;  %v10786_v31 = vld [vmem:[%s14432_s5 + $0x190] sm:$0xff]   ;;  %v10787_v35 = vld [vmem:[%s14432_s5 + $0x148] sm:$0xff]  }
 0x629   : >> { %v2727_v42 = vpack.c.bf16 %v2707_v36, %v2707_v36  ;;  %v2725_v43 = vpack.c.bf16 %v2706_v37, %v2706_v37  ;;  %v9494_v32 = vld [vmem:[%s12801_s1 + $0x51] sm:$0xf]  ;;  %v10788_v36 = vld [vmem:[%s14432_s5 + $0x1c8] sm:$0xff]  }
 0x62a   : >> { %v13002_v48 = vld [vmem:[#allocation9 + $0x10] sm:$0xff]  ;;  %v2615_v49 = vpop.permute.xlu1 %2614  ;;  %v2604_v50 = vpop.permute.xlu0 %2603  ;;  %v9497_v33 = vld [vmem:[%s12801_s1 + $0x54] sm:$0xf]  ;;  %4363 = vrot.lane.b32.xlu0 %v9494_v32, %s14520_s21  ;;  %v9504_v32 = vld [vmem:[%s12801_s1 + $0x63] sm:$0xf] }
 0x62b   : >> { %3972 = vmatprep.mubr.bf16.mxu1 %v2727_v42  ;;  %3932 = vmatprep.mubr.bf16.mxu0 %v2725_v43  ;;  %4296 = vst.msk [vmem:[#allocation9 + $0x10] sm:$0xf] %vm2528_vm14, %v9477_v41  ;;  %v2708_v54 = vcombine.high %v13002_v48, %v13002_v48  ;;  %v10791_v41 = vld [vmem:[%s14432_s5 + $0x1c0] sm:$0xff]  }
 0x62c   : >> { %2617 = vst.msk [vmem:[#allocation9 + $0x24] sm:$0xf] %vm2535_vm5, %v2615_v49  ;;  %2606 = vst.msk [vmem:[#allocation9 + $0x20] sm:$0xf] %vm2535_vm5, %v2604_v50  ;;  %3933 = vmatmul.mubr.bf16.vlgmr.msra.gmra.mxu0 %v2724_v45  ;;  %3973 = vmatmul.mubr.bf16.vlgmr.msra.gmra.mxu1 %v2726_v47  ;;  %v10792_v42 = vld [vmem:[%s14432_s5 + $0x140] sm:$0xff]   ;;  %v10795_v47 = vld [vmem:[%s14432_s5 + $0x2f8] sm:$0xff]  }
 0x62d   : >> { %10114 = vmatpush3.bf16.msra.mxu0 %v10765_v38  ;;  %10136 = vmatpush3.bf16.msra.mxu1 %v10766_v39  ;;  %v2729_v59 = vpack.c.bf16 %v2708_v54, %v2708_v54  ;;  %v10789_v39 = vld [vmem:[%s14432_s5 + $0x108] sm:$0xff]   ;;  %v10794_v45 = vld [vmem:[%s14432_s5 + $0x180] sm:$0xff]   ;;  %v10796_v49 = vld [vmem:[%s14432_s5 + $0x278] sm:$0xff]  }
 0x62e   : >> { %10115 = vmatprep.subr.bf16.mxu0 %v10767_v40  ;;  %10137 = vmatprep.subr.bf16.mxu1 %v10768_v44  ;;  %v2631_v61 = vpop.permute.xlu1 %2630  ;;  %v2623_v62 = vpop.permute.xlu0 %2622  ;;  %v10790_v40 = vld [vmem:[%s14432_s5 + $0x188] sm:$0xff]   ;;  %v10793_v44 = vld [vmem:[%s14432_s5 + $0x100] sm:$0xff]   ;;  %v10797_v50 = vld [vmem:[%s14432_s5 + $0x238] sm:$0xff]  }
 0x62f   : >> { %v13026_v46 = vld [vmem:[#allocation9 + $0x18] sm:$0xff]  ;;  %4012 = vmatprep.mubr.bf16.mxu0 %v2729_v59  ;;  %2633 = vst.msk [vmem:[#allocation9 + $0x2c] sm:$0xf] %vm2535_vm5, %v2631_v61  ;;  %2625 = vst.msk [vmem:[#allocation9 + $0x28] sm:$0xf] %vm2535_vm5, %v2623_v62 }
 0x630   : >> { %4312 = vst.msk [vmem:[#allocation9 + $0x18] sm:$0xf] %vm2528_vm14, %v9481_v57  ;;  %v2709_v23 = vcombine.high %v13026_v46, %v13026_v46  ;;  %v2730_v54 = vpack.c.bf16 %v13026_v46, %v13026_v46  ;;  %v10800_v59 = vld [vmem:[%s14432_s5 + $0x2f0] sm:$0xff]  }
 0x631   : >> { %10116 = vmatpush3.bf16.msra.mxu0 %v10769_v51  ;;  %10138 = vmatpush3.bf16.msra.mxu1 %v10770_v53  ;;  %v9322_v62 = vld [vmem:[%s12801_s1 + $0x54] sm:$0xf] }
 0x632   : >> { %v2731_v3 = vpack.c.bf16 %v2709_v23, %v2709_v23  ;;  %10117 = vmatprep.subr.bf16.mxu0 %v10771_v58  ;;  %10139 = vmatprep.subr.bf16.mxu1 %v10772_v60  ;;  %v2650_v29 = vpop.permute.xlu1 %2649  ;;  %v2642_v6 = vpop.permute.xlu0 %2641  ;;  %v2728_v58 = vpack.c.bf16 %v13002_v48, %v13002_v48  ;;  %v10801_v60 = vld [vmem:[%s14432_s5 + $0x230] sm:$0xff]   ;;  %2681 = vst.msk [vmem:[#allocation9 + $0x44] sm:$0xf] %vm2528_vm14, %v9322_v62  ;;  %v10804_v23 = vld [vmem:[%s14432_s5 + $0x2e8] sm:$0xff]  }
 0x633   : >> { %v13046_v5 = vld [vmem:[#allocation9 + $0x20] sm:$0xff]  ;;  %2652 = vst.msk [vmem:[#allocation9 + $0x34] sm:$0xf] %vm2535_vm5, %v2650_v29  ;;  %2644 = vst.msk [vmem:[#allocation9 + $0x30] sm:$0xf] %vm2535_vm5, %v2642_v6  ;;  %v10807_v29 = vld [vmem:[%s14432_s5 + $0x260] sm:$0xff]  }
 0x634   : >> { %4052 = vmatprep.mubr.bf16.mxu1 %v2731_v3  ;;  %4328 = vst.msk [vmem:[#allocation9 + $0x20] sm:$0xf] %vm2528_vm14, %v9485_v27  ;;  %v2710_v51 = vcombine.high %v13046_v5, %v13046_v5  ;;  %v9320_v48 = vld [vmem:[%s12801_s1 + $0x52] sm:$0xf]  ;;  %v10805_v27 = vld [vmem:[%s14432_s5 + $0x228] sm:$0xff]   ;;  %v10808_v6 = vld [vmem:[%s14432_s5 + $0x2e0] sm:$0xff]  }
 0x635   : >> { %10118 = vmatpush3.bf16.msra.mxu0 %v10773_v63  ;;  %10140 = vmatpush3.bf16.msra.mxu1 %v10774_v21  ;;  %v10802_v63 = vld [vmem:[%s14432_s5 + $0x2b0] sm:$0xff]   ;;  %v10803_v21 = vld [vmem:[%s14432_s5 + $0x268] sm:$0xff]   ;;  %2673 = vst.msk [vmem:[#allocation9 + $0x40] sm:$0xf] %vm2528_vm14, %v9320_v48  ;;  %v10840_v48 = vld [vmem:[%s14432_s5 + $0x3e0] sm:$0xff]  }
 0x636   : >> { %10119 = vmatprep.subr.bf16.mxu0 %v10775_v52  ;;  %10141 = vmatprep.subr.bf16.mxu1 %v10776_v4  ;;  %v13066_v18 = vld [vmem:[#allocation9 + $0x28] sm:$0xff]  ;;  %v2669_v19 = vpop.permute.xlu1 %2668  ;;  %v2658_v20 = vpop.permute.xlu0 %2657  ;;  %v2733_v46 = vpack.c.bf16 %v2710_v51, %v2710_v51  ;;  %v10806_v3 = vld [vmem:[%s14432_s5 + $0x2a8] sm:$0xff]   ;;  %v9469_v4 = vld [vmem:[%s12801_s1 + $0x10] sm:$0xf] }
 0x637   : >> { %4344 = vst.msk [vmem:[#allocation9 + $0x28] sm:$0xf] %vm2528_vm14, %v9489_v12  ;;  %v2711_v53 = vcombine.high %v13066_v18, %v13066_v18  ;;  %4264 = vst.msk [vmem:[#allocation9] sm:$0xf] %vm2528_vm14, %v9469_v4  ;;  %v10811_v12 = vld [vmem:[%s14432_s5 + $0x258] sm:$0xff]   ;;  %v2734_v51 = vpack.c.bf16 %v13066_v18, %v13066_v18  ;;  %v10833_v18 = vld [vmem:[%s14432_s5 + $0x330] sm:$0xff]  }
 0x638   : >> { %2671 = vst.msk [vmem:[#allocation9 + $0x3c] sm:$0xf] %vm2535_vm5, %v2669_v19  ;;  %2660 = vst.msk [vmem:[#allocation9 + $0x38] sm:$0xf] %vm2535_vm5, %v2658_v20  ;;  %v10814_v19 = vld [vmem:[%s14432_s5 + $0x298] sm:$0xff]   ;;  %v10815_v20 = vld [vmem:[%s14432_s5 + $0x250] sm:$0xff]  }
 0x639   : >> { %10120 = vmatpush3.bf16.msra.mxu0 %v10777_v7  ;;  %10142 = vmatpush3.bf16.msra.mxu1 %v10778_v10  ;;  %v2735_v61 = vpack.c.bf16 %v2711_v53, %v2711_v53  ;;  %v10809_v7 = vld [vmem:[%s14432_s5 + $0x220] sm:$0xff]   ;;  %v10830_v53 = vld [vmem:[%s14432_s5 + $0x3b8] sm:$0xff]   ;;  %v10838_v62 = vld [vmem:[%s14432_s5 + $0x3a8] sm:$0xff]  }
 0x63a   : >> { %10121 = vmatprep.subr.bf16.mxu0 %v10779_v11  ;;  %10143 = vmatprep.subr.bf16.mxu1 %v10780_v17  ;;  %v13086_v14 = vld [vmem:[#allocation9 + $0x30] sm:$0xff]  ;;  %v2685_v38 = vpop.permute.xlu1 %2684  ;;  %v2677_v57 = vpop.permute.xlu0 %2676  ;;  %v10810_v10 = vld [vmem:[%s14432_s5 + $0x2a0] sm:$0xff]   ;;  %v10813_v17 = vld [vmem:[%s14432_s5 + $0x218] sm:$0xff]  }
 0x63b   : >> { %4360 = vst.msk [vmem:[#allocation9 + $0x30] sm:$0xf] %vm2528_vm14, %v9493_v26  ;;  %v9503_v11 = vld [vmem:[%s12801_s1 + $0x62] sm:$0xf]  ;;  %v10816_v26 = vld [vmem:[%s14432_s5 + $0x2d0] sm:$0xff]   ;;  %v10844_v4 = vld [vmem:[%s14432_s5 + $0x3d8] sm:$0xff]  }
 0x63c   : >> { %2687 = vst.msk [vmem:[#allocation9 + $0x44] sm:$0xf] %vm2535_vm5, %v2685_v38  ;;  %2679 = vst.msk [vmem:[#allocation9 + $0x40] sm:$0xf] %vm2535_vm5, %v2677_v57 }
 0x63d   : >> { %10122 = vmatpush3.bf16.msra.mxu0 %v10781_v24  ;;  %10144 = vmatpush3.bf16.msra.mxu1 %v10782_v25  ;;  %v9502_v24 = vld [vmem:[%s12801_s1 + $0x61] sm:$0xf]  ;;  %v9498_v25 = vld [vmem:[%s12801_s1 + $0x55] sm:$0xf] }
 0x63e   : >> { %10123 = vmatprep.subr.bf16.mxu0 %v10783_v28  ;;  %10145 = vmatprep.subr.bf16.mxu1 %v10784_v8  ;;  %v4276_v43 = vpop.permute.xlu1 %4275  ;;  %v4268_v52 = vpop.permute.xlu0 %4267  ;;  %v10817_v28 = vld [vmem:[%s14432_s5 + $0x210] sm:$0xff]  }
 0x63f   : >> { %v13106_v37 = vld [vmem:[#allocation9 + $0x38] sm:$0xff]  ;;  %4278 = vst.msk [vmem:[#allocation9 + $0x4] sm:$0xf] %vm2535_vm5, %v4276_v43  ;;  %4270 = vst.msk [vmem:[#allocation9] sm:$0xf] %vm2535_vm5, %v4268_v52  ;;  %4390 = vrot.lane.b32.xlu1 %v9502_v24, %s14520_s21  ;;  %4379 = vrot.lane.b32.xlu0 %v9498_v25, %s14520_s21  ;;  %v10827_v43 = vld [vmem:[%s14432_s5 + $0x378] sm:$0xff]  }
 0x640   : >> { %4376 = vst.msk [vmem:[#allocation9 + $0x38] sm:$0xf] %vm2528_vm14, %v9497_v33  ;;  %v10818_v8 = vld [vmem:[%s14432_s5 + $0x290] sm:$0xff]   ;;  %v10821_v33 = vld [vmem:[%s14432_s5 + $0x208] sm:$0xff]   ;;  %v10842_v52 = vld [vmem:[%s14432_s5 + $0x3a0] sm:$0xff]  }
 0x641   : >> { %10124 = vmatpush3.bf16.msra.mxu0 %v10785_v30  ;;  %10146 = vmatpush3.bf16.msra.mxu1 %v10786_v31  ;;  %v10820_v30 = vld [vmem:[%s14432_s5 + $0x2c8] sm:$0xff]   ;;  %v10855_v24 = vld [vmem:[%s14432_s5 + $0x340] sm:$0xff]  }
 0x642   : >> { %10125 = vmatprep.subr.bf16.mxu0 %v10787_v35  ;;  %10147 = vmatprep.subr.bf16.mxu1 %v10788_v36  ;;  %v9506_v31 = vld [vmem:[%s12801_s1 + $0x65] sm:$0xf]  ;;  %v4292_v35 = vpop.permute.xlu1 %4291  ;;  %v4284_v38 = vpop.permute.xlu0 %4283 }
 0x643   : >> { %v13197_v13 = vld [vmem:[#allocation9 + $0x40] sm:$0xff]  ;;  %4406 = vrot.lane.b32.xlu1 %v9506_v31, %s14520_s21  ;;  %4398 = vrot.lane.b32.xlu0 %v9504_v32, %s14520_s21  ;;  %v10822_v36 = vld [vmem:[%s14432_s5 + $0x288] sm:$0xff]   ;;  %4294 = vst.msk [vmem:[#allocation9 + $0xc] sm:$0xf] %vm2535_vm5, %v4292_v35  ;;  %v10856_v25 = vld [vmem:[%s14432_s5 + $0x3c0] sm:$0xff]   ;;  %s9977_s21 = sshll.u32 (%p2520_p10), %s11616_s29, 4 }
 0x644   : >> { %4395 = vst.msk [vmem:[#allocation9 + $0x40] sm:$0xf] %vm2528_vm14, %v9503_v11  ;;  %v10849_v11 = vld [vmem:[%s14432_s5 + $0x310] sm:$0xff]   ;;  %v10860_v31 = vld [vmem:[%s14432_s5 + $0x78] sm:$0xff]   ;;  %s14383_s7 = scalar_lea.hbm (%p2520_p10), %s14440_s13, %s9977_s21  ;;  %s11524_s29 = smov (%p2520_p10), [#allocation14]  }
 0x645   : >> { %10126 = vmatpush3.bf16.msra.mxu0 %v10789_v39  ;;  %10148 = vmatpush3.bf16.msra.mxu1 %v10790_v40  ;;  %v10823_v39 = vld [vmem:[%s14432_s5 + $0x240] sm:$0xff]   ;;  %v10861_v32 = vld [vmem:[%s14432_s5 + $0x438] sm:$0xff]   ;;  %s11413_s4 = sshll.u32 (%p2520_p10), %s11524_s29, 4  ;;  %s11414_s4 = int_to_ptr.vmem [resolvable:$false] %s11413_s4 }
 0x646   : >> { %10149 = vmatprep.subr.bf16.mxu1 %v10791_v41  ;;  %10127 = vmatprep.subr.bf16.mxu0 %v10792_v42  ;;  %v10824_v40 = vld [vmem:[%s14432_s5 + $0x2c0] sm:$0xff]   ;;  %s11415_s2 = scalar_lea.vmem (%p2520_p10), %s11414_s4, 32  ;;  %p11416_p0 = scmp.lt.s32.totalorder (%p2520_p10), %s14385_s23, %s11414_s4 }
 0x647   : >> { %v10825_v41 = vld [vmem:[%s14432_s5 + $0x200] sm:$0xff]   ;;  %p11417_p1 = scmp.lt.s32.totalorder (%p2520_p10), %s11415_s2, %s11409_s15 }
 0x648   : >> { %v10826_v42 = vld [vmem:[%s14432_s5 + $0x280] sm:$0xff]  }
 0x649   : >> { %10128 = vmatpush3.bf16.msra.mxu0 %v10793_v44  ;;  %10150 = vmatpush3.bf16.msra.mxu1 %v10794_v45  ;;  %v4300_v44 = vpop.permute.xlu0 %4299  ;;  %v10828_v45 = vld [vmem:[%s14432_s5 + $0x3f8] sm:$0xff]   ;;  %p11418_p2 = por (%p2520_p10), %p11417_p1, %p11416_p0 }
 0x64a   : >> { %10179 = vmatprep.subr.bf16.mxu1 %v10795_v47  ;;  %10157 = vmatprep.subr.bf16.mxu0 %v10796_v49  ;;  %4302 = vst.msk [vmem:[#allocation9 + $0x10] sm:$0xf] %vm2535_vm5, %v4300_v44  ;;  %v10829_v47 = vld [vmem:[%s14432_s5 + $0x338] sm:$0xff]   ;;  %v2712_v49 = vcombine.high %v13086_v14, %v13086_v14 }
 0x64b   : > { %p11419_p3 = pnand (%p2520_p10), %p11418_p2, %p11412_p13 }
 0x64c   : >> { %4013 = vmatmul.mubr.bf16.vlgmr.msra.gmra.mxu0 %v2728_v58  ;;  %4053 = vmatmul.mubr.bf16.vlgmr.msra.gmra.mxu1 %v2730_v54  ;;  %v10831_v54 = vld [vmem:[%s14432_s5 + $0x370] sm:$0xff]   ;;  %v2737_v57 = vpack.c.bf16 %v2712_v49, %v2712_v49 }
 0x64d   : >> { %10158 = vmatpush3.bf16.msra.mxu0 %v10797_v50  ;;  %10180 = vmatpush3.bf16.msra.mxu1 %v10798_v55  ;;  %v2713_v50 = vcombine.high %v13106_v37, %v13106_v37  ;;  %v2732_v55 = vpack.c.bf16 %v13046_v5, %v13046_v5  ;;  %v10835_v5 = vld [vmem:[%s14432_s5 + $0x368] sm:$0xff]  }
 0x64e   : >> { %10159 = vmatprep.subr.bf16.mxu0 %v10799_v56  ;;  %10181 = vmatprep.subr.bf16.mxu1 %v10800_v59  ;;  %v10832_v56 = vld [vmem:[%s14432_s5 + $0x3f0] sm:$0xff]  }
 0x64f   : >> { %4092 = vmatprep.mubr.bf16.mxu0 %v2733_v46  ;;  %4132 = vmatprep.mubr.bf16.mxu1 %v2735_v61  ;;  %v2739_v58 = vpack.c.bf16 %v2713_v50, %v2713_v50  ;;  %v10834_v59 = vld [vmem:[%s14432_s5 + $0x3b0] sm:$0xff]   ;;  %v10837_v46 = vld [vmem:[%s14432_s5 + $0x328] sm:$0xff]  }
 0x650   : >> { %v9473_v61 = vld [vmem:[%s12801_s1 + $0x14] sm:$0xf]  ;;  %v10869_v50 = vld [vmem:[%s14432_s5 + $0x428] sm:$0xff]  }
 0x651   : >> { %10160 = vmatpush3.bf16.msra.mxu0 %v10801_v60  ;;  %10182 = vmatpush3.bf16.msra.mxu1 %v10802_v63  ;;  %v10836_v60 = vld [vmem:[%s14432_s5 + $0x3e8] sm:$0xff]   ;;  %4280 = vst.msk [vmem:[#allocation9 + $0x8] sm:$0xf] %vm2528_vm14, %v9473_v61  ;;  %v10839_v63 = vld [vmem:[%s14432_s5 + $0x360] sm:$0xff]   ;;  %v10879_v61 = vld [vmem:[%s14432_s5 + $0x450] sm:$0xff]  }
 0x652   : >> { %10161 = vmatprep.subr.bf16.mxu0 %v10803_v21  ;;  %10183 = vmatprep.subr.bf16.mxu1 %v10804_v23  ;;  %4286 = vst.msk [vmem:[#allocation9 + $0x8] sm:$0xf] %vm2535_vm5, %v4284_v38  ;;  %v4308_v21 = vpop.permute.xlu1 %4307  ;;  %v10841_v23 = vld [vmem:[%s14432_s5 + $0x320] sm:$0xff]   ;;  %v2738_v38 = vpack.c.bf16 %v13106_v37, %v13106_v37  ;;  %v10864_v37 = vld [vmem:[%s14432_s5 + $0x70] sm:$0xff]  }
 0x655   : >> { %10162 = vmatpush3.bf16.msra.mxu0 %v10805_v27  ;;  %10184 = vmatpush3.bf16.msra.mxu1 %v10806_v3  ;;  %v9479_v27 = vld [vmem:[%s12801_s1 + $0x24] sm:$0xf]  ;;  %v10843_v3 = vld [vmem:[%s14432_s5 + $0x358] sm:$0xff]  }
 0x656   : >> { %10163 = vmatprep.subr.bf16.mxu0 %v10807_v29  ;;  %10185 = vmatprep.subr.bf16.mxu1 %v10808_v6  ;;  %4304 = vst.msk [vmem:[#allocation9 + $0x14] sm:$0xf] %vm2528_vm14, %v9479_v27  ;;  %v10845_v29 = vld [vmem:[%s14432_s5 + $0x318] sm:$0xff]   ;;  %v4324_v49 = vpop.permute.xlu1 %4323  ;;  %v10885_v27 = vld [vmem:[%s14432_s5 + $0x408] sm:$0xff]  }
 0x657   : >> { %4310 = vst.msk [vmem:[#allocation9 + $0x14] sm:$0xf] %vm2535_vm5, %v4308_v21  ;;  %v10846_v6 = vld [vmem:[%s14432_s5 + $0x398] sm:$0xff]   ;;  %v10883_v21 = vld [vmem:[%s14432_s5 + $0x448] sm:$0xff]  }
 0x659   : >> { %10164 = vmatpush3.bf16.msra.mxu0 %v10809_v7  ;;  %10186 = vmatpush3.bf16.msra.mxu1 %v10810_v10  ;;  %v10847_v7 = vld [vmem:[%s14432_s5 + $0x350] sm:$0xff]  }
 0x65a   : >> { %10165 = vmatprep.subr.bf16.mxu0 %v10811_v12  ;;  %10187 = vmatprep.subr.bf16.mxu1 %v10812_v16  ;;  %v10848_v10 = vld [vmem:[%s14432_s5 + $0x3d0] sm:$0xff]   ;;  %v10851_v16 = vld [vmem:[%s14432_s5 + $0x348] sm:$0xff]  }
 0x65b   : >> { %v10850_v12 = vld [vmem:[%s14432_s5 + $0x390] sm:$0xff]  }
 0x65d   : >> { %10166 = vmatpush3.bf16.msra.mxu0 %v10813_v17  ;;  %10188 = vmatpush3.bf16.msra.mxu1 %v10814_v19  ;;  %v10852_v17 = vld [vmem:[%s14432_s5 + $0x3c8] sm:$0xff]  }
 0x65e   : >> { %10167 = vmatprep.subr.bf16.mxu0 %v10815_v20  ;;  %10189 = vmatprep.subr.bf16.mxu1 %v10816_v26  ;;  %v10853_v19 = vld [vmem:[%s14432_s5 + $0x308] sm:$0xff]   ;;  %v10857_v26 = vld [vmem:[%s14432_s5 + $0x300] sm:$0xff]  }
 0x65f   : >> { %v10854_v20 = vld [vmem:[%s14432_s5 + $0x388] sm:$0xff]  }
 0x661   : >> { %10168 = vmatpush3.bf16.msra.mxu0 %v10817_v28  ;;  %10190 = vmatpush3.bf16.msra.mxu1 %v10818_v8  ;;  %v10858_v28 = vld [vmem:[%s14432_s5 + $0x380] sm:$0xff]   ;;  %v4316_v8 = vpop.permute.xlu0 %4315 }
 0x662   : >> { %10169 = vmatprep.subr.bf16.mxu0 %v10819_v22  ;;  %10191 = vmatprep.subr.bf16.mxu1 %v10820_v30  ;;  %v13365_v22 = vld [vmem:[#allocation9] sm:$0xff]  ;;  %4318 = vst.msk [vmem:[#allocation9 + $0x18] sm:$0xf] %vm2535_vm5, %v4316_v8  ;;  %v10897_v8 = vld [vmem:[%s14432_s5 + $0x170] sm:$0xff]  }
 0x663   : >> { %v10859_v30 = vld [vmem:[%s14432_s5 + $0x478] sm:$0xff]   ;;  %v4428_v35 = vcombine.high %v13365_v22, %v13365_v22 }
 0x665   : >> { %10170 = vmatpush3.bf16.msra.mxu0 %v10821_v33  ;;  %10192 = vmatpush3.bf16.msra.mxu1 %v10822_v36  ;;  %v2714_v33 = vcombine.high %v13197_v13, %v13197_v13  ;;  %v4332_v36 = vpop.permute.xlu0 %4331  ;;  %v4447_v44 = vpack.c.bf16 %v4428_v35, %v4428_v35 }
 0x666   : >> { %10171 = vmatprep.subr.bf16.mxu0 %v10823_v39  ;;  %10193 = vmatprep.subr.bf16.mxu1 %v10824_v40  ;;  %v10862_v39 = vld [vmem:[%s14432_s5 + $0x38] sm:$0xff]   ;;  %4334 = vst.msk [vmem:[#allocation9 + $0x20] sm:$0xf] %vm2535_vm5, %v4332_v36  ;;  %v10863_v40 = vld [vmem:[%s14432_s5 + $0x470] sm:$0xff]   ;;  %v10902_v36 = vld [vmem:[%s14432_s5 + $0xa8] sm:$0xff]  }
 0x669   : >> { %10172 = vmatpush3.bf16.msra.mxu0 %v10825_v41  ;;  %10194 = vmatpush3.bf16.msra.mxu1 %v10826_v42  ;;  %v2736_v41 = vpack.c.bf16 %v13086_v14, %v13086_v14  ;;  %v10865_v42 = vld [vmem:[%s14432_s5 + $0x430] sm:$0xff]   ;;  %v10867_v14 = vld [vmem:[%s14432_s5 + $0x468] sm:$0xff]  }
 0x66a   : >> { %10201 = vmatprep.subr.bf16.mxu0 %v10827_v43  ;;  %10223 = vmatprep.subr.bf16.mxu1 %v10828_v45  ;;  %v2741_v43 = vpack.c.bf16 %v2714_v33, %v2714_v33  ;;  %v10866_v45 = vld [vmem:[%s14432_s5 + $0x30] sm:$0xff]   ;;  %v10901_v33 = vld [vmem:[%s14432_s5 + $0x168] sm:$0xff]  }
 0x66c   : >> { %4093 = vmatmul.mubr.bf16.vlgmr.msra.gmra.mxu0 %v2732_v55  ;;  %4133 = vmatmul.mubr.bf16.vlgmr.msra.gmra.mxu1 %v2734_v51  ;;  %v10870_v51 = vld [vmem:[%s14432_s5 + $0x28] sm:$0xff]   ;;  %v10872_v55 = vld [vmem:[%s14432_s5 + $0x60] sm:$0xff]  }
 0x66d   : >> { %10202 = vmatpush3.bf16.msra.mxu0 %v10829_v47  ;;  %10224 = vmatpush3.bf16.msra.mxu1 %v10830_v53  ;;  %v10868_v47 = vld [vmem:[%s14432_s5 + $0x68] sm:$0xff]   ;;  %v9483_v53 = vld [vmem:[%s12801_s1 + $0x32] sm:$0xf] }
 0x66e   : >> { %10203 = vmatprep.subr.bf16.mxu0 %v10831_v54  ;;  %10225 = vmatprep.subr.bf16.mxu1 %v10832_v56  ;;  %v10871_v54 = vld [vmem:[%s14432_s5 + $0x460] sm:$0xff]   ;;  %4320 = vst.msk [vmem:[#allocation9 + $0x1c] sm:$0xf] %vm2528_vm14, %v9483_v53  ;;  %v10913_v53 = vld [vmem:[%s14432_s5 + $0x150] sm:$0xff]  }
 0x66f   : >> { %4172 = vmatprep.mubr.bf16.mxu0 %v2737_v57  ;;  %4212 = vmatprep.mubr.bf16.mxu1 %v2739_v58  ;;  %4326 = vst.msk [vmem:[#allocation9 + $0x1c] sm:$0xf] %vm2535_vm5, %v4324_v49  ;;  %v10873_v56 = vld [vmem:[%s14432_s5 + $0x420] sm:$0xff]   ;;  %v10875_v57 = vld [vmem:[%s14432_s5 + $0x458] sm:$0xff]   ;;  %v4340_v58 = vpop.permute.xlu1 %4339 }
 0x670   : >> { %v10910_v49 = vld [vmem:[%s14432_s5 + $0x98] sm:$0xff]  }
 0x671   : >> { %10204 = vmatpush3.bf16.msra.mxu0 %v10833_v18  ;;  %10226 = vmatpush3.bf16.msra.mxu1 %v10834_v59  ;;  %v10874_v18 = vld [vmem:[%s14432_s5 + $0x20] sm:$0xff]  }
 0x672   : >> { %10205 = vmatprep.subr.bf16.mxu0 %v10835_v5  ;;  %10227 = vmatprep.subr.bf16.mxu1 %v10836_v60  ;;  %v9487_v59 = vld [vmem:[%s12801_s1 + $0x40] sm:$0xf]  ;;  %v10876_v5 = vld [vmem:[%s14432_s5 + $0x58] sm:$0xff]  }
 0x673   : >> { %4336 = vst.msk [vmem:[#allocation9 + $0x24] sm:$0xf] %vm2528_vm14, %v9487_v59  ;;  %v10877_v60 = vld [vmem:[%s14432_s5 + $0x418] sm:$0xff]   ;;  %v10920_v59 = vld [vmem:[%s14432_s5 + $0xc0] sm:$0xff]  }
 0x674   : >> { %4342 = vst.msk [vmem:[#allocation9 + $0x24] sm:$0xf] %vm2535_vm5, %v4340_v58  ;;  %v10919_v58 = vld [vmem:[%s14432_s5 + $0x108] sm:$0xff]  }
 0x675   : >> { %10206 = vmatpush3.bf16.msra.mxu0 %v10837_v46  ;;  %10228 = vmatpush3.bf16.msra.mxu1 %v10838_v62  ;;  %v10878_v46 = vld [vmem:[%s14432_s5 + $0x18] sm:$0xff]   ;;  %v10880_v62 = vld [vmem:[%s14432_s5 + $0x50] sm:$0xff]  }
 0x676   : >> { %10207 = vmatprep.subr.bf16.mxu0 %v10839_v63  ;;  %10229 = vmatprep.subr.bf16.mxu1 %v10840_v48  ;;  %v10881_v63 = vld [vmem:[%s14432_s5 + $0x410] sm:$0xff]  }
 0x677   : >> { %v10882_v48 = vld [vmem:[%s14432_s5 + $0x10] sm:$0xff]  }
 0x679   : >> { %10208 = vmatpush3.bf16.msra.mxu0 %v10841_v23  ;;  %10230 = vmatpush3.bf16.msra.mxu1 %v10842_v52  ;;  %v10884_v23 = vld [vmem:[%s14432_s5 + $0x48] sm:$0xff]  }
 0x67a   : >> { %10209 = vmatprep.subr.bf16.mxu0 %v10843_v3  ;;  %10231 = vmatprep.subr.bf16.mxu1 %v10844_v4  ;;  %v10886_v52 = vld [vmem:[%s14432_s5 + $0x8] sm:$0xff]   ;;  %v10887_v3 = vld [vmem:[%s14432_s5 + $0x440] sm:$0xff]  }
 0x67b   : >> { %v10888_v4 = vld [vmem:[%s14432_s5 + $0x40] sm:$0xff]  }
 0x67d   : >> { %10210 = vmatpush3.bf16.msra.mxu0 %v10845_v29  ;;  %10232 = vmatpush3.bf16.msra.mxu1 %v10846_v6  ;;  %v10889_v29 = vld [vmem:[%s14432_s5 + $0x400] sm:$0xff]  }
 0x67e   : >> { %10211 = vmatprep.subr.bf16.mxu0 %v10847_v7  ;;  %10233 = vmatprep.subr.bf16.mxu1 %v10848_v10  ;;  %v10890_v6 = vld [vmem:[%s14432_s5] sm:$0xff]   ;;  %v13481_v10 = vld [vmem:[#allocation9 + $0x10] sm:$0xff] }
 0x67f   : >> { %v13479_v7 = vld [vmem:[#allocation9 + $0x8] sm:$0xff] }
 0x681   : >> { %10212 = vmatpush3.bf16.msra.mxu0 %v10849_v11  ;;  %10234 = vmatpush3.bf16.msra.mxu1 %v10850_v12  ;;  %v10892_v11 = vld [vmem:[%s14432_s5 + $0xf8] sm:$0xff]  }
 0x682   : >> { %10213 = vmatprep.subr.bf16.mxu0 %v10851_v16  ;;  %10235 = vmatprep.subr.bf16.mxu1 %v10852_v17  ;;  %v10893_v12 = vld [vmem:[%s14432_s5 + $0x178] sm:$0xff]   ;;  %v4429_v17 = vcombine.high %v13479_v7, %v13479_v7 }
 0x683   : >> { %v10894_v16 = vld [vmem:[%s14432_s5 + $0xb8] sm:$0xff]  }
 0x685   : >> { %10214 = vmatpush3.bf16.msra.mxu0 %v10853_v19  ;;  %10236 = vmatpush3.bf16.msra.mxu1 %v10854_v20  ;;  %v4430_v19 = vcombine.high %v13481_v10, %v13481_v10  ;;  %v4446_v20 = vpack.c.bf16 %v13365_v22, %v13365_v22  ;;  %v10898_v22 = vld [vmem:[%s14432_s5 + $0xb0] sm:$0xff]  }
 0x686   : >> { %10215 = vmatprep.subr.bf16.mxu0 %v10855_v24  ;;  %10237 = vmatprep.subr.bf16.mxu1 %v10856_v25  ;;  %v10895_v24 = vld [vmem:[%s14432_s5 + $0x138] sm:$0xff]   ;;  %v10896_v25 = vld [vmem:[%s14432_s5 + $0xf0] sm:$0xff]  }
 0x689   : >> { %10216 = vmatpush3.bf16.msra.mxu0 %v10857_v26  ;;  %10238 = vmatpush3.bf16.msra.mxu1 %v10858_v28  ;;  %v4348_v26 = vpop.permute.xlu0 %4347  ;;  %v2740_v28 = vpack.c.bf16 %v13197_v13, %v13197_v13  ;;  %v10899_v13 = vld [vmem:[%s14432_s5 + $0x130] sm:$0xff]  }
 0x68a   : >> { %10245 = vmatprep.subr.bf16.mxu0 %v10859_v30  ;;  %10267 = vmatprep.subr.bf16.mxu1 %v10860_v31  ;;  %4350 = vst.msk [vmem:[#allocation9 + $0x28] sm:$0xf] %vm2535_vm5, %v4348_v26  ;;  %v4449_v30 = vpack.c.bf16 %v4429_v17, %v4429_v17  ;;  %v4451_v31 = vpack.c.bf16 %v4430_v19, %v4430_v19  ;;  %v10935_v19 = vld [vmem:[%s14432_s5 + $0x268] sm:$0xff]   ;;  %v10938_v26 = vld [vmem:[%s14432_s5 + $0x1e0] sm:$0xff]  }
 0x68c   : >> { %4173 = vmatmul.mubr.bf16.vlgmr.msra.gmra.mxu0 %v2736_v41  ;;  %4213 = vmatmul.mubr.bf16.vlgmr.msra.gmra.mxu1 %v2738_v38  ;;  %v10903_v38 = vld [vmem:[%s14432_s5 + $0x128] sm:$0xff]   ;;  %v10905_v41 = vld [vmem:[%s14432_s5 + $0x160] sm:$0xff]  }
 0x68d   : >> { %10246 = vmatpush3.bf16.msra.mxu0 %v10861_v32  ;;  %10268 = vmatpush3.bf16.msra.mxu1 %v10862_v39  ;;  %v10900_v32 = vld [vmem:[%s14432_s5 + $0xe8] sm:$0xff]   ;;  %v4356_v39 = vpop.permute.xlu1 %4355 }
 0x68e   : >> { %10247 = vmatprep.subr.bf16.mxu0 %v10863_v40  ;;  %10269 = vmatprep.subr.bf16.mxu1 %v10864_v37  ;;  %v10904_v40 = vld [vmem:[%s14432_s5 + $0xe0] sm:$0xff]  }
 0x68f   : >> { %4252 = vmatprep.mubr.bf16.mxu0 %v2741_v43  ;;  %5648 = vmatprep.mubr.bf16.mxu1 %v4447_v44  ;;  %v9491_v37 = vld [vmem:[%s12801_s1 + $0x44] sm:$0xf]  ;;  %v10908_v44 = vld [vmem:[%s14432_s5 + $0xd8] sm:$0xff]  }
 0x690   : >> { %4352 = vst.msk [vmem:[#allocation9 + $0x2c] sm:$0xf] %vm2528_vm14, %v9491_v37  ;;  %v10907_v43 = vld [vmem:[%s14432_s5 + $0x120] sm:$0xff]   ;;  %v10949_v37 = vld [vmem:[%s14432_s5 + $0x210] sm:$0xff]  }
 0x691   : >> { %10248 = vmatpush3.bf16.msra.mxu0 %v10865_v42  ;;  %10270 = vmatpush3.bf16.msra.mxu1 %v10866_v45  ;;  %v10906_v42 = vld [vmem:[%s14432_s5 + $0xa0] sm:$0xff]   ;;  %4358 = vst.msk [vmem:[#allocation9 + $0x2c] sm:$0xf] %vm2535_vm5, %v4356_v39  ;;  %v4372_v45 = vpop.permute.xlu1 %4371  ;;  %v10946_v39 = vld [vmem:[%s14432_s5 + $0x1d0] sm:$0xff]  }
 0x692   : >> { %10249 = vmatprep.subr.bf16.mxu0 %v10867_v14  ;;  %10271 = vmatprep.subr.bf16.mxu1 %v10868_v47  ;;  %v10909_v14 = vld [vmem:[%s14432_s5 + $0x158] sm:$0xff]   ;;  %v9495_v47 = vld [vmem:[%s12801_s1 + $0x52] sm:$0xf] }
 0x693   : >> { %4368 = vst.msk [vmem:[#allocation9 + $0x34] sm:$0xf] %vm2528_vm14, %v9495_v47  ;;  %v10955_v47 = vld [vmem:[%s14432_s5 + $0x240] sm:$0xff]  }
 0x694   : >> { %4374 = vst.msk [vmem:[#allocation9 + $0x34] sm:$0xf] %vm2535_vm5, %v4372_v45  ;;  %v10953_v45 = vld [vmem:[%s14432_s5 + $0x208] sm:$0xff]  }
 0x695   : >> { %10250 = vmatpush3.bf16.msra.mxu0 %v10869_v50  ;;  %10272 = vmatpush3.bf16.msra.mxu1 %v10870_v51  ;;  %v10911_v50 = vld [vmem:[%s14432_s5 + $0x118] sm:$0xff]   ;;  %v10912_v51 = vld [vmem:[%s14432_s5 + $0xd0] sm:$0xff]  }
 0x696   : >> { %10251 = vmatprep.subr.bf16.mxu0 %v10871_v54  ;;  %10273 = vmatprep.subr.bf16.mxu1 %v10872_v55  ;;  %v10914_v54 = vld [vmem:[%s14432_s5 + $0x90] sm:$0xff]  }
 0x697   : >> { %v10915_v55 = vld [vmem:[%s14432_s5 + $0x110] sm:$0xff]  }
 0x699   : >> { %10252 = vmatpush3.bf16.msra.mxu0 %v10873_v56  ;;  %10274 = vmatpush3.bf16.msra.mxu1 %v10874_v18  ;;  %v10916_v56 = vld [vmem:[%s14432_s5 + $0xc8] sm:$0xff]  }
 0x69a   : >> { %10253 = vmatprep.subr.bf16.mxu0 %v10875_v57  ;;  %10275 = vmatprep.subr.bf16.mxu1 %v10876_v5  ;;  %v10917_v18 = vld [vmem:[%s14432_s5 + $0x148] sm:$0xff]   ;;  %v10921_v5 = vld [vmem:[%s14432_s5 + $0x140] sm:$0xff]  }
 0x69b   : >> { %v10918_v57 = vld [vmem:[%s14432_s5 + $0x88] sm:$0xff]  }
 0x69c   : >> { %v4364_v35 = vpop.permute.xlu0 %4363 }
 0x69d   : >> { %10254 = vmatpush3.bf16.msra.mxu0 %v10877_v60  ;;  %10276 = vmatpush3.bf16.msra.mxu1 %v10878_v46  ;;  %4366 = vst.msk [vmem:[#allocation9 + $0x30] sm:$0xf] %vm2535_vm5, %v4364_v35  ;;  %v10922_v60 = vld [vmem:[%s14432_s5 + $0x80] sm:$0xff]   ;;  %v10944_v35 = vld [vmem:[%s14432_s5 + $0x198] sm:$0xff]  }
 0x69e   : >> { %10255 = vmatprep.subr.bf16.mxu0 %v10879_v61  ;;  %10277 = vmatprep.subr.bf16.mxu1 %v10880_v62  ;;  %v10923_v46 = vld [vmem:[%s14432_s5 + $0x100] sm:$0xff]   ;;  %v13595_v61 = vld [vmem:[#allocation9 + $0x18] sm:$0xff]  ;;  %v13597_v62 = vld [vmem:[#allocation9 + $0x20] sm:$0xff] }
 0x6a1   : >> { %10256 = vmatpush3.bf16.msra.mxu0 %v10881_v63  ;;  %10278 = vmatpush3.bf16.msra.mxu1 %v10882_v48  ;;  %v10926_v63 = vld [vmem:[%s14432_s5 + $0x1f8] sm:$0xff]  }
 0x6a2   : >> { %10257 = vmatprep.subr.bf16.mxu0 %v10883_v21  ;;  %10279 = vmatprep.subr.bf16.mxu1 %v10884_v23  ;;  %v10927_v48 = vld [vmem:[%s14432_s5 + $0x278] sm:$0xff]   ;;  %v4431_v23 = vcombine.high %v13595_v61, %v13595_v61 }
 0x6a3   : >> { %v10928_v21 = vld [vmem:[%s14432_s5 + $0x1b8] sm:$0xff]  }
 0x6a5   : >> { %10258 = vmatpush3.bf16.msra.mxu0 %v10885_v27  ;;  %10280 = vmatpush3.bf16.msra.mxu1 %v10886_v52  ;;  %v4432_v27 = vcombine.high %v13597_v62, %v13597_v62  ;;  %v4450_v52 = vpack.c.bf16 %v13481_v10, %v13481_v10  ;;  %v10932_v10 = vld [vmem:[%s14432_s5 + $0x1b0] sm:$0xff]  }
 0x6a6   : >> { %10259 = vmatprep.subr.bf16.mxu0 %v10887_v3  ;;  %10281 = vmatprep.subr.bf16.mxu1 %v10888_v4  ;;  %v10929_v3 = vld [vmem:[%s14432_s5 + $0x238] sm:$0xff]   ;;  %v10930_v4 = vld [vmem:[%s14432_s5 + $0x1f0] sm:$0xff]  }
 0x6a9   : >> { %10260 = vmatpush3.bf16.msra.mxu0 %v10889_v29  ;;  %10282 = vmatpush3.bf16.msra.mxu1 %v10890_v6  ;;  %v4448_v29 = vpack.c.bf16 %v13479_v7, %v13479_v7  ;;  %v10931_v6 = vld [vmem:[%s14432_s5 + $0x270] sm:$0xff]   ;;  %v10934_v7 = vld [vmem:[%s14432_s5 + $0x1e8] sm:$0xff]  }
 0x6aa   : >> { %10289 = vmatprep.subr.bf16.mxu0 %v10892_v11  ;;  %10311 = vmatprep.subr.bf16.mxu1 %v10893_v12  ;;  %v4453_v11 = vpack.c.bf16 %v4431_v23, %v4431_v23  ;;  %v4455_v12 = vpack.c.bf16 %v4432_v27, %v4432_v27  ;;  %v10967_v23 = vld [vmem:[%s14432_s5 + $0x330] sm:$0xff]  }
 0x6ac   : >> { %4253 = vmatmul.mubr.bf16.vlgmr.msra.gmra.mxu0 %v2740_v28  ;;  %5649 = vmatmul.mubr.bf16.vlgmr.msra.gmra.mxu1 %v4446_v20  ;;  %v10936_v20 = vld [vmem:[%s14432_s5 + $0x1a8] sm:$0xff]  }
 0x6ad   : >> { %10290 = vmatpush3.bf16.msra.mxu0 %v10894_v16  ;;  %10312 = vmatpush3.bf16.msra.mxu1 %v10895_v24  ;;  %v10933_v16 = vld [vmem:[%s14432_s5 + $0x230] sm:$0xff]   ;;  %v10937_v24 = vld [vmem:[%s14432_s5 + $0x228] sm:$0xff]  }
 0x6ae   : >> { %10291 = vmatprep.subr.bf16.mxu0 %v10896_v25  ;;  %10313 = vmatprep.subr.bf16.mxu1 %v10897_v8  ;;  %v10939_v8 = vld [vmem:[%s14432_s5 + $0x260] sm:$0xff]  }
 0x6af   : >> { %5688 = vmatprep.mubr.bf16.mxu0 %v4449_v30  ;;  %5728 = vmatprep.mubr.bf16.mxu1 %v4451_v31  ;;  %v9501_v30 = vld [vmem:[%s12801_s1 + $0x60] sm:$0xf] }
 0x6b0   : >> { %v10941_v31 = vld [vmem:[%s14432_s5 + $0x220] sm:$0xff]   ;;  %4387 = vst.msk [vmem:[#allocation9 + $0x3c] sm:$0xf] %vm2528_vm14, %v9501_v30  ;;  %v10978_v30 = vld [vmem:[%s14432_s5 + $0x298] sm:$0xff]  }
 0x6b1   : >> { %10292 = vmatpush3.bf16.msra.mxu0 %v10898_v22  ;;  %10314 = vmatpush3.bf16.msra.mxu1 %v10899_v13  ;;  %v4380_v17 = vpop.permute.xlu0 %4379  ;;  %v4391_v25 = vpop.permute.xlu1 %4390  ;;  %v10940_v22 = vld [vmem:[%s14432_s5 + $0x1a0] sm:$0xff]   ;;  %v10942_v13 = vld [vmem:[%s14432_s5 + $0x1d8] sm:$0xff]  }
 0x6b2   : >> { %10293 = vmatprep.subr.bf16.mxu0 %v10900_v32  ;;  %10315 = vmatprep.subr.bf16.mxu1 %v10901_v33  ;;  %4382 = vst.msk [vmem:[#allocation9 + $0x38] sm:$0xf] %vm2535_vm5, %v4380_v17  ;;  %4393 = vst.msk [vmem:[#allocation9 + $0x3c] sm:$0xf] %vm2535_vm5, %v4391_v25  ;;  %v10943_v32 = vld [vmem:[%s14432_s5 + $0x258] sm:$0xff]  }
 0x6b5   : >> { %10294 = vmatpush3.bf16.msra.mxu0 %v10902_v36  ;;  %10316 = vmatpush3.bf16.msra.mxu1 %v10903_v38  ;;  %v4399_v28 = vpop.permute.xlu0 %4398  ;;  %v4407_v33 = vpop.permute.xlu1 %4406  ;;  %v9505_v36 = vld [vmem:[%s12801_s1 + $0x64] sm:$0xf]  ;;  %v10945_v38 = vld [vmem:[%s14432_s5 + $0x218] sm:$0xff]  }
 0x6b6   : >> { %10295 = vmatprep.subr.bf16.mxu0 %v10904_v40  ;;  %10317 = vmatprep.subr.bf16.mxu1 %v10905_v41  ;;  %4401 = vst.msk [vmem:[#allocation9 + $0x40] sm:$0xf] %vm2535_vm5, %v4399_v28  ;;  %v10947_v40 = vld [vmem:[%s14432_s5 + $0x250] sm:$0xff]   ;;  %v10975_v28 = vld [vmem:[%s14432_s5 + $0x320] sm:$0xff]  }
 0x6b7   : >> { %4403 = vst.msk [vmem:[#allocation9 + $0x44] sm:$0xf] %vm2528_vm14, %v9505_v36  ;;  %v10948_v41 = vld [vmem:[%s14432_s5 + $0x190] sm:$0xff]   ;;  %v10984_v36 = vld [vmem:[%s14432_s5 + $0x2c8] sm:$0xff]  }
 0x6b8   : >> { %4409 = vst.msk [vmem:[#allocation9 + $0x44] sm:$0xf] %vm2535_vm5, %v4407_v33  ;;  %v10982_v33 = vld [vmem:[%s14432_s5 + $0x290] sm:$0xff]  }
 0x6b9   : >> { %10296 = vmatpush3.bf16.msra.mxu0 %v10906_v42  ;;  %10318 = vmatpush3.bf16.msra.mxu1 %v10907_v43  ;;  %v10950_v42 = vld [vmem:[%s14432_s5 + $0x1c8] sm:$0xff]  }
 0x6ba   : >> { %10297 = vmatprep.subr.bf16.mxu0 %v10908_v44  ;;  %10319 = vmatprep.subr.bf16.mxu1 %v10909_v14  ;;  %v10951_v43 = vld [vmem:[%s14432_s5 + $0x248] sm:$0xff]   ;;  %v10954_v14 = vld [vmem:[%s14432_s5 + $0x1c0] sm:$0xff]  }
 0x6bb   : >> { %v10952_v44 = vld [vmem:[%s14432_s5 + $0x188] sm:$0xff]  }
 0x6bd   : >> { %10298 = vmatpush3.bf16.msra.mxu0 %v10910_v49  ;;  %10320 = vmatpush3.bf16.msra.mxu1 %v10911_v50  ;;  %v13705_v49 = vld [vmem:[#allocation9 + $0x28] sm:$0xff]  ;;  %v13707_v50 = vld [vmem:[#allocation9 + $0x30] sm:$0xff] }
 0x6be   : >> { %10299 = vmatprep.subr.bf16.mxu0 %v10912_v51  ;;  %10321 = vmatprep.subr.bf16.mxu1 %v10913_v53  ;;  %v10956_v51 = vld [vmem:[%s14432_s5 + $0x180] sm:$0xff]  }
 0x6bf   : >> { %v10957_v53 = vld [vmem:[%s14432_s5 + $0x200] sm:$0xff]  }
 0x6c1   : >> { %10300 = vmatpush3.bf16.msra.mxu0 %v10914_v54  ;;  %10322 = vmatpush3.bf16.msra.mxu1 %v10915_v55  ;;  %v10960_v54 = vld [vmem:[%s14432_s5 + $0x2f8] sm:$0xff]  }
 0x6c2   : >> { %10301 = vmatprep.subr.bf16.mxu0 %v10916_v56  ;;  %10323 = vmatprep.subr.bf16.mxu1 %v10917_v18  ;;  %v10961_v55 = vld [vmem:[%s14432_s5 + $0x378] sm:$0xff]   ;;  %v4433_v56 = vcombine.high %v13705_v49, %v13705_v49  ;;  %v4434_v18 = vcombine.high %v13707_v50, %v13707_v50 }
 0x6c5   : >> { %10302 = vmatpush3.bf16.msra.mxu0 %v10918_v57  ;;  %10324 = vmatpush3.bf16.msra.mxu1 %v10919_v58  ;;  %v4454_v57 = vpack.c.bf16 %v13597_v62, %v13597_v62  ;;  %v10962_v58 = vld [vmem:[%s14432_s5 + $0x2b8] sm:$0xff]   ;;  %v4457_v62 = vpack.c.bf16 %v4433_v56, %v4433_v56 }
 0x6c6   : >> { %10303 = vmatprep.subr.bf16.mxu0 %v10920_v59  ;;  %10325 = vmatprep.subr.bf16.mxu1 %v10921_v5  ;;  %v10963_v59 = vld [vmem:[%s14432_s5 + $0x338] sm:$0xff]   ;;  %v4452_v5 = vpack.c.bf16 %v13595_v61, %v13595_v61  ;;  %v10966_v61 = vld [vmem:[%s14432_s5 + $0x2b0] sm:$0xff]  }
 0x6c7   : >> { %v10997_v56 = vld [vmem:[%s14432_s5 + $0x438] sm:$0xff]  }
 0x6c9   : >> { %10304 = vmatpush3.bf16.msra.mxu0 %v10922_v60  ;;  %10326 = vmatpush3.bf16.msra.mxu1 %v10923_v46  ;;  %v10964_v60 = vld [vmem:[%s14432_s5 + $0x2f0] sm:$0xff]  }
 0x6ca   : >> { %10333 = vmatprep.subr.bf16.mxu0 %v10926_v63  ;;  %10355 = vmatprep.subr.bf16.mxu1 %v10927_v48  ;;  %v10965_v46 = vld [vmem:[%s14432_s5 + $0x370] sm:$0xff]   ;;  %v4459_v63 = vpack.c.bf16 %v4434_v18, %v4434_v18  ;;  %v4456_v18 = vpack.c.bf16 %v13705_v49, %v13705_v49 }
 0x6cb   : >> { %v11000_v49 = vld [vmem:[%s14432_s5 + $0x3b0] sm:$0xff]  }
 0x6cc   : >> { %5689 = vmatmul.mubr.bf16.vlgmr.msra.gmra.mxu0 %v4448_v29  ;;  %5729 = vmatmul.mubr.bf16.vlgmr.msra.gmra.mxu1 %v4450_v52 }
 0x6cd   : >> { %10334 = vmatpush3.bf16.msra.mxu0 %v10928_v21  ;;  %10356 = vmatpush3.bf16.msra.mxu1 %v10929_v3  ;;  %v10968_v3 = vld [vmem:[%s14432_s5 + $0x2e8] sm:$0xff]  }
 0x6ce   : >> { %10335 = vmatprep.subr.bf16.mxu0 %v10930_v4  ;;  %10357 = vmatprep.subr.bf16.mxu1 %v10931_v6  ;;  %v10969_v4 = vld [vmem:[%s14432_s5 + $0x368] sm:$0xff]  }
 0x6cf   : >> { %5768 = vmatprep.mubr.bf16.mxu0 %v4453_v11  ;;  %5808 = vmatprep.mubr.bf16.mxu1 %v4455_v12 }
 0x6d1   : >> { %10336 = vmatpush3.bf16.msra.mxu0 %v10932_v10  ;;  %10358 = vmatpush3.bf16.msra.mxu1 %v10933_v16  ;;  %v10970_v16 = vld [vmem:[%s14432_s5 + $0x2a8] sm:$0xff]  }
 0x6d2   : >> { %10337 = vmatprep.subr.bf16.mxu0 %v10934_v7  ;;  %10359 = vmatprep.subr.bf16.mxu1 %v10935_v19  ;;  %v10971_v7 = vld [vmem:[%s14432_s5 + $0x328] sm:$0xff]  }
 0x6d5   : >> { %10338 = vmatpush3.bf16.msra.mxu0 %v10936_v20  ;;  %10360 = vmatpush3.bf16.msra.mxu1 %v10937_v24  ;;  %v10972_v20 = vld [vmem:[%s14432_s5 + $0x2e0] sm:$0xff]  }
 0x6d6   : >> { %10339 = vmatprep.subr.bf16.mxu0 %v10938_v26  ;;  %10361 = vmatprep.subr.bf16.mxu1 %v10939_v8  ;;  %v10973_v24 = vld [vmem:[%s14432_s5 + $0x360] sm:$0xff]   ;;  %v10976_v8 = vld [vmem:[%s14432_s5 + $0x2d8] sm:$0xff]  }
 0x6d7   : >> { %v10974_v26 = vld [vmem:[%s14432_s5 + $0x2a0] sm:$0xff]  }
 0x6d9   : >> { %10340 = vmatpush3.bf16.msra.mxu0 %v10940_v22  ;;  %10362 = vmatpush3.bf16.msra.mxu1 %v10941_v31  ;;  %v10977_v22 = vld [vmem:[%s14432_s5 + $0x358] sm:$0xff]  }
 0x6da   : >> { %10341 = vmatprep.subr.bf16.mxu0 %v10942_v13  ;;  %10363 = vmatprep.subr.bf16.mxu1 %v10943_v32  ;;  %v10979_v31 = vld [vmem:[%s14432_s5 + $0x318] sm:$0xff]   ;;  %v10980_v13 = vld [vmem:[%s14432_s5 + $0x2d0] sm:$0xff]  }
 0x6db   : >> { %v10981_v32 = vld [vmem:[%s14432_s5 + $0x350] sm:$0xff]  }
 0x6dd   : >> { %10342 = vmatpush3.bf16.msra.mxu0 %v10944_v35  ;;  %10364 = vmatpush3.bf16.msra.mxu1 %v10945_v38  ;;  %v10983_v35 = vld [vmem:[%s14432_s5 + $0x310] sm:$0xff]   ;;  %v10985_v38 = vld [vmem:[%s14432_s5 + $0x348] sm:$0xff]  }
 0x6de   : >> { %10343 = vmatprep.subr.bf16.mxu0 %v10946_v39  ;;  %10365 = vmatprep.subr.bf16.mxu1 %v10947_v40  ;;  %v10986_v39 = vld [vmem:[%s14432_s5 + $0x288] sm:$0xff]  }
 0x6df   : >> { %v10987_v40 = vld [vmem:[%s14432_s5 + $0x308] sm:$0xff]  }
 0x6e1   : >> { %10344 = vmatpush3.bf16.msra.mxu0 %v10948_v41  ;;  %10366 = vmatpush3.bf16.msra.mxu1 %v10949_v37  ;;  %v10988_v41 = vld [vmem:[%s14432_s5 + $0x2c0] sm:$0xff]  }
 0x6e2   : >> { %10345 = vmatprep.subr.bf16.mxu0 %v10950_v42  ;;  %10367 = vmatprep.subr.bf16.mxu1 %v10951_v43  ;;  %v10989_v37 = vld [vmem:[%s14432_s5 + $0x340] sm:$0xff]   ;;  %v13816_v42 = vld [vmem:[#allocation9 + $0x38] sm:$0xff]  ;;  %v13818_v43 = vld [vmem:[#allocation9 + $0x40] sm:$0xff] }
 0x6e5   : >> { %10346 = vmatpush3.bf16.msra.mxu0 %v10952_v44  ;;  %10368 = vmatpush3.bf16.msra.mxu1 %v10953_v45  ;;  %v10990_v44 = vld [vmem:[%s14432_s5 + $0x280] sm:$0xff]  }
 0x6e6   : >> { %10347 = vmatprep.subr.bf16.mxu0 %v10954_v14  ;;  %10369 = vmatprep.subr.bf16.mxu1 %v10955_v47  ;;  %v10991_v45 = vld [vmem:[%s14432_s5 + $0x300] sm:$0xff]   ;;  %v10994_v14 = vld [vmem:[%s14432_s5 + $0x3f8] sm:$0xff]  }
 0x6e7   : >> { %v10995_v47 = vld [vmem:[%s14432_s5 + $0x478] sm:$0xff]  }
 0x6e9   : >> { %10348 = vmatpush3.bf16.msra.mxu0 %v10956_v51  ;;  %10370 = vmatpush3.bf16.msra.mxu1 %v10957_v53  ;;  %v4435_v51 = vcombine.high %v13816_v42, %v13816_v42  ;;  %v4436_v53 = vcombine.high %v13818_v43, %v13818_v43 }
 0x6ea   : >> { %10377 = vmatprep.subr.bf16.mxu0 %v10960_v54  ;;  %10399 = vmatprep.subr.bf16.mxu1 %v10961_v55  ;;  %v4458_v54 = vpack.c.bf16 %v13707_v50, %v13707_v50  ;;  %v10996_v55 = vld [vmem:[%s14432_s5 + $0x3b8] sm:$0xff]   ;;  %v10999_v50 = vld [vmem:[%s14432_s5 + $0x470] sm:$0xff]  }
 0x6ec   : >> { %5769 = vmatmul.mubr.bf16.vlgmr.msra.gmra.mxu0 %v4452_v5  ;;  %5809 = vmatmul.mubr.bf16.vlgmr.msra.gmra.mxu1 %v4454_v57  ;;  %v10085_v48 = vpop.f32.mrf.mxu0  ;;  %v10107_v21 = vpop.f32.mrf.mxu1  ;;  %v10998_v57 = vld [vmem:[%s14432_s5 + $0x3f0] sm:$0xff]  }
 0x6ed   : >> { %10378 = vmatpush3.bf16.msra.mxu0 %v10962_v58  ;;  %10400 = vmatpush3.bf16.msra.mxu1 %v10963_v59  ;;  %v4461_v58 = vpack.c.bf16 %v4435_v51, %v4435_v51  ;;  %v4463_v59 = vpack.c.bf16 %v4436_v53, %v4436_v53 }
 0x6ee   : >> { %v10086_v27 = vpop.f32.mrf.mxu0  ;;  %v10108_v52 = vpop.f32.mrf.mxu1  ;;  %10379 = vmatprep.subr.bf16.mxu0 %v10964_v60  ;;  %10401 = vmatprep.subr.bf16.mxu1 %v10965_v46  ;;  %v11001_v46 = vld [vmem:[%s14432_s5 + $0x430] sm:$0xff]  }
 0x6ef   : >> { %v10087_v29 = vadd.f32 %v10086_v27, %v10085_v48  ;;  %v10109_v6 = vadd.f32 %v10108_v52, %v10107_v21  ;;  %5848 = vmatprep.mubr.bf16.mxu0 %v4457_v62  ;;  %5888 = vmatprep.mubr.bf16.mxu1 %v4459_v63  ;;  %v11002_v48 = vld [vmem:[%s14432_s5 + $0x3e8] sm:$0xff]  }
 0x6f0   : >> { %v10088_v10 = vpop.f32.mrf.mxu0  ;;  %v10110_v11 = vpop.f32.mrf.mxu1  ;;  %v11003_v21 = vld [vmem:[%s14432_s5 + $0x468] sm:$0xff]  }
 0x6f1   : >> { %v3935_v12 = vadd.f32 %v10087_v29, %v12781_v34  ;;  %10380 = vmatpush3.bf16.msra.mxu0 %v10966_v61  ;;  %10402 = vmatpush3.bf16.msra.mxu1 %v10967_v23  ;;  %v11005_v29 = vld [vmem:[%s14432_s5 + $0x428] sm:$0xff]   ;;  %v11006_v11 = vld [vmem:[%s14432_s5 + $0x3e0] sm:$0xff]  }
 0x6f2   : >> { %v10089_v17 = vpop.f32.mrf.mxu0  ;;  %v10111_v19 = vpop.f32.mrf.mxu1  ;;  %10381 = vmatprep.subr.bf16.mxu0 %v10968_v3  ;;  %10403 = vmatprep.subr.bf16.mxu1 %v10969_v4  ;;  %v11004_v4 = vld [vmem:[%s14432_s5 + $0x3a8] sm:$0xff]  }
 0x6f3   : >> { %v13766_v25 = vadd.f32 %v10109_v6, %v3935_v12  ;;  %v11007_v12 = vld [vmem:[%s14432_s5 + $0x460] sm:$0xff]   ;;  %v11010_v19 = vld [vmem:[%s14432_s5 + $0x3d8] sm:$0xff]  }
 0x6f4   : >> { %v11009_v17 = vld [vmem:[%s14432_s5 + $0x420] sm:$0xff]  }
 0x6f5   : >> { %10382 = vmatpush3.bf16.msra.mxu0 %v10970_v16  ;;  %10404 = vmatpush3.bf16.msra.mxu1 %v10971_v7  ;;  %v11008_v7 = vld [vmem:[%s14432_s5 + $0x3a0] sm:$0xff]  }
 0x6f6   : >> { %10383 = vmatprep.subr.bf16.mxu0 %v10972_v20  ;;  %10405 = vmatprep.subr.bf16.mxu1 %v10973_v24  ;;  %v11011_v20 = vld [vmem:[%s14432_s5 + $0x458] sm:$0xff]  }
 0x6f7   : >> { %v11012_v24 = vld [vmem:[%s14432_s5 + $0x398] sm:$0xff]  }
 0x6f9   : >> { %10384 = vmatpush3.bf16.msra.mxu0 %v10974_v26  ;;  %10406 = vmatpush3.bf16.msra.mxu1 %v10975_v28  ;;  %v11014_v26 = vld [vmem:[%s14432_s5 + $0x3d0] sm:$0xff]  }
 0x6fa   : >> { %10385 = vmatprep.subr.bf16.mxu0 %v10976_v8  ;;  %10407 = vmatprep.subr.bf16.mxu1 %v10977_v22  ;;  %v11015_v28 = vld [vmem:[%s14432_s5 + $0x450] sm:$0xff]  }
 0x6fb   : >> { %v11016_v8 = vld [vmem:[%s14432_s5 + $0x390] sm:$0xff]  }
 0x6fc   : >> { %v11017_v22 = vld [vmem:[%s14432_s5 + $0x410] sm:$0xff]  }
 0x6fd   : >> { %10386 = vmatpush3.bf16.msra.mxu0 %v10978_v30  ;;  %10408 = vmatpush3.bf16.msra.mxu1 %v10979_v31  ;;  %v11018_v30 = vld [vmem:[%s14432_s5 + $0x3c8] sm:$0xff]  }
 0x6fe   : >> { %10387 = vmatprep.subr.bf16.mxu0 %v10980_v13  ;;  %10409 = vmatprep.subr.bf16.mxu1 %v10981_v32  ;;  %v11019_v31 = vld [vmem:[%s14432_s5 + $0x448] sm:$0xff]  }
 0x6ff   : >> { %v11020_v13 = vld [vmem:[%s14432_s5 + $0x388] sm:$0xff]  }
 0x700   : >> { %v11021_v32 = vld [vmem:[%s14432_s5 + $0x408] sm:$0xff]  }
 0x701   : >> { %10388 = vmatpush3.bf16.msra.mxu0 %v10982_v33  ;;  %10410 = vmatpush3.bf16.msra.mxu1 %v10983_v35  ;;  %v11022_v33 = vld [vmem:[%s14432_s5 + $0x3c0] sm:$0xff]  }
 0x702   : >> { %10389 = vmatprep.subr.bf16.mxu0 %v10984_v36  ;;  %10411 = vmatprep.subr.bf16.mxu1 %v10985_v38  ;;  %v11023_v35 = vld [vmem:[%s14432_s5 + $0x440] sm:$0xff]  }
 0x703   : >> { %v11024_v36 = vld [vmem:[%s14432_s5 + $0x380] sm:$0xff]  }
 0x704   : >> { %v11026_v38 = vld [vmem:[%s14432_s5 + $0x400] sm:$0xff]  }
 0x705   : >> { %10390 = vmatpush3.bf16.msra.mxu0 %v10986_v39  ;;  %10412 = vmatpush3.bf16.msra.mxu1 %v10987_v40  ;;  %v4462_v39 = vpack.c.bf16 %v13818_v43, %v13818_v43  ;;  %v4460_v40 = vpack.c.bf16 %v13816_v42, %v13816_v42 }
 0x706   : >> { %10391 = vmatprep.subr.bf16.mxu0 %v10988_v41  ;;  %10413 = vmatprep.subr.bf16.mxu1 %v10989_v37 }
 0x709   : >> { %10392 = vmatpush3.bf16.msra.mxu0 %v10990_v44  ;;  %10414 = vmatpush3.bf16.msra.mxu1 %v10991_v45 }
 0x70a   : >> { %10421 = vmatprep.subr.bf16.mxu0 %v10994_v14  ;;  %10443 = vmatprep.subr.bf16.mxu1 %v10995_v47 }
 0x70c   : >> { %v10129_v5 = vpop.f32.mrf.mxu0  ;;  %v10151_v60 = vpop.f32.mrf.mxu1  ;;  %5849 = vmatmul.mubr.bf16.vlgmr.msra.gmra.mxu0 %v4456_v18  ;;  %5889 = vmatmul.mubr.bf16.vlgmr.msra.gmra.mxu1 %v4458_v54 }
 0x70d   : >> { %10422 = vmatpush3.bf16.msra.mxu0 %v10996_v55  ;;  %10444 = vmatpush3.bf16.msra.mxu1 %v10997_v56 }
 0x70e   : >> { %v10130_v62 = vpop.f32.mrf.mxu0  ;;  %v10152_v63 = vpop.f32.mrf.mxu1  ;;  %10423 = vmatprep.subr.bf16.mxu0 %v10998_v57  ;;  %10445 = vmatprep.subr.bf16.mxu1 %v10999_v50 }
 0x70f   : >> { %v10131_v61 = vadd.f32 %v10130_v62, %v10129_v5  ;;  %v10153_v23 = vadd.f32 %v10152_v63, %v10151_v60  ;;  %5928 = vmatprep.mubr.bf16.mxu0 %v4461_v58  ;;  %5968 = vmatprep.mubr.bf16.mxu1 %v4463_v59 }
 0x710   : >> { %v10132_v27 = vpop.f32.mrf.mxu0  ;;  %v10154_v52 = vpop.f32.mrf.mxu1 }
 0x711   : >> { %v4015_v3 = vadd.f32 %v10131_v61, %v13766_v25  ;;  %10424 = vmatpush3.bf16.msra.mxu0 %v11000_v49  ;;  %10446 = vmatpush3.bf16.msra.mxu1 %v11001_v46  ;;  %v11013_v25 = vld [vmem:[%s14432_s5 + $0x418] sm:$0xff]  }
 0x712   : >> { %v10133_v6 = vpop.f32.mrf.mxu0  ;;  %v10155_v10 = vpop.f32.mrf.mxu1  ;;  %10425 = vmatprep.subr.bf16.mxu0 %v11002_v48  ;;  %10447 = vmatprep.subr.bf16.mxu1 %v11003_v21 }
 0x713   : >> { %v4055_v16 = vadd.f32 %v10153_v23, %v4015_v3 }
 0x715   : >> { %10426 = vmatpush3.bf16.msra.mxu0 %v11004_v4  ;;  %10448 = vmatpush3.bf16.msra.mxu1 %v11005_v29 }
 0x716   : >> { %10427 = vmatprep.subr.bf16.mxu0 %v11006_v11  ;;  %10449 = vmatprep.subr.bf16.mxu1 %v11007_v12  ;;  %v11518_v11 = vmov 0.0  }
 0x719   : >> { %10428 = vmatpush3.bf16.msra.mxu0 %v11008_v7  ;;  %10450 = vmatpush3.bf16.msra.mxu1 %v11009_v17 }
 0x71a   : >> { %10429 = vmatprep.subr.bf16.mxu0 %v11010_v19  ;;  %10451 = vmatprep.subr.bf16.mxu1 %v11011_v20 }
 0x71d   : >> { %10430 = vmatpush3.bf16.msra.mxu0 %v11012_v24  ;;  %10452 = vmatpush3.bf16.msra.mxu1 %v11013_v25 }
 0x71e   : >> { %10431 = vmatprep.subr.bf16.mxu0 %v11014_v26  ;;  %10453 = vmatprep.subr.bf16.mxu1 %v11015_v28 }
 0x721   : >> { %10432 = vmatpush3.bf16.msra.mxu0 %v11016_v8  ;;  %10454 = vmatpush3.bf16.msra.mxu1 %v11017_v22 }
 0x722   : >> { %10433 = vmatprep.subr.bf16.mxu0 %v11018_v30  ;;  %10455 = vmatprep.subr.bf16.mxu1 %v11019_v31 }
 0x725   : >> { %10434 = vmatpush3.bf16.msra.mxu0 %v11020_v13  ;;  %10456 = vmatpush3.bf16.msra.mxu1 %v11021_v32 }
 0x726   : >> { %10435 = vmatprep.subr.bf16.mxu0 %v11022_v33  ;;  %10457 = vmatprep.subr.bf16.mxu1 %v11023_v35 }
 0x729   : >> { %10436 = vmatpush3.bf16.msra.mxu0 %v11024_v36  ;;  %10458 = vmatpush3.bf16.msra.mxu1 %v11026_v38 }
 0x72a   : >> { %10564 = vmatprep.subr.mxu0 %v11518_v11  ;;  %10569 = vmatprep.subr.mxu1 %v11518_v11 }
 0x72c   : >> { %v10173_v41 = vpop.f32.mrf.mxu0  ;;  %v10195_v37 = vpop.f32.mrf.mxu1  ;;  %5929 = vmatmul.mubr.bf16.vlgmr.msra.gmra.mxu0 %v4460_v40  ;;  %5969 = vmatmul.mubr.bf16.vlgmr.msra.gmra.mxu1 %v4462_v39 }
 0x72d   : >> { %10566 = vmatprep.mubr.msk.f32.mxu0 %vm11519_vm7, %v11518_v11  ;;  %10571 = vmatprep.mubr.msk.f32.mxu1 %vm11519_vm7, %v11518_v11 }
 0x72e   : >> { %v10174_v44 = vpop.f32.mrf.mxu0  ;;  %v10196_v45 = vpop.f32.mrf.mxu1 }
 0x72f   : >> { %v10175_v14 = vadd.f32 %v10174_v44, %v10173_v41  ;;  %v10197_v47 = vadd.f32 %v10196_v45, %v10195_v37 }
 0x730   : >> { %v10176_v51 = vpop.f32.mrf.mxu0  ;;  %v10198_v53 = vpop.f32.mrf.mxu1 }
 0x731   : >> { %v4095_v54 = vadd.f32 %v10175_v14, %v4055_v16 }
 0x732   : >> { %v10177_v55 = vpop.f32.mrf.mxu0  ;;  %v10199_v56 = vpop.f32.mrf.mxu1 }
 0x733   : >> { %v4135_v18 = vadd.f32 %v10197_v47, %v4095_v54 }
 0x74c   : >> { %v10217_v43 = vpop.f32.mrf.mxu0  ;;  %v10239_v57 = vpop.f32.mrf.mxu1 }
 0x74e   : >> { %v10218_v50 = vpop.f32.mrf.mxu0  ;;  %v10240_v58 = vpop.f32.mrf.mxu1 }
 0x74f   : >> { %v10219_v59 = vadd.f32 %v10218_v50, %v10217_v43  ;;  %v10241_v42 = vadd.f32 %v10240_v58, %v10239_v57 }
 0x750   : >> { %v10220_v5 = vpop.f32.mrf.mxu0  ;;  %v10242_v60 = vpop.f32.mrf.mxu1 }
 0x751   : >> { %v4175_v49 = vadd.f32 %v10219_v59, %v4135_v18 }
 0x752   : >> { %v10221_v46 = vpop.f32.mrf.mxu0  ;;  %v10243_v62 = vpop.f32.mrf.mxu1 }
 0x753   : >> { %v4215_v63 = vadd.f32 %v10241_v42, %v4175_v49 }
 0x76c   : >> { %v10261_v48 = vpop.f32.mrf.mxu0  ;;  %v10283_v21 = vpop.f32.mrf.mxu1 }
 0x76e   : >> { %v10262_v61 = vpop.f32.mrf.mxu0  ;;  %v10284_v23 = vpop.f32.mrf.mxu1 }
 0x76f   : >> { %v10263_v27 = vadd.f32 %v10262_v61, %v10261_v48  ;;  %v10285_v52 = vadd.f32 %v10284_v23, %v10283_v21 }
 0x770   : >> { %v10264_v3 = vpop.f32.mrf.mxu0  ;;  %v10286_v4 = vpop.f32.mrf.mxu1 }
 0x771   : >> { %v13935_v29 = vadd.f32 %v10263_v27, %v4215_v63  ;;  %v5651_v19 = vadd.f32 %v10285_v52, %v12781_v34  ;;  %v13958_v34 = vld [vmem:[#allocation11 + $0x54] ss:$8 sps:$4 sm:$0xff] (%p2520_p10)  }
 0x772   : >> { %v10265_v6 = vpop.f32.mrf.mxu0  ;;  %v10287_v10 = vpop.f32.mrf.mxu1 }
 0x773   : >> { %v4261_v61 = vmul.f32 0.1, %v13935_v29  ;;  %vm4260_vm8 = vcmp.ge.f32.partialorder %v13935_v29, 0.0 }
 0x775   : >> { %v4262_v52 = vsel %vm4260_vm8, %v13935_v29, %v4261_v61  ;;  %v13949_v29 = vld [vmem:[#allocation11 + $0x74] ss:$8 sps:$4 sm:$0xff] (%p2520_p10)  }
 0x78c   : >> { %v10305_v12 = vpop.f32.mrf.mxu0  ;;  %v10327_v16 = vpop.f32.mrf.mxu1 }
 0x78e   : >> { %v10306_v7 = vpop.f32.mrf.mxu0  ;;  %v10328_v17 = vpop.f32.mrf.mxu1 }
 0x78f   : >> { %v10307_v20 = vadd.f32 %v10306_v7, %v10305_v12  ;;  %v10329_v24 = vadd.f32 %v10328_v17, %v10327_v16  ;;  %v11030_v7 = vld [vmem:[#allocation11 + $0x174] ss:$8 sps:$4 sm:$0xff] (%p2520_p10)   ;;  %v13952_v17 = vld [vmem:[#allocation11 + $0x70] ss:$8 sps:$4 sm:$0xff] (%p2520_p10)  }
 0x790   : >> { %v10308_v25 = vpop.f32.mrf.mxu0  ;;  %v10330_v26 = vpop.f32.mrf.mxu1 }
 0x791   : >> { %v5691_v28 = vadd.f32 %v10307_v20, %v5651_v19  ;;  %v11033_v19 = vld [vmem:[#allocation11 + $0x170] ss:$8 sps:$4 sm:$0xff] (%p2520_p10)   ;;  %v13954_v20 = vld [vmem:[#allocation11 + $0x64] ss:$8 sps:$4 sm:$0xff] (%p2520_p10)   ;;  %v11038_v25 = vld [vmem:[#allocation11 + $0x60] ss:$8 sps:$4 sm:$0xff] (%p2520_p10)  }
 0x792   : >> { %v10309_v8 = vpop.f32.mrf.mxu0  ;;  %v10331_v22 = vpop.f32.mrf.mxu1  ;;  %v11039_v26 = vld [vmem:[#allocation11 + $0x160] ss:$8 sps:$4 sm:$0xff] (%p2520_p10)  }
 0x793   : >> { %v5731_v30 = vadd.f32 %v10329_v24, %v5691_v28  ;;  %v11036_v24 = vld [vmem:[#allocation11 + $0x164] ss:$8 sps:$4 sm:$0xff] (%p2520_p10)   ;;  %v11042_v28 = vld [vmem:[#allocation11 + $0x154] ss:$8 sps:$4 sm:$0xff] (%p2520_p10)   ;;  %v11044_v8 = vld [vmem:[#allocation11 + $0x50] ss:$8 sps:$4 sm:$0xff] (%p2520_p10)  }
 0x794   : > { %v11045_v22 = vld [vmem:[#allocation11 + $0x150] ss:$8 sps:$4 sm:$0xff] (%p2520_p10)  }
 0x7ac   : >> { %v10349_v31 = vpop.f32.mrf.mxu0  ;;  %v10371_v13 = vpop.f32.mrf.mxu1 }
 0x7ae   : >> { %v10350_v32 = vpop.f32.mrf.mxu0  ;;  %v10372_v33 = vpop.f32.mrf.mxu1 }
 0x7af   : >> { %v10351_v53 = vadd.f32 %v10350_v32, %v10349_v31  ;;  %v10373_v55 = vadd.f32 %v10372_v33, %v10371_v13  ;;  %v11048_v31 = vld [vmem:[#allocation11 + $0x144] ss:$8 sps:$4 sm:$0xff] (%p2520_p10)   ;;  %v11050_v13 = vld [vmem:[#allocation11 + $0x40] ss:$8 sps:$4 sm:$0xff] (%p2520_p10)   ;;  %v11052_v33 = vld [vmem:[#allocation11 + $0x34] ss:$8 sps:$4 sm:$0xff] (%p2520_p10)  }
 0x7b0   : >> { %v10352_v35 = vpop.f32.mrf.mxu0  ;;  %v10374_v36 = vpop.f32.mrf.mxu1  ;;  %v11051_v32 = vld [vmem:[#allocation11 + $0x140] ss:$8 sps:$4 sm:$0xff] (%p2520_p10)  }
 0x7b1   : >> { %v5771_v54 = vadd.f32 %v10351_v53, %v5731_v30  ;;  %v11046_v30 = vld [vmem:[#allocation11 + $0x44] ss:$8 sps:$4 sm:$0xff] (%p2520_p10)   ;;  %v11054_v35 = vld [vmem:[#allocation11 + $0x134] ss:$8 sps:$4 sm:$0xff] (%p2520_p10)   ;;  %v11056_v36 = vld [vmem:[#allocation11 + $0x30] ss:$8 sps:$4 sm:$0xff] (%p2520_p10)  }
 0x7b2   : >> { %v10353_v38 = vpop.f32.mrf.mxu0  ;;  %v10375_v39 = vpop.f32.mrf.mxu1  ;;  %v11072_v53 = vld [vmem:[#allocation11 + $0x104] ss:$8 sps:$4 sm:$0xff] (%p2520_p10)  }
 0x7b3   : >> { %v5811_v18 = vadd.f32 %v10373_v55, %v5771_v54  ;;  %v11057_v38 = vld [vmem:[#allocation11 + $0x130] ss:$8 sps:$4 sm:$0xff] (%p2520_p10)   ;;  %v11058_v39 = vld [vmem:[#allocation11 + $0x24] ss:$8 sps:$4 sm:$0xff] (%p2520_p10)   ;;  %v11074_v54 = vld [vmem:[#allocation11] ss:$8 sps:$4 sm:$0xff] (%p2520_p10)  }
 0x7b4   : > { %v11075_v55 = vld [vmem:[#allocation11 + $0x100] ss:$8 sps:$4 sm:$0xff] (%p2520_p10)  }
 0x7cc   : >> { %v10393_v40 = vpop.f32.mrf.mxu0  ;;  %v10415_v41 = vpop.f32.mrf.mxu1 }
 0x7ce   : >> { %v10394_v37 = vpop.f32.mrf.mxu0  ;;  %v10416_v44 = vpop.f32.mrf.mxu1 }
 0x7cf   : >> { %v10395_v56 = vadd.f32 %v10394_v37, %v10393_v40  ;;  %v10417_v58 = vadd.f32 %v10416_v44, %v10415_v41  ;;  %v11060_v40 = vld [vmem:[#allocation11 + $0x124] ss:$8 sps:$4 sm:$0xff] (%p2520_p10)   ;;  %v11062_v41 = vld [vmem:[#allocation11 + $0x20] ss:$8 sps:$4 sm:$0xff] (%p2520_p10)   ;;  %v11064_v44 = vld [vmem:[#allocation11 + $0x14] ss:$8 sps:$4 sm:$0xff] (%p2520_p10)  }
 0x7d0   : >> { %v10396_v45 = vpop.f32.mrf.mxu0  ;;  %v10418_v14 = vpop.f32.mrf.mxu1  ;;  %v11063_v37 = vld [vmem:[#allocation11 + $0x120] ss:$8 sps:$4 sm:$0xff] (%p2520_p10)  }
 0x7d1   : >> { %v5851_v43 = vadd.f32 %v10395_v56, %v5811_v18  ;;  %v11066_v45 = vld [vmem:[#allocation11 + $0x114] ss:$8 sps:$4 sm:$0xff] (%p2520_p10)   ;;  %v11068_v14 = vld [vmem:[#allocation11 + $0x10] ss:$8 sps:$4 sm:$0xff] (%p2520_p10)  }
 0x7d2   : >> { %v10397_v47 = vpop.f32.mrf.mxu0  ;;  %v10419_v51 = vpop.f32.mrf.mxu1  ;;  %v11076_v56 = vld [vmem:[#allocation11 + $0xf4] ss:$8 sps:$4 sm:$0xff] (%p2520_p10)  }
 0x7d3   : >> { %v5891_v5 = vadd.f32 %v10417_v58, %v5851_v43  ;;  %v11069_v47 = vld [vmem:[#allocation11 + $0x110] ss:$8 sps:$4 sm:$0xff] (%p2520_p10)   ;;  %v11070_v51 = vld [vmem:[#allocation11 + $0x4] ss:$8 sps:$4 sm:$0xff] (%p2520_p10)   ;;  %v11078_v18 = vld [vmem:[#allocation11 + $0x1f4] ss:$8 sps:$4 sm:$0xff] (%p2520_p10)  }
 0x7d4   : > { %v11080_v43 = vld [vmem:[#allocation11 + $0xf0] ss:$8 sps:$4 sm:$0xff] (%p2520_p10)   ;;  %v11084_v58 = vld [vmem:[#allocation11 + $0x1e4] ss:$8 sps:$4 sm:$0xff] (%p2520_p10)  }
 0x7ec   : >> { %v10437_v57 = vpop.f32.mrf.mxu0  ;;  %v10459_v50 = vpop.f32.mrf.mxu1 }
 0x7ee   : >> { %v10438_v59 = vpop.f32.mrf.mxu0  ;;  %v10460_v42 = vpop.f32.mrf.mxu1 }
 0x7ef   : >> { %v10439_v60 = vadd.f32 %v10438_v59, %v10437_v57  ;;  %v10461_v63 = vadd.f32 %v10460_v42, %v10459_v50  ;;  %v11081_v57 = vld [vmem:[#allocation11 + $0x1f0] ss:$8 sps:$4 sm:$0xff] (%p2520_p10)   ;;  %v11082_v50 = vld [vmem:[#allocation11 + $0xe4] ss:$8 sps:$4 sm:$0xff] (%p2520_p10)   ;;  %v11086_v59 = vld [vmem:[#allocation11 + $0xe0] ss:$8 sps:$4 sm:$0xff] (%p2520_p10)  }
 0x7f0   : >> { %v10440_v49 = vpop.f32.mrf.mxu0  ;;  %v10462_v46 = vpop.f32.mrf.mxu1  ;;  %v11087_v42 = vld [vmem:[#allocation11 + $0x1e0] ss:$8 sps:$4 sm:$0xff] (%p2520_p10)  }
 0x7f1   : >> { %v5931_v62 = vadd.f32 %v10439_v60, %v5891_v5  ;;  %v11088_v5 = vld [vmem:[#allocation11 + $0xd4] ss:$8 sps:$4 sm:$0xff] (%p2520_p10)   ;;  %v13961_v49 = vld [vmem:[#allocation11 + $0xd0] ss:$8 sps:$4 sm:$0xff] (%p2520_p10)  }
 0x7f2   : >> { %v10441_v48 = vpop.f32.mrf.mxu0  ;;  %v10463_v21 = vpop.f32.mrf.mxu1  ;;  %v11090_v60 = vld [vmem:[#allocation11 + $0x1d4] ss:$8 sps:$4 sm:$0xff] (%p2520_p10)   ;;  %v11093_v46 = vld [vmem:[#allocation11 + $0x1d0] ss:$8 sps:$4 sm:$0xff] (%p2520_p10)  }
 0x7f3   : >> { %v5971_v23 = vadd.f32 %v10461_v63, %v5931_v62  ;;  %v13963_v62 = vld [vmem:[#allocation11 + $0xc4] ss:$8 sps:$4 sm:$0xff] (%p2520_p10)   ;;  %v11520_v63 = vmov (%p2520_p10), 1983009808  }
 0x7f4   : > { %v6165_v48 = vunpack.c.l.s4 (%p2520_p10), %v11520_v63  ;;  %v11096_v21 = vld [vmem:[#allocation11 + $0x1c4] ss:$8 sps:$4 sm:$0xff] (%p2520_p10)   ;;  %v14018_v63 = vld [vmem:[#allocation11 + $0x240] ss:$8 sps:$4 sm:$0xff] (%p2520_p10)  }
 0x7f5   : >> { %vm5976_vm9 = vcmp.ge.f32.partialorder %v5971_v23, 0.0  ;;  %v5977_v27 = vmul.f32 0.1, %v5971_v23 }
 0x7f7   : >> { %v5978_v3 = vsel %vm5976_vm9, %v5971_v23, %v5977_v27 }
 0x7f8   : >> { %v5979_v4 = vmax.f32 %v4262_v52, %v5978_v3  ;;  %v13966_v52 = vld [vmem:[#allocation11 + $0xc0] ss:$8 sps:$4 sm:$0xff] (%p2520_p10)  }
 0x7f9   : > { %v11099_v3 = vld [vmem:[#allocation11 + $0x1c0] ss:$8 sps:$4 sm:$0xff] (%p2520_p10)  }
 0x7fa   : >> { %10565 = vmatpush3.msk.msra.mxu0 %vm14521_vm12, %v5979_v4  ;;  %10570 = vmatpush3.msk.msra.mxu1 %vm14522_vm13, %v5979_v4  ;;  %v6166_v4 = vunpack.c.0.s8 (%p2520_p10), %v6165_v48  ;;  %v11145_v48 = vld [vmem:[#allocation11 + $0x340] ss:$8 sps:$4 sm:$0xff] (%p2520_p10)  }
 0x7fb   : >> { %10567 = vmatmul.mubr.msk.f32.vlgmr.msra.gmra.mxu0 %vm5980_vm11, %v12025_v9  ;;  %10572 = vmatmul.mubr.msk.f32.vlgmr.msra.gmra.mxu1 %vm5980_vm11, %v12041_v15  ;;  %v11370_v15 = vld [vmem:[#allocation11 + $0x34] ss:$8 sps:$4 sm:$0xff] (%p2520_p10)   ;;  %v14156_v9 = vld [vmem:[#allocation11 + $0x420] ss:$8 sps:$4 sm:$0xff] (%p2520_p10)  }
 0x7fc   : > { %7097 = vmatprep.subr.bf16.mxu0 (%p2520_p10), %v13949_v29  ;;  %7138 = vmatprep.subr.bf16.mxu1 (%p2520_p10), %v11030_v7  ;;  %v11108_v7 = vld [vmem:[#allocation11 + $0x1a4] ss:$8 sps:$4 sm:$0xff] (%p2520_p10)   ;;  %14531 = vst [vmem:[#allocation27_spill] sm:$0xff] (%p2520_p10), %v14156_v9 }
 0x7fd   : > { %7098 = vmatpush1.bf16.msra.mxu0 (%p2520_p10), %v13952_v17  ;;  %7139 = vmatpush1.bf16.msra.mxu1 (%p2520_p10), %v11033_v19  ;;  %v13977_v19 = vsub.s32 (%p2520_p10), %v6166_v4, %v11908_v2  ;;  %v11159_v4 = vld [vmem:[#allocation11 + $0x324] ss:$8 sps:$4 sm:$0xff] (%p2520_p10)  }
 0x7fe   : > { %7099 = vmatprep.subr.bf16.mxu0 (%p2520_p10), %v13954_v20  ;;  %7140 = vmatprep.subr.bf16.mxu1 (%p2520_p10), %v11036_v24 }
 0x801   : > { %7100 = vmatpush1.bf16.msra.mxu0 (%p2520_p10), %v11038_v25  ;;  %7141 = vmatpush1.bf16.msra.mxu1 (%p2520_p10), %v11039_v26 }
 0x802   : > { %7101 = vmatprep.subr.bf16.mxu0 (%p2520_p10), %v13958_v34  ;;  %7142 = vmatprep.subr.bf16.mxu1 (%p2520_p10), %v11042_v28  ;;  %v13980_v28 = vld [vmem:[#allocation11 + $0xa0] ss:$8 sps:$4 sm:$0xff] (%p2520_p10)  }
 0x805   : > { %7102 = vmatpush1.bf16.msra.mxu0 (%p2520_p10), %v11044_v8  ;;  %7143 = vmatpush1.bf16.msra.mxu1 (%p2520_p10), %v11045_v22  ;;  %v11111_v22 = vld [vmem:[#allocation11 + $0x1a0] ss:$8 sps:$4 sm:$0xff] (%p2520_p10)  }
 0x806   : > { %7103 = vmatprep.subr.bf16.mxu0 (%p2520_p10), %v11046_v30  ;;  %7144 = vmatprep.subr.bf16.mxu1 (%p2520_p10), %v11048_v31  ;;  %v13983_v30 = vld [vmem:[#allocation11 + $0x94] ss:$8 sps:$4 sm:$0xff] (%p2520_p10)  }
 0x809   : > { %7104 = vmatpush1.bf16.msra.mxu0 (%p2520_p10), %v11050_v13  ;;  %7145 = vmatpush1.bf16.msra.mxu1 (%p2520_p10), %v11051_v32  ;;  %v11114_v32 = vld [vmem:[#allocation11 + $0x194] ss:$8 sps:$4 sm:$0xff] (%p2520_p10)  }
 0x80a   : > { %7105 = vmatprep.subr.bf16.mxu0 (%p2520_p10), %v11052_v33  ;;  %7146 = vmatprep.subr.bf16.mxu1 (%p2520_p10), %v11054_v35 }
 0x80d   : > { %7106 = vmatpush1.bf16.msra.mxu0 (%p2520_p10), %v11056_v36  ;;  %7147 = vmatpush1.bf16.msra.mxu1 (%p2520_p10), %v11057_v38  ;;  %v13988_v36 = vld [vmem:[#allocation11 + $0x90] ss:$8 sps:$4 sm:$0xff] (%p2520_p10)  }
 0x80e   : > { %7107 = vmatprep.subr.bf16.mxu0 (%p2520_p10), %v11058_v39  ;;  %7148 = vmatprep.subr.bf16.mxu1 (%p2520_p10), %v11060_v40  ;;  %v11117_v38 = vld [vmem:[#allocation11 + $0x190] ss:$8 sps:$4 sm:$0xff] (%p2520_p10)   ;;  %v13991_v39 = vld [vmem:[#allocation11 + $0x84] ss:$8 sps:$4 sm:$0xff] (%p2520_p10)  }
 0x811   : > { %7108 = vmatpush1.bf16.msra.mxu0 (%p2520_p10), %v11062_v41  ;;  %7149 = vmatpush1.bf16.msra.mxu1 (%p2520_p10), %v11063_v37  ;;  %v11120_v37 = vld [vmem:[#allocation11 + $0x184] ss:$8 sps:$4 sm:$0xff] (%p2520_p10)  }
 0x812   : > { %7109 = vmatprep.subr.bf16.mxu0 (%p2520_p10), %v11064_v44  ;;  %7150 = vmatprep.subr.bf16.mxu1 (%p2520_p10), %v11066_v45  ;;  %v13994_v45 = vld [vmem:[#allocation11 + $0x80] ss:$8 sps:$4 sm:$0xff] (%p2520_p10)  }
 0x815   : > { %7110 = vmatpush1.bf16.msra.mxu0 (%p2520_p10), %v11068_v14  ;;  %7151 = vmatpush1.bf16.msra.mxu1 (%p2520_p10), %v11069_v47  ;;  %v11123_v14 = vld [vmem:[#allocation11 + $0x180] ss:$8 sps:$4 sm:$0xff] (%p2520_p10)   ;;  %v13997_v47 = vld [vmem:[#allocation11 + $0x274] ss:$8 sps:$4 sm:$0xff] (%p2520_p10)  }
 0x816   : > { %7111 = vmatprep.subr.bf16.mxu0 (%p2520_p10), %v11070_v51  ;;  %7152 = vmatprep.subr.bf16.mxu1 (%p2520_p10), %v11072_v53  ;;  %v11129_v51 = vld [vmem:[#allocation11 + $0x374] ss:$8 sps:$4 sm:$0xff] (%p2520_p10)  }
 0x819   : > { %7112 = vmatpush1.bf16.msra.mxu0 (%p2520_p10), %v11074_v54  ;;  %7153 = vmatpush1.bf16.msra.mxu1 (%p2520_p10), %v11075_v55  ;;  %v14000_v55 = vld [vmem:[#allocation11 + $0x270] ss:$8 sps:$4 sm:$0xff] (%p2520_p10)  }
 0x81a   : > { %7113 = vmatprep.subr.bf16.mxu0 (%p2520_p10), %v11076_v56  ;;  %7154 = vmatprep.subr.bf16.mxu1 (%p2520_p10), %v11078_v18  ;;  %v11127_v56 = vld [vmem:[#allocation11 + $0x370] ss:$8 sps:$4 sm:$0xff] (%p2520_p10)   ;;  %v14003_v18 = vld [vmem:[#allocation11 + $0x264] ss:$8 sps:$4 sm:$0xff] (%p2520_p10)  }
 0x81d   : > { %7114 = vmatpush2.bf16.msra.mxu0 (%p2520_p10), %v11080_v43  ;;  %7155 = vmatpush2.bf16.msra.mxu1 (%p2520_p10), %v11081_v57  ;;  %v11135_v43 = vld [vmem:[#allocation11 + $0x364] ss:$8 sps:$4 sm:$0xff] (%p2520_p10)   ;;  %v14006_v57 = vld [vmem:[#allocation11 + $0x260] ss:$8 sps:$4 sm:$0xff] (%p2520_p10)  }
 0x81e   : > { %7115 = vmatprep.subr.bf16.mxu0 (%p2520_p10), %v11082_v50  ;;  %7156 = vmatprep.subr.bf16.mxu1 (%p2520_p10), %v11084_v58  ;;  %v11133_v50 = vld [vmem:[#allocation11 + $0x360] ss:$8 sps:$4 sm:$0xff] (%p2520_p10)   ;;  %v14009_v58 = vld [vmem:[#allocation11 + $0x254] ss:$8 sps:$4 sm:$0xff] (%p2520_p10)  }
 0x821   : > { %7116 = vmatpush2.bf16.msra.mxu0 (%p2520_p10), %v11086_v59  ;;  %7157 = vmatpush2.bf16.msra.mxu1 (%p2520_p10), %v11087_v42  ;;  %v11141_v59 = vld [vmem:[#allocation11 + $0x354] ss:$8 sps:$4 sm:$0xff] (%p2520_p10)   ;;  %v14012_v42 = vld [vmem:[#allocation11 + $0x250] ss:$8 sps:$4 sm:$0xff] (%p2520_p10)  }
 0x822   : > { %7117 = vmatprep.subr.bf16.mxu0 (%p2520_p10), %v11088_v5  ;;  %7158 = vmatprep.subr.bf16.mxu1 (%p2520_p10), %v11090_v60  ;;  %v11139_v5 = vld [vmem:[#allocation11 + $0x350] ss:$8 sps:$4 sm:$0xff] (%p2520_p10)   ;;  %v14015_v60 = vld [vmem:[#allocation11 + $0x244] ss:$8 sps:$4 sm:$0xff] (%p2520_p10)  }
 0x825   : > { %7118 = vmatpush2.bf16.msra.mxu0 (%p2520_p10), %v13961_v49  ;;  %7159 = vmatpush2.bf16.msra.mxu1 (%p2520_p10), %v11093_v46  ;;  %v11147_v46 = vld [vmem:[#allocation11 + $0x344] ss:$8 sps:$4 sm:$0xff] (%p2520_p10)  }
 0x826   : > { %7119 = vmatprep.subr.bf16.mxu0 (%p2520_p10), %v13963_v62  ;;  %7160 = vmatprep.subr.bf16.mxu1 (%p2520_p10), %v11096_v21  ;;  %v14021_v21 = vld [vmem:[#allocation11 + $0x234] ss:$8 sps:$4 sm:$0xff] (%p2520_p10)  }
 0x829   : > { %7120 = vmatpush2.bf16.msra.mxu0 (%p2520_p10), %v13966_v52  ;;  %7161 = vmatpush2.bf16.msra.mxu1 (%p2520_p10), %v11099_v3  ;;  %v14027_v3 = vld [vmem:[#allocation11 + $0x224] ss:$8 sps:$4 sm:$0xff] (%p2520_p10)  }
 0x8ba   : > { %2522 = sbr.rel (!%p2520_p10) target bundleno = 1441 (0x5a1), region = 179 }
 0x8bb   : >> { %v6054_v6 = vpop.f32.mrf.mxu0  ;;  %v6127_v10 = vpop.f32.mrf.mxu1 }
 0x8bc   : >> { %v6131_v11 = vmax.f32 %v6054_v6, %v6127_v10  ;;  %v13969_v6 = vld [vmem:[#allocation11 + $0xb4] ss:$8 sps:$4 sm:$0xff] (%p2520_p10)  }
 0x8bd   : >> { %v10568_v12 = vpop.f32.mrf.mxu0  ;;  %v10573_v16 = vpop.f32.mrf.mxu1  ;;  %v11102_v10 = vld [vmem:[#allocation11 + $0x1b4] ss:$8 sps:$4 sm:$0xff] (%p2520_p10)   ;;  %7121 = vmatprep.subr.bf16.mxu0 (%p2520_p10), %v13969_v6 }
 0x8be   : >> { %9656 = vst [vmem:[%s9050_s30 + $0x5] sm:$0x3] %v6131_v11  ;;  %v13971_v11 = vld [vmem:[#allocation11 + $0xb0] ss:$8 sps:$4 sm:$0xff] (%p2520_p10)   ;;  %v13973_v16 = vld [vmem:[#allocation11 + $0xa4] ss:$8 sps:$4 sm:$0xff] (%p2520_p10)   ;;  %7162 = vmatprep.subr.bf16.mxu1 (%p2520_p10), %v11102_v10 }
 0x8bf   : > { %v11105_v12 = vld [vmem:[#allocation11 + $0x1b0] ss:$8 sps:$4 sm:$0xff]   ;;  %7122 = vmatpush2.bf16.msra.mxu0 %v13971_v11  ;;  %v14030_v10 = vld [vmem:[#allocation11 + $0x220] ss:$8 sps:$4 sm:$0xff]   ;;  %s14554_s30 = sand.u32 1, %s11477_s26  }
 0x8c0   : > { %7163 = vmatpush2.bf16.msra.mxu1 %v11105_v12  ;;  %7123 = vmatprep.subr.bf16.mxu0 %v13973_v16  ;;  %v11157_v12 = vld [vmem:[#allocation11 + $0x320] ss:$8 sps:$4 sm:$0xff]   ;;  %s8946_s16 = scalar_lea.sflag [#allocation13], %s14554_s30 }
 0x8c1   : > { %7164 = vmatprep.subr.bf16.mxu1 %v11108_v7  ;;  %v14033_v7 = vld [vmem:[#allocation11 + $0x214] ss:$8 sps:$4 sm:$0xff]  }
 0x8c3   : > { %7124 = vmatpush2.bf16.msra.mxu0 %v13980_v28 }
 0x8c4   : > { %7165 = vmatpush2.bf16.msra.mxu1 %v11111_v22  ;;  %7125 = vmatprep.subr.bf16.mxu0 %v13983_v30 }
 0x8c5   : > { %v6137_v61 = vld [vmem:[#allocation5] sm:$0x3]  ;;  %v6141_v27 = vld [vmem:[#allocation5 + $0x2] sm:$0xf]   ;;  %v7312_v26 = vld [vmem:[#allocation5 + $0x6] sm:$0xf]   ;;  %7166 = vmatprep.subr.bf16.mxu1 %v11114_v32 }
 0x8c6   : > { %6138 = vst [vmem:[#allocation10] sm:$0x3] %v6137_v61  ;;  %v6139_v23 = vld [vmem:[#allocation5 + $0x1] sm:$0x3]  ;;  %6142 = vst [vmem:[#allocation10 + $0x4] sm:$0xf] %v6141_v27  }
 0x8c7   : > { %6140 = vst [vmem:[#allocation10 + $0x2] sm:$0x3] %v6139_v23  ;;  %v7308_v24 = vld [vmem:[#allocation5 + $0x4] sm:$0x3]  ;;  %7126 = vmatpush2.bf16.msra.mxu0 %v13988_v36  ;;  %v11153_v61 = vld [vmem:[#allocation11 + $0x334] ss:$8 sps:$4 sm:$0xff]  }
 0x8c8   : > { %v7310_v25 = vld [vmem:[#allocation5 + $0x5] sm:$0x3]  ;;  %7167 = vmatpush2.bf16.msra.mxu1 %v11117_v38  ;;  %7127 = vmatprep.subr.bf16.mxu0 %v13991_v39  ;;  %v14024_v23 = vld [vmem:[#allocation11 + $0x230] ss:$8 sps:$4 sm:$0xff]   ;;  %v14045_v38 = vld [vmem:[#allocation11 + $0x2f4] ss:$8 sps:$4 sm:$0xff]  }
 0x8c9   : > { %7168 = vmatprep.subr.bf16.mxu1 %v11120_v37  ;;  %v11151_v27 = vld [vmem:[#allocation11 + $0x330] ss:$8 sps:$4 sm:$0xff]   ;;  %v6148_v22 = vld [vmem:[#allocation5 + $0x6] sm:$0xf]   ;;  %v7318_v37 = vld [vmem:[#allocation5 + $0xa] sm:$0xf]  }
 0x8ca   : > { %v11171_v32 = vld [vmem:[#allocation11 + $0x304] ss:$8 sps:$4 sm:$0xff]   ;;  %6149 = vst [vmem:[#allocation10 + $0xa] sm:$0xf] %v6148_v22  }
 0x8cb   : > { %7128 = vmatpush2.bf16.msra.mxu0 %v13994_v45 }
 0x8cc   : > { %7169 = vmatpush2.bf16.msra.mxu1 %v11123_v14  ;;  %7179 = vmatprep.subr.bf16.mxu0 %v13997_v47  ;;  %v14048_v14 = vld [vmem:[#allocation11 + $0x2f0] ss:$8 sps:$4 sm:$0xff]  }
 0x8cd   : > { %7220 = vmatprep.subr.bf16.mxu1 %v11129_v51  ;;  %v11175_v51 = vld [vmem:[#allocation11 + $0x3f0] ss:$8 sps:$4 sm:$0xff]  }
 0x8ce   : > { %v6157_v8 = vld [vmem:[#allocation10] sm:$0xff] }
 0x8cf   : > { %v6170_v31 = vrot.slane %v6157_v8, %v13977_v19  ;;  %7309 = vst [vmem:[#allocation10] sm:$0x3] %v7308_v24  ;;  %7311 = vst [vmem:[#allocation10 + $0x2] sm:$0x3] %v7310_v25  ;;  %v6163_v13 = vcombine.high %v6157_v8, %v6157_v8  ;;  %v11165_v24 = vld [vmem:[#allocation11 + $0x314] ss:$8 sps:$4 sm:$0xff]  }
 0x8d0   : > { %7313 = vst [vmem:[#allocation10 + $0x4] sm:$0xf] %v7312_v26   ;;  %v14036_v25 = vld [vmem:[#allocation11 + $0x210] ss:$8 sps:$4 sm:$0xff]   ;;  %v6146_v26 = vld [vmem:[#allocation5 + $0x5] sm:$0x3] }
 0x8d1   : > { %v6178_v33 = vcombine.high %v6170_v31, %v6170_v31  ;;  %v6177_v35 = vrot.slane %v6163_v13, %v13977_v19  ;;  %v6213_v53 = vpack.c.bf16 %v6170_v31, %v6170_v31  ;;  %v11163_v8 = vld [vmem:[#allocation11 + $0x310] ss:$8 sps:$4 sm:$0xff]   ;;  %6147 = vst [vmem:[#allocation10 + $0x8] sm:$0x3] %v6146_v26  ;;  %v6153_v31 = vld [vmem:[#allocation5 + $0x9] sm:$0x3] }
 0x8d2   : > { %v14040_v13 = vld [vmem:[#allocation11 + $0x204] ss:$8 sps:$4 sm:$0xff]   ;;  %6154 = vst [vmem:[#allocation10 + $0xe] sm:$0x3] %v6153_v31  ;;  %v14070_v26 = vld [vmem:[#allocation11 + $0x2d0] ss:$8 sps:$4 sm:$0xff]  }
 0x8d3   : > { %v6214_v40 = vpack.c.bf16 %v6178_v33, %v6178_v33  ;;  %v6179_v41 = vcombine.high %v6177_v35, %v6177_v35  ;;  %v6215_v54 = vpack.c.bf16 %v6177_v35, %v6177_v35  ;;  %v14042_v33 = vld [vmem:[#allocation11 + $0x200] ss:$8 sps:$4 sm:$0xff]   ;;  %v14073_v31 = vld [vmem:[#allocation11 + $0x2c4] ss:$8 sps:$4 sm:$0xff]  }
 0x8d4   : > { %v11169_v35 = vld [vmem:[#allocation11 + $0x300] ss:$8 sps:$4 sm:$0xff]  }
 0x8d5   : > { %7129 = vmatprep.mubr.bf16.mxu0 %v6214_v40  ;;  %v6216_v44 = vpack.c.bf16 %v6179_v41, %v6179_v41  ;;  %v11177_v40 = vld [vmem:[#allocation11 + $0x3f4] ss:$8 sps:$4 sm:$0xff]   ;;  %v7316_v41 = vld [vmem:[#allocation5 + $0x9] sm:$0x3] }
 0x8d6   : > { %7130 = vmatmul.mubr.bf16.vlgmr.msra.gmra.mxu0 %v6213_v53 }
 0x8d7   : > { %7170 = vmatprep.mubr.bf16.mxu1 %v6216_v44  ;;  %7180 = vmatpush1.bf16.msra.mxu0 %v14000_v55  ;;  %v7323_v44 = vld [vmem:[#allocation5 + $0xd] sm:$0x3] }
 0x8d8   : > { %7171 = vmatmul.mubr.bf16.vlgmr.msra.gmra.mxu1 %v6215_v54  ;;  %7181 = vmatprep.subr.bf16.mxu0 %v14003_v18  ;;  %v14052_v54 = vld [vmem:[#allocation11 + $0x2e4] ss:$8 sps:$4 sm:$0xff]  }
 0x8d9   : > { %7221 = vmatpush1.bf16.msra.mxu1 %v11127_v56  ;;  %v6158_v53 = vld [vmem:[#allocation10 + $0x8] sm:$0xff]  ;;  %v11183_v56 = vld [vmem:[#allocation11 + $0x3e4] ss:$8 sps:$4 sm:$0xff]  }
 0x8da   : > { %7222 = vmatprep.subr.bf16.mxu1 %v11135_v43  ;;  %v14055_v43 = vrot.slane %v6158_v53, %v13977_v19  ;;  %7317 = vst [vmem:[#allocation10 + $0x8] sm:$0x3] %v7316_v41  ;;  %7319 = vst [vmem:[#allocation10 + $0xa] sm:$0xf] %v7318_v37   ;;  %v11193_v41 = vld [vmem:[#allocation11 + $0x3c0] ss:$8 sps:$4 sm:$0xff]  }
 0x8db   : > { %7182 = vmatpush1.bf16.msra.mxu0 %v14006_v57  ;;  %7324 = vst [vmem:[#allocation10 + $0xe] sm:$0x3] %v7323_v44  ;;  %v14082_v44 = vld [vmem:[#allocation11 + $0x2b4] ss:$8 sps:$4 sm:$0xff]  }
 0x8dc   : > { %7183 = vmatprep.subr.bf16.mxu0 %v14009_v58 }
 0x8dd   : > { %7223 = vmatpush1.bf16.msra.mxu1 %v11133_v50  ;;  %v6180_v50 = vcombine.high %v6158_v53, %v6158_v53  ;;  %v14085_v53 = vld [vmem:[#allocation11 + $0x2b0] ss:$8 sps:$4 sm:$0xff]  }
 0x8de   : > { %7224 = vmatprep.subr.bf16.mxu1 %v11141_v59  ;;  %v14057_v59 = vld [vmem:[#allocation11 + $0x2e0] ss:$8 sps:$4 sm:$0xff]  }
 0x8df   : > { %7184 = vmatpush1.bf16.msra.mxu0 %v14012_v42 }
 0x8e0   : > { %7185 = vmatprep.subr.bf16.mxu0 %v14015_v60 }
 0x8e1   : > { %7225 = vmatpush1.bf16.msra.mxu1 %v11139_v5  ;;  %v6195_v5 = vcombine.high %v14055_v43, %v14055_v43 }
 0x8e2   : > { %7226 = vmatprep.subr.bf16.mxu1 %v11147_v46  ;;  %v14062_v46 = vrot.slane %v6180_v50, %v13977_v19  ;;  %v14088_v50 = vld [vmem:[#allocation11 + $0x2a4] ss:$8 sps:$4 sm:$0xff]  }
 0x8e3   : > { %7186 = vmatpush1.bf16.msra.mxu0 %v14018_v63 }
 0x8e4   : > { %7187 = vmatprep.subr.bf16.mxu0 %v14021_v21  ;;  %v6219_v0 = vpack.c.bf16 %v14062_v46, %v14062_v46 }
 0x8e5   : > { %7227 = vmatpush1.bf16.msra.mxu1 %v11145_v48  ;;  %v11181_v48 = vld [vmem:[#allocation11 + $0x3e0] ss:$8 sps:$4 sm:$0xff]  }
 0x8e6   : > { %7228 = vmatprep.subr.bf16.mxu1 %v11153_v61  ;;  %v14065_v61 = vld [vmem:[#allocation11 + $0x2d4] ss:$8 sps:$4 sm:$0xff]  }
 0x8e7   : > { %7188 = vmatpush1.bf16.msra.mxu0 %v14024_v23 }
 0x8e8   : > { %7189 = vmatprep.subr.bf16.mxu0 %v14027_v3 }
 0x8e9   : > { %7229 = vmatpush1.bf16.msra.mxu1 %v11151_v27  ;;  %v6155_v27 = vld [vmem:[#allocation5 + $0xa] sm:$0x3] }
 0x8ea   : > { %7230 = vmatprep.subr.bf16.mxu1 %v11159_v4  ;;  %v11189_v4 = vld [vmem:[#allocation11 + $0x3d4] ss:$8 sps:$4 sm:$0xff]   ;;  %6156 = vst [vmem:[#allocation10 + $0x10] sm:$0x3] %v6155_v27  ;;  %v11205_v27 = vld [vmem:[#allocation11 + $0x3a0] ss:$8 sps:$4 sm:$0xff]  }
 0x8eb   : > { %7190 = vmatpush1.bf16.msra.mxu0 %v14030_v10 }
 0x8ec   : > { %7191 = vmatprep.subr.bf16.mxu0 %v14033_v7 }
 0x8ed   : > { %7231 = vmatpush1.bf16.msra.mxu1 %v11157_v12  ;;  %v6218_v12 = vpack.c.bf16 %v6195_v5, %v6195_v5  ;;  %v11207_v5 = vld [vmem:[#allocation11 + $0x3a4] ss:$8 sps:$4 sm:$0xff]  }
 0x8ee   : > { %7232 = vmatprep.subr.bf16.mxu1 %v11165_v24  ;;  %v6196_v24 = vcombine.high %v14062_v46, %v14062_v46  ;;  %v14133_v46 = vld [vmem:[#allocation11 + $0x454] ss:$8 sps:$4 sm:$0xff]  }
 0x8ef   : > { %7192 = vmatpush1.bf16.msra.mxu0 %v14036_v25  ;;  %7211 = vmatprep.mubr.bf16.mxu0 %v6218_v12  ;;  %v11213_v12 = vld [vmem:[#allocation11 + $0x394] ss:$8 sps:$4 sm:$0xff]   ;;  %14524 = vst [vmem:[#allocation20_spill] sm:$0xff] %v14133_v46 }
 0x8f0   : > { %7193 = vmatprep.subr.bf16.mxu0 %v14040_v13  ;;  %v6220_v22 = vpack.c.bf16 %v6196_v24, %v6196_v24  ;;  %v14096_v24 = vld [vmem:[#allocation10] sm:$0xff] }
 0x8f1   : > { %7233 = vmatpush1.bf16.msra.mxu1 %v11163_v8  ;;  %v11187_v8 = vld [vmem:[#allocation11 + $0x3d0] ss:$8 sps:$4 sm:$0xff]   ;;  %v14079_v37 = vld.sshfl [vmem:[#allocation10 + $0x10] sm:$0x3 pattern:$0x76325410] }
 0x8f2   : > { %7234 = vmatprep.subr.bf16.mxu1 %v11171_v32  ;;  %v11195_v32 = vld [vmem:[#allocation11 + $0x3c4] ss:$8 sps:$4 sm:$0xff]   ;;  %7252 = vmatprep.mubr.bf16.mxu1 %v6220_v22  ;;  %v11211_v22 = vld [vmem:[#allocation11 + $0x390] ss:$8 sps:$4 sm:$0xff]  }
 0x8f3   : > { %7194 = vmatpush1.bf16.msra.mxu0 %v14042_v33 }
 0x8f4   : > { %7195 = vmatprep.subr.bf16.mxu0 %v14045_v38 }
 0x8f5   : > { %7235 = vmatpush1.bf16.msra.mxu1 %v11169_v35  ;;  %v7325_v35 = vld [vmem:[#allocation5 + $0xe] sm:$0x3] }
 0x8f6   : > { %7236 = vmatprep.subr.bf16.mxu1 %v11177_v40  ;;  %v14076_v40 = vld [vmem:[#allocation11 + $0x2c0] ss:$8 sps:$4 sm:$0xff]   ;;  %7326 = vst [vmem:[#allocation10 + $0x10] sm:$0x3] %v7325_v35  ;;  %v11219_v35 = vld [vmem:[#allocation11 + $0x384] ss:$8 sps:$4 sm:$0xff]  }
 0x8f7   : > { %7196 = vmatpush2.bf16.msra.mxu0 %v14048_v14 }
 0x8f8   : > { %7197 = vmatprep.subr.bf16.mxu0 %v14052_v54 }
 0x8f9   : > { %7237 = vmatpush2.bf16.msra.mxu1 %v11175_v51  ;;  %v11201_v51 = vld [vmem:[#allocation11 + $0x3b4] ss:$8 sps:$4 sm:$0xff]  }
 0x8fa   : > { %7238 = vmatprep.subr.bf16.mxu1 %v11183_v56  ;;  %v11199_v56 = vld [vmem:[#allocation11 + $0x3b0] ss:$8 sps:$4 sm:$0xff]  }
 0x8fb   : > { %7198 = vmatpush2.bf16.msra.mxu0 %v14057_v59 }
 0x8fc   : > { %7199 = vmatprep.subr.bf16.mxu0 %v14065_v61 }
 0x8fd   : > { %7239 = vmatpush2.bf16.msra.mxu1 %v11181_v48  ;;  %v14091_v48 = vld [vmem:[#allocation11 + $0x2a0] ss:$8 sps:$4 sm:$0xff]  }
 0x8fe   : > { %7240 = vmatprep.subr.bf16.mxu1 %v11189_v4  ;;  %v14094_v4 = vld [vmem:[#allocation11 + $0x294] ss:$8 sps:$4 sm:$0xff]  }
 0x8ff   : > { %7200 = vmatpush2.bf16.msra.mxu0 %v14070_v26 }
 0x900   : > { %7201 = vmatprep.subr.bf16.mxu0 %v14073_v31 }
 0x901   : > { %7241 = vmatpush2.bf16.msra.mxu1 %v11187_v8  ;;  %v14099_v8 = vld [vmem:[#allocation11 + $0x290] ss:$8 sps:$4 sm:$0xff]  }
 0x902   : > { %7242 = vmatprep.subr.bf16.mxu1 %v11195_v32  ;;  %v14102_v32 = vld [vmem:[#allocation11 + $0x284] ss:$8 sps:$4 sm:$0xff]  }
 0x903   : > { %7202 = vmatpush2.bf16.msra.mxu0 %v14076_v40 }
 0x904   : > { %7203 = vmatprep.subr.bf16.mxu0 %v14082_v44 }
 0x905   : > { %7243 = vmatpush2.bf16.msra.mxu1 %v11193_v41  ;;  %v14106_v41 = vrot.slane %v14096_v24, %v13977_v19 }
 0x906   : > { %7244 = vmatprep.subr.bf16.mxu1 %v11201_v51  ;;  %v14109_v51 = vld [vmem:[#allocation11 + $0x280] ss:$8 sps:$4 sm:$0xff]  }
 0x907   : > { %7204 = vmatpush2.bf16.msra.mxu0 %v14085_v53 }
 0x908   : > { %7205 = vmatprep.subr.bf16.mxu0 %v14088_v50 }
 0x909   : > { %7245 = vmatpush2.bf16.msra.mxu1 %v11199_v56  ;;  %v11217_v56 = vld [vmem:[#allocation11 + $0x380] ss:$8 sps:$4 sm:$0xff]  }
 0x90a   : > { %7246 = vmatprep.subr.bf16.mxu1 %v11207_v5  ;;  %v14112_v5 = vld [vmem:[#allocation11 + $0x474] ss:$8 sps:$4 sm:$0xff]  }
 0x90b   : > { %7206 = vmatpush2.bf16.msra.mxu0 %v14091_v48 }
 0x90c   : > { %7207 = vmatprep.subr.bf16.mxu0 %v14094_v4 }
 0x90d   : > { %7247 = vmatpush2.bf16.msra.mxu1 %v11205_v27  ;;  %v7348_v27 = vcombine.high %v14106_v41, %v14106_v41 }
 0x90e   : > { %7248 = vmatprep.subr.bf16.mxu1 %v11213_v12  ;;  %v6217_v12 = vpack.c.bf16 %v14055_v43, %v14055_v43  ;;  %v14129_v43 = vld [vmem:[#allocation11 + $0x460] ss:$8 sps:$4 sm:$0xff]  }
 0x90f   : > { %7208 = vmatpush2.bf16.msra.mxu0 %v14099_v8  ;;  %v7384_v1 = vpack.c.bf16 %v7348_v27, %v7348_v27  ;;  %14523 = vst [vmem:[#allocation19_spill] sm:$0xff] %v14129_v43  ;;  %v14144_v27 = vld [vmem:[#allocation11 + $0x440] ss:$8 sps:$4 sm:$0xff]  }
 0x910   : > { %7209 = vmatprep.subr.bf16.mxu0 %v14102_v32  ;;  %14527 = vst [vmem:[#allocation23_spill] sm:$0xff] %v14144_v27 }
 0x911   : > { %7249 = vmatpush2.bf16.msra.mxu1 %v11211_v22  ;;  %v14121_v22 = vld [vmem:[#allocation11 + $0x470] ss:$8 sps:$4 sm:$0xff]  }
 0x912   : > { %7250 = vmatprep.subr.bf16.mxu1 %v11219_v35  ;;  %v14125_v35 = vld [vmem:[#allocation11 + $0x464] ss:$8 sps:$4 sm:$0xff]  }
 0x913   : > { %7210 = vmatpush2.bf16.msra.mxu0 %v14109_v51 }
 0x914   : > { %7261 = vmatprep.subr.bf16.mxu0 %v14112_v5 }
 0x915   : > { %7251 = vmatpush2.bf16.msra.mxu1 %v11217_v56  ;;  %v14466_v56 = vmov 0  }
 0x916   : > { %8256 = vmatprep.subr.bf16.mxu1 %v13949_v29  ;;  %7212 = vmatmul.mubr.bf16.vlgmr.msra.gmra.mxu0 %v6217_v12  ;;  %v11366_v29 = vld [vmem:[#allocation11 + $0x60] ss:$8 sps:$4 sm:$0xff]   ;;  %v14146_v12 = vld [vmem:[#allocation11 + $0x434] ss:$8 sps:$4 sm:$0xff]  }
 0x917   : > { %7262 = vmatpush1.bf16.msra.mxu0 %v14121_v22  ;;  %7293 = vmatprep.mubr.bf16.mxu0 %v14466_v56  ;;  %14528 = vst [vmem:[#allocation24_spill] sm:$0xff] %v14146_v12  ;;  %v14150_v56 = vld [vmem:[#allocation11 + $0x430] ss:$8 sps:$4 sm:$0xff]  }
 0x918   : > { %7253 = vmatmul.mubr.bf16.vlgmr.msra.gmra.mxu1 %v6219_v0  ;;  %7263 = vmatprep.subr.bf16.mxu0 %v14125_v35  ;;  %v14137_v0 = vld [vmem:[#allocation11 + $0x450] ss:$8 sps:$4 sm:$0xff]   ;;  %14529 = vst [vmem:[#allocation25_spill] sm:$0xff] %v14150_v56 }
 0x919   : > { %8257 = vmatpush1.bf16.msra.mxu1 %v13952_v17  ;;  %8288 = vmatprep.mubr.bf16.mxu1 %v7384_v1  ;;  %14525 = vst [vmem:[#allocation21_spill] sm:$0xff] %v14137_v0  ;;  %v14141_v17 = vld [vmem:[#allocation11 + $0x444] ss:$8 sps:$4 sm:$0xff]  }
 0x91a   : > { %8258 = vmatprep.subr.bf16.mxu1 %v13954_v20  ;;  %14526 = vst [vmem:[#allocation22_spill] sm:$0xff] %v14141_v17  ;;  %v11367_v20 = vld [vmem:[#allocation11 + $0x50] ss:$8 sps:$4 sm:$0xff]   ;;  %v11368_v1 = vld [vmem:[#allocation11 + $0x44] ss:$8 sps:$4 sm:$0xff]  }
 0x91b   : > { %7264 = vmatpush1.bf16.msra.mxu0 %v14129_v43  ;;  %v11252_v43 = vld [vmem:[#allocation11 + $0x154] ss:$8 sps:$4 sm:$0xff]  }
 0x91c   : > { %7265 = vmatprep.subr.bf16.mxu0 %v14133_v46  ;;  %v11380_v46 = vld [vmem:[#allocation11 + $0xe4] ss:$8 sps:$4 sm:$0xff]  }
 0x91d   : > { %8259 = vmatpush1.bf16.msra.mxu1 %v11366_v29  ;;  %v11369_v29 = vld [vmem:[#allocation11 + $0x40] ss:$8 sps:$4 sm:$0xff]  }
 0x91e   : > { %8260 = vmatprep.subr.bf16.mxu1 %v13958_v34  ;;  %v14152_v34 = vld [vmem:[#allocation11 + $0x424] ss:$8 sps:$4 sm:$0xff]  }
 0x91f   : > { %7266 = vmatpush1.bf16.msra.mxu0 %v14137_v0  ;;  %14530 = vst [vmem:[#allocation26_spill] sm:$0xff] %v14152_v34 }
 0x920   : > { %7267 = vmatprep.subr.bf16.mxu0 %v14141_v17  ;;  %v14158_v17 = vld [vmem:[#allocation11 + $0x414] ss:$8 sps:$4 sm:$0xff]  }
 0x921   : > { %8261 = vmatpush1.bf16.msra.mxu1 %v11367_v20  ;;  %v11371_v20 = vld [vmem:[#allocation11 + $0x30] ss:$8 sps:$4 sm:$0xff]   ;;  %14532 = vst [vmem:[#allocation28_spill] sm:$0xff] %v14158_v17 }
 0x922   : > { %8262 = vmatprep.subr.bf16.mxu1 %v11368_v1  ;;  %v11372_v1 = vld [vmem:[#allocation11 + $0x24] ss:$8 sps:$4 sm:$0xff]  }
 0x923   : > { %7268 = vmatpush1.bf16.msra.mxu0 %v14144_v27 }
 0x924   : > { %7269 = vmatprep.subr.bf16.mxu0 %v14146_v12  ;;  %v11373_v12 = vld [vmem:[#allocation11 + $0x20] ss:$8 sps:$4 sm:$0xff]  }
 0x925   : > { %8263 = vmatpush1.bf16.msra.mxu1 %v11369_v29  ;;  %v7333_v29 = vcombine.high %v14096_v24, %v14096_v24  ;;  %v14173_v24 = vld [vmem:[#allocation11 + $0x400] ss:$8 sps:$4 sm:$0xff]  }
 0x926   : > { %8264 = vmatprep.subr.bf16.mxu1 %v11370_v15  ;;  %v14164_v15 = vld [vmem:[#allocation11 + $0x410] ss:$8 sps:$4 sm:$0xff]   ;;  %14535 = vst [vmem:[#allocation31_spill] sm:$0xff] %v14173_v24 }
 0x927   : > { %7270 = vmatpush1.bf16.msra.mxu0 %v14150_v56  ;;  %14533 = vst [vmem:[#allocation29_spill] sm:$0xff] %v14164_v15  ;;  %v14166_v56 = vld [vmem:[#allocation11 + $0x404] ss:$8 sps:$4 sm:$0xff]   ;;  %v14170_v27 = vrot.slane %v7333_v29, %v13977_v19  ;;  %v11377_v29 = vld [vmem:[#allocation11] ss:$8 sps:$4 sm:$0xff]  }
 0x928   : > { %7271 = vmatprep.subr.bf16.mxu0 %v14152_v34  ;;  %14534 = vst [vmem:[#allocation30_spill] sm:$0xff] %v14166_v56 }
 0x929   : > { %8265 = vmatpush1.bf16.msra.mxu1 %v11371_v20  ;;  %v11374_v20 = vld [vmem:[#allocation11 + $0x14] ss:$8 sps:$4 sm:$0xff]   ;;  %v7349_v34 = vcombine.high %v14170_v27, %v14170_v27 }
 0x92a   : > { %8266 = vmatprep.subr.bf16.mxu1 %v11372_v1  ;;  %v11375_v1 = vld [vmem:[#allocation11 + $0x10] ss:$8 sps:$4 sm:$0xff]  }
 0x92b   : > { %7272 = vmatpush1.bf16.msra.mxu0 %v14156_v9  ;;  %v11246_v9 = vld [vmem:[#allocation11 + $0x174] ss:$8 sps:$4 sm:$0xff]   ;;  %v7386_v0 = vpack.c.bf16 %v7349_v34, %v7349_v34  ;;  %v11268_v34 = vld [vmem:[#allocation11 + $0x1f0] ss:$8 sps:$4 sm:$0xff]  }
 0x92c   : > { %7273 = vmatprep.subr.bf16.mxu0 %v14158_v17  ;;  %v11249_v17 = vld [vmem:[#allocation11 + $0x164] ss:$8 sps:$4 sm:$0xff]  }
 0x92d   : > { %8267 = vmatpush1.bf16.msra.mxu1 %v11373_v12  ;;  %v11376_v12 = vld [vmem:[#allocation11 + $0x4] ss:$8 sps:$4 sm:$0xff]  }
 0x92e   : > { %8268 = vmatprep.subr.bf16.mxu1 %v11374_v20  ;;  %v6221_v20 = vpack.c.bf16 %v14079_v37, %v14079_v37  ;;  %v11381_v37 = vld [vmem:[#allocation11 + $0xe0] ss:$8 sps:$4 sm:$0xff]  }
 0x92f   : > { %7274 = vmatpush1.bf16.msra.mxu0 %v14164_v15  ;;  %v11244_v15 = vld [vmem:[#allocation11 + $0x170] ss:$8 sps:$4 sm:$0xff]  }
 0x930   : > { %7275 = vmatprep.subr.bf16.mxu0 %v14166_v56  ;;  %v11379_v56 = vld [vmem:[#allocation11 + $0xf0] ss:$8 sps:$4 sm:$0xff]  }
 0x931   : > { %8269 = vmatpush1.bf16.msra.mxu1 %v11375_v1  ;;  %v11378_v1 = vld [vmem:[#allocation11 + $0xf4] ss:$8 sps:$4 sm:$0xff]  }
 0x932   : > { %8270 = vmatprep.subr.bf16.mxu1 %v11376_v12  ;;  %v11247_v12 = vld [vmem:[#allocation11 + $0x160] ss:$8 sps:$4 sm:$0xff]  }
 0x933   : > { %7276 = vmatpush1.bf16.msra.mxu0 %v14173_v24  ;;  %v11382_v24 = vld [vmem:[#allocation11 + $0xd4] ss:$8 sps:$4 sm:$0xff]  }
 0x934   : > { %8297 = vmatprep.subr.bf16.mxu0 %v11246_v9  ;;  %v11253_v9 = vld [vmem:[#allocation11 + $0x140] ss:$8 sps:$4 sm:$0xff]  }
 0x935   : > { %8271 = vmatpush1.bf16.msra.mxu1 %v11377_v29  ;;  %v11250_v29 = vld [vmem:[#allocation11 + $0x150] ss:$8 sps:$4 sm:$0xff]  }
 0x936   : > { %8272 = vmatprep.subr.bf16.mxu1 %v11378_v1  ;;  %7294 = vmatmul.mubr.bf16.vlgmr.msra.gmra.mxu0 %v6221_v20  ;;  %v11255_v1 = vld [vmem:[#allocation11 + $0x144] ss:$8 sps:$4 sm:$0xff]  }
 0x937   : > { %8298 = vmatpush1.bf16.msra.mxu0 %v11244_v15  ;;  %8329 = vmatprep.mubr.bf16.mxu0 %v7386_v0  ;;  %v11261_v0 = vld [vmem:[#allocation11 + $0x124] ss:$8 sps:$4 sm:$0xff]  }
 0x938   : > { %8299 = vmatprep.subr.bf16.mxu0 %v11249_v17  ;;  %v14187_v17 = vld [vmem:[#allocation10 + $0x8] sm:$0xff] }
 0x939   : > { %8273 = vmatpush2.bf16.msra.mxu1 %v11379_v56  ;;  %v11258_v56 = vld [vmem:[#allocation11 + $0x134] ss:$8 sps:$4 sm:$0xff]  }
 0x93a   : > { %8274 = vmatprep.subr.bf16.mxu1 %v11380_v46  ;;  %v11256_v46 = vld [vmem:[#allocation11 + $0x130] ss:$8 sps:$4 sm:$0xff]  }
 0x93b   : > { %8300 = vmatpush1.bf16.msra.mxu0 %v11247_v12 }
 0x93c   : > { %8301 = vmatprep.subr.bf16.mxu0 %v11252_v43  ;;  %v11259_v43 = vld [vmem:[#allocation11 + $0x120] ss:$8 sps:$4 sm:$0xff]  }
 0x93d   : > { %8275 = vmatpush2.bf16.msra.mxu1 %v11381_v37  ;;  %v11301_v37 = vld [vmem:[#allocation11 + $0x354] ss:$8 sps:$4 sm:$0xff]  }
 0x93e   : > { %8276 = vmatprep.subr.bf16.mxu1 %v11382_v24  ;;  %v11276_v24 = vld [vmem:[#allocation11 + $0x1d4] ss:$8 sps:$4 sm:$0xff]  }
 0x93f   : > { %8302 = vmatpush1.bf16.msra.mxu0 %v11250_v29  ;;  %v6373_v29 = vsub.s32 1, %v11908_v2 }
 0x940   : > { %8303 = vmatprep.subr.bf16.mxu0 %v11255_v1  ;;  %v11317_v1 = vld [vmem:[#allocation11 + $0x3f0] ss:$8 sps:$4 sm:$0xff]  }
 0x941   : > { %8277 = vmatpush2.bf16.msra.mxu1 %v13961_v49  ;;  %v11264_v49 = vld [vmem:[#allocation11 + $0x114] ss:$8 sps:$4 sm:$0xff]  }
 0x942   : > { %8278 = vmatprep.subr.bf16.mxu1 %v13963_v62  ;;  %v11262_v62 = vld [vmem:[#allocation11 + $0x110] ss:$8 sps:$4 sm:$0xff]  }
 0x943   : > { %8304 = vmatpush1.bf16.msra.mxu0 %v11253_v9 }
 0x944   : > { %8305 = vmatprep.subr.bf16.mxu0 %v11258_v56 }
 0x945   : > { %8279 = vmatpush2.bf16.msra.mxu1 %v13966_v52  ;;  %v11267_v52 = vld [vmem:[#allocation11 + $0x104] ss:$8 sps:$4 sm:$0xff]  }
 0x946   : > { %8280 = vmatprep.subr.bf16.mxu1 %v13969_v6  ;;  %v14193_v6 = vrot.slane %v14187_v17, %v13977_v19 }
 0x947   : > { %8306 = vmatpush1.bf16.msra.mxu0 %v11256_v46 }
 0x948   : > { %8307 = vmatprep.subr.bf16.mxu0 %v11261_v0 }
 0x949   : > { %8281 = vmatpush2.bf16.msra.mxu1 %v13971_v11  ;;  %v11265_v11 = vld [vmem:[#allocation11 + $0x100] ss:$8 sps:$4 sm:$0xff]  }
 0x94a   : > { %8282 = vmatprep.subr.bf16.mxu1 %v13973_v16  ;;  %v11270_v16 = vld [vmem:[#allocation11 + $0x1f4] ss:$8 sps:$4 sm:$0xff]  }
 0x94b   : > { %8308 = vmatpush1.bf16.msra.mxu0 %v11259_v43 }
 0x94c   : > { %8309 = vmatprep.subr.bf16.mxu0 %v11264_v49 }
 0x94d   : > { %8283 = vmatpush2.bf16.msra.mxu1 %v13980_v28  ;;  %v7365_v28 = vcombine.high %v14193_v6, %v14193_v6 }
 0x94e   : > { %8284 = vmatprep.subr.bf16.mxu1 %v13983_v30  ;;  %v7383_v30 = vpack.c.bf16 %v14106_v41, %v14106_v41  ;;  %v11277_v41 = vld [vmem:[#allocation11 + $0x1c0] ss:$8 sps:$4 sm:$0xff]  }
 0x94f   : > { %8310 = vmatpush1.bf16.msra.mxu0 %v11262_v62  ;;  %v7388_v15 = vpack.c.bf16 %v7365_v28, %v7365_v28  ;;  %v14537_v28 = vld [vmem:[#allocation19_spill] sm:$0xff] }
 0x950   : > { %8311 = vmatprep.subr.bf16.mxu0 %v11267_v52  ;;  %v14536_v52 = vmov 0  }
 0x951   : > { %8285 = vmatpush2.bf16.msra.mxu1 %v13988_v36  ;;  %v11273_v36 = vld [vmem:[#allocation11 + $0x1e4] ss:$8 sps:$4 sm:$0xff]  }
 0x952   : > { %8286 = vmatprep.subr.bf16.mxu1 %v13991_v39  ;;  %v11271_v39 = vld [vmem:[#allocation11 + $0x1e0] ss:$8 sps:$4 sm:$0xff]  }
 0x953   : > { %8312 = vmatpush1.bf16.msra.mxu0 %v11265_v11 }
 0x954   : > { %8313 = vmatprep.subr.bf16.mxu0 %v11270_v16 }
 0x955   : > { %8287 = vmatpush2.bf16.msra.mxu1 %v13994_v45  ;;  %v11274_v45 = vld [vmem:[#allocation11 + $0x1d0] ss:$8 sps:$4 sm:$0xff]  }
 0x956   : > { %8338 = vmatprep.subr.bf16.mxu1 %v13997_v47  ;;  %v11279_v47 = vld [vmem:[#allocation11 + $0x1c4] ss:$8 sps:$4 sm:$0xff]  }
 0x957   : > { %8314 = vmatpush2.bf16.msra.mxu0 %v11268_v34 }
 0x958   : > { %8289 = vmatmul.mubr.bf16.vlgmr.msra.gmra.mxu1 %v7383_v30  ;;  %8315 = vmatprep.subr.bf16.mxu0 %v11273_v36  ;;  %v11323_v30 = vld [vmem:[#allocation11 + $0x3d0] ss:$8 sps:$4 sm:$0xff]  }
 0x959   : > { %8339 = vmatpush1.bf16.msra.mxu1 %v14000_v55  ;;  %8370 = vmatprep.mubr.bf16.mxu1 %v7388_v15  ;;  %v11282_v55 = vld [vmem:[#allocation11 + $0x1b4] ss:$8 sps:$4 sm:$0xff]   ;;  %v11328_v15 = vld [vmem:[#allocation11 + $0x3c4] ss:$8 sps:$4 sm:$0xff]  }
 0x95a   : > { %8340 = vmatprep.subr.bf16.mxu1 %v14003_v18  ;;  %v11280_v18 = vld [vmem:[#allocation11 + $0x1b0] ss:$8 sps:$4 sm:$0xff]  }
 0x95b   : > { %8316 = vmatpush2.bf16.msra.mxu0 %v11271_v39  ;;  %v14538_v36 = vld [vmem:[#allocation20_spill] sm:$0xff] }
 0x95c   : > { %8317 = vmatprep.subr.bf16.mxu0 %v11276_v24  ;;  %v11326_v39 = vld [vmem:[#allocation11 + $0x3c0] ss:$8 sps:$4 sm:$0xff]  }
 0x95d   : > { %8341 = vmatpush1.bf16.msra.mxu1 %v14006_v57  ;;  %v11285_v57 = vld [vmem:[#allocation11 + $0x1a4] ss:$8 sps:$4 sm:$0xff]  }
 0x95e   : > { %8342 = vmatprep.subr.bf16.mxu1 %v14009_v58  ;;  %v11283_v58 = vld [vmem:[#allocation11 + $0x1a0] ss:$8 sps:$4 sm:$0xff]  }
 0x95f   : > { %8318 = vmatpush2.bf16.msra.mxu0 %v11274_v45  ;;  %v14540_v24 = vld [vmem:[#allocation22_spill] sm:$0xff]  ;;  %v11331_v45 = vld [vmem:[#allocation11 + $0x3b4] ss:$8 sps:$4 sm:$0xff]  }
 0x960   : > { %8319 = vmatprep.subr.bf16.mxu0 %v11279_v47  ;;  %v14541_v47 = vld [vmem:[#allocation23_spill] sm:$0xff] }
 0x961   : > { %8343 = vmatpush1.bf16.msra.mxu1 %v14012_v42  ;;  %v11288_v42 = vld [vmem:[#allocation11 + $0x194] ss:$8 sps:$4 sm:$0xff]  }
 0x962   : > { %8344 = vmatprep.subr.bf16.mxu1 %v14015_v60  ;;  %v7350_v60 = vcombine.high %v14187_v17, %v14187_v17 }
 0x963   : > { %8320 = vmatpush2.bf16.msra.mxu0 %v11277_v41  ;;  %v11329_v41 = vld [vmem:[#allocation11 + $0x3b0] ss:$8 sps:$4 sm:$0xff]  }
 0x964   : > { %8321 = vmatprep.subr.bf16.mxu0 %v11282_v55  ;;  %v14218_v20 = vrot.slane %v7350_v60, %v13977_v19  ;;  %v11298_v19 = vld [vmem:[#allocation11 + $0x364] ss:$8 sps:$4 sm:$0xff]   ;;  %v14542_v55 = vld [vmem:[#allocation24_spill] sm:$0xff] }
 0x965   : > { %8345 = vmatpush1.bf16.msra.mxu1 %v14018_v63  ;;  %v11286_v63 = vld [vmem:[#allocation11 + $0x190] ss:$8 sps:$4 sm:$0xff]   ;;  %v11337_v60 = vld [vmem:[#allocation11 + $0x394] ss:$8 sps:$4 sm:$0xff]  }
 0x966   : > { %8346 = vmatprep.subr.bf16.mxu1 %v14021_v21  ;;  %v11291_v21 = vld [vmem:[#allocation11 + $0x184] ss:$8 sps:$4 sm:$0xff]   ;;  %v7366_v12 = vcombine.high %v14218_v20, %v14218_v20 }
 0x967   : > { %8322 = vmatpush2.bf16.msra.mxu0 %v11280_v18  ;;  %v11334_v18 = vld [vmem:[#allocation11 + $0x3a4] ss:$8 sps:$4 sm:$0xff]  }
 0x968   : > { %8323 = vmatprep.subr.bf16.mxu0 %v11285_v57  ;;  %v14543_v57 = vld [vmem:[#allocation25_spill] sm:$0xff] }
 0x969   : > { %8347 = vmatpush1.bf16.msra.mxu1 %v14024_v23  ;;  %v11289_v23 = vld [vmem:[#allocation11 + $0x180] ss:$8 sps:$4 sm:$0xff]  }
 0x96a   : > { %8348 = vmatprep.subr.bf16.mxu1 %v14027_v3  ;;  %v11295_v3 = vld [vmem:[#allocation11 + $0x374] ss:$8 sps:$4 sm:$0xff]  }
 0x96b   : > { %8324 = vmatpush2.bf16.msra.mxu0 %v11283_v58  ;;  %v11332_v58 = vld [vmem:[#allocation11 + $0x3a0] ss:$8 sps:$4 sm:$0xff]  }
 0x96c   : > { %8325 = vmatprep.subr.bf16.mxu0 %v11288_v42  ;;  %v14544_v42 = vld [vmem:[#allocation26_spill] sm:$0xff] }
 0x96d   : > { %8349 = vmatpush1.bf16.msra.mxu1 %v14030_v10  ;;  %v7385_v10 = vpack.c.bf16 %v14170_v27, %v14170_v27  ;;  %v11302_v27 = vld [vmem:[#allocation11 + $0x340] ss:$8 sps:$4 sm:$0xff]  }
 0x96e   : > { %8350 = vmatprep.subr.bf16.mxu1 %v14033_v7  ;;  %v11293_v7 = vld [vmem:[#allocation11 + $0x370] ss:$8 sps:$4 sm:$0xff]  }
 0x96f   : > { %8326 = vmatpush2.bf16.msra.mxu0 %v11286_v63  ;;  %v14545_v63 = vld [vmem:[#allocation27_spill] sm:$0xff] }
 0x970   : > { %8327 = vmatprep.subr.bf16.mxu0 %v11291_v21  ;;  %v11335_v21 = vld [vmem:[#allocation11 + $0x390] ss:$8 sps:$4 sm:$0xff]  }
 0x971   : > { %8351 = vmatpush1.bf16.msra.mxu1 %v14036_v25  ;;  %v7390_v25 = vpack.c.bf16 %v7366_v12, %v7366_v12  ;;  %v14547_v12 = vld [vmem:[#allocation29_spill] sm:$0xff] }
 0x972   : > { %8352 = vmatprep.subr.bf16.mxu1 %v14040_v13  ;;  %v11296_v13 = vld [vmem:[#allocation11 + $0x360] ss:$8 sps:$4 sm:$0xff]  }
 0x973   : > { %8328 = vmatpush2.bf16.msra.mxu0 %v11289_v23  ;;  %v14546_v23 = vld [vmem:[#allocation28_spill] sm:$0xff] }
 0x974   : > { %8379 = vmatprep.subr.bf16.mxu0 %v11295_v3  ;;  %v11340_v3 = vld [vmem:[#allocation11 + $0x384] ss:$8 sps:$4 sm:$0xff]  }
 0x975   : > { %8353 = vmatpush1.bf16.msra.mxu1 %v14042_v33  ;;  %v11299_v33 = vld [vmem:[#allocation11 + $0x350] ss:$8 sps:$4 sm:$0xff]  }
 0x976   : > { %8354 = vmatprep.subr.bf16.mxu1 %v14045_v38  ;;  %8330 = vmatmul.mubr.bf16.vlgmr.msra.gmra.mxu0 %v7385_v10  ;;  %v11304_v38 = vld [vmem:[#allocation11 + $0x344] ss:$8 sps:$4 sm:$0xff]   ;;  %v11338_v10 = vld [vmem:[#allocation11 + $0x380] ss:$8 sps:$4 sm:$0xff]  }
 0x977   : > { %8380 = vmatpush1.bf16.msra.mxu0 %v11293_v7  ;;  %8411 = vmatprep.mubr.bf16.mxu0 %v7390_v25  ;;  %v9802_v7 = vld.sshfl [vmem:[#allocation10 + $0x10] sm:$0x3 pattern:$0x76325410]  ;;  %v7389_v25 = vpack.c.bf16 %v14218_v20, %v14218_v20 }
 0x978   : > { %8381 = vmatprep.subr.bf16.mxu0 %v11298_v19  ;;  %v14548_v19 = vld [vmem:[#allocation30_spill] sm:$0xff] }
 0x979   : > { %8355 = vmatpush2.bf16.msra.mxu1 %v14048_v14  ;;  %v11307_v14 = vld [vmem:[#allocation11 + $0x334] ss:$8 sps:$4 sm:$0xff]  }
 0x97a   : > { %8356 = vmatprep.subr.bf16.mxu1 %v14052_v54  ;;  %v11305_v54 = vld [vmem:[#allocation11 + $0x330] ss:$8 sps:$4 sm:$0xff]  }
 0x97b   : > { %8382 = vmatpush1.bf16.msra.mxu0 %v11296_v13  ;;  %v7391_v13 = vpack.c.bf16 %v9802_v7, %v9802_v7 }
 0x97c   : > { %8383 = vmatprep.subr.bf16.mxu0 %v11301_v37  ;;  %v14549_v37 = vld [vmem:[#allocation31_spill] sm:$0xff] }
 0x97d   : > { %8357 = vmatpush2.bf16.msra.mxu1 %v14057_v59  ;;  %v11310_v59 = vld [vmem:[#allocation11 + $0x324] ss:$8 sps:$4 sm:$0xff]  }
 0x97e   : > { %8358 = vmatprep.subr.bf16.mxu1 %v14065_v61  ;;  %v11308_v61 = vld [vmem:[#allocation11 + $0x320] ss:$8 sps:$4 sm:$0xff]  }
 0x97f   : > { %8384 = vmatpush1.bf16.msra.mxu0 %v11299_v33  ;;  %v14550_v33 = vmov 0.0  }
 0x980   : > { %8385 = vmatprep.subr.bf16.mxu0 %v11304_v38 }
 0x981   : > { %8359 = vmatpush2.bf16.msra.mxu1 %v14070_v26  ;;  %v11313_v26 = vld [vmem:[#allocation11 + $0x314] ss:$8 sps:$4 sm:$0xff]  }
 0x982   : > { %8360 = vmatprep.subr.bf16.mxu1 %v14073_v31  ;;  %v11311_v31 = vld [vmem:[#allocation11 + $0x310] ss:$8 sps:$4 sm:$0xff]  }
 0x983   : > { %8386 = vmatpush1.bf16.msra.mxu0 %v11302_v27 }
 0x984   : > { %8387 = vmatprep.subr.bf16.mxu0 %v11307_v14 }
 0x985   : > { %8361 = vmatpush2.bf16.msra.mxu1 %v14076_v40  ;;  %v11316_v40 = vld [vmem:[#allocation11 + $0x304] ss:$8 sps:$4 sm:$0xff]  }
 0x986   : > { %8362 = vmatprep.subr.bf16.mxu1 %v14082_v44  ;;  %v11314_v44 = vld [vmem:[#allocation11 + $0x300] ss:$8 sps:$4 sm:$0xff]  }
 0x987   : > { %8388 = vmatpush1.bf16.msra.mxu0 %v11305_v54 }
 0x988   : > { %8389 = vmatprep.subr.bf16.mxu0 %v11310_v59 }
 0x989   : > { %8363 = vmatpush2.bf16.msra.mxu1 %v14085_v53  ;;  %v6369_v53 = vsub.s32 0, %v11908_v2 }
 0x98a   : > { %8364 = vmatprep.subr.bf16.mxu1 %v14088_v50  ;;  %v6136_v50 = vld [vmem:[%s14435_s8] sm:$0x3] }
 0x98b   : > { %8390 = vmatpush1.bf16.msra.mxu0 %v11308_v61  ;;  %v14257_v9 = vrot.slane %v6136_v50, %v6373_v29 }
 0x98c   : > { %8391 = vmatprep.subr.bf16.mxu0 %v11313_v26 }
 0x98d   : > { %8365 = vmatpush2.bf16.msra.mxu1 %v14091_v48  ;;  %v11319_v48 = vld [vmem:[#allocation11 + $0x3f4] ss:$8 sps:$4 sm:$0xff]  }
 0x98e   : > { %8366 = vmatprep.subr.bf16.mxu1 %v14094_v4  ;;  %v7387_v4 = vpack.c.bf16 %v14193_v6, %v14193_v6 }
 0x98f   : > { %8392 = vmatpush1.bf16.msra.mxu0 %v11311_v31 }
 0x990   : > { %8393 = vmatprep.subr.bf16.mxu0 %v11316_v40 }
 0x991   : > { %8367 = vmatpush2.bf16.msra.mxu1 %v14099_v8  ;;  %v14252_v8 = vrot.slane %v6136_v50, %v6369_v53 }
 0x992   : > { %8368 = vmatprep.subr.bf16.mxu1 %v14102_v32  ;;  %v11322_v32 = vld [vmem:[#allocation11 + $0x3e4] ss:$8 sps:$4 sm:$0xff]  }
 0x993   : > { %8394 = vmatpush1.bf16.msra.mxu0 %v11314_v44 }
 0x994   : > { %8395 = vmatprep.subr.bf16.mxu0 %v11319_v48 }
 0x995   : > { %8369 = vmatpush2.bf16.msra.mxu1 %v14109_v51  ;;  %v11320_v51 = vld [vmem:[#allocation11 + $0x3e0] ss:$8 sps:$4 sm:$0xff]  }
 0x996   : > { %8420 = vmatprep.subr.bf16.mxu1 %v14112_v5  ;;  %v7131_v56 = vpop.f32.mrf.mxu0  ;;  %v11325_v5 = vld [vmem:[#allocation11 + $0x3d4] ss:$8 sps:$4 sm:$0xff]  }
 0x997   : > { %v7132_v0 = vadd.f32 %v7131_v56, %v14252_v8  ;;  %8396 = vmatpush2.bf16.msra.mxu0 %v11317_v1 }
 0x998   : > { %v7172_v46 = vpop.f32.mrf.mxu1  ;;  %8371 = vmatmul.mubr.bf16.vlgmr.msra.gmra.mxu1 %v7387_v4  ;;  %v7133_v43 = vpop.f32.mrf.mxu0  ;;  %8397 = vmatprep.subr.bf16.mxu0 %v11322_v32 }
 0x999   : > { %8421 = vmatpush1.bf16.msra.mxu1 %v14121_v22  ;;  %v7173_v17 = vadd.f32 %v7172_v46, %v7132_v0  ;;  %v7134_v62 = vadd.f32 %v7133_v43, %v14257_v9  ;;  %8452 = vmatprep.mubr.bf16.mxu1 %v14536_v52 }
 0x99a   : > { %v7174_v49 = vpop.f32.mrf.mxu1  ;;  %8422 = vmatprep.subr.bf16.mxu1 %v14125_v35  ;;  %v7135_v6 = vpop.f32.mrf.mxu0  ;;  %v14539_v35 = vld [vmem:[#allocation21_spill] sm:$0xff] }
 0x99b   : > { %v7175_v16 = vadd.f32 %v7174_v49, %v7134_v62  ;;  %8398 = vmatpush2.bf16.msra.mxu0 %v11320_v51 }
 0x99c   : > { %v7176_v11 = vpop.f32.mrf.mxu1  ;;  %v7136_v22 = vpop.f32.mrf.mxu0  ;;  %8399 = vmatprep.subr.bf16.mxu0 %v11325_v5 }
 0x99d   : > { %8423 = vmatpush1.bf16.msra.mxu1 %v14537_v28 }
 0x99e   : > { %v7177_v34 = vpop.f32.mrf.mxu1  ;;  %8424 = vmatprep.subr.bf16.mxu1 %v14538_v36 }
 0x99f   : > { %8400 = vmatpush2.bf16.msra.mxu0 %v11323_v30 }
 0x9a0   : > { %8401 = vmatprep.subr.bf16.mxu0 %v11328_v15 }
 0x9a1   : > { %8425 = vmatpush1.bf16.msra.mxu1 %v14539_v35 }
 0x9a2   : > { %8426 = vmatprep.subr.bf16.mxu1 %v14540_v24 }
 0x9a3   : > { %8402 = vmatpush2.bf16.msra.mxu0 %v11326_v39 }
 0x9a4   : > { %8403 = vmatprep.subr.bf16.mxu0 %v11331_v45 }
 0x9a5   : > { %8427 = vmatpush1.bf16.msra.mxu1 %v14541_v47 }
 0x9a6   : > { %8428 = vmatprep.subr.bf16.mxu1 %v14542_v55 }
 0x9a7   : > { %8404 = vmatpush2.bf16.msra.mxu0 %v11329_v41 }
 0x9a8   : > { %8405 = vmatprep.subr.bf16.mxu0 %v11334_v18 }
 0x9a9   : > { %8429 = vmatpush1.bf16.msra.mxu1 %v14543_v57 }
 0x9aa   : > { %8430 = vmatprep.subr.bf16.mxu1 %v14544_v42 }
 0x9ab   : > { %8406 = vmatpush2.bf16.msra.mxu0 %v11332_v58 }
 0x9ac   : > { %8407 = vmatprep.subr.bf16.mxu0 %v11337_v60 }
 0x9ad   : > { %8431 = vmatpush1.bf16.msra.mxu1 %v14545_v63 }
 0x9ae   : > { %8432 = vmatprep.subr.bf16.mxu1 %v14546_v23 }
 0x9af   : > { %8408 = vmatpush2.bf16.msra.mxu0 %v11335_v21 }
 0x9b0   : > { %8409 = vmatprep.subr.bf16.mxu0 %v11340_v3 }
 0x9b1   : > { %8433 = vmatpush1.bf16.msra.mxu1 %v14547_v12 }
 0x9b2   : > { %8434 = vmatprep.subr.bf16.mxu1 %v14548_v19 }
 0x9b3   : > { %8410 = vmatpush2.bf16.msra.mxu0 %v11338_v10 }
 0x9b5   : > { %8435 = vmatpush1.bf16.msra.mxu1 %v14549_v37  ;;  %v11343_v37 = vld [vmem:[%s14436_s9 + $0x38] sm:$0xff]  }
 0x9b6   : > { %8412 = vmatmul.mubr.bf16.vlgmr.msra.gmra.mxu0 %v7389_v25 }
 0x9b7   : > { %8544 = vmatprep.mubr.f32.mxu0 %v14550_v33 }
 0x9b8   : > { %8453 = vmatmul.mubr.bf16.vlgmr.msra.gmra.mxu1 %v7391_v13  ;;  %v11342_v13 = vld [vmem:[%s14436_s9 + $0x78] sm:$0xff]  }
 0x9b9   : > { %8618 = vmatprep.mubr.f32.mxu1 %v14550_v33 }
 0x9d6   : > { %v7213_v38 = vpop.f32.mrf.mxu0 }
 0x9d7   : > { %v7214_v14 = vadd.f32 %v7213_v38, %v7173_v17  ;;  %v11344_v38 = vld [vmem:[%s14436_s9 + $0x70] sm:$0xff]  }
 0x9d8   : > { %v7254_v27 = vpop.f32.mrf.mxu1  ;;  %v7215_v54 = vpop.f32.mrf.mxu0 }
 0x9d9   : > { %v7255_v61 = vadd.f32 %v7254_v27, %v7214_v14  ;;  %v7216_v26 = vadd.f32 %v7215_v54, %v7175_v16  ;;  %v14551_v27 = vld [vmem:[#allocation17_spill] sm:$0xff]  ;;  %v14552_v14 = vld [vmem:[#allocation18_spill] sm:$0xff] }
 0x9da   : > { %v7256_v59 = vpop.f32.mrf.mxu1  ;;  %v7217_v31 = vpop.f32.mrf.mxu0  ;;  %v11345_v54 = vld [vmem:[%s14436_s9 + $0x30] sm:$0xff]  }
 0x9db   : > { %v7257_v20 = vadd.f32 %v7256_v59, %v7216_v26  ;;  %v11346_v59 = vld [vmem:[%s14436_s9 + $0x68] sm:$0xff]   ;;  %v11348_v26 = vld [vmem:[%s14436_s9 + $0x60] sm:$0xff]  }
 0x9dc   : > { %v7258_v40 = vpop.f32.mrf.mxu1  ;;  %v7218_v44 = vpop.f32.mrf.mxu0  ;;  %v11349_v31 = vld [vmem:[%s14436_s9 + $0x20] sm:$0xff]  }
 0x9dd   : > { %v11350_v40 = vld [vmem:[%s14436_s9 + $0x58] sm:$0xff]   ;;  %v11352_v44 = vld [vmem:[%s14436_s9 + $0x50] sm:$0xff]  }
 0x9de   : > { %v7259_v50 = vpop.f32.mrf.mxu1 }
 0x9df   : > { %v11353_v50 = vld [vmem:[%s14436_s9 + $0x10] sm:$0xff]  }
 0x9f6   : > { %v7295_v48 = vpop.f32.mrf.mxu0 }
 0x9f7   : > { %v7296_v4 = vadd.f32 %v7295_v48, %v7255_v61  ;;  %v11347_v61 = vld [vmem:[%s14436_s9 + $0x28] sm:$0xff]  }
 0x9f8   : > { %v7297_v1 = vpop.f32.mrf.mxu0  ;;  %v11354_v48 = vld [vmem:[%s14436_s9 + $0x48] sm:$0xff]  }
 0x9f9   : > { %v7298_v32 = vadd.f32 %v7297_v1, %v7257_v20  ;;  %v7304_v55 = vmul.f32 0.1, %v7296_v4  ;;  %vm7302_vm10 = vcmp.ge.f32.partialorder %v7296_v4, 0.0  ;;  %v11351_v20 = vld [vmem:[%s14436_s9 + $0x18] sm:$0xff]   ;;  %v11356_v1 = vld [vmem:[%s14436_s9 + $0x40] sm:$0xff]  }
 0x9fa   : > { %v7299_v56 = vpop.f32.mrf.mxu0 }
 0x9fb   : > { %v7305_v60 = vmul.f32 0.1, %v7298_v32  ;;  %vm7303_vm6 = vcmp.ge.f32.partialorder %v7298_v32, 0.0  ;;  %v7306_v23 = vsel %vm7302_vm10, %v7296_v4, %v7304_v55  ;;  %v11355_v4 = vld [vmem:[%s14436_s9 + $0x8] sm:$0xff]   ;;  %v11358_v56 = vld [vmem:[%s14438_s11 + $0x38] sm:$0xff]  }
 0x9fc   : > { %v7300_v46 = vpop.f32.mrf.mxu0  ;;  %v11364_v55 = vld [vmem:[%s14438_s11 + $0x8] sm:$0xff]  }
 0x9fd   : > { %v7307_v7 = vsel %vm7303_vm6, %v7298_v32, %v7305_v60  ;;  %v11357_v32 = vld [vmem:[%s14436_s9] sm:$0xff]   ;;  %v11359_v46 = vld [vmem:[%s14438_s11 + $0x30] sm:$0xff]  }
 0xa18   : > { %v8290_v0 = vpop.f32.mrf.mxu1 }
 0xa19   : > { %v8291_v30 = vadd.f32 %v8290_v0, %v14252_v8  ;;  %v11360_v0 = vld [vmem:[%s14438_s11 + $0x28] sm:$0xff]  }
 0xa1a   : > { %v8292_v51 = vpop.f32.mrf.mxu1 }
 0xa1b   : > { %v8293_v22 = vadd.f32 %v8292_v51, %v14257_v9  ;;  %v11361_v51 = vld [vmem:[%s14438_s11 + $0x20] sm:$0xff]  }
 0xa1c   : > { %v8294_v43 = vpop.f32.mrf.mxu1 }
 0xa1d   : > { %v11362_v43 = vld [vmem:[%s14438_s11 + $0x18] sm:$0xff]  }
 0xa1e   : > { %v8295_v49 = vpop.f32.mrf.mxu1 }
 0xa1f   : > { %v11522_v49 = vmov 1966171168  }
 0xa36   : > { %v8331_v5 = vpop.f32.mrf.mxu0 }
 0xa37   : > { %v8332_v34 = vadd.f32 %v8331_v5, %v8291_v30  ;;  %v8631_v5 = vunpack.c.l.s4 %v11522_v49 }
 0xa38   : > { %v8333_v17 = vpop.f32.mrf.mxu0 }
 0xa39   : > { %v8334_v36 = vadd.f32 %v8333_v17, %v8293_v22  ;;  %v8632_v17 = vunpack.c.0.s8 %v8631_v5 }
 0xa3a   : > { %v8335_v62 = vpop.f32.mrf.mxu0 }
 0xa3b   : > { %v8635_v30 = vsub.s32 %v8632_v17, %v11908_v2  ;;  %v11365_v2 = vld [vmem:[%s14438_s11] sm:$0xff]  }
 0xa3c   : > { %v8336_v52 = vpop.f32.mrf.mxu0 }
 0xa58   : > { %v8372_v6 = vpop.f32.mrf.mxu1 }
 0xa59   : > { %v8373_v15 = vadd.f32 %v8372_v6, %v8332_v34 }
 0xa5a   : > { %v8374_v11 = vpop.f32.mrf.mxu1 }
 0xa5b   : > { %v8375_v24 = vadd.f32 %v8374_v11, %v8334_v36  ;;  %v14553_v36 = vlaneseq }
 0xa5c   : > { %v8376_v16 = vpop.f32.mrf.mxu1 }
 0xa5d   : > { %vm8648_vm3 = vcmp.lt.s32.totalorder %v14553_v36, 256 }
 0xa5e   : > { %v8377_v28 = vpop.f32.mrf.mxu1 }
 0xa76   : > { %v8413_v35 = vpop.f32.mrf.mxu0 }
 0xa77   : > { %v8414_v45 = vadd.f32 %v8413_v35, %v8373_v15 }
 0xa78   : > { %v8454_v39 = vpop.f32.mrf.mxu1  ;;  %v8415_v47 = vpop.f32.mrf.mxu0 }
 0xa79   : > { %v8455_v18 = vadd.f32 %v8454_v39, %v8414_v45  ;;  %v8416_v57 = vadd.f32 %v8415_v47, %v8375_v24 }
 0xa7a   : > { %v8456_v41 = vpop.f32.mrf.mxu1  ;;  %v8417_v58 = vpop.f32.mrf.mxu0 }
 0xa7b   : > { %vm8461_vm0 = vcmp.ge.f32.partialorder %v8455_v18, 0.0  ;;  %v8463_v8 = vmul.f32 0.1, %v8455_v18  ;;  %v8457_v63 = vadd.f32 %v8456_v41, %v8416_v57  ;;  %v11363_v41 = vld [vmem:[%s14438_s11 + $0x10] sm:$0xff]  }
 0xa7c   : > { %v8458_v42 = vpop.f32.mrf.mxu1  ;;  %v8418_v9 = vpop.f32.mrf.mxu0 }
 0xa7d   : > { %v8465_v3 = vsel %vm8461_vm0, %v8455_v18, %v8463_v8  ;;  %vm8462_vm2 = vcmp.ge.f32.partialorder %v8457_v63, 0.0  ;;  %v8464_v12 = vmul.f32 0.1, %v8457_v63 }
 0xa7e   : > { %v8459_v21 = vpop.f32.mrf.mxu1  ;;  %v8467_v10 = vmax.f32 %v7306_v23, %v8465_v3 }
 0xa7f   : > { %v8466_v19 = vsel %vm8462_vm2, %v8457_v63, %v8464_v12 }
 0xa80   : > { %v8468_v25 = vmax.f32 %v7307_v7, %v8466_v19 }
 0xa82   : > { %9947 = vmatprep.subr.msk.mxu0 %vm8473_vm15, %v8468_v25  ;;  %9950 = vmatprep.subr.msk.mxu1 %vm8473_vm15, %v8468_v25 }
 0xa83   : > { %9948 = vmatpush1.msk.msra.mxu0 %vm8473_vm15, %v8467_v10  ;;  %9951 = vmatpush1.msk.msra.mxu1 %vm8473_vm15, %v8467_v10 }
 0xa84   : > { %9949 = vmatmul.mubr.msk.f32.vlgmr.msra.gmra.mxu0 %vm8469_vm1, %v14551_v27  ;;  %9952 = vmatmul.mubr.msk.f32.vlgmr.msra.gmra.mxu1 %vm8469_vm1, %v14552_v14 }
 0xa85   : > { %10469 = vmatprep.subr.bf16.mxu0 %v11342_v13  ;;  %10574 = vmatprep.subr.bf16.mxu1 %v14550_v33 }
 0xa86   : > { %10470 = vmatpush3.bf16.msra.mxu0 %v11343_v37  ;;  %10575 = vmatpush3.bf16.msra.mxu1 %v11358_v56 }
 0xa87   : > { %10471 = vmatprep.subr.bf16.mxu0 %v11344_v38  ;;  %10576 = vmatprep.subr.bf16.mxu1 %v14550_v33 }
 0xa88   : > { %10590 = vmatprep.mubr.msk.bf16.mxu1 %vm11523_vm4, %v14550_v33 }
 0xa8a   : > { %10472 = vmatpush3.bf16.msra.mxu0 %v11345_v54  ;;  %10577 = vmatpush3.bf16.msra.mxu1 %v11359_v46 }
 0xa8b   : > { %10473 = vmatprep.subr.bf16.mxu0 %v11346_v59  ;;  %10578 = vmatprep.subr.bf16.mxu1 %v14550_v33 }
 0xa8e   : > { %10474 = vmatpush3.bf16.msra.mxu0 %v11347_v61  ;;  %10579 = vmatpush3.bf16.msra.mxu1 %v11360_v0 }
 0xa8f   : > { %10475 = vmatprep.subr.bf16.mxu0 %v11348_v26  ;;  %10580 = vmatprep.subr.bf16.mxu1 %v14550_v33 }
 0xa92   : > { %10476 = vmatpush3.bf16.msra.mxu0 %v11349_v31  ;;  %10581 = vmatpush3.bf16.msra.mxu1 %v11361_v51 }
 0xa93   : > { %10477 = vmatprep.subr.bf16.mxu0 %v11350_v40  ;;  %10582 = vmatprep.subr.bf16.mxu1 %v14550_v33 }
 0xa96   : > { %10478 = vmatpush3.bf16.msra.mxu0 %v11351_v20  ;;  %10583 = vmatpush3.bf16.msra.mxu1 %v11362_v43 }
 0xa97   : > { %10479 = vmatprep.subr.bf16.mxu0 %v11352_v44  ;;  %10584 = vmatprep.subr.bf16.mxu1 %v14550_v33 }
 0xa9a   : > { %10480 = vmatpush3.bf16.msra.mxu0 %v11353_v50  ;;  %10585 = vmatpush3.bf16.msra.mxu1 %v11363_v41 }
 0xa9b   : > { %10481 = vmatprep.subr.bf16.mxu0 %v11354_v48  ;;  %10586 = vmatprep.subr.bf16.mxu1 %v14550_v33 }
 0xa9e   : > { %10482 = vmatpush3.bf16.msra.mxu0 %v11355_v4  ;;  %10587 = vmatpush3.bf16.msra.mxu1 %v11364_v55 }
 0xa9f   : > { %10483 = vmatprep.subr.bf16.mxu0 %v11356_v1  ;;  %10588 = vmatprep.subr.bf16.mxu1 %v14550_v33  ;;  %v8855_v33 = vld [vmem:[%s14439_s12] sm:$0x1] }
 0xaa2   : > { %10484 = vmatpush3.bf16.msra.mxu0 %v11357_v32  ;;  %10589 = vmatpush3.bf16.msra.mxu1 %v11365_v2 }
 0xb44   : > { %v8546_v62 = vpop.f32.mrf.mxu0  ;;  %v8620_v52 = vpop.f32.mrf.mxu1 }
 0xb45   : > { %v8625_v16 = vmax.f32 %v8546_v62, %v8620_v52 }
 0xb46   : > { %v8548_v6 = vpop.f32.mrf.mxu0  ;;  %v8622_v11 = vpop.f32.mrf.mxu1 }
 0xb47   : > { %v8626_v28 = vmax.f32 %v8548_v6, %v8622_v11 }
 0xb49   : > { %v8629_v22 = vcombine.low %v8625_v16, %v8626_v28 }
 0xb4b   : > { %v8636_v34 = vrot.slane %v8629_v22, %v8635_v30 }
 0xb4d   : > { %v8643_v15 = vrot.slane %v8636_v34, %v8635_v30 }
 0xb4f   : > { %8651 = vst.msk [vmem:[#allocation6 + $0x5] ss:$2 sm:$0x3] %vm8648_vm3, %v8643_v15 }
 0xb56   : > { %v8652_v35 = vld [vmem:[#allocation6 + $0x5] ss:$2 sm:$0x3] }
 0xb57   : > { %v8657_v39 = vrot.slane %v8652_v35, %v6369_v53  ;;  %v8661_v24 = vrot.slane %v8652_v35, %v6373_v29  ;;  %v8698_v29 = vld [vmem:[%s14437_s10] sm:$0x1] }
 0xb59   : > { %v8664_v45 = vpack.c.bf16 %v8657_v39, %v8657_v39  ;;  %v8665_v47 = vpack.c.bf16 %v8661_v24, %v8661_v24 }
 0xb5b   : > { %8827 = vmatprep.mubr.bf16.mxu0 %v8665_v47 }
 0xb5c   : > { %8828 = vmatmul.mubr.bf16.vlgmr.msra.gmra.mxu0 %v8664_v45 }
 0xc1c   : > { %v10485_v53 = vpop.f32.mrf.mxu0 }
 0xc1e   : > { %v10486_v18 = vpop.f32.mrf.mxu0 }
 0xc1f   : > { %v10487_v57 = vadd.f32 %v10486_v18, %v10485_v53 }
 0xc20   : > { %v10488_v58 = vpop.f32.mrf.mxu0 }
 0xc21   : > { %v8830_v42 = vadd.f32 %v10487_v57, %v8698_v29 }
 0xc22   : > { %v10489_v60 = vpop.f32.mrf.mxu0 }
 0xc23   : > { %vm8835_vm14 = vcmp.ge.f32.partialorder %v8830_v42, 0.0  ;;  %v8836_v8 = vmul.f32 0.1, %v8830_v42 }
 0xc25   : > { %v8837_v63 = vsel %vm8835_vm14, %v8830_v42, %v8836_v8 }
 0xc26   : > { %v8838_v9 = vpack.c.bf16 %v8837_v63, %v8837_v63 }
 0xc28   : > { %10591 = vmatmul.mubr.bf16.vlgmr.msra.gmra.mxu1 %v8838_v9 }
 0xce8   : > { %v8938_v21 = vpop.f32.mrf.mxu1 }
 0xce9   : > { %v8939_v23 = vadd.f32 %v8938_v21, %v8855_v33 }
 0xcea   : > { %v10592_v3 = vpop.f32.mrf.mxu1 }
 0xceb   : > { %8944 = vst [vmem:[%s12270_s20] sm:$0x1] %v8939_v23 }
 0xcec   : > { %v8941_v12 = vpop.f32.mrf.mxu1 }
 0xced   : > { %11422 = shalt.err (!%p11419_p3)
}
 0xcee   : > { %s11423_s20 = scalar_lea.hbm %s14383_s7, 16  ;;  %s11427_s21 = scalar_lea.hbm %s14440_s13, 32 }
 0xcef   : > { %p11424_p4 = scmp.ne.s32.totalorder %s14383_s7, %s11423_s20  ;;  %p11428_p8 = scmp.lt.s32.totalorder %s14383_s7, %s14440_s13 }
 0xcf0   : > { %p11429_p9 = scmp.lt.s32.totalorder %s11427_s21, %s11423_s20 }
 0xcf1   : > { %p11425_p7 = pnand %p11424_p4, %p11633_p5 }
 0xcf2   : > { %p11430_p10 = por %p11429_p9, %p11428_p8 }
 0xcf3   : > { %p11426_p6 = pneg %p11425_p7 }
 0xcf5   : > { %p11431_p11 = pnand %p11430_p10, %p11426_p6 }
 0xcf7   : > { %11434 = shalt.err (!%p11431_p11)
}
 0xcf8   : > { %10599 = dma.vmem_to_hbm [thread:$0]  (%p11633_p5), %s14385_s23, 16, %s14383_s7, %s8946_s16   ;;  %v10593_v10 = vpop.f32.mrf.mxu1 }
 0xcf9 PF: > { %p10611_p12 = scmp.ge.s32.totalorder %s11485_s28, 2  ;;  %s8970_s30 = sand.u32 1, %s11473_s25  }
 0xcfa   : > { %p14555_p13 = scmp.ne.s32.totalorder %s14488_s19, 0  ;;  %s8971_s15 = scalar_lea.sflag [#allocation13], %s8970_s30 }
 0xcfc   : > { %p10606_p0 = pnand %p10611_p12, %p14555_p13 }
 0xcfe   : > { %p10607_p1 = pneg %p10606_p0 }
 0xd00   : > { %11468 = dma.done.wait (%p10607_p1), %s8971_s15, 16  }
 0xd01   : > { %11470 = vsyncadd (%p10607_p1), %s8971_s15, 4294967280  ;;  %p24_p2 = scmp.ge.s32.totalorder %s11620_s14, 4   ;;  %s14556_s25 = smov %s11477_s26 }
 0xd02   : > { %s14557_s26 = smov %s11481_s27  ;;  %s14558_s27 = smov %s11631_s17 }
 0xd03   : > { %s14559_s28 = smov %s11620_s14  ;;  %26 = sbr.rel (!%p24_p2) target bundleno = 10 (0xa), region = 190 }
 0xd08   :  { %8975 = vsyncpa [#allocation12], 1 }
 0xd09   :  { %8977 = vsyncpa [#allocation12 + $0x1], 1 }
 0xd0a   :  { %8978 = vsyncpa [#allocation13], 1 }
 0xd0b   :  { %8980 = vsyncpa [#allocation13 + $0x1], 1 }

</bundles_post_ra>
